<compile_context>
chip_gen: v6e
topology: v6e:2x2x1
jax: 0.10.0
libtpu: 0.0.40
codegen_flags: <defaults>
</compile_context>

<pallas_src>
import jax
import jax.numpy as jnp
import numpy as np
from jax.experimental import pallas as pl
from jax.experimental.pallas import tpu as pltpu

IN_SIZE = 1
HID_SIZE = 30
OUT_SIZE = 1
LAYERS = 2
HP = 128       # per-gate padded width (one full vreg lane tile)
SUBLANE = 8    # batch padded to a full sublane tile


# ----------------------------------------------------------------------------- kernel
def _lstm_seq_kernel(x_ref, wih0_ref, whh0_ref, b0_ref, wih1_ref, whh1_ref, b1_ref,
                     wlin_ref, blin_ref,
                     y_ref, hn_ref, cn_ref,
                     inp0_ref):
    B = hn_ref.shape[1]
    T = x_ref.shape[0] // B

    # ---- hoisted constants (JAX does not CSE broadcast_in_dim; keep them out of the loop) ----
    lane = jax.lax.broadcasted_iota(jnp.int32, (B, 4 * HP), 1)
    is_g = (lane >= 2 * HP) & (lane < 3 * HP)               # the tanh ('g') gate block
    gate_scale = jnp.where(is_g, 1.0, 0.5).astype(jnp.float32)
    gate_add = jnp.where(is_g, 0.0, 0.5).astype(jnp.float32)
    b1_b = jnp.broadcast_to(b1_ref[...], (B, 4 * HP))

    # ---- layer-0 input term for all timesteps at once (state-independent, off critical path) --
    inp0_ref[...] = x_ref[...] * wih0_ref[...] + b0_ref[...]        # (T*B, 4*HP)

    def gate_update(gates, c):
        # sigmoid(x) = 0.5*tanh(0.5*x)+0.5  ->  one EUP tanh pass over all four gate blocks,
        # then a per-gate affine fixup on the VPU.  Gate order matches PyTorch: i, f, g, o.
        t = jnp.tanh(gates * gate_scale)
        act = t * gate_scale + gate_add
        i = act[:, 0 * HP:1 * HP]
        f = act[:, 1 * HP:2 * HP]
        g = act[:, 2 * HP:3 * HP]
        o = act[:, 3 * HP:4 * HP]
        c_new = f * c + i * g
        h_new = o * jnp.tanh(c_new)
        return h_new, c_new

    zeros = jnp.zeros((B, HP), jnp.float32)
    h0, c0, h1, c1 = zeros, zeros, zeros, zeros
    h1_list = []

    # TODO(synk): for long sequences, chunk T with a fori_loop to bound unrolled code size.
    for t in range(T):
        # Layer-1 recurrent term: depends only on h1[t-1] -> off this step's serial chain
        # (the scheduler overlaps it with layer-0 of the same step).
        rec1 = jnp.dot(h1, whh1_ref[...], preferred_element_type=jnp.float32) + b1_b

        # Layer 0: precomputed input/bias term + exactly one MXU dot on the critical path.
        gates0 = (inp0_ref[t * B:(t + 1) * B, :]
                  + jnp.dot(h0, whh0_ref[...], preferred_element_type=jnp.float32))
        h0, c0 = gate_update(gates0, c0)

        # Layer 1: only the h0-dependent dot sits on the critical path.
        gates1 = rec1 + jnp.dot(h0, wih1_ref[...], preferred_element_type=jnp.float32)
        h1, c1 = gate_update(gates1, c1)

        h1_list.append(h1)

    # Linear head (OUT_SIZE == 1): VPU multiply + lane reduction over all timesteps at once.
    h1_all = jnp.concatenate(h1_list, axis=0)                       # (T*B, HP), t-major rows
    y_ref[...] = (jnp.sum(h1_all * wlin_ref[...], axis=-1, keepdims=True)
                  + blin_ref[...])

    # Final LSTM states (padded lanes / padded batch rows sliced off in the wrapper).
    hn_ref[0] = h0
    hn_ref[1] = h1
    cn_ref[0] = c0
    cn_ref[1] = c1


# ----------------------------------------------------------------------- pallas wrapper
def lstm_linear_pallas(x_tm, p):
    """x_tm: (T, B, I) float32 time-major input.

    Returns y_tm (T, B, OUT_SIZE), h_n (LAYERS, B, H), c_n (LAYERS, B, H).
    """
    T, B, _ = x_tm.shape
    B_pad = max(SUBLANE, -(-B // SUBLANE) * SUBLANE)
    x_pad = jnp.zeros((T, B_pad, IN_SIZE), jnp.float32).at[:, :B].set(x_tm)
    x_flat = x_pad.reshape(T * B_pad, IN_SIZE)

    vmem = pl.BlockSpec(memory_space=pltpu.MemorySpace.VMEM)
    out_shape = (
        jax.ShapeDtypeStruct((T * B_pad, OUT_SIZE), jnp.float32),   # linear output, t-major rows
        jax.ShapeDtypeStruct((LAYERS, B_pad, HP), jnp.float32),     # h_n (padded)
        jax.ShapeDtypeStruct((LAYERS, B_pad, HP), jnp.float32),     # c_n (padded)
    )
    y_flat, hn_pad, cn_pad = pl.pallas_call(
        _lstm_seq_kernel,
        out_shape=out_shape,
        in_specs=[vmem] * 9,
        out_specs=(vmem, vmem, vmem),
        scratch_shapes=[pltpu.VMEM((T * B_pad, 4 * HP), jnp.float32)],  # precomputed input term
    )(x_flat, p["wih0_row"], p["whh0_p"], p["b0_p"],
      p["wih1_p"], p["whh1_p"], p["b1_p"], p["wlin_row"], p["blin_p"])

    y_tm = y_flat.reshape(T, B_pad, OUT_SIZE)[:, :B]
    h_n = hn_pad[:, :B, :HID_SIZE]
    c_n = cn_pad[:, :B, :HID_SIZE]
    return y_tm, h_n, c_n


# -------------------------------------------------------------------------- parameters
def init_raw_params(key):
    """PyTorch-layout parameters, U(-1/sqrt(H), 1/sqrt(H)) like nn.LSTM / nn.Linear."""
    k = 1.0 / np.sqrt(HID_SIZE)
    keys = jax.random.split(key, 10)
    u = lambda kk, shape: jax.random.uniform(kk, shape, jnp.float32, -k, k)
    return dict(
        w_ih0=u(keys[0], (4 * HID_SIZE, IN_SIZE)),
        w_hh0=u(keys[1], (4 * HID_SIZE, HID_SIZE)),
        b_ih0=u(keys[2], (4 * HID_SIZE,)),
        b_hh0=u(keys[3], (4 * HID_SIZE,)),
        w_ih1=u(keys[4], (4 * HID_SIZE, HID_SIZE)),
        w_hh1=u(keys[5], (4 * HID_SIZE, HID_SIZE)),
        b_ih1=u(keys[6], (4 * HID_SIZE,)),
        b_hh1=u(keys[7], (4 * HID_SIZE,)),
        w_lin=u(keys[8], (OUT_SIZE, HID_SIZE)),
        b_lin=u(keys[9], (OUT_SIZE,)),
    )


def _pad_gate_cols(w):
    """(K, 4*H) with gates i,f,g,o contiguous -> (K, 4*HP), each gate in its own 128-lane block."""
    K = w.shape[0]
    out = np.zeros((K, 4 * HP), np.float32)
    for g in range(4):
        out[:, g * HP:g * HP + HID_SIZE] = w[:, g * HID_SIZE:(g + 1) * HID_SIZE]
    return out


def prepare_kernel_params(raw):
    H = HID_SIZE
    wih0_row = _pad_gate_cols(np.asarray(raw["w_ih0"], np.float32).T)      # (1, 4*HP)

    whh0_p = np.zeros((HP, 4 * HP), np.float32)
    whh0_p[:H] = _pad_gate_cols(np.asarray(raw["w_hh0"], np.float32).T)    # (HP, 4*HP)

    wih1_p = np.zeros((HP, 4 * HP), np.float32)
    wih1_p[:H] = _pad_gate_cols(np.asarray(raw["w_ih1"], np.float32).T)    # (HP, 4*HP)

    whh1_p = np.zeros((HP, 4 * HP), np.float32)
    whh1_p[:H] = _pad_gate_cols(np.asarray(raw["w_hh1"], np.float32).T)    # (HP, 4*HP)

    b0_p = _pad_gate_cols((np.asarray(raw["b_ih0"], np.float32)
                           + np.asarray(raw["b_hh0"], np.float32))[None, :])
    b1_p = _pad_gate_cols((np.asarray(raw["b_ih1"], np.float32)
                           + np.asarray(raw["b_hh1"], np.float32))[None, :])

    wlin_row = np.zeros((1, HP), np.float32)
    wlin_row[0, :H] = np.asarray(raw["w_lin"], np.float32)[0]              # (1, HP)
    blin_p = np.asarray(raw["b_lin"], np.float32)[None, :]                 # (1, 1)

    return {k: jnp.asarray(v) for k, v in dict(
        wih0_row=wih0_row, whh0_p=whh0_p, b0_p=b0_p,
        wih1_p=wih1_p, whh1_p=whh1_p, b1_p=b1_p,
        wlin_row=wlin_row, blin_p=blin_p).items()}


# ------------------------------------------------------------------------ module forward
def simple_lstm_sequence_forward(data, kernel_params, future=0):
    """Mirrors SimpleLSTMSequence.forward for the runnable (future == 0) path.

    Returns (hidden, outputs) with hidden = (h_n, c_n), each (layers, B, H), and
    outputs = torch.stack([linear(lstm_out)], 1).squeeze(2).
    """
    # TODO(synk): the reference module's `for i in range(future)` loop is unrunnable
    # (uses undefined `output`, applies Linear to the (h, c) tuple); only future == 0.
    assert future == 0, "future > 0 path of the PyTorch reference is a latent bug"
    B, T, _ = data.shape
    x_tm = jnp.transpose(data, (1, 0, 2)).astype(jnp.float32)      # (T, B, I)
    y_tm, h_n, c_n = lstm_linear_pallas(x_tm, kernel_params)
    out = jnp.transpose(y_tm, (1, 0, 2))                           # (B, T, O)
    outputs = out[:, None, :, :]                                   # torch.stack([out], 1)
    if outputs.shape[2] == 1:                                      # .squeeze(2)
        outputs = jnp.squeeze(outputs, axis=2)
    return (h_n, c_n), outputs


# ---------------------------------------------------------------------- pure-JAX reference
def _ref_forward(data, raw):
    H = HID_SIZE
    wih0, whh0 = jnp.asarray(raw["w_ih0"]).T, jnp.asarray(raw["w_hh0"]).T
    wih1, whh1 = jnp.asarray(raw["w_ih1"]).T, jnp.asarray(raw["w_hh1"]).T
    b0 = (raw["b_ih0"] + raw["b_hh0"])[None, :]
    b1 = (raw["b_ih1"] + raw["b_hh1"])[None, :]
    wlin, blin = jnp.asarray(raw["w_lin"]).T, raw["b_lin"][None, :]

    x_tm = jnp.transpose(data, (1, 0, 2)).astype(jnp.float32)
    _, B, _ = x_tm.shape

    def cell(x, h, c, wih, whh, b):
        gates = x @ wih + h @ whh + b
        i = jax.nn.sigmoid(gates[:, :H])
        f = jax.nn.sigmoid(gates[:, H:2 * H])
        g = jnp.tanh(gates[:, 2 * H:3 * H])
        o = jax.nn.sigmoid(gates[:, 3 * H:])
        c = f * c + i * g
        return o * jnp.tanh(c), c

    def step(carry, x_t):
        h0, c0, h1, c1 = carry
        h0, c0 = cell(x_t, h0, c0, wih0, whh0, b0)
        h1, c1 = cell(h0, h1, c1, wih1, whh1, b1)
        y = h1 @ wlin + blin
        return (h0, c0, h1, c1), y

    z = jnp.zeros((B, H), jnp.float32)
    (h0, c0, h1, c1), ys = jax.lax.scan(step, (z, z, z, z), x_tm)
    out = jnp.transpose(ys, (1, 0, 2))
    outputs = out[:, None, :, :]
    if outputs.shape[2] == 1:
        outputs = jnp.squeeze(outputs, axis=2)
    return (jnp.stack([h0, h1]), jnp.stack([c0, c1])), outputs


if __name__ == "__main__":
    key = jax.random.PRNGKey(0)
    pkey, dkey = jax.random.split(key)
    raw = init_raw_params(pkey)
    kparams = prepare_kernel_params(raw)

    B, T = 2, 8
    data = jax.random.normal(dkey, (B, T, IN_SIZE), dtype=jnp.float32)

    (h_n, c_n), outputs = simple_lstm_sequence_forward(data, kparams, future=0)
    jax.block_until_ready((h_n, c_n, outputs))

    (h_ref, c_ref), out_ref = _ref_forward(data, raw)
    np.testing.assert_allclose(np.asarray(outputs), np.asarray(out_ref), rtol=1e-4, atol=1e-4)
    np.testing.assert_allclose(np.asarray(h_n), np.asarray(h_ref), rtol=1e-4, atol=1e-4)
    np.testing.assert_allclose(np.asarray(c_n), np.asarray(c_ref), rtol=1e-4, atol=1e-4)

    print("KERNEL_OK")
</pallas_src>

<mosaic_0001>
module attributes {stable_mosaic.version = 11 : i64} {
  func.func @_lstm_seq_kernel(%arg0: memref<64x1xf32, #tpu.memory_space<vmem>>, %arg1: memref<1x512xf32, #tpu.memory_space<vmem>>, %arg2: memref<128x512xf32, #tpu.memory_space<vmem>>, %arg3: memref<1x512xf32, #tpu.memory_space<vmem>>, %arg4: memref<128x512xf32, #tpu.memory_space<vmem>>, %arg5: memref<128x512xf32, #tpu.memory_space<vmem>>, %arg6: memref<1x512xf32, #tpu.memory_space<vmem>>, %arg7: memref<1x128xf32, #tpu.memory_space<vmem>>, %arg8: memref<1x1xf32, #tpu.memory_space<vmem>>, %arg9: memref<64x1xf32, #tpu.memory_space<vmem>>, %arg10: memref<2x8x128xf32, #tpu.memory_space<vmem>>, %arg11: memref<2x8x128xf32, #tpu.memory_space<vmem>>, %arg12: memref<64x512xf32, #tpu.memory_space<vmem>>) attributes {dimension_semantics = [], scalar_prefetch = 0 : i64, scratch_operands = 1 : i64, tpu.core_type = #tpu.core_type<tc>} {
    %0 = tpu.iota {dimensions = array<i32: 1>} : vector<8x512xi32>
    %c256_i32 = arith.constant 256 : i32
    %1 = vector.broadcast %c256_i32 : i32 to vector<8x512xi32>
    %2 = arith.cmpi sge, %0, %1 : vector<8x512xi32>
    %c384_i32 = arith.constant 384 : i32
    %3 = vector.broadcast %c384_i32 : i32 to vector<8x512xi32>
    %4 = arith.cmpi slt, %0, %3 : vector<8x512xi32>
    %5 = arith.andi %2, %4 : vector<8x512xi1>
    %cst = arith.constant 1.000000e+00 : f32
    %cst_0 = arith.constant 5.000000e-01 : f32
    %6 = vector.broadcast %cst : f32 to vector<8x512xf32>
    %7 = vector.broadcast %cst_0 : f32 to vector<8x512xf32>
    %8 = arith.select %5, %6, %7 : vector<8x512xi1>, vector<8x512xf32>
    %cst_1 = arith.constant 0.000000e+00 : f32
    %cst_2 = arith.constant 5.000000e-01 : f32
    %9 = vector.broadcast %cst_1 : f32 to vector<8x512xf32>
    %10 = vector.broadcast %cst_2 : f32 to vector<8x512xf32>
    %11 = arith.select %5, %9, %10 : vector<8x512xi1>, vector<8x512xf32>
    %c0 = arith.constant 0 : index
    %c0_3 = arith.constant 0 : index
    %12 = vector.load %arg6[%c0, %c0_3] : memref<1x512xf32, #tpu.memory_space<vmem>>, vector<1x512xf32>
    %13 = vector.shape_cast %12 : vector<1x512xf32> to vector<1x512xf32>
    %14 = vector.broadcast %13 : vector<1x512xf32> to vector<8x512xf32>
    %c0_4 = arith.constant 0 : index
    %c0_5 = arith.constant 0 : index
    %15 = vector.load %arg0[%c0_4, %c0_5] : memref<64x1xf32, #tpu.memory_space<vmem>>, vector<64x1xf32>
    %c0_6 = arith.constant 0 : index
    %c0_7 = arith.constant 0 : index
    %16 = vector.load %arg1[%c0_6, %c0_7] : memref<1x512xf32, #tpu.memory_space<vmem>>, vector<1x512xf32>
    %17 = vector.broadcast %15 : vector<64x1xf32> to vector<64x512xf32>
    %18 = vector.broadcast %16 : vector<1x512xf32> to vector<64x512xf32>
    %19 = arith.mulf %17, %18 : vector<64x512xf32>
    %c0_8 = arith.constant 0 : index
    %c0_9 = arith.constant 0 : index
    %20 = vector.load %arg3[%c0_8, %c0_9] : memref<1x512xf32, #tpu.memory_space<vmem>>, vector<1x512xf32>
    %21 = vector.broadcast %20 : vector<1x512xf32> to vector<64x512xf32>
    %22 = arith.addf %19, %21 : vector<64x512xf32>
    %c0_10 = arith.constant 0 : index
    %c0_11 = arith.constant 0 : index
    %23 = vector.load %arg12[%c0_10, %c0_11] : memref<64x512xf32, #tpu.memory_space<vmem>>, vector<64x512xf32>
    tpu.vector_store %arg12[%c0_10, %c0_11], %22 {strides = array<i32>} : memref<64x512xf32, #tpu.memory_space<vmem>>, vector<64x512xf32>,
    %cst_12 = arith.constant 0.000000e+00 : f32
    %24 = vector.broadcast %cst_12 : f32 to vector<8x128xf32>
    %c0_13 = arith.constant 0 : index
    %c0_14 = arith.constant 0 : index
    %25 = vector.load %arg5[%c0_13, %c0_14] : memref<128x512xf32, #tpu.memory_space<vmem>>, vector<128x512xf32>
    %cst_15 = arith.constant dense<0.000000e+00> : vector<8x512xf32>
    %26 = tpu.matmul %24, %25, %cst_15 {dimension_numbers = #tpu.dot_dimension_numbers<[1], [0], [0], [1], [0, 0, 1, 1], [], []>} : vector<8x128xf32>, vector<128x512xf32>, vector<8x512xf32> -> vector<8x512xf32>
    %27 = arith.addf %26, %14 : vector<8x512xf32>
    %c0_16 = arith.constant 0 : index
    %c0_17 = arith.constant 0 : index
    %28 = vector.load %arg12[%c0_16, %c0_17] : memref<64x512xf32, #tpu.memory_space<vmem>>, vector<8x512xf32>
    %c0_18 = arith.constant 0 : index
    %c0_19 = arith.constant 0 : index
    %29 = vector.load %arg2[%c0_18, %c0_19] : memref<128x512xf32, #tpu.memory_space<vmem>>, vector<128x512xf32>
    %cst_20 = arith.constant dense<0.000000e+00> : vector<8x512xf32>
    %30 = tpu.matmul %24, %29, %cst_20 {dimension_numbers = #tpu.dot_dimension_numbers<[1], [0], [0], [1], [0, 0, 1, 1], [], []>} : vector<8x128xf32>, vector<128x512xf32>, vector<8x512xf32> -> vector<8x512xf32>
    %31 = arith.addf %28, %30 : vector<8x512xf32>
    %32 = arith.mulf %31, %8 : vector<8x512xf32>
    %33 = math.tanh %32 : vector<8x512xf32>
    %34 = arith.mulf %33, %8 : vector<8x512xf32>
    %35 = arith.addf %34, %11 : vector<8x512xf32>
    %36 = vector.extract_strided_slice %35 {offsets = [0, 0], sizes = [8, 128], strides = [1, 1]} : vector<8x512xf32> to vector<8x128xf32>
    %37 = vector.extract_strided_slice %35 {offsets = [0, 128], sizes = [8, 128], strides = [1, 1]} : vector<8x512xf32> to vector<8x128xf32>
    %38 = vector.extract_strided_slice %35 {offsets = [0, 256], sizes = [8, 128], strides = [1, 1]} : vector<8x512xf32> to vector<8x128xf32>
    %39 = vector.extract_strided_slice %35 {offsets = [0, 384], sizes = [8, 128], strides = [1, 1]} : vector<8x512xf32> to vector<8x128xf32>
    %40 = arith.mulf %37, %24 : vector<8x128xf32>
    %41 = arith.mulf %36, %38 : vector<8x128xf32>
    %42 = arith.addf %40, %41 : vector<8x128xf32>
    %43 = math.tanh %42 : vector<8x128xf32>
    %44 = arith.mulf %39, %43 : vector<8x128xf32>
    %c0_21 = arith.constant 0 : index
    %c0_22 = arith.constant 0 : index
    %45 = vector.load %arg4[%c0_21, %c0_22] : memref<128x512xf32, #tpu.memory_space<vmem>>, vector<128x512xf32>
    %cst_23 = arith.constant dense<0.000000e+00> : vector<8x512xf32>
    %46 = tpu.matmul %44, %45, %cst_23 {dimension_numbers = #tpu.dot_dimension_numbers<[1], [0], [0], [1], [0, 0, 1, 1], [], []>} : vector<8x128xf32>, vector<128x512xf32>, vector<8x512xf32> -> vector<8x512xf32>
    %47 = arith.addf %27, %46 : vector<8x512xf32>
    %48 = arith.mulf %47, %8 : vector<8x512xf32>
    %49 = math.tanh %48 : vector<8x512xf32>
    %50 = arith.mulf %49, %8 : vector<8x512xf32>
    %51 = arith.addf %50, %11 : vector<8x512xf32>
    %52 = vector.extract_strided_slice %51 {offsets = [0, 0], sizes = [8, 128], strides = [1, 1]} : vector<8x512xf32> to vector<8x128xf32>
    %53 = vector.extract_strided_slice %51 {offsets = [0, 128], sizes = [8, 128], strides = [1, 1]} : vector<8x512xf32> to vector<8x128xf32>
    %54 = vector.extract_strided_slice %51 {offsets = [0, 256], sizes = [8, 128], strides = [1, 1]} : vector<8x512xf32> to vector<8x128xf32>
    %55 = vector.extract_strided_slice %51 {offsets = [0, 384], sizes = [8, 128], strides = [1, 1]} : vector<8x512xf32> to vector<8x128xf32>
    %56 = arith.mulf %53, %24 : vector<8x128xf32>
    %57 = arith.mulf %52, %54 : vector<8x128xf32>
    %58 = arith.addf %56, %57 : vector<8x128xf32>
    %59 = math.tanh %58 : vector<8x128xf32>
    %60 = arith.mulf %55, %59 : vector<8x128xf32>
    %c0_24 = arith.constant 0 : index
    %c0_25 = arith.constant 0 : index
    %61 = vector.load %arg5[%c0_24, %c0_25] : memref<128x512xf32, #tpu.memory_space<vmem>>, vector<128x512xf32>
    %cst_26 = arith.constant dense<0.000000e+00> : vector<8x512xf32>
    %62 = tpu.matmul %60, %61, %cst_26 {dimension_numbers = #tpu.dot_dimension_numbers<[1], [0], [0], [1], [0, 0, 1, 1], [], []>} : vector<8x128xf32>, vector<128x512xf32>, vector<8x512xf32> -> vector<8x512xf32>
    %63 = arith.addf %62, %14 : vector<8x512xf32>
    %c8 = arith.constant 8 : index
    %c0_27 = arith.constant 0 : index
    %64 = vector.load %arg12[%c8, %c0_27] : memref<64x512xf32, #tpu.memory_space<vmem>>, vector<8x512xf32>
    %c0_28 = arith.constant 0 : index
    %c0_29 = arith.constant 0 : index
    %65 = vector.load %arg2[%c0_28, %c0_29] : memref<128x512xf32, #tpu.memory_space<vmem>>, vector<128x512xf32>
    %cst_30 = arith.constant dense<0.000000e+00> : vector<8x512xf32>
    %66 = tpu.matmul %44, %65, %cst_30 {dimension_numbers = #tpu.dot_dimension_numbers<[1], [0], [0], [1], [0, 0, 1, 1], [], []>} : vector<8x128xf32>, vector<128x512xf32>, vector<8x512xf32> -> vector<8x512xf32>
    %67 = arith.addf %64, %66 : vector<8x512xf32>
    %68 = arith.mulf %67, %8 : vector<8x512xf32>
    %69 = math.tanh %68 : vector<8x512xf32>
    %70 = arith.mulf %69, %8 : vector<8x512xf32>
    %71 = arith.addf %70, %11 : vector<8x512xf32>
    %72 = vector.extract_strided_slice %71 {offsets = [0, 0], sizes = [8, 128], strides = [1, 1]} : vector<8x512xf32> to vector<8x128xf32>
    %73 = vector.extract_strided_slice %71 {offsets = [0, 128], sizes = [8, 128], strides = [1, 1]} : vector<8x512xf32> to vector<8x128xf32>
    %74 = vector.extract_strided_slice %71 {offsets = [0, 256], sizes = [8, 128], strides = [1, 1]} : vector<8x512xf32> to vector<8x128xf32>
    %75 = vector.extract_strided_slice %71 {offsets = [0, 384], sizes = [8, 128], strides = [1, 1]} : vector<8x512xf32> to vector<8x128xf32>
    %76 = arith.mulf %73, %42 : vector<8x128xf32>
    %77 = arith.mulf %72, %74 : vector<8x128xf32>
    %78 = arith.addf %76, %77 : vector<8x128xf32>
    %79 = math.tanh %78 : vector<8x128xf32>
    %80 = arith.mulf %75, %79 : vector<8x128xf32>
    %c0_31 = arith.constant 0 : index
    %c0_32 = arith.constant 0 : index
    %81 = vector.load %arg4[%c0_31, %c0_32] : memref<128x512xf32, #tpu.memory_space<vmem>>, vector<128x512xf32>
    %cst_33 = arith.constant dense<0.000000e+00> : vector<8x512xf32>
    %82 = tpu.matmul %80, %81, %cst_33 {dimension_numbers = #tpu.dot_dimension_numbers<[1], [0], [0], [1], [0, 0, 1, 1], [], []>} : vector<8x128xf32>, vector<128x512xf32>, vector<8x512xf32> -> vector<8x512xf32>
    %83 = arith.addf %63, %82 : vector<8x512xf32>
    %84 = arith.mulf %83, %8 : vector<8x512xf32>
    %85 = math.tanh %84 : vector<8x512xf32>
    %86 = arith.mulf %85, %8 : vector<8x512xf32>
    %87 = arith.addf %86, %11 : vector<8x512xf32>
    %88 = vector.extract_strided_slice %87 {offsets = [0, 0], sizes = [8, 128], strides = [1, 1]} : vector<8x512xf32> to vector<8x128xf32>
    %89 = vector.extract_strided_slice %87 {offsets = [0, 128], sizes = [8, 128], strides = [1, 1]} : vector<8x512xf32> to vector<8x128xf32>
    %90 = vector.extract_strided_slice %87 {offsets = [0, 256], sizes = [8, 128], strides = [1, 1]} : vector<8x512xf32> to vector<8x128xf32>
    %91 = vector.extract_strided_slice %87 {offsets = [0, 384], sizes = [8, 128], strides = [1, 1]} : vector<8x512xf32> to vector<8x128xf32>
    %92 = arith.mulf %89, %58 : vector<8x128xf32>
    %93 = arith.mulf %88, %90 : vector<8x128xf32>
    %94 = arith.addf %92, %93 : vector<8x128xf32>
    %95 = math.tanh %94 : vector<8x128xf32>
    %96 = arith.mulf %91, %95 : vector<8x128xf32>
    %c0_34 = arith.constant 0 : index
    %c0_35 = arith.constant 0 : index
    %97 = vector.load %arg5[%c0_34, %c0_35] : memref<128x512xf32, #tpu.memory_space<vmem>>, vector<128x512xf32>
    %cst_36 = arith.constant dense<0.000000e+00> : vector<8x512xf32>
    %98 = tpu.matmul %96, %97, %cst_36 {dimension_numbers = #tpu.dot_dimension_numbers<[1], [0], [0], [1], [0, 0, 1, 1], [], []>} : vector<8x128xf32>, vector<128x512xf32>, vector<8x512xf32> -> vector<8x512xf32>
    %99 = arith.addf %98, %14 : vector<8x512xf32>
    %c16 = arith.constant 16 : index
    %c0_37 = arith.constant 0 : index
    %100 = vector.load %arg12[%c16, %c0_37] : memref<64x512xf32, #tpu.memory_space<vmem>>, vector<8x512xf32>
    %c0_38 = arith.constant 0 : index
    %c0_39 = arith.constant 0 : index
    %101 = vector.load %arg2[%c0_38, %c0_39] : memref<128x512xf32, #tpu.memory_space<vmem>>, vector<128x512xf32>
    %cst_40 = arith.constant dense<0.000000e+00> : vector<8x512xf32>
    %102 = tpu.matmul %80, %101, %cst_40 {dimension_numbers = #tpu.dot_dimension_numbers<[1], [0], [0], [1], [0, 0, 1, 1], [], []>} : vector<8x128xf32>, vector<128x512xf32>, vector<8x512xf32> -> vector<8x512xf32>
    %103 = arith.addf %100, %102 : vector<8x512xf32>
    %104 = arith.mulf %103, %8 : vector<8x512xf32>
    %105 = math.tanh %104 : vector<8x512xf32>
    %106 = arith.mulf %105, %8 : vector<8x512xf32>
    %107 = arith.addf %106, %11 : vector<8x512xf32>
    %108 = vector.extract_strided_slice %107 {offsets = [0, 0], sizes = [8, 128], strides = [1, 1]} : vector<8x512xf32> to vector<8x128xf32>
    %109 = vector.extract_strided_slice %107 {offsets = [0, 128], sizes = [8, 128], strides = [1, 1]} : vector<8x512xf32> to vector<8x128xf32>
    %110 = vector.extract_strided_slice %107 {offsets = [0, 256], sizes = [8, 128], strides = [1, 1]} : vector<8x512xf32> to vector<8x128xf32>
    %111 = vector.extract_strided_slice %107 {offsets = [0, 384], sizes = [8, 128], strides = [1, 1]} : vector<8x512xf32> to vector<8x128xf32>
    %112 = arith.mulf %109, %78 : vector<8x128xf32>
    %113 = arith.mulf %108, %110 : vector<8x128xf32>
    %114 = arith.addf %112, %113 : vector<8x128xf32>
    %115 = math.tanh %114 : vector<8x128xf32>
    %116 = arith.mulf %111, %115 : vector<8x128xf32>
    %c0_41 = arith.constant 0 : index
    %c0_42 = arith.constant 0 : index
    %117 = vector.load %arg4[%c0_41, %c0_42] : memref<128x512xf32, #tpu.memory_space<vmem>>, vector<128x512xf32>
    %cst_43 = arith.constant dense<0.000000e+00> : vector<8x512xf32>
    %118 = tpu.matmul %116, %117, %cst_43 {dimension_numbers = #tpu.dot_dimension_numbers<[1], [0], [0], [1], [0, 0, 1, 1], [], []>} : vector<8x128xf32>, vector<128x512xf32>, vector<8x512xf32> -> vector<8x512xf32>
    %119 = arith.addf %99, %118 : vector<8x512xf32>
    %120 = arith.mulf %119, %8 : vector<8x512xf32>
    %121 = math.tanh %120 : vector<8x512xf32>
    %122 = arith.mulf %121, %8 : vector<8x512xf32>
    %123 = arith.addf %122, %11 : vector<8x512xf32>
    %124 = vector.extract_strided_slice %123 {offsets = [0, 0], sizes = [8, 128], strides = [1, 1]} : vector<8x512xf32> to vector<8x128xf32>
    %125 = vector.extract_strided_slice %123 {offsets = [0, 128], sizes = [8, 128], strides = [1, 1]} : vector<8x512xf32> to vector<8x128xf32>
    %126 = vector.extract_strided_slice %123 {offsets = [0, 256], sizes = [8, 128], strides = [1, 1]} : vector<8x512xf32> to vector<8x128xf32>
    %127 = vector.extract_strided_slice %123 {offsets = [0, 384], sizes = [8, 128], strides = [1, 1]} : vector<8x512xf32> to vector<8x128xf32>
    %128 = arith.mulf %125, %94 : vector<8x128xf32>
    %129 = arith.mulf %124, %126 : vector<8x128xf32>
    %130 = arith.addf %128, %129 : vector<8x128xf32>
    %131 = math.tanh %130 : vector<8x128xf32>
    %132 = arith.mulf %127, %131 : vector<8x128xf32>
    %c0_44 = arith.constant 0 : index
    %c0_45 = arith.constant 0 : index
    %133 = vector.load %arg5[%c0_44, %c0_45] : memref<128x512xf32, #tpu.memory_space<vmem>>, vector<128x512xf32>
    %cst_46 = arith.constant dense<0.000000e+00> : vector<8x512xf32>
    %134 = tpu.matmul %132, %133, %cst_46 {dimension_numbers = #tpu.dot_dimension_numbers<[1], [0], [0], [1], [0, 0, 1, 1], [], []>} : vector<8x128xf32>, vector<128x512xf32>, vector<8x512xf32> -> vector<8x512xf32>
    %135 = arith.addf %134, %14 : vector<8x512xf32>
    %c24 = arith.constant 24 : index
    %c0_47 = arith.constant 0 : index
    %136 = vector.load %arg12[%c24, %c0_47] : memref<64x512xf32, #tpu.memory_space<vmem>>, vector<8x512xf32>
    %c0_48 = arith.constant 0 : index
    %c0_49 = arith.constant 0 : index
    %137 = vector.load %arg2[%c0_48, %c0_49] : memref<128x512xf32, #tpu.memory_space<vmem>>, vector<128x512xf32>
    %cst_50 = arith.constant dense<0.000000e+00> : vector<8x512xf32>
    %138 = tpu.matmul %116, %137, %cst_50 {dimension_numbers = #tpu.dot_dimension_numbers<[1], [0], [0], [1], [0, 0, 1, 1], [], []>} : vector<8x128xf32>, vector<128x512xf32>, vector<8x512xf32> -> vector<8x512xf32>
    %139 = arith.addf %136, %138 : vector<8x512xf32>
    %140 = arith.mulf %139, %8 : vector<8x512xf32>
    %141 = math.tanh %140 : vector<8x512xf32>
    %142 = arith.mulf %141, %8 : vector<8x512xf32>
    %143 = arith.addf %142, %11 : vector<8x512xf32>
    %144 = vector.extract_strided_slice %143 {offsets = [0, 0], sizes = [8, 128], strides = [1, 1]} : vector<8x512xf32> to vector<8x128xf32>
    %145 = vector.extract_strided_slice %143 {offsets = [0, 128], sizes = [8, 128], strides = [1, 1]} : vector<8x512xf32> to vector<8x128xf32>
    %146 = vector.extract_strided_slice %143 {offsets = [0, 256], sizes = [8, 128], strides = [1, 1]} : vector<8x512xf32> to vector<8x128xf32>
    %147 = vector.extract_strided_slice %143 {offsets = [0, 384], sizes = [8, 128], strides = [1, 1]} : vector<8x512xf32> to vector<8x128xf32>
    %148 = arith.mulf %145, %114 : vector<8x128xf32>
    %149 = arith.mulf %144, %146 : vector<8x128xf32>
    %150 = arith.addf %148, %149 : vector<8x128xf32>
    %151 = math.tanh %150 : vector<8x128xf32>
    %152 = arith.mulf %147, %151 : vector<8x128xf32>
    %c0_51 = arith.constant 0 : index
    %c0_52 = arith.constant 0 : index
    %153 = vector.load %arg4[%c0_51, %c0_52] : memref<128x512xf32, #tpu.memory_space<vmem>>, vector<128x512xf32>
    %cst_53 = arith.constant dense<0.000000e+00> : vector<8x512xf32>
    %154 = tpu.matmul %152, %153, %cst_53 {dimension_numbers = #tpu.dot_dimension_numbers<[1], [0], [0], [1], [0, 0, 1, 1], [], []>} : vector<8x128xf32>, vector<128x512xf32>, vector<8x512xf32> -> vector<8x512xf32>
    %155 = arith.addf %135, %154 : vector<8x512xf32>
    %156 = arith.mulf %155, %8 : vector<8x512xf32>
    %157 = math.tanh %156 : vector<8x512xf32>
    %158 = arith.mulf %157, %8 : vector<8x512xf32>
    %159 = arith.addf %158, %11 : vector<8x512xf32>
    %160 = vector.extract_strided_slice %159 {offsets = [0, 0], sizes = [8, 128], strides = [1, 1]} : vector<8x512xf32> to vector<8x128xf32>
    %161 = vector.extract_strided_slice %159 {offsets = [0, 128], sizes = [8, 128], strides = [1, 1]} : vector<8x512xf32> to vector<8x128xf32>
    %162 = vector.extract_strided_slice %159 {offsets = [0, 256], sizes = [8, 128], strides = [1, 1]} : vector<8x512xf32> to vector<8x128xf32>
    %163 = vector.extract_strided_slice %159 {offsets = [0, 384], sizes = [8, 128], strides = [1, 1]} : vector<8x512xf32> to vector<8x128xf32>
    %164 = arith.mulf %161, %130 : vector<8x128xf32>
    %165 = arith.mulf %160, %162 : vector<8x128xf32>
    %166 = arith.addf %164, %165 : vector<8x128xf32>
    %167 = math.tanh %166 : vector<8x128xf32>
    %168 = arith.mulf %163, %167 : vector<8x128xf32>
    %c0_54 = arith.constant 0 : index
    %c0_55 = arith.constant 0 : index
    %169 = vector.load %arg5[%c0_54, %c0_55] : memref<128x512xf32, #tpu.memory_space<vmem>>, vector<128x512xf32>
    %cst_56 = arith.constant dense<0.000000e+00> : vector<8x512xf32>
    %170 = tpu.matmul %168, %169, %cst_56 {dimension_numbers = #tpu.dot_dimension_numbers<[1], [0], [0], [1], [0, 0, 1, 1], [], []>} : vector<8x128xf32>, vector<128x512xf32>, vector<8x512xf32> -> vector<8x512xf32>
    %171 = arith.addf %170, %14 : vector<8x512xf32>
    %c32 = arith.constant 32 : index
    %c0_57 = arith.constant 0 : index
    %172 = vector.load %arg12[%c32, %c0_57] : memref<64x512xf32, #tpu.memory_space<vmem>>, vector<8x512xf32>
    %c0_58 = arith.constant 0 : index
    %c0_59 = arith.constant 0 : index
    %173 = vector.load %arg2[%c0_58, %c0_59] : memref<128x512xf32, #tpu.memory_space<vmem>>, vector<128x512xf32>
    %cst_60 = arith.constant dense<0.000000e+00> : vector<8x512xf32>
    %174 = tpu.matmul %152, %173, %cst_60 {dimension_numbers = #tpu.dot_dimension_numbers<[1], [0], [0], [1], [0, 0, 1, 1], [], []>} : vector<8x128xf32>, vector<128x512xf32>, vector<8x512xf32> -> vector<8x512xf32>
    %175 = arith.addf %172, %174 : vector<8x512xf32>
    %176 = arith.mulf %175, %8 : vector<8x512xf32>
    %177 = math.tanh %176 : vector<8x512xf32>
    %178 = arith.mulf %177, %8 : vector<8x512xf32>
    %179 = arith.addf %178, %11 : vector<8x512xf32>
    %180 = vector.extract_strided_slice %179 {offsets = [0, 0], sizes = [8, 128], strides = [1, 1]} : vector<8x512xf32> to vector<8x128xf32>
    %181 = vector.extract_strided_slice %179 {offsets = [0, 128], sizes = [8, 128], strides = [1, 1]} : vector<8x512xf32> to vector<8x128xf32>
    %182 = vector.extract_strided_slice %179 {offsets = [0, 256], sizes = [8, 128], strides = [1, 1]} : vector<8x512xf32> to vector<8x128xf32>
    %183 = vector.extract_strided_slice %179 {offsets = [0, 384], sizes = [8, 128], strides = [1, 1]} : vector<8x512xf32> to vector<8x128xf32>
    %184 = arith.mulf %181, %150 : vector<8x128xf32>
    %185 = arith.mulf %180, %182 : vector<8x128xf32>
    %186 = arith.addf %184, %185 : vector<8x128xf32>
    %187 = math.tanh %186 : vector<8x128xf32>
    %188 = arith.mulf %183, %187 : vector<8x128xf32>
    %c0_61 = arith.constant 0 : index
    %c0_62 = arith.constant 0 : index
    %189 = vector.load %arg4[%c0_61, %c0_62] : memref<128x512xf32, #tpu.memory_space<vmem>>, vector<128x512xf32>
    %cst_63 = arith.constant dense<0.000000e+00> : vector<8x512xf32>
    %190 = tpu.matmul %188, %189, %cst_63 {dimension_numbers = #tpu.dot_dimension_numbers<[1], [0], [0], [1], [0, 0, 1, 1], [], []>} : vector<8x128xf32>, vector<128x512xf32>, vector<8x512xf32> -> vector<8x512xf32>
    %191 = arith.addf %171, %190 : vector<8x512xf32>
    %192 = arith.mulf %191, %8 : vector<8x512xf32>
    %193 = math.tanh %192 : vector<8x512xf32>
    %194 = arith.mulf %193, %8 : vector<8x512xf32>
    %195 = arith.addf %194, %11 : vector<8x512xf32>
    %196 = vector.extract_strided_slice %195 {offsets = [0, 0], sizes = [8, 128], strides = [1, 1]} : vector<8x512xf32> to vector<8x128xf32>
    %197 = vector.extract_strided_slice %195 {offsets = [0, 128], sizes = [8, 128], strides = [1, 1]} : vector<8x512xf32> to vector<8x128xf32>
    %198 = vector.extract_strided_slice %195 {offsets = [0, 256], sizes = [8, 128], strides = [1, 1]} : vector<8x512xf32> to vector<8x128xf32>
    %199 = vector.extract_strided_slice %195 {offsets = [0, 384], sizes = [8, 128], strides = [1, 1]} : vector<8x512xf32> to vector<8x128xf32>
    %200 = arith.mulf %197, %166 : vector<8x128xf32>
    %201 = arith.mulf %196, %198 : vector<8x128xf32>
    %202 = arith.addf %200, %201 : vector<8x128xf32>
    %203 = math.tanh %202 : vector<8x128xf32>
    %204 = arith.mulf %199, %203 : vector<8x128xf32>
    %c0_64 = arith.constant 0 : index
    %c0_65 = arith.constant 0 : index
    %205 = vector.load %arg5[%c0_64, %c0_65] : memref<128x512xf32, #tpu.memory_space<vmem>>, vector<128x512xf32>
    %cst_66 = arith.constant dense<0.000000e+00> : vector<8x512xf32>
    %206 = tpu.matmul %204, %205, %cst_66 {dimension_numbers = #tpu.dot_dimension_numbers<[1], [0], [0], [1], [0, 0, 1, 1], [], []>} : vector<8x128xf32>, vector<128x512xf32>, vector<8x512xf32> -> vector<8x512xf32>
    %207 = arith.addf %206, %14 : vector<8x512xf32>
    %c40 = arith.constant 40 : index
    %c0_67 = arith.constant 0 : index
    %208 = vector.load %arg12[%c40, %c0_67] : memref<64x512xf32, #tpu.memory_space<vmem>>, vector<8x512xf32>
    %c0_68 = arith.constant 0 : index
    %c0_69 = arith.constant 0 : index
    %209 = vector.load %arg2[%c0_68, %c0_69] : memref<128x512xf32, #tpu.memory_space<vmem>>, vector<128x512xf32>
    %cst_70 = arith.constant dense<0.000000e+00> : vector<8x512xf32>
    %210 = tpu.matmul %188, %209, %cst_70 {dimension_numbers = #tpu.dot_dimension_numbers<[1], [0], [0], [1], [0, 0, 1, 1], [], []>} : vector<8x128xf32>, vector<128x512xf32>, vector<8x512xf32> -> vector<8x512xf32>
    %211 = arith.addf %208, %210 : vector<8x512xf32>
    %212 = arith.mulf %211, %8 : vector<8x512xf32>
    %213 = math.tanh %212 : vector<8x512xf32>
    %214 = arith.mulf %213, %8 : vector<8x512xf32>
    %215 = arith.addf %214, %11 : vector<8x512xf32>
    %216 = vector.extract_strided_slice %215 {offsets = [0, 0], sizes = [8, 128], strides = [1, 1]} : vector<8x512xf32> to vector<8x128xf32>
    %217 = vector.extract_strided_slice %215 {offsets = [0, 128], sizes = [8, 128], strides = [1, 1]} : vector<8x512xf32> to vector<8x128xf32>
    %218 = vector.extract_strided_slice %215 {offsets = [0, 256], sizes = [8, 128], strides = [1, 1]} : vector<8x512xf32> to vector<8x128xf32>
    %219 = vector.extract_strided_slice %215 {offsets = [0, 384], sizes = [8, 128], strides = [1, 1]} : vector<8x512xf32> to vector<8x128xf32>
    %220 = arith.mulf %217, %186 : vector<8x128xf32>
    %221 = arith.mulf %216, %218 : vector<8x128xf32>
    %222 = arith.addf %220, %221 : vector<8x128xf32>
    %223 = math.tanh %222 : vector<8x128xf32>
    %224 = arith.mulf %219, %223 : vector<8x128xf32>
    %c0_71 = arith.constant 0 : index
    %c0_72 = arith.constant 0 : index
    %225 = vector.load %arg4[%c0_71, %c0_72] : memref<128x512xf32, #tpu.memory_space<vmem>>, vector<128x512xf32>
    %cst_73 = arith.constant dense<0.000000e+00> : vector<8x512xf32>
    %226 = tpu.matmul %224, %225, %cst_73 {dimension_numbers = #tpu.dot_dimension_numbers<[1], [0], [0], [1], [0, 0, 1, 1], [], []>} : vector<8x128xf32>, vector<128x512xf32>, vector<8x512xf32> -> vector<8x512xf32>
    %227 = arith.addf %207, %226 : vector<8x512xf32>
    %228 = arith.mulf %227, %8 : vector<8x512xf32>
    %229 = math.tanh %228 : vector<8x512xf32>
    %230 = arith.mulf %229, %8 : vector<8x512xf32>
    %231 = arith.addf %230, %11 : vector<8x512xf32>
    %232 = vector.extract_strided_slice %231 {offsets = [0, 0], sizes = [8, 128], strides = [1, 1]} : vector<8x512xf32> to vector<8x128xf32>
    %233 = vector.extract_strided_slice %231 {offsets = [0, 128], sizes = [8, 128], strides = [1, 1]} : vector<8x512xf32> to vector<8x128xf32>
    %234 = vector.extract_strided_slice %231 {offsets = [0, 256], sizes = [8, 128], strides = [1, 1]} : vector<8x512xf32> to vector<8x128xf32>
    %235 = vector.extract_strided_slice %231 {offsets = [0, 384], sizes = [8, 128], strides = [1, 1]} : vector<8x512xf32> to vector<8x128xf32>
    %236 = arith.mulf %233, %202 : vector<8x128xf32>
    %237 = arith.mulf %232, %234 : vector<8x128xf32>
    %238 = arith.addf %236, %237 : vector<8x128xf32>
    %239 = math.tanh %238 : vector<8x128xf32>
    %240 = arith.mulf %235, %239 : vector<8x128xf32>
    %c0_74 = arith.constant 0 : index
    %c0_75 = arith.constant 0 : index
    %241 = vector.load %arg5[%c0_74, %c0_75] : memref<128x512xf32, #tpu.memory_space<vmem>>, vector<128x512xf32>
    %cst_76 = arith.constant dense<0.000000e+00> : vector<8x512xf32>
    %242 = tpu.matmul %240, %241, %cst_76 {dimension_numbers = #tpu.dot_dimension_numbers<[1], [0], [0], [1], [0, 0, 1, 1], [], []>} : vector<8x128xf32>, vector<128x512xf32>, vector<8x512xf32> -> vector<8x512xf32>
    %243 = arith.addf %242, %14 : vector<8x512xf32>
    %c48 = arith.constant 48 : index
    %c0_77 = arith.constant 0 : index
    %244 = vector.load %arg12[%c48, %c0_77] : memref<64x512xf32, #tpu.memory_space<vmem>>, vector<8x512xf32>
    %c0_78 = arith.constant 0 : index
    %c0_79 = arith.constant 0 : index
    %245 = vector.load %arg2[%c0_78, %c0_79] : memref<128x512xf32, #tpu.memory_space<vmem>>, vector<128x512xf32>
    %cst_80 = arith.constant dense<0.000000e+00> : vector<8x512xf32>
    %246 = tpu.matmul %224, %245, %cst_80 {dimension_numbers = #tpu.dot_dimension_numbers<[1], [0], [0], [1], [0, 0, 1, 1], [], []>} : vector<8x128xf32>, vector<128x512xf32>, vector<8x512xf32> -> vector<8x512xf32>
    %247 = arith.addf %244, %246 : vector<8x512xf32>
    %248 = arith.mulf %247, %8 : vector<8x512xf32>
    %249 = math.tanh %248 : vector<8x512xf32>
    %250 = arith.mulf %249, %8 : vector<8x512xf32>
    %251 = arith.addf %250, %11 : vector<8x512xf32>
    %252 = vector.extract_strided_slice %251 {offsets = [0, 0], sizes = [8, 128], strides = [1, 1]} : vector<8x512xf32> to vector<8x128xf32>
    %253 = vector.extract_strided_slice %251 {offsets = [0, 128], sizes = [8, 128], strides = [1, 1]} : vector<8x512xf32> to vector<8x128xf32>
    %254 = vector.extract_strided_slice %251 {offsets = [0, 256], sizes = [8, 128], strides = [1, 1]} : vector<8x512xf32> to vector<8x128xf32>
    %255 = vector.extract_strided_slice %251 {offsets = [0, 384], sizes = [8, 128], strides = [1, 1]} : vector<8x512xf32> to vector<8x128xf32>
    %256 = arith.mulf %253, %222 : vector<8x128xf32>
    %257 = arith.mulf %252, %254 : vector<8x128xf32>
    %258 = arith.addf %256, %257 : vector<8x128xf32>
    %259 = math.tanh %258 : vector<8x128xf32>
    %260 = arith.mulf %255, %259 : vector<8x128xf32>
    %c0_81 = arith.constant 0 : index
    %c0_82 = arith.constant 0 : index
    %261 = vector.load %arg4[%c0_81, %c0_82] : memref<128x512xf32, #tpu.memory_space<vmem>>, vector<128x512xf32>
    %cst_83 = arith.constant dense<0.000000e+00> : vector<8x512xf32>
    %262 = tpu.matmul %260, %261, %cst_83 {dimension_numbers = #tpu.dot_dimension_numbers<[1], [0], [0], [1], [0, 0, 1, 1], [], []>} : vector<8x128xf32>, vector<128x512xf32>, vector<8x512xf32> -> vector<8x512xf32>
    %263 = arith.addf %243, %262 : vector<8x512xf32>
    %264 = arith.mulf %263, %8 : vector<8x512xf32>
    %265 = math.tanh %264 : vector<8x512xf32>
    %266 = arith.mulf %265, %8 : vector<8x512xf32>
    %267 = arith.addf %266, %11 : vector<8x512xf32>
    %268 = vector.extract_strided_slice %267 {offsets = [0, 0], sizes = [8, 128], strides = [1, 1]} : vector<8x512xf32> to vector<8x128xf32>
    %269 = vector.extract_strided_slice %267 {offsets = [0, 128], sizes = [8, 128], strides = [1, 1]} : vector<8x512xf32> to vector<8x128xf32>
    %270 = vector.extract_strided_slice %267 {offsets = [0, 256], sizes = [8, 128], strides = [1, 1]} : vector<8x512xf32> to vector<8x128xf32>
    %271 = vector.extract_strided_slice %267 {offsets = [0, 384], sizes = [8, 128], strides = [1, 1]} : vector<8x512xf32> to vector<8x128xf32>
    %272 = arith.mulf %269, %238 : vector<8x128xf32>
    %273 = arith.mulf %268, %270 : vector<8x128xf32>
    %274 = arith.addf %272, %273 : vector<8x128xf32>
    %275 = math.tanh %274 : vector<8x128xf32>
    %276 = arith.mulf %271, %275 : vector<8x128xf32>
    %c0_84 = arith.constant 0 : index
    %c0_85 = arith.constant 0 : index
    %277 = vector.load %arg5[%c0_84, %c0_85] : memref<128x512xf32, #tpu.memory_space<vmem>>, vector<128x512xf32>
    %cst_86 = arith.constant dense<0.000000e+00> : vector<8x512xf32>
    %278 = tpu.matmul %276, %277, %cst_86 {dimension_numbers = #tpu.dot_dimension_numbers<[1], [0], [0], [1], [0, 0, 1, 1], [], []>} : vector<8x128xf32>, vector<128x512xf32>, vector<8x512xf32> -> vector<8x512xf32>
    %279 = arith.addf %278, %14 : vector<8x512xf32>
    %c56 = arith.constant 56 : index
    %c0_87 = arith.constant 0 : index
    %280 = vector.load %arg12[%c56, %c0_87] : memref<64x512xf32, #tpu.memory_space<vmem>>, vector<8x512xf32>
    %c0_88 = arith.constant 0 : index
    %c0_89 = arith.constant 0 : index
    %281 = vector.load %arg2[%c0_88, %c0_89] : memref<128x512xf32, #tpu.memory_space<vmem>>, vector<128x512xf32>
    %cst_90 = arith.constant dense<0.000000e+00> : vector<8x512xf32>
    %282 = tpu.matmul %260, %281, %cst_90 {dimension_numbers = #tpu.dot_dimension_numbers<[1], [0], [0], [1], [0, 0, 1, 1], [], []>} : vector<8x128xf32>, vector<128x512xf32>, vector<8x512xf32> -> vector<8x512xf32>
    %283 = arith.addf %280, %282 : vector<8x512xf32>
    %284 = arith.mulf %283, %8 : vector<8x512xf32>
    %285 = math.tanh %284 : vector<8x512xf32>
    %286 = arith.mulf %285, %8 : vector<8x512xf32>
    %287 = arith.addf %286, %11 : vector<8x512xf32>
    %288 = vector.extract_strided_slice %287 {offsets = [0, 0], sizes = [8, 128], strides = [1, 1]} : vector<8x512xf32> to vector<8x128xf32>
    %289 = vector.extract_strided_slice %287 {offsets = [0, 128], sizes = [8, 128], strides = [1, 1]} : vector<8x512xf32> to vector<8x128xf32>
    %290 = vector.extract_strided_slice %287 {offsets = [0, 256], sizes = [8, 128], strides = [1, 1]} : vector<8x512xf32> to vector<8x128xf32>
    %291 = vector.extract_strided_slice %287 {offsets = [0, 384], sizes = [8, 128], strides = [1, 1]} : vector<8x512xf32> to vector<8x128xf32>
    %292 = arith.mulf %289, %258 : vector<8x128xf32>
    %293 = arith.mulf %288, %290 : vector<8x128xf32>
    %294 = arith.addf %292, %293 : vector<8x128xf32>
    %295 = math.tanh %294 : vector<8x128xf32>
    %296 = arith.mulf %291, %295 : vector<8x128xf32>
    %c0_91 = arith.constant 0 : index
    %c0_92 = arith.constant 0 : index
    %297 = vector.load %arg4[%c0_91, %c0_92] : memref<128x512xf32, #tpu.memory_space<vmem>>, vector<128x512xf32>
    %cst_93 = arith.constant dense<0.000000e+00> : vector<8x512xf32>
    %298 = tpu.matmul %296, %297, %cst_93 {dimension_numbers = #tpu.dot_dimension_numbers<[1], [0], [0], [1], [0, 0, 1, 1], [], []>} : vector<8x128xf32>, vector<128x512xf32>, vector<8x512xf32> -> vector<8x512xf32>
    %299 = arith.addf %279, %298 : vector<8x512xf32>
    %300 = arith.mulf %299, %8 : vector<8x512xf32>
    %301 = math.tanh %300 : vector<8x512xf32>
    %302 = arith.mulf %301, %8 : vector<8x512xf32>
    %303 = arith.addf %302, %11 : vector<8x512xf32>
    %304 = vector.extract_strided_slice %303 {offsets = [0, 0], sizes = [8, 128], strides = [1, 1]} : vector<8x512xf32> to vector<8x128xf32>
    %305 = vector.extract_strided_slice %303 {offsets = [0, 128], sizes = [8, 128], strides = [1, 1]} : vector<8x512xf32> to vector<8x128xf32>
    %306 = vector.extract_strided_slice %303 {offsets = [0, 256], sizes = [8, 128], strides = [1, 1]} : vector<8x512xf32> to vector<8x128xf32>
    %307 = vector.extract_strided_slice %303 {offsets = [0, 384], sizes = [8, 128], strides = [1, 1]} : vector<8x512xf32> to vector<8x128xf32>
    %308 = arith.mulf %305, %274 : vector<8x128xf32>
    %309 = arith.mulf %304, %306 : vector<8x128xf32>
    %310 = arith.addf %308, %309 : vector<8x128xf32>
    %311 = math.tanh %310 : vector<8x128xf32>
    %312 = arith.mulf %307, %311 : vector<8x128xf32>
    %313 = tpu.concatenate %60, %96, %132, %168, %204, %240, %276, %312 in 0 : vector<8x128xf32>, vector<8x128xf32>, vector<8x128xf32>, vector<8x128xf32>, vector<8x128xf32>, vector<8x128xf32>, vector<8x128xf32>, vector<8x128xf32> -> vector<64x128xf32>
    %c0_94 = arith.constant 0 : index
    %c0_95 = arith.constant 0 : index
    %314 = vector.load %arg7[%c0_94, %c0_95] : memref<1x128xf32, #tpu.memory_space<vmem>>, vector<1x128xf32>
    %315 = vector.broadcast %314 : vector<1x128xf32> to vector<64x128xf32>
    %316 = arith.mulf %313, %315 : vector<64x128xf32>
    %cst_96 = arith.constant dense<0.000000e+00> : vector<64xf32>
    %317 = vector.multi_reduction <add>, %316, %cst_96 [1] : vector<64x128xf32> to vector<64xf32>
    %318 = vector.shape_cast %317 : vector<64xf32> to vector<64x1xf32>
    %c0_97 = arith.constant 0 : index
    %c0_98 = arith.constant 0 : index
    %319 = vector.load %arg8[%c0_97, %c0_98] : memref<1x1xf32, #tpu.memory_space<vmem>>, vector<1x1xf32>
    %320 = vector.broadcast %319 : vector<1x1xf32> to vector<64x1xf32>
    %321 = arith.addf %318, %320 : vector<64x1xf32>
    %c0_99 = arith.constant 0 : index
    %c0_100 = arith.constant 0 : index
    %322 = vector.load %arg9[%c0_99, %c0_100] : memref<64x1xf32, #tpu.memory_space<vmem>>, vector<64x1xf32>
    tpu.vector_store %arg9[%c0_99, %c0_100], %321 {strides = array<i32>} : memref<64x1xf32, #tpu.memory_space<vmem>>, vector<64x1xf32>,
    %c0_101 = arith.constant 0 : index
    %c0_102 = arith.constant 0 : index
    %c0_103 = arith.constant 0 : index
    %323 = vector.load %arg10[%c0_101, %c0_102, %c0_103] : memref<2x8x128xf32, #tpu.memory_space<vmem>>, vector<1x8x128xf32>
    %324 = vector.shape_cast %323 : vector<1x8x128xf32> to vector<8x128xf32>
    %325 = vector.shape_cast %296 : vector<8x128xf32> to vector<1x8x128xf32>
    tpu.vector_store %arg10[%c0_101, %c0_102, %c0_103], %325 {strides = array<i32>} : memref<2x8x128xf32, #tpu.memory_space<vmem>>, vector<1x8x128xf32>,
    %c1 = arith.constant 1 : index
    %c0_104 = arith.constant 0 : index
    %c0_105 = arith.constant 0 : index
    %326 = vector.load %arg10[%c1, %c0_104, %c0_105] : memref<2x8x128xf32, #tpu.memory_space<vmem>>, vector<1x8x128xf32>
    %327 = vector.shape_cast %326 : vector<1x8x128xf32> to vector<8x128xf32>
    %328 = vector.shape_cast %312 : vector<8x128xf32> to vector<1x8x128xf32>
    tpu.vector_store %arg10[%c1, %c0_104, %c0_105], %328 {strides = array<i32>} : memref<2x8x128xf32, #tpu.memory_space<vmem>>, vector<1x8x128xf32>,
    %c0_106 = arith.constant 0 : index
    %c0_107 = arith.constant 0 : index
    %c0_108 = arith.constant 0 : index
    %329 = vector.load %arg11[%c0_106, %c0_107, %c0_108] : memref<2x8x128xf32, #tpu.memory_space<vmem>>, vector<1x8x128xf32>
    %330 = vector.shape_cast %329 : vector<1x8x128xf32> to vector<8x128xf32>
    %331 = vector.shape_cast %294 : vector<8x128xf32> to vector<1x8x128xf32>
    tpu.vector_store %arg11[%c0_106, %c0_107, %c0_108], %331 {strides = array<i32>} : memref<2x8x128xf32, #tpu.memory_space<vmem>>, vector<1x8x128xf32>,
    %c1_109 = arith.constant 1 : index
    %c0_110 = arith.constant 0 : index
    %c0_111 = arith.constant 0 : index
    %332 = vector.load %arg11[%c1_109, %c0_110, %c0_111] : memref<2x8x128xf32, #tpu.memory_space<vmem>>, vector<1x8x128xf32>
    %333 = vector.shape_cast %332 : vector<1x8x128xf32> to vector<8x128xf32>
    %334 = vector.shape_cast %310 : vector<8x128xf32> to vector<1x8x128xf32>
    tpu.vector_store %arg11[%c1_109, %c0_110, %c0_111], %334 {strides = array<i32>} : memref<2x8x128xf32, #tpu.memory_space<vmem>>, vector<1x8x128xf32>,
    return
  }
}

</mosaic_0001>

<bundles_post_ra>
// kernel: tpu_custom_call.1
= control target key start
LH: loop header
LB: loop body
LE: loop exit
PB: predicated region body
PF: predicated region fallthrough
CT: control target
= control target key end

     0   :  { %s8985_s0 = inlined_call_operand.vmem [shape: f32[64,1], index: 0, kind: input, shape index: {}]   ;;  %s8986_s1 = inlined_call_operand.vmem [shape: f32[1,512], index: 1, kind: input, shape index: {}]   ;;  %s8987_s2 = inlined_call_operand.hbm [shape: f32[128,512], index: 2, kind: input, shape index: {}]   ;;  %s8988_s3 = inlined_call_operand.vmem [shape: f32[1,512], index: 3, kind: input, shape index: {}]   ;;  %s8989_s4 = inlined_call_operand.hbm [shape: f32[128,512], index: 4, kind: input, shape index: {}]   ;;  %s8990_s5 = inlined_call_operand.hbm [shape: f32[128,512], index: 5, kind: input, shape index: {}]   ;;  %s8991_s6 = inlined_call_operand.vmem [shape: f32[1,512], index: 6, kind: input, shape index: {}]   ;;  %s8992_s7 = inlined_call_operand.vmem [shape: f32[1,128], index: 7, kind: input, shape index: {}]   ;;  %s8993_s8 = inlined_call_operand.<no memory space> [shape: f32[1,1], index: 8, kind: input, shape index: {}]   ;;  %s8994_s9 = inlined_call_operand.vmem [shape: f32[64,1], index: 9, kind: output, shape index: {0}]   ;;  %s8995_s10 = inlined_call_operand.hbm [shape: f32[2,8,128], index: 10, kind: output, shape index: {1}]   ;;  %s8996_s11 = inlined_call_operand.hbm [shape: f32[2,8,128], index: 11, kind: output, shape index: {2}]  }
   0x1   :  { %v17_v0 = vstv %s8993_s8 }
   0x2   :  { %18 = vst [vmem:[#allocation3] sm:$0x1] %v17_v0 }
   0x3   :  { %19 = vsyncpa [#allocation5], 0 }
   0x4   :  { %20 = vsyncpa [#allocation8], 0 }
   0x5   :  { %21 = vsyncpa [#allocation6], 0 }
   0x6   :  { %22 = vsyncpa [#allocation12], 0  ;;  %s5311_s19 = smov [#allocation7]   ;;  %s5312_s21 = smov [#allocation4]  }
   0x7   :  { %s46_s20 = sshll.u32 %s5311_s19, 4  ;;  %s32_s22 = sshll.u32 %s5312_s21, 4  ;;  %s47_s20 = int_to_ptr.vmem [resolvable:$true] %s46_s20  ;;  %s33_s22 = int_to_ptr.vmem [resolvable:$true] %s32_s22 }
   0x8   :  { %s5211_s23 = scalar_lea.vmem %s47_s20, 8192  ;;  %p5216_p1 = scmp.lt.s32.totalorder %s47_s20, %s47_s20 }
   0x9   :  { %p5212_p0 = scmp.ne.s32.totalorder %s47_s20, %s5211_s23  ;;  %p5217_p2 = scmp.lt.s32.totalorder %s5211_s23, %s5211_s23 }
   0xb   :  { %p5218_p3 = por %p5217_p2, %p5216_p1 }
   0xd   :  { %p5219_p4 = pnand %p5218_p3, %p5212_p0 }
   0xf   :  { %5222 = shalt.err (!%p5219_p4)
}
  0x10   :  { %s5313_s24 = smov 512   ;;  %s5314_s8 = smov 32  }
  0x11   :  { %52 = dma.hbm_to_vmem [thread:$0]  %s8989_s4, 8192, %s47_s20, [#allocation8], %s5313_s24, %s5313_s24, %s5314_s8  }
  0x12   :  { %s5231_s27 = scalar_lea.vmem %s33_s22, 8192  ;;  %p5236_p6 = scmp.lt.s32.totalorder %s33_s22, %s33_s22 }
  0x13   :  { %p5232_p5 = scmp.ne.s32.totalorder %s33_s22, %s5231_s27  ;;  %p5237_p7 = scmp.lt.s32.totalorder %s5231_s27, %s5231_s27 }
  0x15   :  { %p5238_p8 = por %p5237_p7, %p5236_p6 }
  0x17   :  { %p5239_p9 = pnand %p5238_p8, %p5232_p5 }
  0x19   :  { %5242 = shalt.err (!%p5239_p9)
}
  0x1a   :  { %38 = dma.hbm_to_vmem [thread:$0]  %s8987_s2, 8192, %s33_s22, [#allocation5], %s5313_s24, %s5313_s24, %s5314_s8  }
  0x1b   :  { %s5315_s30 = smov [#allocation9]  }
  0x1c   :  { %s58_s12 = sshll.u32 %s5315_s30, 4  ;;  %s59_s12 = int_to_ptr.vmem [resolvable:$true] %s58_s12 }
  0x1d   :  { %s5251_s13 = scalar_lea.vmem %s59_s12, 8192  ;;  %p5256_p11 = scmp.lt.s32.totalorder %s59_s12, %s59_s12 }
  0x1e   :  { %p5252_p10 = scmp.ne.s32.totalorder %s59_s12, %s5251_s13  ;;  %p5257_p12 = scmp.lt.s32.totalorder %s5251_s13, %s5251_s13 }
  0x20   :  { %p5258_p13 = por %p5257_p12, %p5256_p11 }
  0x22   :  { %p5259_p0 = pnand %p5258_p13, %p5252_p10 }
  0x24   :  { %5262 = shalt.err (!%p5259_p0)
}
  0x25   :  { %64 = dma.hbm_to_vmem [thread:$0]  %s8990_s5, 8192, %s59_s12, [#allocation8], %s5313_s24, %s5313_s24, %s5314_s8  }
  0x26   :  { %5303 = dma.done.wait [#allocation5], 8192  }
  0x27   :  { %5304 = vsyncadd [#allocation5], 4294959104 }
  0x28   :  { %5305 = dma.done.wait [#allocation8], 16384  }
  0x29   :  { %5306 = vsyncadd [#allocation8], 4294950912  ;;  %v8997_v1 = vmov 0.0   ;;  %v5317_v2 = vmov 0   ;;  %v5396_v3 = vld [vmem:[#allocation9 + $0x1e8] sm:$0xff]  ;;  %v5398_v4 = vld [vmem:[#allocation9 + $0x1f8] sm:$0xff] }
  0x2a   :  { %443 = vmatprep.mubr.f32.mxu0 %v8997_v1  ;;  %514 = vmatprep.mubr.f32.mxu1 %v8997_v1  ;;  %v5400_v5 = vld [vmem:[#allocation9 + $0x1e0] sm:$0xff]  ;;  %v5404_v6 = vld [vmem:[#allocation9 + $0x1f0] sm:$0xff]  ;;  %v5406_v7 = vld [vmem:[#allocation9 + $0x1c8] sm:$0xff]  ;;  %vm4393_vm0 = vcmask 7168   ;;  %s5318_s25 = smov [#allocation10]   ;;  %s5319_s27 = smov [#allocation11]  }
  0x2b   :  { %4459 = vset.pattern.permute.xlu0 %v5317_v2  ;;  %4460 = vset.pattern.permute.xlu1 %v5317_v2  ;;  %v5408_v8 = vld [vmem:[#allocation9 + $0x1d8] sm:$0xff]  ;;  %v5412_v9 = vld [vmem:[#allocation9 + $0x1c0] sm:$0xff]  ;;  %v5414_v10 = vld [vmem:[#allocation9 + $0x1d0] sm:$0xff]  ;;  %s4415_s26 = sshll.u32 %s5318_s25, 4  ;;  %s4427_s28 = sshll.u32 %s5319_s27, 4  ;;  %s4416_s26 = int_to_ptr.vmem [resolvable:$true] %s4415_s26  ;;  %s4428_s28 = int_to_ptr.vmem [resolvable:$true] %s4427_s28 }
  0x2c   :  { %379 = vmatprep.subr.mxu0 %v5396_v3  ;;  %450 = vmatprep.subr.mxu1 %v5398_v4  ;;  %v5416_v11 = vld [vmem:[#allocation9 + $0x1a8] sm:$0xff]  ;;  %v5420_v12 = vld [vmem:[#allocation9 + $0x1b8] sm:$0xff]  ;;  %v5422_v13 = vld [vmem:[#allocation9 + $0x1a0] sm:$0xff]  ;;  %s5263_s29 = scalar_lea.vmem %s4416_s26, 256  ;;  %p5268_p2 = scmp.lt.s32.totalorder %s4416_s26, %s4416_s26 }
  0x2d   :  { %380 = vmatpush1.msra.mxu0 %v5400_v5  ;;  %451 = vmatpush1.msra.mxu1 %v5404_v6  ;;  %v5424_v14 = vld [vmem:[#allocation9 + $0x1b0] sm:$0xff]  ;;  %v5428_v15 = vld [vmem:[#allocation9 + $0x188] sm:$0xff]  ;;  %v5430_v16 = vld [vmem:[#allocation9 + $0x198] sm:$0xff]  ;;  %p5264_p1 = scmp.ne.s32.totalorder %s4416_s26, %s5263_s29  ;;  %p5269_p3 = scmp.lt.s32.totalorder %s5263_s29, %s5263_s29 }
  0x2e   :  { %381 = vmatprep.subr.mxu0 %v5406_v7  ;;  %452 = vmatprep.subr.mxu1 %v5408_v8  ;;  %v5434_v17 = vld [vmem:[#allocation9 + $0x180] sm:$0xff]  ;;  %v5436_v18 = vld [vmem:[#allocation9 + $0x190] sm:$0xff]  ;;  %v5440_v19 = vld [vmem:[#allocation9 + $0x168] sm:$0xff] }
  0x2f   :  { %382 = vmatpush1.msra.mxu0 %v5412_v9  ;;  %453 = vmatpush1.msra.mxu1 %v5414_v10  ;;  %v5442_v20 = vld [vmem:[#allocation9 + $0x178] sm:$0xff]  ;;  %v5446_v21 = vld [vmem:[#allocation9 + $0x160] sm:$0xff]  ;;  %v5448_v22 = vld [vmem:[#allocation9 + $0x170] sm:$0xff]  ;;  %p5270_p4 = por %p5269_p3, %p5268_p2 }
  0x30   :  { %383 = vmatprep.subr.mxu0 %v5416_v11  ;;  %454 = vmatprep.subr.mxu1 %v5420_v12  ;;  %v5452_v23 = vld [vmem:[#allocation9 + $0x148] sm:$0xff]  ;;  %v5454_v24 = vld [vmem:[#allocation9 + $0x158] sm:$0xff]  ;;  %v5458_v25 = vld [vmem:[#allocation9 + $0x140] sm:$0xff] }
  0x31   :  { %384 = vmatpush1.msra.mxu0 %v5422_v13  ;;  %455 = vmatpush1.msra.mxu1 %v5424_v14  ;;  %v5460_v26 = vld [vmem:[#allocation9 + $0x150] sm:$0xff]  ;;  %v5464_v27 = vld [vmem:[#allocation9 + $0x128] sm:$0xff]  ;;  %v5466_v28 = vld [vmem:[#allocation9 + $0x138] sm:$0xff]  ;;  %p5271_p5 = pnand %p5270_p4, %p5264_p1 }
  0x32   :  { %385 = vmatprep.subr.mxu0 %v5428_v15  ;;  %456 = vmatprep.subr.mxu1 %v5430_v16  ;;  %v5470_v29 = vld [vmem:[#allocation9 + $0x120] sm:$0xff]  ;;  %v5472_v30 = vld [vmem:[#allocation9 + $0x130] sm:$0xff]  ;;  %v5476_v31 = vld [vmem:[#allocation9 + $0x108] sm:$0xff] }
  0x33   :  { %386 = vmatpush1.msra.mxu0 %v5434_v17  ;;  %457 = vmatpush1.msra.mxu1 %v5436_v18  ;;  %v5478_v32 = vld [vmem:[#allocation9 + $0x118] sm:$0xff]  ;;  %v5482_v33 = vld [vmem:[#allocation9 + $0x100] sm:$0xff]  ;;  %v5484_v34 = vld [vmem:[#allocation9 + $0x110] sm:$0xff] }
  0x34   :  { %387 = vmatprep.subr.mxu0 %v5440_v19  ;;  %458 = vmatprep.subr.mxu1 %v5442_v20  ;;  %v5488_v35 = vld [vmem:[#allocation9 + $0xe8] sm:$0xff]  ;;  %v5490_v36 = vld [vmem:[#allocation9 + $0xf8] sm:$0xff]  ;;  %v5494_v37 = vld [vmem:[#allocation9 + $0xe0] sm:$0xff] }
  0x35   :  { %388 = vmatpush1.msra.mxu0 %v5446_v21  ;;  %459 = vmatpush1.msra.mxu1 %v5448_v22  ;;  %v5496_v38 = vld [vmem:[#allocation9 + $0xf0] sm:$0xff]  ;;  %v5500_v39 = vld [vmem:[#allocation9 + $0xc8] sm:$0xff]  ;;  %v5502_v40 = vld [vmem:[#allocation9 + $0xd8] sm:$0xff] }
  0x36   :  { %389 = vmatprep.subr.mxu0 %v5452_v23  ;;  %460 = vmatprep.subr.mxu1 %v5454_v24  ;;  %v5506_v41 = vld [vmem:[#allocation9 + $0xc0] sm:$0xff]  ;;  %v5508_v42 = vld [vmem:[#allocation9 + $0xd0] sm:$0xff]  ;;  %v5512_v43 = vld [vmem:[#allocation9 + $0xa8] sm:$0xff] }
  0x37   :  { %390 = vmatpush1.msra.mxu0 %v5458_v25  ;;  %461 = vmatpush1.msra.mxu1 %v5460_v26  ;;  %v5514_v44 = vld [vmem:[#allocation9 + $0xb8] sm:$0xff]  ;;  %v5518_v45 = vld [vmem:[#allocation9 + $0xa0] sm:$0xff]  ;;  %v5520_v46 = vld [vmem:[#allocation9 + $0xb0] sm:$0xff] }
  0x38   :  { %391 = vmatprep.subr.mxu0 %v5464_v27  ;;  %462 = vmatprep.subr.mxu1 %v5466_v28  ;;  %v5524_v47 = vld [vmem:[#allocation9 + $0x88] sm:$0xff]  ;;  %v5526_v48 = vld [vmem:[#allocation9 + $0x98] sm:$0xff]  ;;  %v5530_v49 = vld [vmem:[#allocation9 + $0x80] sm:$0xff] }
  0x39   :  { %392 = vmatpush1.msra.mxu0 %v5470_v29  ;;  %463 = vmatpush1.msra.mxu1 %v5472_v30  ;;  %9662 = vst [vmem:[#allocation17_spill] sm:$0xff] %v5526_v48  ;;  %9663 = vst [vmem:[#allocation18_spill] sm:$0xff] %v5530_v49  ;;  %v5532_v50 = vld [vmem:[#allocation9 + $0x90] sm:$0xff]  ;;  %v5536_v51 = vld [vmem:[#allocation9 + $0x68] sm:$0xff] }
  0x3a   :  { %393 = vmatprep.subr.mxu0 %v5476_v31  ;;  %464 = vmatprep.subr.mxu1 %v5478_v32  ;;  %9664 = vst [vmem:[#allocation19_spill] sm:$0xff] %v5532_v50  ;;  %9665 = vst [vmem:[#allocation20_spill] sm:$0xff] %v5536_v51  ;;  %v5538_v52 = vld [vmem:[#allocation9 + $0x78] sm:$0xff]  ;;  %v5542_v53 = vld [vmem:[#allocation9 + $0x60] sm:$0xff] }
  0x3b   :  { %394 = vmatpush1.msra.mxu0 %v5482_v33  ;;  %465 = vmatpush1.msra.mxu1 %v5484_v34  ;;  %9666 = vst [vmem:[#allocation21_spill] sm:$0xff] %v5538_v52  ;;  %9667 = vst [vmem:[#allocation22_spill] sm:$0xff] %v5542_v53  ;;  %v5544_v54 = vld [vmem:[#allocation9 + $0x70] sm:$0xff]  ;;  %v5548_v55 = vld [vmem:[#allocation9 + $0x48] sm:$0xff] }
  0x3c   :  { %395 = vmatprep.subr.mxu0 %v5488_v35  ;;  %466 = vmatprep.subr.mxu1 %v5490_v36  ;;  %9668 = vst [vmem:[#allocation23_spill] sm:$0xff] %v5544_v54  ;;  %9669 = vst [vmem:[#allocation24_spill] sm:$0xff] %v5548_v55  ;;  %v5550_v56 = vld [vmem:[#allocation9 + $0x58] sm:$0xff]  ;;  %v5554_v57 = vld [vmem:[#allocation9 + $0x40] sm:$0xff] }
  0x3d   :  { %396 = vmatpush1.msra.mxu0 %v5494_v37  ;;  %467 = vmatpush1.msra.mxu1 %v5496_v38  ;;  %9670 = vst [vmem:[#allocation25_spill] sm:$0xff] %v5550_v56  ;;  %9671 = vst [vmem:[#allocation26_spill] sm:$0xff] %v5554_v57  ;;  %v5556_v58 = vld [vmem:[#allocation9 + $0x50] sm:$0xff]  ;;  %v5560_v59 = vld [vmem:[#allocation9 + $0x28] sm:$0xff] }
  0x3e   :  { %397 = vmatprep.subr.mxu0 %v5500_v39  ;;  %468 = vmatprep.subr.mxu1 %v5502_v40  ;;  %9672 = vst [vmem:[#allocation27_spill] sm:$0xff] %v5556_v58  ;;  %9673 = vst [vmem:[#allocation28_spill] sm:$0xff] %v5560_v59  ;;  %v5562_v60 = vld [vmem:[#allocation9 + $0x38] sm:$0xff]  ;;  %v5566_v61 = vld [vmem:[#allocation9 + $0x20] sm:$0xff] }
  0x3f   :  { %398 = vmatpush1.msra.mxu0 %v5506_v41  ;;  %469 = vmatpush1.msra.mxu1 %v5508_v42  ;;  %9674 = vst [vmem:[#allocation29_spill] sm:$0xff] %v5562_v60  ;;  %9675 = vst [vmem:[#allocation30_spill] sm:$0xff] %v5566_v61  ;;  %v5568_v62 = vld [vmem:[#allocation9 + $0x30] sm:$0xff]  ;;  %v5572_v63 = vld [vmem:[#allocation9 + $0x8] sm:$0xff] }
  0x40   :  { %399 = vmatprep.subr.mxu0 %v5512_v43  ;;  %470 = vmatprep.subr.mxu1 %v5514_v44  ;;  %9676 = vst [vmem:[#allocation31_spill] sm:$0xff] %v5568_v62  ;;  %9677 = vst [vmem:[#allocation32_spill] sm:$0xff] %v5572_v63  ;;  %v5574_v0 = vld [vmem:[#allocation9 + $0x18] sm:$0xff]  ;;  %v5578_v2 = vld [vmem:[#allocation9] sm:$0xff] }
  0x41   :  { %400 = vmatpush1.msra.mxu0 %v5518_v45  ;;  %471 = vmatpush1.msra.mxu1 %v5520_v46  ;;  %9678 = vst [vmem:[#allocation33_spill] sm:$0xff] %v5574_v0  ;;  %9679 = vst [vmem:[#allocation34_spill] sm:$0xff] %v5578_v2  ;;  %v5580_v1 = vld [vmem:[#allocation9 + $0x10] sm:$0xff] }
  0x42   :  { %401 = vmatprep.subr.mxu0 %v5524_v47  ;;  %472 = vmatprep.subr.mxu1 %v5526_v48  ;;  %9680 = vst [vmem:[#allocation35_spill] sm:$0xff] %v5580_v1 }
  0x43   :  { %402 = vmatpush1.msra.mxu0 %v5530_v49  ;;  %473 = vmatpush1.msra.mxu1 %v5532_v50 }
  0x44   :  { %403 = vmatprep.subr.mxu0 %v5536_v51  ;;  %474 = vmatprep.subr.mxu1 %v5538_v52 }
  0x45   :  { %404 = vmatpush1.msra.mxu0 %v5542_v53  ;;  %475 = vmatpush1.msra.mxu1 %v5544_v54 }
  0x46   :  { %405 = vmatprep.subr.mxu0 %v5548_v55  ;;  %476 = vmatprep.subr.mxu1 %v5550_v56  ;;  %v5584_v56 = vld [vmem:[#allocation4 + $0x1e8] sm:$0xff] }
  0x47   :  { %406 = vmatpush1.msra.mxu0 %v5554_v57  ;;  %477 = vmatpush1.msra.mxu1 %v5556_v58  ;;  %9681 = vst [vmem:[#allocation36_spill] sm:$0xff] %v5584_v56  ;;  %v5588_v58 = vld [vmem:[#allocation4 + $0x1f8] sm:$0xff]  ;;  %v9685_v57 = vmov 0.0   ;;  %v5622_v55 = vld [vmem:[#allocation4 + $0x188] sm:$0xff] }
  0x48   :  { %407 = vmatprep.subr.mxu0 %v5560_v59  ;;  %478 = vmatprep.subr.mxu1 %v5562_v60  ;;  %9682 = vst [vmem:[#allocation37_spill] sm:$0xff] %v5588_v58  ;;  %v5592_v60 = vld [vmem:[#allocation4 + $0x1e0] sm:$0xff]  ;;  %v5594_v59 = vld [vmem:[#allocation4 + $0x1f0] sm:$0xff]  ;;  %9694 = vst [vmem:[#allocation48_spill] sm:$0xff] %v5622_v55 }
  0x49   :  { %408 = vmatpush1.msra.mxu0 %v5566_v61  ;;  %479 = vmatpush1.msra.mxu1 %v5568_v62  ;;  %9683 = vst [vmem:[#allocation38_spill] sm:$0xff] %v5592_v60  ;;  %9684 = vst [vmem:[#allocation39_spill] sm:$0xff] %v5594_v59  ;;  %v5598_v62 = vld [vmem:[#allocation4 + $0x1c8] sm:$0xff]  ;;  %v5600_v61 = vld [vmem:[#allocation4 + $0x1d8] sm:$0xff] }
  0x4a   :  { %409 = vmatprep.subr.mxu0 %v5572_v63  ;;  %480 = vmatprep.subr.mxu1 %v5574_v0  ;;  %9686 = vst [vmem:[#allocation40_spill] sm:$0xff] %v5598_v62  ;;  %9687 = vst [vmem:[#allocation41_spill] sm:$0xff] %v5600_v61  ;;  %v5604_v0 = vld [vmem:[#allocation4 + $0x1c0] sm:$0xff]  ;;  %v5612_v63 = vld [vmem:[#allocation4 + $0x1b8] sm:$0xff] }
  0x4b   :  { %410 = vmatpush1.msra.mxu0 %v5578_v2  ;;  %481 = vmatpush1.msra.mxu1 %v5580_v1  ;;  %9688 = vst [vmem:[#allocation42_spill] sm:$0xff] %v5604_v0  ;;  %v5606_v2 = vld [vmem:[#allocation4 + $0x1d0] sm:$0xff]  ;;  %v5610_v1 = vld [vmem:[#allocation4 + $0x1a8] sm:$0xff]  ;;  %9691 = vst [vmem:[#allocation45_spill] sm:$0xff] %v5612_v63 }
  0x4c   :  { %444 = vmatmul.mubr.f32.vlgmr.msra.gmra.mxu0 %v9685_v57  ;;  %589 = vmatprep.subr.mxu0 %v5584_v56  ;;  %9689 = vst [vmem:[#allocation43_spill] sm:$0xff] %v5606_v2  ;;  %9690 = vst [vmem:[#allocation44_spill] sm:$0xff] %v5610_v1  ;;  %v5616_v56 = vld [vmem:[#allocation4 + $0x1a0] sm:$0xff] }
  0x4d   :  { %660 = vmatprep.subr.mxu1 %v5588_v58  ;;  %515 = vmatmul.mubr.f32.vlgmr.msra.gmra.mxu1 %v9685_v57  ;;  %9692 = vst [vmem:[#allocation46_spill] sm:$0xff] %v5616_v56  ;;  %v5618_v58 = vld [vmem:[#allocation4 + $0x1b0] sm:$0xff] }
  0x4e   :  { %590 = vmatpush1.msra.mxu0 %v5592_v60  ;;  %661 = vmatpush1.msra.mxu1 %v5594_v59  ;;  %9693 = vst [vmem:[#allocation47_spill] sm:$0xff] %v5618_v58  ;;  %v5624_v60 = vld [vmem:[#allocation4 + $0x198] sm:$0xff]  ;;  %v5628_v59 = vld [vmem:[#allocation4 + $0x180] sm:$0xff] }
  0x4f   :  { %591 = vmatprep.subr.mxu0 %v5598_v62  ;;  %662 = vmatprep.subr.mxu1 %v5600_v61  ;;  %9695 = vst [vmem:[#allocation49_spill] sm:$0xff] %v5624_v60  ;;  %9696 = vst [vmem:[#allocation50_spill] sm:$0xff] %v5628_v59  ;;  %v5630_v62 = vld [vmem:[#allocation4 + $0x190] sm:$0xff]  ;;  %v5634_v61 = vld [vmem:[#allocation4 + $0x168] sm:$0xff] }
  0x50   :  { %592 = vmatpush1.msra.mxu0 %v5604_v0  ;;  %663 = vmatpush1.msra.mxu1 %v5606_v2  ;;  %9697 = vst [vmem:[#allocation51_spill] sm:$0xff] %v5630_v62  ;;  %9698 = vst [vmem:[#allocation52_spill] sm:$0xff] %v5634_v61  ;;  %v5636_v0 = vld [vmem:[#allocation4 + $0x178] sm:$0xff]  ;;  %v5640_v2 = vld [vmem:[#allocation4 + $0x160] sm:$0xff] }
  0x51   :  { %593 = vmatprep.subr.mxu0 %v5610_v1  ;;  %664 = vmatprep.subr.mxu1 %v5612_v63  ;;  %9699 = vst [vmem:[#allocation53_spill] sm:$0xff] %v5636_v0  ;;  %9700 = vst [vmem:[#allocation54_spill] sm:$0xff] %v5640_v2  ;;  %v5642_v1 = vld [vmem:[#allocation4 + $0x170] sm:$0xff]  ;;  %v5646_v63 = vld [vmem:[#allocation4 + $0x148] sm:$0xff] }
  0x52   :  { %594 = vmatpush1.msra.mxu0 %v5616_v56  ;;  %665 = vmatpush1.msra.mxu1 %v5618_v58  ;;  %9701 = vst [vmem:[#allocation55_spill] sm:$0xff] %v5642_v1  ;;  %9702 = vst [vmem:[#allocation56_spill] sm:$0xff] %v5646_v63  ;;  %v5648_v56 = vld [vmem:[#allocation4 + $0x158] sm:$0xff]  ;;  %v5652_v58 = vld [vmem:[#allocation4 + $0x140] sm:$0xff] }
  0x53   :  { %595 = vmatprep.subr.mxu0 %v5622_v55  ;;  %666 = vmatprep.subr.mxu1 %v5624_v60  ;;  %9703 = vst [vmem:[#allocation57_spill] sm:$0xff] %v5648_v56  ;;  %9704 = vst [vmem:[#allocation58_spill] sm:$0xff] %v5652_v58  ;;  %v5654_v55 = vld [vmem:[#allocation4 + $0x150] sm:$0xff]  ;;  %v5658_v60 = vld [vmem:[#allocation4 + $0x128] sm:$0xff] }
  0x54   :  { %596 = vmatpush1.msra.mxu0 %v5628_v59  ;;  %667 = vmatpush1.msra.mxu1 %v5630_v62  ;;  %9705 = vst [vmem:[#allocation59_spill] sm:$0xff] %v5654_v55  ;;  %9706 = vst [vmem:[#allocation60_spill] sm:$0xff] %v5658_v60  ;;  %v5660_v59 = vld [vmem:[#allocation4 + $0x138] sm:$0xff]  ;;  %v5664_v62 = vld [vmem:[#allocation4 + $0x120] sm:$0xff] }
  0x55   :  { %597 = vmatprep.subr.mxu0 %v5634_v61  ;;  %668 = vmatprep.subr.mxu1 %v5636_v0  ;;  %9707 = vst [vmem:[#allocation61_spill] sm:$0xff] %v5660_v59  ;;  %9708 = vst [vmem:[#allocation62_spill] sm:$0xff] %v5664_v62  ;;  %v5666_v61 = vld [vmem:[#allocation4 + $0x130] sm:$0xff]  ;;  %v5670_v0 = vld [vmem:[#allocation4 + $0x108] sm:$0xff] }
  0x56   :  { %598 = vmatpush1.msra.mxu0 %v5640_v2  ;;  %669 = vmatpush1.msra.mxu1 %v5642_v1  ;;  %9709 = vst [vmem:[#allocation63_spill] sm:$0xff] %v5666_v61  ;;  %9710 = vst [vmem:[#allocation64_spill] sm:$0xff] %v5670_v0  ;;  %v5672_v2 = vld [vmem:[#allocation4 + $0x118] sm:$0xff]  ;;  %v5676_v1 = vld [vmem:[#allocation4 + $0x100] sm:$0xff] }
  0x57   :  { %599 = vmatprep.subr.mxu0 %v5646_v63  ;;  %670 = vmatprep.subr.mxu1 %v5648_v56  ;;  %9711 = vst [vmem:[#allocation65_spill] sm:$0xff] %v5672_v2  ;;  %9712 = vst [vmem:[#allocation66_spill] sm:$0xff] %v5676_v1  ;;  %v5678_v63 = vld [vmem:[#allocation4 + $0x110] sm:$0xff]  ;;  %v5682_v56 = vld [vmem:[#allocation4 + $0xe8] sm:$0xff] }
  0x58   :  { %600 = vmatpush1.msra.mxu0 %v5652_v58  ;;  %671 = vmatpush1.msra.mxu1 %v5654_v55  ;;  %9713 = vst [vmem:[#allocation67_spill] sm:$0xff] %v5678_v63  ;;  %9714 = vst [vmem:[#allocation68_spill] sm:$0xff] %v5682_v56  ;;  %v5684_v58 = vld [vmem:[#allocation4 + $0xf8] sm:$0xff]  ;;  %v5688_v55 = vld [vmem:[#allocation4 + $0xe0] sm:$0xff] }
  0x59   :  { %601 = vmatprep.subr.mxu0 %v5658_v60  ;;  %672 = vmatprep.subr.mxu1 %v5660_v59  ;;  %9715 = vst [vmem:[#allocation69_spill] sm:$0xff] %v5684_v58  ;;  %9716 = vst [vmem:[#allocation70_spill] sm:$0xff] %v5688_v55  ;;  %v5690_v60 = vld [vmem:[#allocation4 + $0xf0] sm:$0xff]  ;;  %v5694_v59 = vld [vmem:[#allocation4 + $0xc8] sm:$0xff] }
  0x5a   :  { %602 = vmatpush1.msra.mxu0 %v5664_v62  ;;  %673 = vmatpush1.msra.mxu1 %v5666_v61  ;;  %9717 = vst [vmem:[#allocation71_spill] sm:$0xff] %v5690_v60  ;;  %9718 = vst [vmem:[#allocation72_spill] sm:$0xff] %v5694_v59  ;;  %v5696_v62 = vld [vmem:[#allocation4 + $0xd8] sm:$0xff]  ;;  %v5700_v61 = vld [vmem:[#allocation4 + $0xc0] sm:$0xff] }
  0x5b   :  { %603 = vmatprep.subr.mxu0 %v5670_v0  ;;  %674 = vmatprep.subr.mxu1 %v5672_v2  ;;  %9719 = vst [vmem:[#allocation73_spill] sm:$0xff] %v5696_v62  ;;  %9720 = vst [vmem:[#allocation74_spill] sm:$0xff] %v5700_v61  ;;  %v5702_v0 = vld [vmem:[#allocation4 + $0xd0] sm:$0xff]  ;;  %v5706_v2 = vld [vmem:[#allocation4 + $0xa8] sm:$0xff] }
  0x5c   :  { %604 = vmatpush1.msra.mxu0 %v5676_v1  ;;  %675 = vmatpush1.msra.mxu1 %v5678_v63  ;;  %9721 = vst [vmem:[#allocation75_spill] sm:$0xff] %v5702_v0  ;;  %9722 = vst [vmem:[#allocation76_spill] sm:$0xff] %v5706_v2  ;;  %v5708_v1 = vld [vmem:[#allocation4 + $0xb8] sm:$0xff]  ;;  %v5712_v63 = vld [vmem:[#allocation4 + $0xa0] sm:$0xff] }
  0x5d   :  { %605 = vmatprep.subr.mxu0 %v5682_v56  ;;  %676 = vmatprep.subr.mxu1 %v5684_v58  ;;  %9723 = vst [vmem:[#allocation77_spill] sm:$0xff] %v5708_v1  ;;  %9724 = vst [vmem:[#allocation78_spill] sm:$0xff] %v5712_v63  ;;  %v5714_v56 = vld [vmem:[#allocation4 + $0xb0] sm:$0xff]  ;;  %v5718_v58 = vld [vmem:[#allocation4 + $0x88] sm:$0xff] }
  0x5e   :  { %606 = vmatpush1.msra.mxu0 %v5688_v55  ;;  %677 = vmatpush1.msra.mxu1 %v5690_v60  ;;  %9725 = vst [vmem:[#allocation79_spill] sm:$0xff] %v5714_v56  ;;  %9726 = vst [vmem:[#allocation80_spill] sm:$0xff] %v5718_v58  ;;  %v5720_v55 = vld [vmem:[#allocation4 + $0x98] sm:$0xff]  ;;  %v5724_v60 = vld [vmem:[#allocation4 + $0x80] sm:$0xff] }
  0x5f   :  { %607 = vmatprep.subr.mxu0 %v5694_v59  ;;  %678 = vmatprep.subr.mxu1 %v5696_v62  ;;  %9727 = vst [vmem:[#allocation81_spill] sm:$0xff] %v5720_v55  ;;  %9728 = vst [vmem:[#allocation82_spill] sm:$0xff] %v5724_v60  ;;  %v5726_v59 = vld [vmem:[#allocation4 + $0x90] sm:$0xff]  ;;  %v5730_v62 = vld [vmem:[#allocation4 + $0x68] sm:$0xff] }
  0x60   :  { %608 = vmatpush1.msra.mxu0 %v5700_v61  ;;  %679 = vmatpush1.msra.mxu1 %v5702_v0  ;;  %9729 = vst [vmem:[#allocation83_spill] sm:$0xff] %v5726_v59  ;;  %9730 = vst [vmem:[#allocation84_spill] sm:$0xff] %v5730_v62  ;;  %v5732_v61 = vld [vmem:[#allocation4 + $0x78] sm:$0xff]  ;;  %v5736_v0 = vld [vmem:[#allocation4 + $0x60] sm:$0xff] }
  0x61   :  { %609 = vmatprep.subr.mxu0 %v5706_v2  ;;  %680 = vmatprep.subr.mxu1 %v5708_v1  ;;  %9731 = vst [vmem:[#allocation85_spill] sm:$0xff] %v5732_v61  ;;  %9732 = vst [vmem:[#allocation86_spill] sm:$0xff] %v5736_v0  ;;  %v5738_v2 = vld [vmem:[#allocation4 + $0x70] sm:$0xff]  ;;  %v5742_v1 = vld [vmem:[#allocation4 + $0x48] sm:$0xff] }
  0x62   :  { %610 = vmatpush1.msra.mxu0 %v5712_v63  ;;  %681 = vmatpush1.msra.mxu1 %v5714_v56  ;;  %9733 = vst [vmem:[#allocation87_spill] sm:$0xff] %v5738_v2  ;;  %9734 = vst [vmem:[#allocation88_spill] sm:$0xff] %v5742_v1  ;;  %v5744_v63 = vld [vmem:[#allocation4 + $0x58] sm:$0xff]  ;;  %v5748_v56 = vld [vmem:[#allocation4 + $0x40] sm:$0xff] }
  0x63   :  { %611 = vmatprep.subr.mxu0 %v5718_v58  ;;  %682 = vmatprep.subr.mxu1 %v5720_v55  ;;  %9735 = vst [vmem:[#allocation89_spill] sm:$0xff] %v5744_v63  ;;  %9736 = vst [vmem:[#allocation90_spill] sm:$0xff] %v5748_v56  ;;  %v5750_v58 = vld [vmem:[#allocation4 + $0x50] sm:$0xff]  ;;  %v5754_v55 = vld [vmem:[#allocation4 + $0x28] sm:$0xff] }
  0x64   :  { %612 = vmatpush1.msra.mxu0 %v5724_v60  ;;  %683 = vmatpush1.msra.mxu1 %v5726_v59  ;;  %9737 = vst [vmem:[#allocation91_spill] sm:$0xff] %v5750_v58  ;;  %9738 = vst [vmem:[#allocation92_spill] sm:$0xff] %v5754_v55  ;;  %v5756_v60 = vld [vmem:[#allocation4 + $0x38] sm:$0xff]  ;;  %v5760_v59 = vld [vmem:[#allocation4 + $0x20] sm:$0xff] }
  0x65   :  { %613 = vmatprep.subr.mxu0 %v5730_v62  ;;  %684 = vmatprep.subr.mxu1 %v5732_v61  ;;  %9739 = vst [vmem:[#allocation93_spill] sm:$0xff] %v5756_v60  ;;  %9740 = vst [vmem:[#allocation94_spill] sm:$0xff] %v5760_v59  ;;  %v5762_v62 = vld [vmem:[#allocation4 + $0x30] sm:$0xff]  ;;  %v5766_v61 = vld [vmem:[#allocation4 + $0x8] sm:$0xff] }
  0x66   :  { %614 = vmatpush1.msra.mxu0 %v5736_v0  ;;  %685 = vmatpush1.msra.mxu1 %v5738_v2  ;;  %9741 = vst [vmem:[#allocation95_spill] sm:$0xff] %v5762_v62  ;;  %9742 = vst [vmem:[#allocation96_spill] sm:$0xff] %v5766_v61  ;;  %v5768_v0 = vld [vmem:[#allocation4 + $0x18] sm:$0xff]  ;;  %v5772_v2 = vld [vmem:[#allocation4] sm:$0xff] }
  0x67   :  { %615 = vmatprep.subr.mxu0 %v5742_v1  ;;  %686 = vmatprep.subr.mxu1 %v5744_v63  ;;  %9743 = vst [vmem:[#allocation97_spill] sm:$0xff] %v5768_v0  ;;  %9744 = vst [vmem:[#allocation98_spill] sm:$0xff] %v5772_v2  ;;  %v5776_v63 = vld [vmem:[#allocation4 + $0x10] sm:$0xff]  ;;  %v5940_v1 = vld [vmem:[#allocation7 + $0x68] sm:$0xff] }
  0x68   :  { %616 = vmatpush1.msra.mxu0 %v5748_v56  ;;  %687 = vmatpush1.msra.mxu1 %v5750_v58  ;;  %9745 = vst [vmem:[#allocation99_spill] sm:$0xff] %v5776_v63  ;;  %v5916_v58 = vld [vmem:[#allocation7 + $0xa8] sm:$0xff]  ;;  %v5924_v56 = vld [vmem:[#allocation7 + $0xb0] sm:$0xff]  ;;  %9794 = vst [vmem:[#allocation148_spill] sm:$0xff] %v5940_v1 }
  0x69   :  { %617 = vmatprep.subr.mxu0 %v5754_v55  ;;  %688 = vmatprep.subr.mxu1 %v5756_v60  ;;  %v127_v60 = vld [vmem:[%s8985_s0] sm:$0xff]  ;;  %9786 = vst [vmem:[#allocation140_spill] sm:$0xff] %v5916_v58  ;;  %9789 = vst [vmem:[#allocation143_spill] sm:$0xff] %v5924_v56 }
  0x6a   :  { %618 = vmatpush1.msra.mxu0 %v5760_v59  ;;  %689 = vmatpush1.msra.mxu1 %v5762_v62  ;;  %v5806_v62 = vld [vmem:[#allocation7 + $0x1e0] sm:$0xff]  ;;  %v5814_v59 = vld [vmem:[#allocation7 + $0x1d8] sm:$0xff] }
  0x6b   :  { %619 = vmatprep.subr.mxu0 %v5766_v61  ;;  %690 = vmatprep.subr.mxu1 %v5768_v0  ;;  %v133_v0 = vld [vmem:[%s8985_s0 + $0x30] sm:$0xff]  ;;  %v5802_v61 = vld [vmem:[#allocation7 + $0x1f8] sm:$0xff]  ;;  %9748 = vst [vmem:[#allocation102_spill] sm:$0xff] %v5806_v62  ;;  %9751 = vst [vmem:[#allocation105_spill] sm:$0xff] %v5814_v59 }
  0x6c   :  { %620 = vmatpush1.msra.mxu0 %v5772_v2  ;;  %653 = vmatprep.mubr.f32.mxu0 %v9685_v57  ;;  %v128_v2 = vld [vmem:[%s8985_s0 + $0x8] sm:$0xff]  ;;  %9747 = vst [vmem:[#allocation101_spill] sm:$0xff] %v5802_v61  ;;  %v5908_v55 = vld [vmem:[#allocation7 + $0xd8] sm:$0xff] }
  0x6d   :  { %691 = vmatpush1.msra.mxu1 %v5776_v63  ;;  %724 = vmatprep.mubr.f32.mxu1 %v9685_v57  ;;  %v131_v63 = vld [vmem:[%s8985_s0 + $0x20] sm:$0xff]  ;;  %9783 = vst [vmem:[#allocation137_spill] sm:$0xff] %v5908_v55 }
  0x6e   :  { %654 = vmatmul.mubr.f32.vlgmr.msra.gmra.mxu0 %v9685_v57  ;;  %725 = vmatmul.mubr.f32.vlgmr.msra.gmra.mxu1 %v9685_v57 }
  0x6f   :  { %138 = vperm.xlu0 %4459, %v127_v60   ;;  %884 = vmatprep.mubr.f32.mxu0 %v9685_v57  ;;  %v5800_v60 = vld [vmem:[#allocation7 + $0x1e8] sm:$0xff] }
  0x70   :  { %955 = vmatprep.mubr.f32.mxu1 %v9685_v57  ;;  %9746 = vst [vmem:[#allocation100_spill] sm:$0xff] %v5800_v60  ;;  %820 = vmatprep.subr.mxu0 %v5800_v60  ;;  %v5820_v60 = vld [vmem:[#allocation7 + $0x1d0] sm:$0xff] }
  0x71   :  { %891 = vmatprep.subr.mxu1 %v5802_v61  ;;  %821 = vmatpush1.msra.mxu0 %v5806_v62  ;;  %9753 = vst [vmem:[#allocation107_spill] sm:$0xff] %v5820_v60  ;;  %v5824_v61 = vld [vmem:[#allocation7 + $0x1a8] sm:$0xff]  ;;  %v5826_v62 = vld [vmem:[#allocation7 + $0x1b8] sm:$0xff] }
  0x72   :  { %9754 = vst [vmem:[#allocation108_spill] sm:$0xff] %v5824_v61  ;;  %9755 = vst [vmem:[#allocation109_spill] sm:$0xff] %v5826_v62 }
  0x73   :  { %143 = vperm.xlu0 %4459, %v128_v2   ;;  %v5808_v2 = vld [vmem:[#allocation7 + $0x1f0] sm:$0xff] }
  0x74   :  { %9749 = vst [vmem:[#allocation103_spill] sm:$0xff] %v5808_v2  ;;  %892 = vmatpush1.msra.mxu1 %v5808_v2  ;;  %v5830_v2 = vld [vmem:[#allocation7 + $0x1a0] sm:$0xff] }
  0x75   :  { %893 = vmatprep.subr.mxu1 %v5814_v59  ;;  %9756 = vst [vmem:[#allocation110_spill] sm:$0xff] %v5830_v2  ;;  %v5836_v59 = vld [vmem:[#allocation7 + $0x188] sm:$0xff] }
  0x76   :  { %894 = vmatpush1.msra.mxu1 %v5820_v60  ;;  %9758 = vst [vmem:[#allocation112_spill] sm:$0xff] %v5836_v59  ;;  %v5842_v60 = vld [vmem:[#allocation7 + $0x180] sm:$0xff] }
  0x77   :  { %158 = vperm.xlu0 %4459, %v131_v63   ;;  %v5812_v63 = vld [vmem:[#allocation7 + $0x1c8] sm:$0xff]  ;;  %895 = vmatprep.subr.mxu1 %v5826_v62  ;;  %9760 = vst [vmem:[#allocation114_spill] sm:$0xff] %v5842_v60 }
  0x78   :  { %9750 = vst [vmem:[#allocation104_spill] sm:$0xff] %v5812_v63  ;;  %822 = vmatprep.subr.mxu0 %v5812_v63  ;;  %v5832_v63 = vld [vmem:[#allocation7 + $0x1b0] sm:$0xff]  ;;  %v5848_v62 = vld [vmem:[#allocation7 + $0x168] sm:$0xff] }
  0x79   :  { %9757 = vst [vmem:[#allocation111_spill] sm:$0xff] %v5832_v63  ;;  %896 = vmatpush1.msra.mxu1 %v5832_v63  ;;  %9762 = vst [vmem:[#allocation116_spill] sm:$0xff] %v5848_v62  ;;  %v5854_v63 = vld [vmem:[#allocation7 + $0x160] sm:$0xff] }
  0x7a   :  { %9764 = vst [vmem:[#allocation118_spill] sm:$0xff] %v5854_v63 }
  0x7b   :  { %168 = vperm.xlu0 %4459, %v133_v0   ;;  %v5818_v0 = vld [vmem:[#allocation7 + $0x1c0] sm:$0xff] }
  0x7c   :  { %9752 = vst [vmem:[#allocation106_spill] sm:$0xff] %v5818_v0  ;;  %823 = vmatpush1.msra.mxu0 %v5818_v0  ;;  %v5838_v0 = vld [vmem:[#allocation7 + $0x198] sm:$0xff] }
  0x7d   :  { %824 = vmatprep.subr.mxu0 %v5824_v61  ;;  %9759 = vst [vmem:[#allocation113_spill] sm:$0xff] %v5838_v0  ;;  %897 = vmatprep.subr.mxu1 %v5838_v0  ;;  %v5844_v61 = vld [vmem:[#allocation7 + $0x190] sm:$0xff]  ;;  %v5860_v0 = vld [vmem:[#allocation7 + $0x148] sm:$0xff] }
  0x7e   :  { %825 = vmatpush1.msra.mxu0 %v5830_v2  ;;  %9761 = vst [vmem:[#allocation115_spill] sm:$0xff] %v5844_v61  ;;  %898 = vmatpush1.msra.mxu1 %v5844_v61  ;;  %v5850_v2 = vld [vmem:[#allocation7 + $0x178] sm:$0xff]  ;;  %9766 = vst [vmem:[#allocation120_spill] sm:$0xff] %v5860_v0  ;;  %v5866_v61 = vld [vmem:[#allocation7 + $0x140] sm:$0xff] }
  0x7f   :  { %826 = vmatprep.subr.mxu0 %v5836_v59  ;;  %9763 = vst [vmem:[#allocation117_spill] sm:$0xff] %v5850_v2  ;;  %899 = vmatprep.subr.mxu1 %v5850_v2  ;;  %v5856_v59 = vld [vmem:[#allocation7 + $0x170] sm:$0xff]  ;;  %9768 = vst [vmem:[#allocation122_spill] sm:$0xff] %v5866_v61  ;;  %v5872_v2 = vld [vmem:[#allocation7 + $0x128] sm:$0xff] }
  0x80   :  { %827 = vmatpush1.msra.mxu0 %v5842_v60  ;;  %9765 = vst [vmem:[#allocation119_spill] sm:$0xff] %v5856_v59  ;;  %900 = vmatpush1.msra.mxu1 %v5856_v59  ;;  %v5862_v60 = vld [vmem:[#allocation7 + $0x158] sm:$0xff]  ;;  %9770 = vst [vmem:[#allocation124_spill] sm:$0xff] %v5872_v2  ;;  %v5878_v59 = vld [vmem:[#allocation7 + $0x120] sm:$0xff] }
  0x81   :  { %828 = vmatprep.subr.mxu0 %v5848_v62  ;;  %9767 = vst [vmem:[#allocation121_spill] sm:$0xff] %v5862_v60  ;;  %901 = vmatprep.subr.mxu1 %v5862_v60  ;;  %v5868_v62 = vld [vmem:[#allocation7 + $0x150] sm:$0xff]  ;;  %9772 = vst [vmem:[#allocation126_spill] sm:$0xff] %v5878_v59  ;;  %v5884_v60 = vld [vmem:[#allocation7 + $0x108] sm:$0xff] }
  0x82   :  { %829 = vmatpush1.msra.mxu0 %v5854_v63  ;;  %9769 = vst [vmem:[#allocation123_spill] sm:$0xff] %v5868_v62  ;;  %902 = vmatpush1.msra.mxu1 %v5868_v62  ;;  %v5874_v63 = vld [vmem:[#allocation7 + $0x138] sm:$0xff]  ;;  %9774 = vst [vmem:[#allocation128_spill] sm:$0xff] %v5884_v60  ;;  %v5890_v62 = vld [vmem:[#allocation7 + $0x100] sm:$0xff] }
  0x83   :  { %830 = vmatprep.subr.mxu0 %v5860_v0  ;;  %9771 = vst [vmem:[#allocation125_spill] sm:$0xff] %v5874_v63  ;;  %903 = vmatprep.subr.mxu1 %v5874_v63  ;;  %v5880_v0 = vld [vmem:[#allocation7 + $0x130] sm:$0xff]  ;;  %9776 = vst [vmem:[#allocation130_spill] sm:$0xff] %v5890_v62  ;;  %v5896_v63 = vld [vmem:[#allocation7 + $0xe8] sm:$0xff] }
  0x84   :  { %831 = vmatpush1.msra.mxu0 %v5866_v61  ;;  %9773 = vst [vmem:[#allocation127_spill] sm:$0xff] %v5880_v0  ;;  %904 = vmatpush1.msra.mxu1 %v5880_v0  ;;  %v5886_v61 = vld [vmem:[#allocation7 + $0x118] sm:$0xff]  ;;  %9778 = vst [vmem:[#allocation132_spill] sm:$0xff] %v5896_v63  ;;  %v5900_v0 = vld [vmem:[#allocation7 + $0xe0] sm:$0xff] }
  0x85   :  { %832 = vmatprep.subr.mxu0 %v5872_v2  ;;  %9775 = vst [vmem:[#allocation129_spill] sm:$0xff] %v5886_v61  ;;  %905 = vmatprep.subr.mxu1 %v5886_v61  ;;  %v5892_v2 = vld [vmem:[#allocation7 + $0x110] sm:$0xff]  ;;  %9780 = vst [vmem:[#allocation134_spill] sm:$0xff] %v5900_v0  ;;  %v5906_v61 = vld [vmem:[#allocation7 + $0xc8] sm:$0xff] }
  0x86   :  { %833 = vmatpush1.msra.mxu0 %v5878_v59  ;;  %9777 = vst [vmem:[#allocation131_spill] sm:$0xff] %v5892_v2  ;;  %906 = vmatpush1.msra.mxu1 %v5892_v2  ;;  %v5898_v59 = vld [vmem:[#allocation7 + $0xf8] sm:$0xff]  ;;  %9782 = vst [vmem:[#allocation136_spill] sm:$0xff] %v5906_v61  ;;  %v5912_v2 = vld [vmem:[#allocation7 + $0xc0] sm:$0xff] }
  0x87   :  { %834 = vmatprep.subr.mxu0 %v5884_v60  ;;  %9779 = vst [vmem:[#allocation133_spill] sm:$0xff] %v5898_v59  ;;  %907 = vmatprep.subr.mxu1 %v5898_v59  ;;  %v5904_v60 = vld [vmem:[#allocation7 + $0xf0] sm:$0xff]  ;;  %9784 = vst [vmem:[#allocation138_spill] sm:$0xff] %v5912_v2  ;;  %v5920_v59 = vld [vmem:[#allocation7 + $0xb8] sm:$0xff] }
  0x88   :  { %835 = vmatpush1.msra.mxu0 %v5890_v62  ;;  %9781 = vst [vmem:[#allocation135_spill] sm:$0xff] %v5904_v60  ;;  %908 = vmatpush1.msra.mxu1 %v5904_v60  ;;  %v5914_v62 = vld [vmem:[#allocation7 + $0xd0] sm:$0xff]  ;;  %9787 = vst [vmem:[#allocation141_spill] sm:$0xff] %v5920_v59  ;;  %v5928_v60 = vld [vmem:[#allocation7 + $0x88] sm:$0xff] }
  0x89   :  { %836 = vmatprep.subr.mxu0 %v5896_v63  ;;  %9785 = vst [vmem:[#allocation139_spill] sm:$0xff] %v5914_v62  ;;  %909 = vmatprep.subr.mxu1 %v5908_v55  ;;  %v5922_v63 = vld [vmem:[#allocation7 + $0xa0] sm:$0xff]  ;;  %9790 = vst [vmem:[#allocation144_spill] sm:$0xff] %v5928_v60  ;;  %v5936_v55 = vld [vmem:[#allocation7 + $0x90] sm:$0xff] }
  0x8a   :  { %837 = vmatpush1.msra.mxu0 %v5900_v0  ;;  %9788 = vst [vmem:[#allocation142_spill] sm:$0xff] %v5922_v63  ;;  %910 = vmatpush1.msra.mxu1 %v5914_v62  ;;  %v5930_v0 = vld [vmem:[#allocation7 + $0x98] sm:$0xff]  ;;  %9793 = vst [vmem:[#allocation147_spill] sm:$0xff] %v5936_v55  ;;  %v5946_v62 = vld [vmem:[#allocation7 + $0x60] sm:$0xff] }
  0x8b   :  { %838 = vmatprep.subr.mxu0 %v5906_v61  ;;  %9791 = vst [vmem:[#allocation145_spill] sm:$0xff] %v5930_v0  ;;  %911 = vmatprep.subr.mxu1 %v5920_v59  ;;  %v5934_v61 = vld [vmem:[#allocation7 + $0x80] sm:$0xff]  ;;  %9796 = vst [vmem:[#allocation150_spill] sm:$0xff] %v5946_v62  ;;  %v5952_v59 = vld [vmem:[#allocation7 + $0x48] sm:$0xff] }
  0x8c   :  { %839 = vmatpush1.msra.mxu0 %v5912_v2  ;;  %9792 = vst [vmem:[#allocation146_spill] sm:$0xff] %v5934_v61  ;;  %912 = vmatpush1.msra.mxu1 %v5924_v56  ;;  %v5942_v2 = vld [vmem:[#allocation7 + $0x78] sm:$0xff]  ;;  %9798 = vst [vmem:[#allocation152_spill] sm:$0xff] %v5952_v59  ;;  %v5958_v56 = vld [vmem:[#allocation7 + $0x40] sm:$0xff] }
  0x8d   :  { %840 = vmatprep.subr.mxu0 %v5916_v58  ;;  %9795 = vst [vmem:[#allocation149_spill] sm:$0xff] %v5942_v2  ;;  %913 = vmatprep.subr.mxu1 %v5930_v0  ;;  %v5948_v58 = vld [vmem:[#allocation7 + $0x70] sm:$0xff]  ;;  %9800 = vst [vmem:[#allocation154_spill] sm:$0xff] %v5958_v56  ;;  %v5964_v0 = vld [vmem:[#allocation7 + $0x28] sm:$0xff] }
  0x8e   :  { %841 = vmatpush1.msra.mxu0 %v5922_v63  ;;  %9797 = vst [vmem:[#allocation151_spill] sm:$0xff] %v5948_v58  ;;  %914 = vmatpush1.msra.mxu1 %v5936_v55  ;;  %v5954_v63 = vld [vmem:[#allocation7 + $0x58] sm:$0xff]  ;;  %9802 = vst [vmem:[#allocation156_spill] sm:$0xff] %v5964_v0  ;;  %v5970_v55 = vld [vmem:[#allocation7 + $0x20] sm:$0xff] }
  0x8f   :  { %842 = vmatprep.subr.mxu0 %v5928_v60  ;;  %9799 = vst [vmem:[#allocation153_spill] sm:$0xff] %v5954_v63  ;;  %915 = vmatprep.subr.mxu1 %v5942_v2  ;;  %v5960_v60 = vld [vmem:[#allocation7 + $0x50] sm:$0xff]  ;;  %9804 = vst [vmem:[#allocation158_spill] sm:$0xff] %v5970_v55  ;;  %v5976_v2 = vld [vmem:[#allocation7 + $0x8] sm:$0xff] }
  0x90   :  { %843 = vmatpush1.msra.mxu0 %v5934_v61  ;;  %9801 = vst [vmem:[#allocation155_spill] sm:$0xff] %v5960_v60  ;;  %916 = vmatpush1.msra.mxu1 %v5948_v58  ;;  %v5966_v61 = vld [vmem:[#allocation7 + $0x38] sm:$0xff]  ;;  %9806 = vst [vmem:[#allocation160_spill] sm:$0xff] %v5976_v2  ;;  %v5982_v58 = vld [vmem:[#allocation7] sm:$0xff] }
  0x91   :  { %844 = vmatprep.subr.mxu0 %v5940_v1  ;;  %9803 = vst [vmem:[#allocation157_spill] sm:$0xff] %v5966_v61  ;;  %917 = vmatprep.subr.mxu1 %v5954_v63  ;;  %v5972_v1 = vld [vmem:[#allocation7 + $0x30] sm:$0xff]  ;;  %9808 = vst [vmem:[#allocation162_spill] sm:$0xff] %v5982_v58 }
  0x92   :  { %845 = vmatpush1.msra.mxu0 %v5946_v62  ;;  %9805 = vst [vmem:[#allocation159_spill] sm:$0xff] %v5972_v1  ;;  %918 = vmatpush1.msra.mxu1 %v5960_v60  ;;  %v5978_v62 = vld [vmem:[#allocation7 + $0x18] sm:$0xff] }
  0x93   :  { %846 = vmatprep.subr.mxu0 %v5952_v59  ;;  %9807 = vst [vmem:[#allocation161_spill] sm:$0xff] %v5978_v62  ;;  %919 = vmatprep.subr.mxu1 %v5966_v61  ;;  %v5984_v59 = vld [vmem:[#allocation7 + $0x10] sm:$0xff]  ;;  %v107_v61 = vlaneseq }
  0x94   :  { %847 = vmatpush1.msra.mxu0 %v5958_v56  ;;  %9809 = vst [vmem:[#allocation163_spill] sm:$0xff] %v5984_v59  ;;  %920 = vmatpush1.msra.mxu1 %v5972_v1 }
  0x95   :  { %848 = vmatprep.subr.mxu0 %v5964_v0  ;;  %921 = vmatprep.subr.mxu1 %v5978_v62  ;;  %v108_v0 = vshrl.u32 %v107_v61, 7 }
  0x96   :  { %849 = vmatpush1.msra.mxu0 %v5970_v55  ;;  %922 = vmatpush1.msra.mxu1 %v5984_v59  ;;  %v135_v55 = vld [vmem:[%s8986_s1] sm:$0xf] }
  0x97   :  { %850 = vmatprep.subr.mxu0 %v5976_v2  ;;  %1058 = vmatprep.subr.mxu1 %v5398_v4  ;;  %v5997_v60 = vsub.s32 0, %v108_v0  ;;  %v5999_v1 = vsub.s32 1, %v108_v0  ;;  %v229_v59 = vld [vmem:[%s8988_s3] sm:$0xf]  ;;  %v6010_v61 = vsub.s32 2, %v108_v0  ;;  %v6028_v51 = vsub.s32 3, %v108_v0 }
  0x98   :  { %851 = vmatpush1.msra.mxu0 %v5982_v58 }
  0x99   :  { %987 = vmatprep.subr.mxu0 %v5396_v3  ;;  %9810 = vst [vmem:[#allocation164_spill] sm:$0xff] %v5997_v60  ;;  %9811 = vst [vmem:[#allocation165_spill] sm:$0xff] %v5999_v1  ;;  %v6002_v62 = vrot.slane %v135_v55, %v5997_v60  ;;  %v6008_v3 = vrot.slane %v135_v55, %v5999_v1  ;;  %v6014_v2 = vrot.slane %v229_v59, %v5997_v60 }
  0x9a   :  { %9814 = vst [vmem:[#allocation168_spill] sm:$0xff] %v6010_v61  ;;  %v6019_v63 = vrot.slane %v135_v55, %v6010_v61  ;;  %v6023_v54 = vrot.slane %v229_v59, %v5999_v1  ;;  %v6032_v60 = vrot.slane %v229_v59, %v6010_v61  ;;  %v6038_v1 = vrot.slane %v135_v55, %v6028_v51 }
  0x9b   :  { %9812 = vst [vmem:[#allocation166_spill] sm:$0xff] %v6002_v62  ;;  %9813 = vst [vmem:[#allocation167_spill] sm:$0xff] %v6008_v3 }
  0x9c   :  { %9815 = vst [vmem:[#allocation169_spill] sm:$0xff] %v6014_v2  ;;  %9817 = vst [vmem:[#allocation171_spill] sm:$0xff] %v6019_v63 }
  0x9d   :  { %9818 = vst [vmem:[#allocation172_spill] sm:$0xff] %v6023_v54  ;;  %9820 = vst [vmem:[#allocation174_spill] sm:$0xff] %v6032_v60 }
  0x9e   :  { %9822 = vst [vmem:[#allocation176_spill] sm:$0xff] %v6038_v1 }
  0xea   :  { %v139_v4 = vpop.permute.xlu0 %138 }
  0xeb   :  { %v197_v58 = vmul.f32 %v6002_v62, %v139_v4  ;;  %v198_v57 = vmul.f32 %v6008_v3, %v139_v4  ;;  %v199_v62 = vmul.f32 %v6019_v63, %v139_v4  ;;  %v200_v61 = vmul.f32 %v6038_v1, %v139_v4 }
  0xed   :  { %v251_v53 = vadd.f32 %v6014_v2, %v197_v58  ;;  %v253_v2 = vadd.f32 %v6032_v60, %v199_v62 }
 0x10c   :  { %v6016_v56 = vpop.f32.mrf.mxu0 }
 0x10d   :  { %9816 = vst [vmem:[#allocation170_spill] sm:$0xff] %v6016_v56  ;;  %v252_v56 = vadd.f32 %v6023_v54, %v198_v57  ;;  %v6035_v50 = vpop.f32.mrf.mxu1  ;;  %v6045_v57 = vrot.slane %v229_v59, %v6028_v51 }
 0x10e   :  { %v6026_v52 = vpop.f32.mrf.mxu0  ;;  %9821 = vst [vmem:[#allocation175_spill] sm:$0xff] %v6035_v50 }
 0x10f   :  { %9819 = vst [vmem:[#allocation173_spill] sm:$0xff] %v6026_v52  ;;  %v6041_v52 = vpop.f32.mrf.mxu1 }
 0x110   :  { %9823 = vst [vmem:[#allocation177_spill] sm:$0xff] %v6041_v52 }
 0x12e   :  { %v655_v49 = vpop.f32.mrf.mxu0  ;;  %v726_v54 = vpop.f32.mrf.mxu1 }
 0x12f   :  { %v731_v3 = vadd.f32 %v655_v49, %v251_v53  ;;  %v733_v50 = vadd.f32 %v726_v54, %v253_v2  ;;  %v254_v49 = vadd.f32 %v6045_v57, %v200_v61 }
 0x130   :  { %v657_v48 = vpop.f32.mrf.mxu0  ;;  %v728_v53 = vpop.f32.mrf.mxu1 }
 0x131   :  { %v735_v58 = vmul.f32 0.5, %v731_v3  ;;  %v732_v0 = vadd.f32 %v657_v48, %v252_v56  ;;  %v734_v55 = vadd.f32 %v728_v53, %v254_v49  ;;  %v9854_v49 = vld [vmem:[#allocation177_spill] sm:$0xff] }
 0x133   :  { %4461 = vtanh.f32 %v735_v58  ;;  %v736_v63 = vmul.f32 0.5, %v732_v0  ;;  %v738_v3 = vmul.f32 0.5, %v734_v55 }
 0x135   :  { %4463 = vtanh.f32 %v736_v63 }
 0x136   :  { %4465 = vtanh.f32 %v733_v50 }
 0x137   :  { %4467 = vtanh.f32 %v738_v3 }
 0x140   :  { %v4462_v62 = vpop.eup %4461 }
 0x141   :  { %v743_v48 = vmul.f32 0.5, %v4462_v62 }
 0x142   :  { %v4464_v56 = vpop.eup %4463 }
 0x143   :  { %v747_v60 = vadd.f32 0.5, %v743_v48  ;;  %v744_v58 = vmul.f32 0.5, %v4464_v56  ;;  %v4466_v4 = vpop.eup %4465 }
 0x144   :  { %v4468_v54 = vpop.eup %4467 }
 0x145   :  { %v748_v0 = vadd.f32 0.5, %v744_v58  ;;  %v752_v59 = vmul.f32 %v4466_v4, %v747_v60  ;;  %v746_v2 = vmul.f32 0.5, %v4468_v54 }
 0x147   :  { %v751_v1 = vmul.f32 0.0, %v748_v0  ;;  %v750_v63 = vadd.f32 0.5, %v746_v2 }
 0x149   :  { %v6048_v52 = vadd.f32 %v752_v59, %v751_v1  ;;  %v9824_v1 = vld [vmem:[#allocation17_spill] sm:$0xff] }
 0x14b   :  { %4469 = vtanh.f32 %v6048_v52 }
 0x158   :  { %v4470_v50 = vpop.eup %4469 }
 0x159   :  { %v6051_v61 = vmul.f32 %v4470_v50, %v750_v63 }
 0x15b   :  { %885 = vmatmul.mubr.f32.vlgmr.msra.gmra.mxu0 %v6051_v61  ;;  %956 = vmatmul.mubr.f32.vlgmr.msra.gmra.mxu1 %v6051_v61 }
 0x15c   :  { %988 = vmatpush1.msra.mxu0 %v5400_v5  ;;  %1059 = vmatpush1.msra.mxu1 %v5404_v6  ;;  %v9825_v5 = vld [vmem:[#allocation18_spill] sm:$0xff]  ;;  %v9826_v6 = vld [vmem:[#allocation19_spill] sm:$0xff] }
 0x15d   :  { %989 = vmatprep.subr.mxu0 %v5406_v7  ;;  %1060 = vmatprep.subr.mxu1 %v5408_v8  ;;  %v9827_v7 = vld [vmem:[#allocation20_spill] sm:$0xff]  ;;  %v9828_v8 = vld [vmem:[#allocation21_spill] sm:$0xff] }
 0x15e   :  { %990 = vmatpush1.msra.mxu0 %v5412_v9  ;;  %1061 = vmatpush1.msra.mxu1 %v5414_v10  ;;  %v9829_v9 = vld [vmem:[#allocation22_spill] sm:$0xff]  ;;  %v9830_v10 = vld [vmem:[#allocation23_spill] sm:$0xff] }
 0x15f   :  { %991 = vmatprep.subr.mxu0 %v5416_v11  ;;  %1062 = vmatprep.subr.mxu1 %v5420_v12  ;;  %v9831_v11 = vld [vmem:[#allocation24_spill] sm:$0xff]  ;;  %v9832_v12 = vld [vmem:[#allocation25_spill] sm:$0xff] }
 0x160   :  { %992 = vmatpush1.msra.mxu0 %v5422_v13  ;;  %1063 = vmatpush1.msra.mxu1 %v5424_v14  ;;  %v9833_v13 = vld [vmem:[#allocation26_spill] sm:$0xff]  ;;  %v9834_v14 = vld [vmem:[#allocation27_spill] sm:$0xff] }
 0x161   :  { %993 = vmatprep.subr.mxu0 %v5428_v15  ;;  %1064 = vmatprep.subr.mxu1 %v5430_v16  ;;  %v9835_v15 = vld [vmem:[#allocation28_spill] sm:$0xff]  ;;  %v9836_v16 = vld [vmem:[#allocation29_spill] sm:$0xff] }
 0x162   :  { %994 = vmatpush1.msra.mxu0 %v5434_v17  ;;  %1065 = vmatpush1.msra.mxu1 %v5436_v18  ;;  %v9837_v17 = vld [vmem:[#allocation30_spill] sm:$0xff]  ;;  %v9838_v18 = vld [vmem:[#allocation31_spill] sm:$0xff] }
 0x163   :  { %995 = vmatprep.subr.mxu0 %v5440_v19  ;;  %1066 = vmatprep.subr.mxu1 %v5442_v20  ;;  %v9839_v19 = vld [vmem:[#allocation32_spill] sm:$0xff]  ;;  %v9840_v20 = vld [vmem:[#allocation33_spill] sm:$0xff] }
 0x164   :  { %996 = vmatpush1.msra.mxu0 %v5446_v21  ;;  %1067 = vmatpush1.msra.mxu1 %v5448_v22  ;;  %v9841_v21 = vld [vmem:[#allocation34_spill] sm:$0xff]  ;;  %v9842_v22 = vld [vmem:[#allocation35_spill] sm:$0xff] }
 0x165   :  { %997 = vmatprep.subr.mxu0 %v5452_v23  ;;  %1068 = vmatprep.subr.mxu1 %v5454_v24  ;;  %v9843_v23 = vmov 0.0   ;;  %v9844_v24 = vld [vmem:[#allocation36_spill] sm:$0xff] }
 0x166   :  { %998 = vmatpush1.msra.mxu0 %v5458_v25  ;;  %1069 = vmatpush1.msra.mxu1 %v5460_v26  ;;  %v9845_v25 = vld [vmem:[#allocation37_spill] sm:$0xff] }
 0x167   :  { %999 = vmatprep.subr.mxu0 %v5464_v27  ;;  %1070 = vmatprep.subr.mxu1 %v5466_v28  ;;  %v105_v26 = vld [vmem:[%s8991_s6] sm:$0xf] }
 0x168   :  { %1000 = vmatpush1.msra.mxu0 %v5470_v29  ;;  %1071 = vmatpush1.msra.mxu1 %v5472_v30  ;;  %v9846_v27 = vld [vmem:[#allocation164_spill] sm:$0xff]  ;;  %v9848_v29 = vld [vmem:[#allocation165_spill] sm:$0xff] }
 0x169   :  { %1001 = vmatprep.subr.mxu0 %v5476_v31  ;;  %1072 = vmatprep.subr.mxu1 %v5478_v32  ;;  %v6125_v28 = vrot.slane %v105_v26, %v9846_v27  ;;  %v6128_v30 = vrot.slane %v105_v26, %v9848_v29  ;;  %v9850_v31 = vld [vmem:[#allocation170_spill] sm:$0xff]  ;;  %v9872_v27 = vld [vmem:[#allocation55_spill] sm:$0xff]  ;;  %v9873_v29 = vld [vmem:[#allocation56_spill] sm:$0xff] }
 0x16a   :  { %1002 = vmatpush1.msra.mxu0 %v5482_v33  ;;  %1073 = vmatpush1.msra.mxu1 %v5484_v34  ;;  %v9851_v33 = vld [vmem:[#allocation168_spill] sm:$0xff] }
 0x16b   :  { %1003 = vmatprep.subr.mxu0 %v5488_v35  ;;  %1074 = vmatprep.subr.mxu1 %v5490_v36  ;;  %9847 = vst [vmem:[#allocation17_spill] sm:$0xff] %v6125_v28  ;;  %9849 = vst [vmem:[#allocation18_spill] sm:$0xff] %v6128_v30  ;;  %v446_v32 = vadd.f32 %v9850_v31, %v6125_v28  ;;  %v6133_v34 = vrot.slane %v105_v26, %v9851_v33  ;;  %v9852_v36 = vld [vmem:[#allocation173_spill] sm:$0xff]  ;;  %v9876_v33 = vld [vmem:[#allocation59_spill] sm:$0xff] }
 0x16c   :  { %1004 = vmatpush1.msra.mxu0 %v5494_v37  ;;  %1075 = vmatpush1.msra.mxu1 %v5496_v38  ;;  %v448_v37 = vadd.f32 %v9852_v36, %v6128_v30  ;;  %v9874_v31 = vld [vmem:[#allocation57_spill] sm:$0xff] }
 0x16d   :  { %1005 = vmatprep.subr.mxu0 %v5500_v39  ;;  %1076 = vmatprep.subr.mxu1 %v5502_v40  ;;  %v9878_v36 = vld [vmem:[#allocation61_spill] sm:$0xff] }
 0x16e   :  { %1006 = vmatpush1.msra.mxu0 %v5506_v41  ;;  %1077 = vmatpush1.msra.mxu1 %v5508_v42  ;;  %v9853_v41 = vld [vmem:[#allocation175_spill] sm:$0xff] }
 0x16f   :  { %1007 = vmatprep.subr.mxu0 %v5512_v43  ;;  %1078 = vmatprep.subr.mxu1 %v5514_v44  ;;  %v517_v42 = vadd.f32 %v9853_v41, %v6133_v34  ;;  %v9883_v41 = vld [vmem:[#allocation66_spill] sm:$0xff] }
 0x170   :  { %1008 = vmatpush1.msra.mxu0 %v5518_v45  ;;  %1079 = vmatpush1.msra.mxu1 %v5520_v46 }
 0x171   :  { %1009 = vmatprep.subr.mxu0 %v5524_v47  ;;  %1080 = vmatprep.subr.mxu1 %v9824_v1  ;;  %v6140_v47 = vrot.slane %v105_v26, %v6028_v51  ;;  %v9871_v26 = vld [vmem:[#allocation54_spill] sm:$0xff] }
 0x172   :  { %1010 = vmatpush1.msra.mxu0 %v9825_v5  ;;  %1081 = vmatpush1.msra.mxu1 %v9826_v6  ;;  %v6150_v6 = vld [vmem:[%s8992_s7] ss:$0 sm:$0xff] }
 0x173   :  { %1011 = vmatprep.subr.mxu0 %v9827_v7  ;;  %1082 = vmatprep.subr.mxu1 %v9828_v8  ;;  %v519_v53 = vadd.f32 %v9854_v49, %v6140_v47  ;;  %v9890_v49 = vld [vmem:[#allocation73_spill] sm:$0xff] }
 0x174   :  { %1012 = vmatpush1.msra.mxu0 %v9829_v9  ;;  %1083 = vmatpush1.msra.mxu1 %v9830_v10  ;;  %v9855_v9 = vld [vmem:[#allocation38_spill] sm:$0xff]  ;;  %v9856_v10 = vld [vmem:[#allocation39_spill] sm:$0xff] }
 0x175   :  { %1013 = vmatprep.subr.mxu0 %v9831_v11  ;;  %1084 = vmatprep.subr.mxu1 %v9832_v12  ;;  %v9857_v11 = vld [vmem:[#allocation40_spill] sm:$0xff]  ;;  %v9858_v12 = vld [vmem:[#allocation41_spill] sm:$0xff] }
 0x176   :  { %1014 = vmatpush1.msra.mxu0 %v9833_v13  ;;  %1085 = vmatpush1.msra.mxu1 %v9834_v14  ;;  %v9859_v13 = vld [vmem:[#allocation42_spill] sm:$0xff]  ;;  %v9860_v14 = vld [vmem:[#allocation43_spill] sm:$0xff] }
 0x177   :  { %1015 = vmatprep.subr.mxu0 %v9835_v15  ;;  %1086 = vmatprep.subr.mxu1 %v9836_v16  ;;  %v9861_v15 = vld [vmem:[#allocation44_spill] sm:$0xff]  ;;  %v9862_v16 = vld [vmem:[#allocation45_spill] sm:$0xff] }
 0x178   :  { %1016 = vmatpush1.msra.mxu0 %v9837_v17  ;;  %1087 = vmatpush1.msra.mxu1 %v9838_v18  ;;  %v9863_v17 = vld [vmem:[#allocation46_spill] sm:$0xff]  ;;  %v9864_v18 = vld [vmem:[#allocation47_spill] sm:$0xff] }
 0x179   :  { %1017 = vmatprep.subr.mxu0 %v9839_v19  ;;  %1088 = vmatprep.subr.mxu1 %v9840_v20  ;;  %v9865_v19 = vld [vmem:[#allocation48_spill] sm:$0xff]  ;;  %v9866_v20 = vld [vmem:[#allocation49_spill] sm:$0xff] }
 0x17a   :  { %1018 = vmatpush1.msra.mxu0 %v9841_v21  ;;  %1089 = vmatpush1.msra.mxu1 %v9842_v22  ;;  %v9867_v21 = vld [vmem:[#allocation50_spill] sm:$0xff]  ;;  %v9868_v22 = vld [vmem:[#allocation51_spill] sm:$0xff] }
 0x17b   :  { %1051 = vmatprep.mubr.f32.mxu0 %v9843_v23  ;;  %1122 = vmatprep.mubr.f32.mxu1 %v9843_v23 }
 0x17c   :  { %1133 = vmatprep.subr.mxu0 %v9844_v24  ;;  %1204 = vmatprep.subr.mxu1 %v9845_v25  ;;  %v9869_v24 = vld [vmem:[#allocation52_spill] sm:$0xff]  ;;  %v9870_v25 = vld [vmem:[#allocation53_spill] sm:$0xff] }
 0x21b   :  { %v886_v35 = vpop.f32.mrf.mxu0  ;;  %v957_v39 = vpop.f32.mrf.mxu1 }
 0x21c   :  { %v962_v38 = vadd.f32 %v886_v35, %v446_v32  ;;  %v964_v45 = vadd.f32 %v957_v39, %v517_v42  ;;  %v9875_v32 = vld [vmem:[#allocation58_spill] sm:$0xff]  ;;  %v9877_v35 = vld [vmem:[#allocation60_spill] sm:$0xff]  ;;  %v9884_v42 = vld [vmem:[#allocation67_spill] sm:$0xff] }
 0x21d   :  { %v888_v40 = vpop.f32.mrf.mxu0  ;;  %v959_v60 = vpop.f32.mrf.mxu1  ;;  %v9881_v39 = vld [vmem:[#allocation64_spill] sm:$0xff] }
 0x21e   :  { %v966_v43 = vmul.f32 0.5, %v962_v38  ;;  %v963_v44 = vadd.f32 %v888_v40, %v448_v37  ;;  %v965_v55 = vadd.f32 %v959_v60, %v519_v53  ;;  %v9879_v37 = vld [vmem:[#allocation62_spill] sm:$0xff]  ;;  %v9880_v38 = vld [vmem:[#allocation63_spill] sm:$0xff]  ;;  %v9882_v40 = vld [vmem:[#allocation65_spill] sm:$0xff] }
 0x21f   :  { %v9889_v60 = vld [vmem:[#allocation72_spill] sm:$0xff]  ;;  %v9891_v53 = vld [vmem:[#allocation74_spill] sm:$0xff] }
 0x220   :  { %4471 = vtanh.f32 %v966_v43  ;;  %v967_v46 = vmul.f32 0.5, %v963_v44  ;;  %v969_v3 = vmul.f32 0.5, %v965_v55  ;;  %v9885_v43 = vld [vmem:[#allocation68_spill] sm:$0xff]  ;;  %v9886_v44 = vld [vmem:[#allocation69_spill] sm:$0xff]  ;;  %v9892_v55 = vld [vmem:[#allocation75_spill] sm:$0xff] }
 0x222   :  { %4473 = vtanh.f32 %v967_v46  ;;  %v9888_v46 = vld [vmem:[#allocation71_spill] sm:$0xff] }
 0x223   :  { %4475 = vtanh.f32 %v964_v45  ;;  %v9887_v45 = vld [vmem:[#allocation70_spill] sm:$0xff] }
 0x224   :  { %4477 = vtanh.f32 %v969_v3  ;;  %v9893_v3 = vld [vmem:[#allocation76_spill] sm:$0xff] }
 0x22d   :  { %v4472_v62 = vpop.eup %4471 }
 0x22e   :  { %v974_v48 = vmul.f32 0.5, %v4472_v62  ;;  %v9894_v62 = vld [vmem:[#allocation77_spill] sm:$0xff] }
 0x22f   :  { %v4474_v56 = vpop.eup %4473 }
 0x230   :  { %v978_v58 = vadd.f32 0.5, %v974_v48  ;;  %v975_v0 = vmul.f32 0.5, %v4474_v56  ;;  %v4476_v4 = vpop.eup %4475  ;;  %v9895_v48 = vld [vmem:[#allocation78_spill] sm:$0xff]  ;;  %v9896_v56 = vld [vmem:[#allocation79_spill] sm:$0xff] }
 0x231   :  { %v4478_v63 = vpop.eup %4477 }
 0x232   :  { %v979_v59 = vadd.f32 0.5, %v975_v0  ;;  %v983_v54 = vmul.f32 %v4476_v4, %v978_v58  ;;  %v977_v50 = vmul.f32 0.5, %v4478_v63  ;;  %v9897_v58 = vld [vmem:[#allocation80_spill] sm:$0xff]  ;;  %v9898_v0 = vld [vmem:[#allocation81_spill] sm:$0xff]  ;;  %v9899_v4 = vld [vmem:[#allocation82_spill] sm:$0xff] }
 0x233   :  { %v9903_v63 = vld [vmem:[#allocation86_spill] sm:$0xff] }
 0x234   :  { %v982_v2 = vmul.f32 0.0, %v979_v59  ;;  %v981_v1 = vadd.f32 0.5, %v977_v50  ;;  %v9900_v59 = vld [vmem:[#allocation83_spill] sm:$0xff] }
 0x235   :  { %v9904_v50 = vld [vmem:[#allocation87_spill] sm:$0xff] }
 0x236   :  { %v6144_v51 = vadd.f32 %v983_v54, %v982_v2  ;;  %v9901_v54 = vld [vmem:[#allocation84_spill] sm:$0xff]  ;;  %v9902_v2 = vld [vmem:[#allocation85_spill] sm:$0xff] }
 0x238   :  { %4479 = vtanh.f32 %v6144_v51 }
 0x245   :  { %v4480_v5 = vpop.eup %4479 }
 0x246   :  { %v986_v7 = vmul.f32 %v4480_v5, %v981_v1  ;;  %v9905_v1 = vld [vmem:[#allocation88_spill] sm:$0xff]  ;;  %v9906_v5 = vld [vmem:[#allocation89_spill] sm:$0xff] }
 0x248   :  { %1052 = vmatmul.mubr.f32.vlgmr.msra.gmra.mxu0 %v986_v7  ;;  %1123 = vmatmul.mubr.f32.vlgmr.msra.gmra.mxu1 %v986_v7  ;;  %v4354_v8 = vmul.f32 %v6150_v6, %v986_v7  ;;  %v9907_v7 = vld [vmem:[#allocation90_spill] sm:$0xff] }
 0x249   :  { %1134 = vmatpush1.msra.mxu0 %v9855_v9  ;;  %1205 = vmatpush1.msra.mxu1 %v9856_v10  ;;  %v9909_v9 = vld [vmem:[#allocation92_spill] sm:$0xff]  ;;  %v9910_v10 = vld [vmem:[#allocation93_spill] sm:$0xff] }
 0x24a   :  { %1135 = vmatprep.subr.mxu0 %v9857_v11  ;;  %1206 = vmatprep.subr.mxu1 %v9858_v12  ;;  %v9911_v11 = vld [vmem:[#allocation94_spill] sm:$0xff]  ;;  %v9912_v12 = vld [vmem:[#allocation95_spill] sm:$0xff] }
 0x24b   :  { %4362 = vadd.xlane.f32.xlu0 %v4354_v8  ;;  %1136 = vmatpush1.msra.mxu0 %v9859_v13  ;;  %v9908_v8 = vld [vmem:[#allocation91_spill] sm:$0xff]  ;;  %v9913_v13 = vld [vmem:[#allocation96_spill] sm:$0xff] }
 0x24c   :  { %1207 = vmatpush1.msra.mxu1 %v9860_v14  ;;  %1137 = vmatprep.subr.mxu0 %v9861_v15  ;;  %v9914_v14 = vld [vmem:[#allocation97_spill] sm:$0xff]  ;;  %v9915_v15 = vld [vmem:[#allocation98_spill] sm:$0xff] }
 0x24d   :  { %1208 = vmatprep.subr.mxu1 %v9862_v16  ;;  %1138 = vmatpush1.msra.mxu0 %v9863_v17  ;;  %v9916_v16 = vld [vmem:[#allocation99_spill] sm:$0xff]  ;;  %v9917_v17 = vld [vmem:[#allocation100_spill] sm:$0xff] }
 0x24e   :  { %1209 = vmatpush1.msra.mxu1 %v9864_v18  ;;  %1139 = vmatprep.subr.mxu0 %v9865_v19  ;;  %v9918_v18 = vld [vmem:[#allocation101_spill] sm:$0xff]  ;;  %v9919_v19 = vld [vmem:[#allocation102_spill] sm:$0xff] }
 0x24f   :  { %1210 = vmatprep.subr.mxu1 %v9866_v20  ;;  %1140 = vmatpush1.msra.mxu0 %v9867_v21  ;;  %v9920_v20 = vld [vmem:[#allocation103_spill] sm:$0xff]  ;;  %v9921_v21 = vld [vmem:[#allocation104_spill] sm:$0xff] }
 0x250   :  { %1211 = vmatpush1.msra.mxu1 %v9868_v22  ;;  %1141 = vmatprep.subr.mxu0 %v9869_v24  ;;  %v9922_v22 = vld [vmem:[#allocation105_spill] sm:$0xff]  ;;  %v9923_v24 = vld [vmem:[#allocation106_spill] sm:$0xff] }
 0x251   :  { %1212 = vmatprep.subr.mxu1 %v9870_v25  ;;  %1142 = vmatpush1.msra.mxu0 %v9871_v26  ;;  %v9924_v25 = vld [vmem:[#allocation107_spill] sm:$0xff]  ;;  %v9925_v26 = vld [vmem:[#allocation108_spill] sm:$0xff] }
 0x252   :  { %1213 = vmatpush1.msra.mxu1 %v9872_v27  ;;  %1143 = vmatprep.subr.mxu0 %v9873_v29  ;;  %v9926_v27 = vld [vmem:[#allocation109_spill] sm:$0xff]  ;;  %v9928_v29 = vld [vmem:[#allocation111_spill] sm:$0xff] }
 0x253   :  { %1214 = vmatprep.subr.mxu1 %v9874_v31  ;;  %1144 = vmatpush1.msra.mxu0 %v9875_v32  ;;  %v9929_v31 = vld [vmem:[#allocation112_spill] sm:$0xff]  ;;  %v9930_v32 = vld [vmem:[#allocation113_spill] sm:$0xff] }
 0x254   :  { %1215 = vmatpush1.msra.mxu1 %v9876_v33  ;;  %1145 = vmatprep.subr.mxu0 %v9877_v35  ;;  %v9931_v33 = vld [vmem:[#allocation114_spill] sm:$0xff]  ;;  %v9932_v35 = vld [vmem:[#allocation115_spill] sm:$0xff] }
 0x255   :  { %1216 = vmatprep.subr.mxu1 %v9878_v36  ;;  %1146 = vmatpush1.msra.mxu0 %v9879_v37  ;;  %v9933_v36 = vld [vmem:[#allocation116_spill] sm:$0xff]  ;;  %v9934_v37 = vld [vmem:[#allocation117_spill] sm:$0xff] }
 0x256   :  { %1217 = vmatpush1.msra.mxu1 %v9880_v38  ;;  %1147 = vmatprep.subr.mxu0 %v9881_v39  ;;  %v9935_v38 = vld [vmem:[#allocation118_spill] sm:$0xff]  ;;  %v9936_v39 = vld [vmem:[#allocation119_spill] sm:$0xff] }
 0x257   :  { %1218 = vmatprep.subr.mxu1 %v9882_v40  ;;  %1148 = vmatpush1.msra.mxu0 %v9883_v41  ;;  %v9937_v40 = vld [vmem:[#allocation120_spill] sm:$0xff]  ;;  %v9938_v41 = vld [vmem:[#allocation121_spill] sm:$0xff] }
 0x258   :  { %1219 = vmatpush1.msra.mxu1 %v9884_v42  ;;  %1149 = vmatprep.subr.mxu0 %v9885_v43  ;;  %v9939_v42 = vld [vmem:[#allocation122_spill] sm:$0xff]  ;;  %v9940_v43 = vld [vmem:[#allocation123_spill] sm:$0xff] }
 0x259   :  { %1220 = vmatprep.subr.mxu1 %v9886_v44  ;;  %1150 = vmatpush1.msra.mxu0 %v9887_v45  ;;  %v9941_v44 = vld [vmem:[#allocation124_spill] sm:$0xff]  ;;  %v9942_v45 = vld [vmem:[#allocation125_spill] sm:$0xff] }
 0x25a   :  { %1221 = vmatpush1.msra.mxu1 %v9888_v46  ;;  %1151 = vmatprep.subr.mxu0 %v9889_v60  ;;  %v9943_v46 = vld [vmem:[#allocation126_spill] sm:$0xff]  ;;  %v9944_v60 = vld [vmem:[#allocation127_spill] sm:$0xff] }
 0x25b   :  { %1222 = vmatprep.subr.mxu1 %v9890_v49  ;;  %1152 = vmatpush1.msra.mxu0 %v9891_v53  ;;  %v9945_v49 = vld [vmem:[#allocation128_spill] sm:$0xff]  ;;  %v9946_v53 = vld [vmem:[#allocation129_spill] sm:$0xff] }
 0x25c   :  { %1223 = vmatpush1.msra.mxu1 %v9892_v55  ;;  %1153 = vmatprep.subr.mxu0 %v9893_v3  ;;  %v9947_v55 = vld [vmem:[#allocation130_spill] sm:$0xff]  ;;  %v9948_v3 = vld [vmem:[#allocation131_spill] sm:$0xff] }
 0x25d   :  { %1224 = vmatprep.subr.mxu1 %v9894_v62  ;;  %1154 = vmatpush1.msra.mxu0 %v9895_v48  ;;  %v9949_v62 = vld [vmem:[#allocation132_spill] sm:$0xff]  ;;  %v9950_v48 = vld [vmem:[#allocation133_spill] sm:$0xff] }
 0x25e   :  { %1225 = vmatpush1.msra.mxu1 %v9896_v56  ;;  %1155 = vmatprep.subr.mxu0 %v9897_v58  ;;  %v9951_v56 = vld [vmem:[#allocation134_spill] sm:$0xff]  ;;  %v9952_v58 = vld [vmem:[#allocation135_spill] sm:$0xff] }
 0x25f   :  { %1226 = vmatprep.subr.mxu1 %v9898_v0  ;;  %1156 = vmatpush1.msra.mxu0 %v9899_v4  ;;  %v9953_v0 = vld [vmem:[#allocation136_spill] sm:$0xff]  ;;  %v9954_v4 = vld [vmem:[#allocation137_spill] sm:$0xff] }
 0x260   :  { %1227 = vmatpush1.msra.mxu1 %v9900_v59  ;;  %1157 = vmatprep.subr.mxu0 %v9901_v54  ;;  %v9955_v59 = vld [vmem:[#allocation138_spill] sm:$0xff]  ;;  %v9956_v54 = vld [vmem:[#allocation139_spill] sm:$0xff] }
 0x261   :  { %1228 = vmatprep.subr.mxu1 %v9902_v2  ;;  %1158 = vmatpush1.msra.mxu0 %v9903_v63  ;;  %v9957_v2 = vld [vmem:[#allocation140_spill] sm:$0xff]  ;;  %v9958_v63 = vld [vmem:[#allocation141_spill] sm:$0xff] }
 0x262   :  { %1229 = vmatpush1.msra.mxu1 %v9904_v50  ;;  %1159 = vmatprep.subr.mxu0 %v9905_v1  ;;  %v9959_v50 = vld [vmem:[#allocation142_spill] sm:$0xff]  ;;  %v9960_v1 = vld [vmem:[#allocation143_spill] sm:$0xff] }
 0x263   :  { %1230 = vmatprep.subr.mxu1 %v9906_v5  ;;  %1160 = vmatpush1.msra.mxu0 %v9907_v7  ;;  %v9961_v5 = vld [vmem:[#allocation144_spill] sm:$0xff]  ;;  %v9962_v7 = vld [vmem:[#allocation145_spill] sm:$0xff] }
 0x264   :  { %1231 = vmatpush1.msra.mxu1 %v9908_v8  ;;  %1161 = vmatprep.subr.mxu0 %v9909_v9  ;;  %v9963_v8 = vld [vmem:[#allocation146_spill] sm:$0xff]  ;;  %v9964_v9 = vld [vmem:[#allocation147_spill] sm:$0xff] }
 0x265   :  { %1232 = vmatprep.subr.mxu1 %v9910_v10  ;;  %1162 = vmatpush1.msra.mxu0 %v9911_v11  ;;  %v9965_v10 = vld [vmem:[#allocation148_spill] sm:$0xff]  ;;  %v9966_v11 = vld [vmem:[#allocation149_spill] sm:$0xff] }
 0x266   :  { %1233 = vmatpush1.msra.mxu1 %v9912_v12  ;;  %1163 = vmatprep.subr.mxu0 %v9913_v13  ;;  %v9967_v12 = vld [vmem:[#allocation150_spill] sm:$0xff]  ;;  %v9968_v13 = vld [vmem:[#allocation151_spill] sm:$0xff] }
 0x267   :  { %1234 = vmatprep.subr.mxu1 %v9914_v14  ;;  %1164 = vmatpush1.msra.mxu0 %v9915_v15  ;;  %v9969_v14 = vld [vmem:[#allocation152_spill] sm:$0xff]  ;;  %v9970_v15 = vld [vmem:[#allocation153_spill] sm:$0xff] }
 0x268   :  { %1197 = vmatprep.mubr.f32.mxu0 %v9843_v23  ;;  %1235 = vmatpush1.msra.mxu1 %v9916_v16  ;;  %v9971_v16 = vld [vmem:[#allocation154_spill] sm:$0xff] }
 0x269   :  { %1268 = vmatprep.mubr.f32.mxu1 %v9843_v23  ;;  %1198 = vmatmul.mubr.f32.vlgmr.msra.gmra.mxu0 %v6051_v61 }
 0x26a   :  { %1269 = vmatmul.mubr.f32.vlgmr.msra.gmra.mxu1 %v6051_v61  ;;  %1300 = vmatprep.subr.mxu0 %v9917_v17  ;;  %v9927_v61 = vld [vmem:[#allocation110_spill] sm:$0xff]  ;;  %v9972_v17 = vld [vmem:[#allocation155_spill] sm:$0xff] }
 0x26b   :  { %1371 = vmatprep.subr.mxu1 %v9918_v18  ;;  %1301 = vmatpush1.msra.mxu0 %v9919_v19  ;;  %v9973_v18 = vld [vmem:[#allocation156_spill] sm:$0xff]  ;;  %v9974_v19 = vld [vmem:[#allocation157_spill] sm:$0xff] }
 0x26c   :  { %1372 = vmatpush1.msra.mxu1 %v9920_v20  ;;  %1302 = vmatprep.subr.mxu0 %v9921_v21  ;;  %v9975_v20 = vld [vmem:[#allocation158_spill] sm:$0xff]  ;;  %v9976_v21 = vld [vmem:[#allocation159_spill] sm:$0xff] }
 0x26d   :  { %1373 = vmatprep.subr.mxu1 %v9922_v22  ;;  %1303 = vmatpush1.msra.mxu0 %v9923_v24  ;;  %v9977_v22 = vld [vmem:[#allocation160_spill] sm:$0xff]  ;;  %v9978_v24 = vld [vmem:[#allocation161_spill] sm:$0xff] }
 0x26e   :  { %1374 = vmatpush1.msra.mxu1 %v9924_v25  ;;  %1304 = vmatprep.subr.mxu0 %v9925_v26  ;;  %v9979_v25 = vld [vmem:[#allocation162_spill] sm:$0xff]  ;;  %v9980_v26 = vld [vmem:[#allocation163_spill] sm:$0xff] }
 0x26f   :  { %1375 = vmatprep.subr.mxu1 %v9926_v27  ;;  %1305 = vmatpush1.msra.mxu0 %v9927_v61  ;;  %v6285_v27 = vld [vmem:[#allocation9 + $0x1e8] sm:$0xff]  ;;  %v6288_v61 = vld [vmem:[#allocation9 + $0x1f8] sm:$0xff] }
 0x270   :  { %1376 = vmatpush1.msra.mxu1 %v9928_v29  ;;  %1306 = vmatprep.subr.mxu0 %v9929_v31  ;;  %v144_v29 = vpop.permute.xlu0 %143 }
 0x271   :  { %1377 = vmatprep.subr.mxu1 %v9930_v32  ;;  %1307 = vmatpush1.msra.mxu0 %v9931_v33  ;;  %v6295_v33 = vld [vmem:[#allocation3] ss:$0 sm:$0xff] }
 0x272   :  { %1378 = vmatpush1.msra.mxu1 %v9932_v35  ;;  %1308 = vmatprep.subr.mxu0 %v9933_v36 }
 0x273   :  { %1379 = vmatprep.subr.mxu1 %v9934_v37  ;;  %1309 = vmatpush1.msra.mxu0 %v9935_v38  ;;  %v129_v37 = vld [vmem:[%s8985_s0 + $0x10] sm:$0xff] }
 0x274   :  { %1380 = vmatpush1.msra.mxu1 %v9936_v39  ;;  %1310 = vmatprep.subr.mxu0 %v9937_v40  ;;  %v6291_v31 = vpop.permute.xlu0 %158  ;;  %v9983_v39 = vld [vmem:[#allocation166_spill] sm:$0xff] }
 0x275   :  { %1381 = vmatprep.subr.mxu1 %v9938_v41  ;;  %1311 = vmatpush1.msra.mxu0 %v9939_v42  ;;  %9981 = vst [vmem:[#allocation19_spill] sm:$0xff] %v6291_v31  ;;  %v201_v40 = vmul.f32 %v9983_v39, %v144_v29  ;;  %v9984_v41 = vld [vmem:[#allocation167_spill] sm:$0xff]  ;;  %v6446_v31 = vld [vmem:[#allocation9 + $0xb8] sm:$0xff] }
 0x276   :  { %1382 = vmatpush1.msra.mxu1 %v9940_v43  ;;  %1312 = vmatprep.subr.mxu0 %v9941_v44  ;;  %v202_v42 = vmul.f32 %v9984_v41, %v144_v29  ;;  %10003 = vst [vmem:[#allocation34_spill] sm:$0xff] %v6446_v31 }
 0x277   :  { %1383 = vmatprep.subr.mxu1 %v9942_v45  ;;  %1313 = vmatpush1.msra.mxu0 %v9943_v46  ;;  %v9985_v45 = vld [vmem:[#allocation169_spill] sm:$0xff] }
 0x278   :  { %1384 = vmatpush1.msra.mxu1 %v9944_v60  ;;  %1314 = vmatprep.subr.mxu0 %v9945_v49  ;;  %v6293_v32 = vpop.permute.xlu0 %168  ;;  %v255_v46 = vadd.f32 %v9985_v45, %v201_v40  ;;  %v6347_v40 = vld [vmem:[#allocation9 + $0x1a8] sm:$0xff] }
 0x279   :  { %1385 = vmatprep.subr.mxu1 %v9946_v53  ;;  %1315 = vmatpush1.msra.mxu0 %v9947_v55  ;;  %9982 = vst [vmem:[#allocation20_spill] sm:$0xff] %v6293_v32  ;;  %v9986_v53 = vld [vmem:[#allocation171_spill] sm:$0xff]  ;;  %v6443_v32 = vld [vmem:[#allocation9 + $0xa8] sm:$0xff] }
 0x27a   :  { %1386 = vmatpush1.msra.mxu1 %v9948_v3  ;;  %1316 = vmatprep.subr.mxu0 %v9949_v62  ;;  %v203_v55 = vmul.f32 %v9986_v53, %v144_v29  ;;  %v9987_v3 = vld [vmem:[#allocation172_spill] sm:$0xff]  ;;  %10002 = vst [vmem:[#allocation33_spill] sm:$0xff] %v6443_v32 }
 0x27b   :  { %1387 = vmatprep.subr.mxu1 %v9950_v48  ;;  %1317 = vmatpush1.msra.mxu0 %v9951_v56  ;;  %v256_v62 = vadd.f32 %v9987_v3, %v202_v42  ;;  %v6350_v42 = vld [vmem:[#allocation9 + $0x1b8] sm:$0xff] }
 0x27c   :  { %1388 = vmatpush1.msra.mxu1 %v9952_v58  ;;  %1318 = vmatprep.subr.mxu0 %v9953_v0 }
 0x27d   :  { %1389 = vmatprep.subr.mxu1 %v9954_v4  ;;  %1319 = vmatpush1.msra.mxu0 %v9955_v59  ;;  %v9988_v59 = vld [vmem:[#allocation174_spill] sm:$0xff] }
 0x27e   :  { %1390 = vmatpush1.msra.mxu1 %v9956_v54  ;;  %1320 = vmatprep.subr.mxu0 %v9957_v2  ;;  %v257_v54 = vadd.f32 %v9988_v59, %v203_v55  ;;  %v6362_v55 = vld [vmem:[#allocation9 + $0x198] sm:$0xff] }
 0x27f   :  { %1391 = vmatprep.subr.mxu1 %v9958_v63  ;;  %1321 = vmatpush1.msra.mxu0 %v9959_v50  ;;  %v9989_v50 = vld [vmem:[#allocation176_spill] sm:$0xff] }
 0x280   :  { %1392 = vmatpush1.msra.mxu1 %v9960_v1  ;;  %1322 = vmatprep.subr.mxu0 %v9961_v5  ;;  %v204_v1 = vmul.f32 %v9989_v50, %v144_v29  ;;  %v6335_v29 = vld [vmem:[#allocation9 + $0x1c8] sm:$0xff] }
 0x281   :  { %1393 = vmatprep.subr.mxu1 %v9962_v7  ;;  %1323 = vmatpush1.msra.mxu0 %v9963_v8 }
 0x282   :  { %1394 = vmatpush1.msra.mxu1 %v9964_v9  ;;  %1324 = vmatprep.subr.mxu0 %v9965_v10  ;;  %v258_v7 = vadd.f32 %v6045_v57, %v204_v1  ;;  %v6389_v1 = vld [vmem:[#allocation9 + $0x140] sm:$0xff] }
 0x283   :  { %1395 = vmatprep.subr.mxu1 %v9966_v11  ;;  %1325 = vmatpush1.msra.mxu0 %v9967_v12 }
 0x284   :  { %1396 = vmatpush1.msra.mxu1 %v9968_v13  ;;  %1326 = vmatprep.subr.mxu0 %v9969_v14 }
 0x285   :  { %1397 = vmatprep.subr.mxu1 %v9970_v15  ;;  %1327 = vmatpush1.msra.mxu0 %v9971_v16 }
 0x286   :  { %1398 = vmatpush1.msra.mxu1 %v9972_v17  ;;  %1328 = vmatprep.subr.mxu0 %v9973_v18 }
 0x287   :  { %1399 = vmatprep.subr.mxu1 %v9974_v19  ;;  %1329 = vmatpush1.msra.mxu0 %v9975_v20 }
 0x288   :  { %1400 = vmatpush1.msra.mxu1 %v9976_v21  ;;  %1330 = vmatprep.subr.mxu0 %v9977_v22 }
 0x289   :  { %1401 = vmatprep.subr.mxu1 %v9978_v24  ;;  %1331 = vmatpush1.msra.mxu0 %v9979_v25 }
 0x28a   :  { %1364 = vmatprep.mubr.f32.mxu0 %v9843_v23  ;;  %1402 = vmatpush1.msra.mxu1 %v9980_v26  ;;  %v6329_v26 = vld [vmem:[#allocation9 + $0x1e0] sm:$0xff] }
 0x28b   :  { %1435 = vmatprep.mubr.f32.mxu1 %v9843_v23  ;;  %1467 = vmatprep.subr.mxu0 %v6285_v27 }
 0x28c   :  { %1538 = vmatprep.subr.mxu1 %v6288_v61  ;;  %148 = vperm.xlu1 %4460, %v129_v37   ;;  %v6344_v37 = vld [vmem:[#allocation9 + $0x1d0] sm:$0xff] }
 0x2d4   :  { %v4363_v35 = vpop.xlane.xlu0 %4362 }
 0x2d5   :  { %v4385_v36 = vadd.f32 %v6295_v33, %v4363_v35  ;;  %v6338_v35 = vld [vmem:[#allocation9 + $0x1d8] sm:$0xff] }
 0x2d7   :  { %4394 = vst.msk [vmem:[%s8994_s9] sm:$0xff] %vm4393_vm0, %v4385_v36  ;;  %v6341_v36 = vld [vmem:[#allocation9 + $0x1c0] sm:$0xff] }
 0x308   :  { %v6305_v38 = vpop.f32.mrf.mxu0  ;;  %v6309_v43 = vpop.f32.mrf.mxu1 }
 0x30a   :  { %v6311_v44 = vpop.f32.mrf.mxu0  ;;  %v6316_v48 = vpop.f32.mrf.mxu1 }
 0x329   :  { %v1199_v60 = vpop.f32.mrf.mxu0 }
 0x32a   :  { %v1275_v49 = vadd.f32 %v1199_v60, %v255_v46  ;;  %v1270_v4 = vpop.f32.mrf.mxu1  ;;  %v6353_v46 = vld [vmem:[#allocation9 + $0x1a0] sm:$0xff]  ;;  %v6356_v60 = vld [vmem:[#allocation9 + $0x1b0] sm:$0xff] }
 0x32b   :  { %v1201_v56 = vpop.f32.mrf.mxu0  ;;  %v1277_v63 = vadd.f32 %v1270_v4, %v257_v54  ;;  %v6377_v4 = vld [vmem:[#allocation9 + $0x160] sm:$0xff]  ;;  %v6380_v54 = vld [vmem:[#allocation9 + $0x170] sm:$0xff] }
 0x32c   :  { %v1279_v58 = vmul.f32 0.5, %v1275_v49  ;;  %v1276_v0 = vadd.f32 %v1201_v56, %v256_v62  ;;  %v1272_v5 = vpop.f32.mrf.mxu1  ;;  %v6359_v49 = vld [vmem:[#allocation9 + $0x188] sm:$0xff]  ;;  %v6365_v62 = vld [vmem:[#allocation9 + $0x180] sm:$0xff]  ;;  %v6368_v56 = vld [vmem:[#allocation9 + $0x190] sm:$0xff] }
 0x32d   :  { %v1278_v8 = vadd.f32 %v1272_v5, %v258_v7  ;;  %v6392_v5 = vld [vmem:[#allocation9 + $0x150] sm:$0xff]  ;;  %v6395_v7 = vld [vmem:[#allocation9 + $0x128] sm:$0xff] }
 0x32e   :  { %4481 = vtanh.f32 %v1279_v58  ;;  %v1280_v2 = vmul.f32 0.5, %v1276_v0  ;;  %v6371_v58 = vld [vmem:[#allocation9 + $0x168] sm:$0xff]  ;;  %v6374_v0 = vld [vmem:[#allocation9 + $0x178] sm:$0xff] }
 0x32f   :  { %v1282_v9 = vmul.f32 0.5, %v1278_v8  ;;  %v6398_v8 = vld [vmem:[#allocation9 + $0x138] sm:$0xff] }
 0x330   :  { %4483 = vtanh.f32 %v1280_v2  ;;  %v6383_v2 = vld [vmem:[#allocation9 + $0x148] sm:$0xff] }
 0x331   :  { %4485 = vtanh.f32 %v1277_v63  ;;  %v6386_v63 = vld [vmem:[#allocation9 + $0x158] sm:$0xff] }
 0x332   :  { %4487 = vtanh.f32 %v1282_v9  ;;  %v6401_v9 = vld [vmem:[#allocation9 + $0x120] sm:$0xff] }
 0x33b   :  { %v4482_v10 = vpop.eup %4481 }
 0x33c   :  { %v1287_v11 = vmul.f32 0.5, %v4482_v10  ;;  %v6404_v10 = vld [vmem:[#allocation9 + $0x130] sm:$0xff] }
 0x33d   :  { %v4484_v12 = vpop.eup %4483 }
 0x33e   :  { %v1291_v13 = vadd.f32 0.5, %v1287_v11  ;;  %v1288_v14 = vmul.f32 0.5, %v4484_v12  ;;  %v4486_v16 = vpop.eup %4485  ;;  %v6407_v11 = vld [vmem:[#allocation9 + $0x108] sm:$0xff]  ;;  %v6410_v12 = vld [vmem:[#allocation9 + $0x118] sm:$0xff] }
 0x33f   :  { %v4488_v20 = vpop.eup %4487  ;;  %9990 = vst [vmem:[#allocation21_spill] sm:$0xff] %v6407_v11  ;;  %9991 = vst [vmem:[#allocation22_spill] sm:$0xff] %v6410_v12 }
 0x340   :  { %v1292_v15 = vadd.f32 0.5, %v1288_v14  ;;  %v1296_v18 = vmul.f32 %v4486_v16, %v1291_v13  ;;  %v1290_v21 = vmul.f32 0.5, %v4488_v20  ;;  %v6413_v13 = vld [vmem:[#allocation9 + $0x100] sm:$0xff]  ;;  %v6416_v14 = vld [vmem:[#allocation9 + $0x110] sm:$0xff]  ;;  %v6422_v16 = vld [vmem:[#allocation9 + $0xf8] sm:$0xff] }
 0x341   :  { %9992 = vst [vmem:[#allocation23_spill] sm:$0xff] %v6413_v13  ;;  %9993 = vst [vmem:[#allocation24_spill] sm:$0xff] %v6416_v14  ;;  %v6431_v20 = vld [vmem:[#allocation9 + $0xc8] sm:$0xff] }
 0x342   :  { %v1295_v17 = vmul.f32 %v1292_v15, %v6048_v52  ;;  %v1294_v22 = vadd.f32 0.5, %v1290_v21  ;;  %v6332_v52 = vld [vmem:[#allocation9 + $0x1f0] sm:$0xff]  ;;  %v6419_v15 = vld [vmem:[#allocation9 + $0xe8] sm:$0xff]  ;;  %9995 = vst [vmem:[#allocation26_spill] sm:$0xff] %v6422_v16  ;;  %9998 = vst [vmem:[#allocation29_spill] sm:$0xff] %v6431_v20 }
 0x343   :  { %9994 = vst [vmem:[#allocation25_spill] sm:$0xff] %v6419_v15  ;;  %v6434_v21 = vld [vmem:[#allocation9 + $0xd8] sm:$0xff] }
 0x344   :  { %v6322_v19 = vadd.f32 %v1296_v18, %v1295_v17  ;;  %v6425_v17 = vld [vmem:[#allocation9 + $0xe0] sm:$0xff]  ;;  %v6428_v18 = vld [vmem:[#allocation9 + $0xf0] sm:$0xff]  ;;  %9999 = vst [vmem:[#allocation30_spill] sm:$0xff] %v6434_v21 }
 0x345   :  { %9996 = vst [vmem:[#allocation27_spill] sm:$0xff] %v6425_v17  ;;  %9997 = vst [vmem:[#allocation28_spill] sm:$0xff] %v6428_v18 }
 0x346   :  { %4489 = vtanh.f32 %v6322_v19 }
 0x353   :  { %v4490_v24 = vpop.eup %4489 }
 0x354   :  { %v6325_v25 = vmul.f32 %v4490_v24, %v1294_v22  ;;  %v6437_v22 = vld [vmem:[#allocation9 + $0xc0] sm:$0xff]  ;;  %v6440_v24 = vld [vmem:[#allocation9 + $0xd0] sm:$0xff] }
 0x355   :  { %10000 = vst [vmem:[#allocation31_spill] sm:$0xff] %v6437_v22  ;;  %10001 = vst [vmem:[#allocation32_spill] sm:$0xff] %v6440_v24 }
 0x356   :  { %1365 = vmatmul.mubr.f32.vlgmr.msra.gmra.mxu0 %v6325_v25  ;;  %1436 = vmatmul.mubr.f32.vlgmr.msra.gmra.mxu1 %v6325_v25 }
 0x357   :  { %1468 = vmatpush1.msra.mxu0 %v6329_v26  ;;  %1539 = vmatpush1.msra.mxu1 %v6332_v52 }
 0x358   :  { %1469 = vmatprep.subr.mxu0 %v6335_v29  ;;  %1540 = vmatprep.subr.mxu1 %v6338_v35 }
 0x359   :  { %1470 = vmatpush1.msra.mxu0 %v6341_v36  ;;  %1541 = vmatpush1.msra.mxu1 %v6344_v37 }
 0x35a   :  { %1471 = vmatprep.subr.mxu0 %v6347_v40  ;;  %1542 = vmatprep.subr.mxu1 %v6350_v42 }
 0x35b   :  { %1472 = vmatpush1.msra.mxu0 %v6353_v46  ;;  %1543 = vmatpush1.msra.mxu1 %v6356_v60 }
 0x35c   :  { %1473 = vmatprep.subr.mxu0 %v6359_v49  ;;  %1544 = vmatprep.subr.mxu1 %v6362_v55 }
 0x35d   :  { %1474 = vmatpush1.msra.mxu0 %v6365_v62  ;;  %1545 = vmatpush1.msra.mxu1 %v6368_v56 }
 0x35e   :  { %1475 = vmatprep.subr.mxu0 %v6371_v58  ;;  %1546 = vmatprep.subr.mxu1 %v6374_v0 }
 0x35f   :  { %1476 = vmatpush1.msra.mxu0 %v6377_v4  ;;  %1547 = vmatpush1.msra.mxu1 %v6380_v54 }
 0x360   :  { %1477 = vmatprep.subr.mxu0 %v6383_v2  ;;  %1548 = vmatprep.subr.mxu1 %v6386_v63 }
 0x361   :  { %1478 = vmatpush1.msra.mxu0 %v6389_v1  ;;  %1549 = vmatpush1.msra.mxu1 %v6392_v5 }
 0x362   :  { %1479 = vmatprep.subr.mxu0 %v6395_v7  ;;  %1550 = vmatprep.subr.mxu1 %v6398_v8 }
 0x363   :  { %1480 = vmatpush1.msra.mxu0 %v6401_v9  ;;  %1551 = vmatpush1.msra.mxu1 %v6404_v10 }
 0x364   :  { %1481 = vmatprep.subr.mxu0 %v6407_v11  ;;  %1552 = vmatprep.subr.mxu1 %v6410_v12 }
 0x365   :  { %1482 = vmatpush1.msra.mxu0 %v6413_v13  ;;  %1553 = vmatpush1.msra.mxu1 %v6416_v14 }
 0x366   :  { %1483 = vmatprep.subr.mxu0 %v6419_v15  ;;  %1554 = vmatprep.subr.mxu1 %v6422_v16  ;;  %v1125_v16 = vadd.f32 %v6309_v43, %v6133_v34 }
 0x367   :  { %1484 = vmatpush1.msra.mxu0 %v6425_v17  ;;  %1555 = vmatpush1.msra.mxu1 %v6428_v18 }
 0x368   :  { %1485 = vmatprep.subr.mxu0 %v6431_v20  ;;  %1556 = vmatprep.subr.mxu1 %v6434_v21  ;;  %v6449_v20 = vld [vmem:[#allocation9 + $0xa0] sm:$0xff]  ;;  %v6452_v21 = vld [vmem:[#allocation9 + $0xb0] sm:$0xff] }
 0x369   :  { %1486 = vmatpush1.msra.mxu0 %v6437_v22  ;;  %1557 = vmatpush1.msra.mxu1 %v6440_v24  ;;  %10004 = vst [vmem:[#allocation35_spill] sm:$0xff] %v6449_v20  ;;  %10005 = vst [vmem:[#allocation36_spill] sm:$0xff] %v6452_v21  ;;  %v6455_v22 = vld [vmem:[#allocation9 + $0x88] sm:$0xff]  ;;  %v6458_v24 = vld [vmem:[#allocation9 + $0x98] sm:$0xff] }
 0x36a   :  { %1487 = vmatprep.subr.mxu0 %v6443_v32  ;;  %1558 = vmatprep.subr.mxu1 %v6446_v31  ;;  %10006 = vst [vmem:[#allocation37_spill] sm:$0xff] %v6455_v22  ;;  %10007 = vst [vmem:[#allocation164_spill] sm:$0xff] %v6458_v24  ;;  %v6461_v32 = vld [vmem:[#allocation9 + $0x80] sm:$0xff]  ;;  %v6464_v31 = vld [vmem:[#allocation9 + $0x90] sm:$0xff] }
 0x36b   :  { %1488 = vmatpush1.msra.mxu0 %v6449_v20  ;;  %1559 = vmatpush1.msra.mxu1 %v6452_v21  ;;  %10008 = vst [vmem:[#allocation165_spill] sm:$0xff] %v6461_v32  ;;  %10009 = vst [vmem:[#allocation170_spill] sm:$0xff] %v6464_v31  ;;  %v6467_v20 = vld [vmem:[#allocation9 + $0x68] sm:$0xff]  ;;  %v6470_v21 = vld [vmem:[#allocation9 + $0x78] sm:$0xff] }
 0x36c   :  { %1489 = vmatprep.subr.mxu0 %v6455_v22  ;;  %1560 = vmatprep.subr.mxu1 %v6458_v24  ;;  %10010 = vst [vmem:[#allocation168_spill] sm:$0xff] %v6467_v20  ;;  %10011 = vst [vmem:[#allocation173_spill] sm:$0xff] %v6470_v21  ;;  %v6473_v22 = vld [vmem:[#allocation9 + $0x60] sm:$0xff]  ;;  %v6476_v24 = vld [vmem:[#allocation9 + $0x70] sm:$0xff] }
 0x36d   :  { %1490 = vmatpush1.msra.mxu0 %v6461_v32  ;;  %1561 = vmatpush1.msra.mxu1 %v6464_v31  ;;  %10012 = vst [vmem:[#allocation175_spill] sm:$0xff] %v6473_v22  ;;  %10013 = vst [vmem:[#allocation177_spill] sm:$0xff] %v6476_v24  ;;  %v6479_v32 = vld [vmem:[#allocation9 + $0x48] sm:$0xff]  ;;  %v6482_v31 = vld [vmem:[#allocation9 + $0x58] sm:$0xff] }
 0x36e   :  { %1491 = vmatprep.subr.mxu0 %v6467_v20  ;;  %1562 = vmatprep.subr.mxu1 %v6470_v21  ;;  %10014 = vst [vmem:[#allocation38_spill] sm:$0xff] %v6479_v32  ;;  %10015 = vst [vmem:[#allocation39_spill] sm:$0xff] %v6482_v31  ;;  %v6485_v20 = vld [vmem:[#allocation9 + $0x40] sm:$0xff]  ;;  %v6488_v21 = vld [vmem:[#allocation9 + $0x50] sm:$0xff] }
 0x36f   :  { %1492 = vmatpush1.msra.mxu0 %v6473_v22  ;;  %1563 = vmatpush1.msra.mxu1 %v6476_v24  ;;  %10016 = vst [vmem:[#allocation40_spill] sm:$0xff] %v6485_v20  ;;  %10017 = vst [vmem:[#allocation41_spill] sm:$0xff] %v6488_v21  ;;  %v6491_v22 = vld [vmem:[#allocation9 + $0x28] sm:$0xff]  ;;  %v6494_v24 = vld [vmem:[#allocation9 + $0x38] sm:$0xff] }
 0x370   :  { %1493 = vmatprep.subr.mxu0 %v6479_v32  ;;  %1564 = vmatprep.subr.mxu1 %v6482_v31  ;;  %10018 = vst [vmem:[#allocation42_spill] sm:$0xff] %v6491_v22  ;;  %10019 = vst [vmem:[#allocation43_spill] sm:$0xff] %v6494_v24  ;;  %v6497_v32 = vld [vmem:[#allocation9 + $0x20] sm:$0xff]  ;;  %v6500_v31 = vld [vmem:[#allocation9 + $0x30] sm:$0xff] }
 0x371   :  { %1494 = vmatpush1.msra.mxu0 %v6485_v20  ;;  %1565 = vmatpush1.msra.mxu1 %v6488_v21  ;;  %10020 = vst [vmem:[#allocation44_spill] sm:$0xff] %v6497_v32  ;;  %10021 = vst [vmem:[#allocation45_spill] sm:$0xff] %v6500_v31  ;;  %v6503_v20 = vld [vmem:[#allocation9 + $0x8] sm:$0xff]  ;;  %v6506_v21 = vld [vmem:[#allocation9 + $0x18] sm:$0xff] }
 0x372   :  { %1495 = vmatprep.subr.mxu0 %v6491_v22  ;;  %1566 = vmatprep.subr.mxu1 %v6494_v24  ;;  %10022 = vst [vmem:[#allocation46_spill] sm:$0xff] %v6503_v20  ;;  %10023 = vst [vmem:[#allocation47_spill] sm:$0xff] %v6506_v21  ;;  %v6509_v22 = vld [vmem:[#allocation9] sm:$0xff]  ;;  %v6512_v24 = vld [vmem:[#allocation9 + $0x10] sm:$0xff] }
 0x373   :  { %1496 = vmatpush1.msra.mxu0 %v6497_v32  ;;  %1567 = vmatpush1.msra.mxu1 %v6500_v31  ;;  %10024 = vst [vmem:[#allocation48_spill] sm:$0xff] %v6509_v22  ;;  %10025 = vst [vmem:[#allocation49_spill] sm:$0xff] %v6512_v24  ;;  %v6517_v31 = vld [vmem:[#allocation4 + $0x1e8] sm:$0xff] }
 0x374   :  { %1497 = vmatprep.subr.mxu0 %v6503_v20  ;;  %1568 = vmatprep.subr.mxu1 %v6506_v21  ;;  %10026 = vst [vmem:[#allocation50_spill] sm:$0xff] %v6517_v31  ;;  %v6520_v20 = vld [vmem:[#allocation4 + $0x1f8] sm:$0xff] }
 0x375   :  { %1498 = vmatpush1.msra.mxu0 %v6509_v22  ;;  %1569 = vmatpush1.msra.mxu1 %v6512_v24  ;;  %10027 = vst [vmem:[#allocation51_spill] sm:$0xff] %v6520_v20  ;;  %v130_v22 = vld [vmem:[%s8985_s0 + $0x18] sm:$0xff]  ;;  %v132_v24 = vld [vmem:[%s8985_s0 + $0x28] sm:$0xff] }
 0x376   :  { %1531 = vmatprep.mubr.f32.mxu0 %v9843_v23  ;;  %1602 = vmatprep.mubr.f32.mxu1 %v9843_v23  ;;  %v134_v21 = vld [vmem:[%s8985_s0 + $0x38] sm:$0xff] }
 0x377   :  { %1613 = vmatprep.subr.mxu0 %v6517_v31  ;;  %1684 = vmatprep.subr.mxu1 %v6520_v20  ;;  %v1054_v31 = vadd.f32 %v6305_v38, %v6125_v28  ;;  %v1056_v20 = vadd.f32 %v6311_v44, %v6128_v30  ;;  %v1127_v38 = vadd.f32 %v6316_v48, %v6140_v47 }
 0x378   :  { %153 = vperm.xlu1 %4460, %v130_v22  }
 0x37c   :  { %163 = vperm.xlu1 %4460, %v132_v24  }
 0x380   :  { %173 = vperm.xlu1 %4460, %v134_v21  }
 0x416   :  { %v1366_v32 = vpop.f32.mrf.mxu0  ;;  %v1437_v17 = vpop.f32.mrf.mxu1 }
 0x417   :  { %v1442_v18 = vadd.f32 %v1366_v32, %v1054_v31  ;;  %v1444_v14 = vadd.f32 %v1437_v17, %v1125_v16 }
 0x418   :  { %v1368_v22 = vpop.f32.mrf.mxu0  ;;  %v1439_v21 = vpop.f32.mrf.mxu1 }
 0x419   :  { %v1446_v15 = vmul.f32 0.5, %v1442_v18  ;;  %v1443_v24 = vadd.f32 %v1368_v22, %v1056_v20  ;;  %v1445_v28 = vadd.f32 %v1439_v21, %v1127_v38  ;;  %v6563_v21 = vld [vmem:[#allocation4 + $0x1a8] sm:$0xff]  ;;  %v6566_v38 = vld [vmem:[#allocation4 + $0x1b8] sm:$0xff] }
 0x41a   :  { %10028 = vst [vmem:[#allocation52_spill] sm:$0xff] %v6563_v21  ;;  %10029 = vst [vmem:[#allocation53_spill] sm:$0xff] %v6566_v38 }
 0x41b   :  { %4491 = vtanh.f32 %v1446_v15  ;;  %v1447_v13 = vmul.f32 0.5, %v1443_v24  ;;  %v1449_v12 = vmul.f32 0.5, %v1445_v28  ;;  %v6545_v24 = vld [vmem:[#allocation4 + $0x1e0] sm:$0xff] }
 0x41d   :  { %4493 = vtanh.f32 %v1447_v13 }
 0x41e   :  { %4495 = vtanh.f32 %v1444_v14 }
 0x41f   :  { %4497 = vtanh.f32 %v1449_v12  ;;  %v6557_v12 = vld [vmem:[#allocation4 + $0x1c0] sm:$0xff] }
 0x428   :  { %v4492_v44 = vpop.eup %4491 }
 0x429   :  { %v1454_v31 = vmul.f32 0.5, %v4492_v44  ;;  %v6569_v44 = vld [vmem:[#allocation4 + $0x1a0] sm:$0xff] }
 0x42a   :  { %v4494_v32 = vpop.eup %4493  ;;  %10030 = vst [vmem:[#allocation54_spill] sm:$0xff] %v6569_v44 }
 0x42b   :  { %v1458_v30 = vadd.f32 0.5, %v1454_v31  ;;  %v1455_v11 = vmul.f32 0.5, %v4494_v32  ;;  %v4496_v43 = vpop.eup %4495  ;;  %v6572_v31 = vld [vmem:[#allocation4 + $0x1b0] sm:$0xff]  ;;  %v6575_v32 = vld [vmem:[#allocation4 + $0x188] sm:$0xff] }
 0x42c   :  { %v4498_v13 = vpop.eup %4497  ;;  %10031 = vst [vmem:[#allocation55_spill] sm:$0xff] %v6572_v31  ;;  %10032 = vst [vmem:[#allocation56_spill] sm:$0xff] %v6575_v32 }
 0x42d   :  { %v1459_v18 = vadd.f32 0.5, %v1455_v11  ;;  %v1463_v20 = vmul.f32 %v4496_v43, %v1458_v30  ;;  %v1457_v14 = vmul.f32 0.5, %v4498_v13  ;;  %v6548_v30 = vld [vmem:[#allocation4 + $0x1f0] sm:$0xff]  ;;  %v6554_v11 = vld [vmem:[#allocation4 + $0x1d8] sm:$0xff] }
 0x42e   :  { %v6578_v43 = vld [vmem:[#allocation4 + $0x198] sm:$0xff] }
 0x42f   :  { %v1462_v15 = vmul.f32 %v1459_v18, %v6144_v51  ;;  %v1461_v48 = vadd.f32 0.5, %v1457_v14  ;;  %v6551_v51 = vld [vmem:[#allocation4 + $0x1c8] sm:$0xff]  ;;  %10033 = vst [vmem:[#allocation57_spill] sm:$0xff] %v6578_v43  ;;  %v6581_v18 = vld [vmem:[#allocation4 + $0x180] sm:$0xff]  ;;  %v6590_v13 = vld [vmem:[#allocation4 + $0x178] sm:$0xff] }
 0x430   :  { %10034 = vst [vmem:[#allocation58_spill] sm:$0xff] %v6581_v18  ;;  %10037 = vst [vmem:[#allocation61_spill] sm:$0xff] %v6590_v13  ;;  %v6593_v14 = vld [vmem:[#allocation4 + $0x160] sm:$0xff] }
 0x431   :  { %v6541_v16 = vadd.f32 %v1463_v20, %v1462_v15  ;;  %v6584_v20 = vld [vmem:[#allocation4 + $0x190] sm:$0xff]  ;;  %v6587_v15 = vld [vmem:[#allocation4 + $0x168] sm:$0xff]  ;;  %10038 = vst [vmem:[#allocation62_spill] sm:$0xff] %v6593_v14 }
 0x432   :  { %10035 = vst [vmem:[#allocation59_spill] sm:$0xff] %v6584_v20  ;;  %10036 = vst [vmem:[#allocation60_spill] sm:$0xff] %v6587_v15 }
 0x433   :  { %4499 = vtanh.f32 %v6541_v16 }
 0x440   :  { %v4500_v17 = vpop.eup %4499 }
 0x441   :  { %v1466_v28 = vmul.f32 %v4500_v17, %v1461_v48  ;;  %v6596_v48 = vld [vmem:[#allocation4 + $0x170] sm:$0xff]  ;;  %v6599_v17 = vld [vmem:[#allocation4 + $0x148] sm:$0xff] }
 0x442   :  { %10039 = vst [vmem:[#allocation63_spill] sm:$0xff] %v6596_v48  ;;  %10040 = vst [vmem:[#allocation64_spill] sm:$0xff] %v6599_v17 }
 0x443   :  { %1532 = vmatmul.mubr.f32.vlgmr.msra.gmra.mxu0 %v1466_v28  ;;  %1603 = vmatmul.mubr.f32.vlgmr.msra.gmra.mxu1 %v1466_v28  ;;  %v4355_v22 = vmul.f32 %v6150_v6, %v1466_v28  ;;  %v6560_v6 = vld [vmem:[#allocation4 + $0x1d0] sm:$0xff]  ;;  %v6602_v28 = vld [vmem:[#allocation4 + $0x158] sm:$0xff] }
 0x444   :  { %1614 = vmatpush1.msra.mxu0 %v6545_v24  ;;  %1685 = vmatpush1.msra.mxu1 %v6548_v30  ;;  %10041 = vst [vmem:[#allocation65_spill] sm:$0xff] %v6602_v28 }
 0x445   :  { %1615 = vmatprep.subr.mxu0 %v6551_v51  ;;  %1686 = vmatprep.subr.mxu1 %v6554_v11 }
 0x446   :  { %4364 = vadd.xlane.f32.xlu1 %v4355_v22  ;;  %1616 = vmatpush1.msra.mxu0 %v6557_v12  ;;  %v6605_v22 = vld [vmem:[#allocation4 + $0x140] sm:$0xff] }
 0x447   :  { %1687 = vmatpush1.msra.mxu1 %v6560_v6  ;;  %1617 = vmatprep.subr.mxu0 %v6563_v21  ;;  %10042 = vst [vmem:[#allocation66_spill] sm:$0xff] %v6605_v22 }
 0x448   :  { %1688 = vmatprep.subr.mxu1 %v6566_v38  ;;  %1618 = vmatpush1.msra.mxu0 %v6569_v44 }
 0x449   :  { %1689 = vmatpush1.msra.mxu1 %v6572_v31  ;;  %1619 = vmatprep.subr.mxu0 %v6575_v32 }
 0x44a   :  { %1690 = vmatprep.subr.mxu1 %v6578_v43  ;;  %1620 = vmatpush1.msra.mxu0 %v6581_v18 }
 0x44b   :  { %1691 = vmatpush1.msra.mxu1 %v6584_v20  ;;  %1621 = vmatprep.subr.mxu0 %v6587_v15 }
 0x44c   :  { %1692 = vmatprep.subr.mxu1 %v6590_v13  ;;  %1622 = vmatpush1.msra.mxu0 %v6593_v14  ;;  %v6608_v13 = vld [vmem:[#allocation4 + $0x150] sm:$0xff]  ;;  %v6611_v14 = vld [vmem:[#allocation4 + $0x128] sm:$0xff] }
 0x44d   :  { %1693 = vmatpush1.msra.mxu1 %v6596_v48  ;;  %1623 = vmatprep.subr.mxu0 %v6599_v17  ;;  %10043 = vst [vmem:[#allocation67_spill] sm:$0xff] %v6608_v13  ;;  %10044 = vst [vmem:[#allocation68_spill] sm:$0xff] %v6611_v14  ;;  %v6614_v48 = vld [vmem:[#allocation4 + $0x138] sm:$0xff]  ;;  %v6617_v17 = vld [vmem:[#allocation4 + $0x120] sm:$0xff] }
 0x44e   :  { %1694 = vmatprep.subr.mxu1 %v6602_v28  ;;  %1624 = vmatpush1.msra.mxu0 %v6605_v22  ;;  %10045 = vst [vmem:[#allocation69_spill] sm:$0xff] %v6614_v48  ;;  %10046 = vst [vmem:[#allocation70_spill] sm:$0xff] %v6617_v17  ;;  %v6620_v28 = vld [vmem:[#allocation4 + $0x130] sm:$0xff]  ;;  %v6623_v22 = vld [vmem:[#allocation4 + $0x108] sm:$0xff] }
 0x44f   :  { %1695 = vmatpush1.msra.mxu1 %v6608_v13  ;;  %1625 = vmatprep.subr.mxu0 %v6611_v14  ;;  %10047 = vst [vmem:[#allocation71_spill] sm:$0xff] %v6620_v28  ;;  %10048 = vst [vmem:[#allocation72_spill] sm:$0xff] %v6623_v22  ;;  %v6626_v13 = vld [vmem:[#allocation4 + $0x118] sm:$0xff]  ;;  %v6629_v14 = vld [vmem:[#allocation4 + $0x100] sm:$0xff] }
 0x450   :  { %1696 = vmatprep.subr.mxu1 %v6614_v48  ;;  %1626 = vmatpush1.msra.mxu0 %v6617_v17  ;;  %10049 = vst [vmem:[#allocation73_spill] sm:$0xff] %v6626_v13  ;;  %10050 = vst [vmem:[#allocation74_spill] sm:$0xff] %v6629_v14  ;;  %v6632_v48 = vld [vmem:[#allocation4 + $0x110] sm:$0xff]  ;;  %v6635_v17 = vld [vmem:[#allocation4 + $0xe8] sm:$0xff] }
 0x451   :  { %1697 = vmatpush1.msra.mxu1 %v6620_v28  ;;  %1627 = vmatprep.subr.mxu0 %v6623_v22  ;;  %10051 = vst [vmem:[#allocation75_spill] sm:$0xff] %v6632_v48  ;;  %10052 = vst [vmem:[#allocation76_spill] sm:$0xff] %v6635_v17  ;;  %v6638_v28 = vld [vmem:[#allocation4 + $0xf8] sm:$0xff]  ;;  %v6641_v22 = vld [vmem:[#allocation4 + $0xe0] sm:$0xff] }
 0x452   :  { %1698 = vmatprep.subr.mxu1 %v6626_v13  ;;  %1628 = vmatpush1.msra.mxu0 %v6629_v14  ;;  %10053 = vst [vmem:[#allocation77_spill] sm:$0xff] %v6638_v28  ;;  %10054 = vst [vmem:[#allocation78_spill] sm:$0xff] %v6641_v22  ;;  %v6644_v13 = vld [vmem:[#allocation4 + $0xf0] sm:$0xff]  ;;  %v6647_v14 = vld [vmem:[#allocation4 + $0xc8] sm:$0xff] }
 0x453   :  { %1699 = vmatpush1.msra.mxu1 %v6632_v48  ;;  %1629 = vmatprep.subr.mxu0 %v6635_v17  ;;  %10055 = vst [vmem:[#allocation79_spill] sm:$0xff] %v6644_v13  ;;  %10056 = vst [vmem:[#allocation80_spill] sm:$0xff] %v6647_v14  ;;  %v6650_v48 = vld [vmem:[#allocation4 + $0xd8] sm:$0xff]  ;;  %v6653_v17 = vld [vmem:[#allocation4 + $0xc0] sm:$0xff] }
 0x454   :  { %1700 = vmatprep.subr.mxu1 %v6638_v28  ;;  %1630 = vmatpush1.msra.mxu0 %v6641_v22  ;;  %10057 = vst [vmem:[#allocation81_spill] sm:$0xff] %v6650_v48  ;;  %10058 = vst [vmem:[#allocation82_spill] sm:$0xff] %v6653_v17  ;;  %v6656_v28 = vld [vmem:[#allocation4 + $0xd0] sm:$0xff]  ;;  %v6659_v22 = vld [vmem:[#allocation4 + $0xa8] sm:$0xff] }
 0x455   :  { %1701 = vmatpush1.msra.mxu1 %v6644_v13  ;;  %1631 = vmatprep.subr.mxu0 %v6647_v14  ;;  %10059 = vst [vmem:[#allocation83_spill] sm:$0xff] %v6656_v28  ;;  %10060 = vst [vmem:[#allocation84_spill] sm:$0xff] %v6659_v22  ;;  %v6662_v13 = vld [vmem:[#allocation4 + $0xb8] sm:$0xff]  ;;  %v6665_v14 = vld [vmem:[#allocation4 + $0xa0] sm:$0xff] }
 0x456   :  { %1702 = vmatprep.subr.mxu1 %v6650_v48  ;;  %1632 = vmatpush1.msra.mxu0 %v6653_v17  ;;  %10061 = vst [vmem:[#allocation85_spill] sm:$0xff] %v6662_v13  ;;  %10062 = vst [vmem:[#allocation86_spill] sm:$0xff] %v6665_v14  ;;  %v6668_v48 = vld [vmem:[#allocation4 + $0xb0] sm:$0xff]  ;;  %v6671_v17 = vld [vmem:[#allocation4 + $0x88] sm:$0xff] }
 0x457   :  { %1703 = vmatpush1.msra.mxu1 %v6656_v28  ;;  %1633 = vmatprep.subr.mxu0 %v6659_v22  ;;  %10063 = vst [vmem:[#allocation87_spill] sm:$0xff] %v6668_v48  ;;  %10064 = vst [vmem:[#allocation88_spill] sm:$0xff] %v6671_v17  ;;  %v6674_v28 = vld [vmem:[#allocation4 + $0x98] sm:$0xff]  ;;  %v6677_v22 = vld [vmem:[#allocation4 + $0x80] sm:$0xff] }
 0x458   :  { %1704 = vmatprep.subr.mxu1 %v6662_v13  ;;  %1634 = vmatpush1.msra.mxu0 %v6665_v14  ;;  %10065 = vst [vmem:[#allocation89_spill] sm:$0xff] %v6674_v28  ;;  %10066 = vst [vmem:[#allocation90_spill] sm:$0xff] %v6677_v22  ;;  %v6680_v13 = vld [vmem:[#allocation4 + $0x90] sm:$0xff]  ;;  %v6683_v14 = vld [vmem:[#allocation4 + $0x68] sm:$0xff] }
 0x459   :  { %1705 = vmatpush1.msra.mxu1 %v6668_v48  ;;  %1635 = vmatprep.subr.mxu0 %v6671_v17  ;;  %10067 = vst [vmem:[#allocation91_spill] sm:$0xff] %v6680_v13  ;;  %10068 = vst [vmem:[#allocation92_spill] sm:$0xff] %v6683_v14  ;;  %v6686_v48 = vld [vmem:[#allocation4 + $0x78] sm:$0xff]  ;;  %v6689_v17 = vld [vmem:[#allocation4 + $0x60] sm:$0xff] }
 0x45a   :  { %1706 = vmatprep.subr.mxu1 %v6674_v28  ;;  %1636 = vmatpush1.msra.mxu0 %v6677_v22  ;;  %10069 = vst [vmem:[#allocation93_spill] sm:$0xff] %v6686_v48  ;;  %10070 = vst [vmem:[#allocation94_spill] sm:$0xff] %v6689_v17  ;;  %v6692_v28 = vld [vmem:[#allocation4 + $0x70] sm:$0xff]  ;;  %v6695_v22 = vld [vmem:[#allocation4 + $0x48] sm:$0xff] }
 0x45b   :  { %1707 = vmatpush1.msra.mxu1 %v6680_v13  ;;  %1637 = vmatprep.subr.mxu0 %v6683_v14  ;;  %10071 = vst [vmem:[#allocation95_spill] sm:$0xff] %v6692_v28  ;;  %10072 = vst [vmem:[#allocation96_spill] sm:$0xff] %v6695_v22  ;;  %v6698_v13 = vld [vmem:[#allocation4 + $0x58] sm:$0xff]  ;;  %v6701_v14 = vld [vmem:[#allocation4 + $0x40] sm:$0xff] }
 0x45c   :  { %1708 = vmatprep.subr.mxu1 %v6686_v48  ;;  %1638 = vmatpush1.msra.mxu0 %v6689_v17  ;;  %10073 = vst [vmem:[#allocation97_spill] sm:$0xff] %v6698_v13  ;;  %10074 = vst [vmem:[#allocation98_spill] sm:$0xff] %v6701_v14  ;;  %v6704_v48 = vld [vmem:[#allocation4 + $0x50] sm:$0xff]  ;;  %v6707_v17 = vld [vmem:[#allocation4 + $0x28] sm:$0xff] }
 0x45d   :  { %1709 = vmatpush1.msra.mxu1 %v6692_v28  ;;  %1639 = vmatprep.subr.mxu0 %v6695_v22  ;;  %10075 = vst [vmem:[#allocation99_spill] sm:$0xff] %v6704_v48  ;;  %10076 = vst [vmem:[#allocation100_spill] sm:$0xff] %v6707_v17  ;;  %v6710_v28 = vld [vmem:[#allocation4 + $0x38] sm:$0xff]  ;;  %v6713_v22 = vld [vmem:[#allocation4 + $0x20] sm:$0xff] }
 0x45e   :  { %1710 = vmatprep.subr.mxu1 %v6698_v13  ;;  %1640 = vmatpush1.msra.mxu0 %v6701_v14  ;;  %10077 = vst [vmem:[#allocation101_spill] sm:$0xff] %v6710_v28  ;;  %10078 = vst [vmem:[#allocation102_spill] sm:$0xff] %v6713_v22  ;;  %v6716_v13 = vld [vmem:[#allocation4 + $0x30] sm:$0xff]  ;;  %v6719_v14 = vld [vmem:[#allocation4 + $0x8] sm:$0xff] }
 0x45f   :  { %1711 = vmatpush1.msra.mxu1 %v6704_v48  ;;  %1641 = vmatprep.subr.mxu0 %v6707_v17  ;;  %10079 = vst [vmem:[#allocation103_spill] sm:$0xff] %v6716_v13  ;;  %10080 = vst [vmem:[#allocation104_spill] sm:$0xff] %v6719_v14  ;;  %v6722_v48 = vld [vmem:[#allocation4 + $0x18] sm:$0xff]  ;;  %v6725_v17 = vld [vmem:[#allocation4] sm:$0xff] }
 0x460   :  { %1712 = vmatprep.subr.mxu1 %v6710_v28  ;;  %1642 = vmatpush1.msra.mxu0 %v6713_v22  ;;  %10081 = vst [vmem:[#allocation105_spill] sm:$0xff] %v6722_v48  ;;  %10082 = vst [vmem:[#allocation106_spill] sm:$0xff] %v6725_v17  ;;  %v6729_v28 = vld [vmem:[#allocation4 + $0x10] sm:$0xff] }
 0x461   :  { %1713 = vmatpush1.msra.mxu1 %v6716_v13  ;;  %1643 = vmatprep.subr.mxu0 %v6719_v14  ;;  %10083 = vst [vmem:[#allocation107_spill] sm:$0xff] %v6729_v28  ;;  %v6735_v14 = vld [vmem:[#allocation7 + $0x1e8] sm:$0xff]  ;;  %v6744_v13 = vld [vmem:[#allocation7 + $0x1f0] sm:$0xff] }
 0x462   :  { %1714 = vmatprep.subr.mxu1 %v6722_v48  ;;  %1644 = vmatpush1.msra.mxu0 %v6725_v17  ;;  %10084 = vst [vmem:[#allocation108_spill] sm:$0xff] %v6735_v14  ;;  %v6738_v48 = vld [vmem:[#allocation7 + $0x1f8] sm:$0xff]  ;;  %v6741_v17 = vld [vmem:[#allocation7 + $0x1e0] sm:$0xff]  ;;  %10087 = vst [vmem:[#allocation111_spill] sm:$0xff] %v6744_v13 }
 0x463   :  { %1677 = vmatprep.mubr.f32.mxu0 %v9843_v23  ;;  %1715 = vmatpush1.msra.mxu1 %v6729_v28  ;;  %10085 = vst [vmem:[#allocation109_spill] sm:$0xff] %v6738_v48  ;;  %10086 = vst [vmem:[#allocation110_spill] sm:$0xff] %v6741_v17  ;;  %v6747_v28 = vld [vmem:[#allocation7 + $0x1c8] sm:$0xff] }
 0x464   :  { %1748 = vmatprep.mubr.f32.mxu1 %v9843_v23  ;;  %1678 = vmatmul.mubr.f32.vlgmr.msra.gmra.mxu0 %v6325_v25  ;;  %10088 = vst [vmem:[#allocation112_spill] sm:$0xff] %v6747_v28 }
 0x465   :  { %1749 = vmatmul.mubr.f32.vlgmr.msra.gmra.mxu1 %v6325_v25  ;;  %1780 = vmatprep.subr.mxu0 %v6735_v14  ;;  %v6750_v25 = vld [vmem:[#allocation7 + $0x1d8] sm:$0xff]  ;;  %v6753_v14 = vld [vmem:[#allocation7 + $0x1c0] sm:$0xff] }
 0x466   :  { %1851 = vmatprep.subr.mxu1 %v6738_v48  ;;  %1781 = vmatpush1.msra.mxu0 %v6741_v17  ;;  %10089 = vst [vmem:[#allocation113_spill] sm:$0xff] %v6750_v25  ;;  %10090 = vst [vmem:[#allocation114_spill] sm:$0xff] %v6753_v14  ;;  %v6756_v48 = vld [vmem:[#allocation7 + $0x1d0] sm:$0xff]  ;;  %v6759_v17 = vld [vmem:[#allocation7 + $0x1a8] sm:$0xff] }
 0x467   :  { %1852 = vmatpush1.msra.mxu1 %v6744_v13  ;;  %1782 = vmatprep.subr.mxu0 %v6747_v28  ;;  %10091 = vst [vmem:[#allocation115_spill] sm:$0xff] %v6756_v48  ;;  %10092 = vst [vmem:[#allocation116_spill] sm:$0xff] %v6759_v17  ;;  %v6762_v13 = vld [vmem:[#allocation7 + $0x1b8] sm:$0xff]  ;;  %v6765_v28 = vld [vmem:[#allocation7 + $0x1a0] sm:$0xff] }
 0x468   :  { %1853 = vmatprep.subr.mxu1 %v6750_v25  ;;  %1783 = vmatpush1.msra.mxu0 %v6753_v14  ;;  %10093 = vst [vmem:[#allocation117_spill] sm:$0xff] %v6762_v13  ;;  %10094 = vst [vmem:[#allocation118_spill] sm:$0xff] %v6765_v28  ;;  %v6768_v25 = vld [vmem:[#allocation7 + $0x1b0] sm:$0xff]  ;;  %v6771_v14 = vld [vmem:[#allocation7 + $0x188] sm:$0xff] }
 0x469   :  { %1854 = vmatpush1.msra.mxu1 %v6756_v48  ;;  %1784 = vmatprep.subr.mxu0 %v6759_v17  ;;  %10095 = vst [vmem:[#allocation119_spill] sm:$0xff] %v6768_v25  ;;  %10096 = vst [vmem:[#allocation120_spill] sm:$0xff] %v6771_v14  ;;  %v6774_v48 = vld [vmem:[#allocation7 + $0x198] sm:$0xff]  ;;  %v6777_v17 = vld [vmem:[#allocation7 + $0x180] sm:$0xff] }
 0x46a   :  { %1855 = vmatprep.subr.mxu1 %v6762_v13  ;;  %1785 = vmatpush1.msra.mxu0 %v6765_v28  ;;  %10097 = vst [vmem:[#allocation121_spill] sm:$0xff] %v6774_v48  ;;  %10098 = vst [vmem:[#allocation122_spill] sm:$0xff] %v6777_v17  ;;  %v6780_v13 = vld [vmem:[#allocation7 + $0x190] sm:$0xff]  ;;  %v6783_v28 = vld [vmem:[#allocation7 + $0x168] sm:$0xff] }
 0x46b   :  { %1856 = vmatpush1.msra.mxu1 %v6768_v25  ;;  %1786 = vmatprep.subr.mxu0 %v6771_v14  ;;  %10099 = vst [vmem:[#allocation123_spill] sm:$0xff] %v6780_v13  ;;  %10100 = vst [vmem:[#allocation124_spill] sm:$0xff] %v6783_v28  ;;  %v6786_v25 = vld [vmem:[#allocation7 + $0x178] sm:$0xff]  ;;  %v6789_v14 = vld [vmem:[#allocation7 + $0x160] sm:$0xff] }
 0x46c   :  { %1857 = vmatprep.subr.mxu1 %v6774_v48  ;;  %1787 = vmatpush1.msra.mxu0 %v6777_v17  ;;  %10101 = vst [vmem:[#allocation125_spill] sm:$0xff] %v6786_v25  ;;  %10102 = vst [vmem:[#allocation126_spill] sm:$0xff] %v6789_v14  ;;  %v6792_v48 = vld [vmem:[#allocation7 + $0x170] sm:$0xff]  ;;  %v6795_v17 = vld [vmem:[#allocation7 + $0x148] sm:$0xff] }
 0x46d   :  { %1858 = vmatpush1.msra.mxu1 %v6780_v13  ;;  %1788 = vmatprep.subr.mxu0 %v6783_v28  ;;  %10103 = vst [vmem:[#allocation127_spill] sm:$0xff] %v6792_v48  ;;  %10104 = vst [vmem:[#allocation128_spill] sm:$0xff] %v6795_v17  ;;  %v6798_v13 = vld [vmem:[#allocation7 + $0x158] sm:$0xff]  ;;  %v6801_v28 = vld [vmem:[#allocation7 + $0x140] sm:$0xff] }
 0x46e   :  { %1859 = vmatprep.subr.mxu1 %v6786_v25  ;;  %1789 = vmatpush1.msra.mxu0 %v6789_v14  ;;  %10105 = vst [vmem:[#allocation129_spill] sm:$0xff] %v6798_v13  ;;  %10106 = vst [vmem:[#allocation130_spill] sm:$0xff] %v6801_v28  ;;  %v6804_v25 = vld [vmem:[#allocation7 + $0x150] sm:$0xff]  ;;  %v6807_v14 = vld [vmem:[#allocation7 + $0x128] sm:$0xff] }
 0x46f   :  { %1860 = vmatpush1.msra.mxu1 %v6792_v48  ;;  %1790 = vmatprep.subr.mxu0 %v6795_v17  ;;  %10107 = vst [vmem:[#allocation131_spill] sm:$0xff] %v6804_v25  ;;  %10108 = vst [vmem:[#allocation132_spill] sm:$0xff] %v6807_v14  ;;  %v6810_v48 = vld [vmem:[#allocation7 + $0x138] sm:$0xff]  ;;  %v6813_v17 = vld [vmem:[#allocation7 + $0x120] sm:$0xff] }
 0x470   :  { %1861 = vmatprep.subr.mxu1 %v6798_v13  ;;  %1791 = vmatpush1.msra.mxu0 %v6801_v28  ;;  %10109 = vst [vmem:[#allocation133_spill] sm:$0xff] %v6810_v48  ;;  %10110 = vst [vmem:[#allocation134_spill] sm:$0xff] %v6813_v17  ;;  %v6816_v13 = vld [vmem:[#allocation7 + $0x130] sm:$0xff]  ;;  %v6819_v28 = vld [vmem:[#allocation7 + $0x108] sm:$0xff] }
 0x471   :  { %1862 = vmatpush1.msra.mxu1 %v6804_v25  ;;  %1792 = vmatprep.subr.mxu0 %v6807_v14  ;;  %10111 = vst [vmem:[#allocation135_spill] sm:$0xff] %v6816_v13  ;;  %10112 = vst [vmem:[#allocation136_spill] sm:$0xff] %v6819_v28  ;;  %v6822_v25 = vld [vmem:[#allocation7 + $0x118] sm:$0xff]  ;;  %v6825_v14 = vld [vmem:[#allocation7 + $0x100] sm:$0xff] }
 0x472   :  { %1863 = vmatprep.subr.mxu1 %v6810_v48  ;;  %1793 = vmatpush1.msra.mxu0 %v6813_v17  ;;  %10113 = vst [vmem:[#allocation137_spill] sm:$0xff] %v6822_v25  ;;  %10114 = vst [vmem:[#allocation138_spill] sm:$0xff] %v6825_v14  ;;  %v6828_v48 = vld [vmem:[#allocation7 + $0x110] sm:$0xff]  ;;  %v6831_v17 = vld [vmem:[#allocation7 + $0xe8] sm:$0xff] }
 0x473   :  { %1864 = vmatpush1.msra.mxu1 %v6816_v13  ;;  %1794 = vmatprep.subr.mxu0 %v6819_v28  ;;  %10115 = vst [vmem:[#allocation139_spill] sm:$0xff] %v6828_v48  ;;  %10116 = vst [vmem:[#allocation140_spill] sm:$0xff] %v6831_v17  ;;  %v6834_v13 = vld [vmem:[#allocation7 + $0xf8] sm:$0xff]  ;;  %v6837_v28 = vld [vmem:[#allocation7 + $0xe0] sm:$0xff] }
 0x474   :  { %1865 = vmatprep.subr.mxu1 %v6822_v25  ;;  %1795 = vmatpush1.msra.mxu0 %v6825_v14  ;;  %10117 = vst [vmem:[#allocation141_spill] sm:$0xff] %v6834_v13  ;;  %10118 = vst [vmem:[#allocation142_spill] sm:$0xff] %v6837_v28  ;;  %v6840_v25 = vld [vmem:[#allocation7 + $0xf0] sm:$0xff]  ;;  %v6843_v14 = vld [vmem:[#allocation7 + $0xc8] sm:$0xff] }
 0x475   :  { %1866 = vmatpush1.msra.mxu1 %v6828_v48  ;;  %1796 = vmatprep.subr.mxu0 %v6831_v17  ;;  %10119 = vst [vmem:[#allocation143_spill] sm:$0xff] %v6840_v25  ;;  %10120 = vst [vmem:[#allocation144_spill] sm:$0xff] %v6843_v14  ;;  %v6846_v48 = vld [vmem:[#allocation7 + $0xd8] sm:$0xff]  ;;  %v6849_v17 = vld [vmem:[#allocation7 + $0xc0] sm:$0xff] }
 0x476   :  { %1867 = vmatprep.subr.mxu1 %v6834_v13  ;;  %1797 = vmatpush1.msra.mxu0 %v6837_v28  ;;  %10121 = vst [vmem:[#allocation145_spill] sm:$0xff] %v6846_v48  ;;  %10122 = vst [vmem:[#allocation146_spill] sm:$0xff] %v6849_v17  ;;  %v6852_v13 = vld [vmem:[#allocation7 + $0xd0] sm:$0xff]  ;;  %v6855_v28 = vld [vmem:[#allocation7 + $0xa8] sm:$0xff] }
 0x477   :  { %1868 = vmatpush1.msra.mxu1 %v6840_v25  ;;  %1798 = vmatprep.subr.mxu0 %v6843_v14  ;;  %10123 = vst [vmem:[#allocation147_spill] sm:$0xff] %v6852_v13  ;;  %10124 = vst [vmem:[#allocation148_spill] sm:$0xff] %v6855_v28  ;;  %v6858_v25 = vld [vmem:[#allocation7 + $0xb8] sm:$0xff]  ;;  %v6861_v14 = vld [vmem:[#allocation7 + $0xa0] sm:$0xff] }
 0x478   :  { %1869 = vmatprep.subr.mxu1 %v6846_v48  ;;  %1799 = vmatpush1.msra.mxu0 %v6849_v17  ;;  %10125 = vst [vmem:[#allocation149_spill] sm:$0xff] %v6858_v25  ;;  %10126 = vst [vmem:[#allocation150_spill] sm:$0xff] %v6861_v14  ;;  %v6864_v48 = vld [vmem:[#allocation7 + $0xb0] sm:$0xff]  ;;  %v6867_v17 = vld [vmem:[#allocation7 + $0x88] sm:$0xff] }
 0x479   :  { %1870 = vmatpush1.msra.mxu1 %v6852_v13  ;;  %1800 = vmatprep.subr.mxu0 %v6855_v28  ;;  %10127 = vst [vmem:[#allocation151_spill] sm:$0xff] %v6864_v48  ;;  %10128 = vst [vmem:[#allocation152_spill] sm:$0xff] %v6867_v17  ;;  %v6870_v13 = vld [vmem:[#allocation7 + $0x98] sm:$0xff]  ;;  %v6873_v28 = vld [vmem:[#allocation7 + $0x80] sm:$0xff] }
 0x47a   :  { %1871 = vmatprep.subr.mxu1 %v6858_v25  ;;  %1801 = vmatpush1.msra.mxu0 %v6861_v14  ;;  %10129 = vst [vmem:[#allocation153_spill] sm:$0xff] %v6870_v13  ;;  %10130 = vst [vmem:[#allocation154_spill] sm:$0xff] %v6873_v28  ;;  %v6876_v25 = vld [vmem:[#allocation7 + $0x90] sm:$0xff]  ;;  %v6879_v14 = vld [vmem:[#allocation7 + $0x68] sm:$0xff] }
 0x47b   :  { %1872 = vmatpush1.msra.mxu1 %v6864_v48  ;;  %1802 = vmatprep.subr.mxu0 %v6867_v17  ;;  %10131 = vst [vmem:[#allocation155_spill] sm:$0xff] %v6876_v25  ;;  %10132 = vst [vmem:[#allocation156_spill] sm:$0xff] %v6879_v14  ;;  %v6882_v48 = vld [vmem:[#allocation7 + $0x78] sm:$0xff]  ;;  %v6885_v17 = vld [vmem:[#allocation7 + $0x60] sm:$0xff] }
 0x47c   :  { %1873 = vmatprep.subr.mxu1 %v6870_v13  ;;  %1803 = vmatpush1.msra.mxu0 %v6873_v28  ;;  %10133 = vst [vmem:[#allocation157_spill] sm:$0xff] %v6882_v48  ;;  %10134 = vst [vmem:[#allocation158_spill] sm:$0xff] %v6885_v17  ;;  %v6888_v13 = vld [vmem:[#allocation7 + $0x70] sm:$0xff]  ;;  %v6891_v28 = vld [vmem:[#allocation7 + $0x48] sm:$0xff] }
 0x47d   :  { %1874 = vmatpush1.msra.mxu1 %v6876_v25  ;;  %1804 = vmatprep.subr.mxu0 %v6879_v14  ;;  %10135 = vst [vmem:[#allocation159_spill] sm:$0xff] %v6888_v13  ;;  %10136 = vst [vmem:[#allocation160_spill] sm:$0xff] %v6891_v28  ;;  %v6894_v25 = vld [vmem:[#allocation7 + $0x58] sm:$0xff]  ;;  %v6897_v14 = vld [vmem:[#allocation7 + $0x40] sm:$0xff] }
 0x47e   :  { %1875 = vmatprep.subr.mxu1 %v6882_v48  ;;  %1805 = vmatpush1.msra.mxu0 %v6885_v17  ;;  %10137 = vst [vmem:[#allocation161_spill] sm:$0xff] %v6894_v25  ;;  %10138 = vst [vmem:[#allocation162_spill] sm:$0xff] %v6897_v14  ;;  %v6900_v48 = vld [vmem:[#allocation7 + $0x50] sm:$0xff]  ;;  %v6903_v17 = vld [vmem:[#allocation7 + $0x28] sm:$0xff] }
 0x47f   :  { %1876 = vmatpush1.msra.mxu1 %v6888_v13  ;;  %1806 = vmatprep.subr.mxu0 %v6891_v28  ;;  %10139 = vst [vmem:[#allocation163_spill] sm:$0xff] %v6900_v48  ;;  %10140 = vst [vmem:[#allocation174_spill] sm:$0xff] %v6903_v17  ;;  %v6906_v13 = vld [vmem:[#allocation7 + $0x38] sm:$0xff]  ;;  %v6909_v28 = vld [vmem:[#allocation7 + $0x20] sm:$0xff] }
 0x480   :  { %1877 = vmatprep.subr.mxu1 %v6894_v25  ;;  %1807 = vmatpush1.msra.mxu0 %v6897_v14  ;;  %10141 = vst [vmem:[#allocation176_spill] sm:$0xff] %v6906_v13  ;;  %10142 = vst [vmem:[#allocation178_spill] sm:$0xff] %v6909_v28  ;;  %v6912_v25 = vld [vmem:[#allocation7 + $0x30] sm:$0xff]  ;;  %v6915_v14 = vld [vmem:[#allocation7 + $0x8] sm:$0xff] }
 0x481   :  { %1878 = vmatpush1.msra.mxu1 %v6900_v48  ;;  %1808 = vmatprep.subr.mxu0 %v6903_v17  ;;  %10143 = vst [vmem:[#allocation179_spill] sm:$0xff] %v6912_v25  ;;  %10144 = vst [vmem:[#allocation180_spill] sm:$0xff] %v6915_v14  ;;  %v6918_v48 = vld [vmem:[#allocation7 + $0x18] sm:$0xff]  ;;  %v6921_v17 = vld [vmem:[#allocation7] sm:$0xff] }
 0x482   :  { %1879 = vmatprep.subr.mxu1 %v6906_v13  ;;  %1809 = vmatpush1.msra.mxu0 %v6909_v28  ;;  %10145 = vst [vmem:[#allocation181_spill] sm:$0xff] %v6918_v48  ;;  %10146 = vst [vmem:[#allocation182_spill] sm:$0xff] %v6921_v17  ;;  %v6925_v13 = vld [vmem:[#allocation7 + $0x10] sm:$0xff] }
 0x483   :  { %1880 = vmatpush1.msra.mxu1 %v6912_v25  ;;  %1810 = vmatprep.subr.mxu0 %v6915_v14  ;;  %10147 = vst [vmem:[#allocation183_spill] sm:$0xff] %v6925_v13  ;;  %v149_v14 = vpop.permute.xlu1 %148 }
 0x484   :  { %1881 = vmatprep.subr.mxu1 %v6918_v48  ;;  %1811 = vmatpush1.msra.mxu0 %v6921_v17 }
 0x485   :  { %1844 = vmatprep.mubr.f32.mxu0 %v9843_v23  ;;  %1882 = vmatpush1.msra.mxu1 %v6925_v13  ;;  %v205_v13 = vmul.f32 %v9983_v39, %v149_v14 }
 0x486   :  { %1915 = vmatprep.mubr.f32.mxu1 %v9843_v23  ;;  %1947 = vmatprep.subr.mxu0 %v6285_v27 }
 0x487   :  { %2018 = vmatprep.subr.mxu1 %v6288_v61  ;;  %v6931_v25 = vpop.permute.xlu1 %153  ;;  %v206_v61 = vmul.f32 %v9984_v41, %v149_v14 }
 0x488   :  { %10148 = vst [vmem:[#allocation184_spill] sm:$0xff] %v6931_v25  ;;  %v259_v25 = vadd.f32 %v9985_v45, %v205_v13  ;;  %v208_v45 = vmul.f32 %v9989_v50, %v149_v14 }
 0x48b   :  { %v6933_v48 = vpop.permute.xlu1 %163 }
 0x48c   :  { %10149 = vst [vmem:[#allocation185_spill] sm:$0xff] %v6933_v48 }
 0x48f   :  { %v6935_v28 = vpop.permute.xlu1 %173 }
 0x490   :  { %10150 = vst [vmem:[#allocation186_spill] sm:$0xff] %v6935_v28  ;;  %v207_v28 = vmul.f32 %v9986_v53, %v149_v14  ;;  %v262_v53 = vadd.f32 %v6045_v57, %v208_v45 }
 0x492   :  { %v261_v43 = vadd.f32 %v9988_v59, %v207_v28 }
 0x4cf   :  { %v4365_v17 = vpop.xlane.xlu1 %4364 }
 0x4d0   :  { %v4386_v22 = vadd.f32 %v6295_v33, %v4365_v17  ;;  %v260_v33 = vadd.f32 %v9987_v3, %v206_v61 }
 0x4d2   :  { %4395 = vst.msk [vmem:[%s8994_s9 + $0x8] sm:$0xff] %vm4393_vm0, %v4386_v22 }
 0x503   :  { %v6943_v27 = vpop.f32.mrf.mxu0  ;;  %v6947_v15 = vpop.f32.mrf.mxu1 }
 0x505   :  { %v6949_v48 = vpop.f32.mrf.mxu0  ;;  %v6953_v18 = vpop.f32.mrf.mxu1 }
 0x524   :  { %v1679_v17 = vpop.f32.mrf.mxu0 }
 0x525   :  { %v1755_v20 = vadd.f32 %v1679_v17, %v259_v25  ;;  %v1750_v41 = vpop.f32.mrf.mxu1 }
 0x526   :  { %v1681_v22 = vpop.f32.mrf.mxu0  ;;  %v1757_v31 = vadd.f32 %v1750_v41, %v261_v43  ;;  %v10181_v43 = vld [vmem:[#allocation44_spill] sm:$0xff] }
 0x527   :  { %v1759_v39 = vmul.f32 0.5, %v1755_v20  ;;  %v1756_v32 = vadd.f32 %v1681_v22, %v260_v33  ;;  %v1752_v44 = vpop.f32.mrf.mxu1  ;;  %v10182_v22 = vld [vmem:[#allocation45_spill] sm:$0xff] }
 0x528   :  { %v1758_v61 = vadd.f32 %v1752_v44, %v262_v53 }
 0x529   :  { %4501 = vtanh.f32 %v1759_v39  ;;  %v1760_v13 = vmul.f32 0.5, %v1756_v32 }
 0x52a   :  { %v1762_v25 = vmul.f32 0.5, %v1758_v61  ;;  %v10184_v61 = vld [vmem:[#allocation47_spill] sm:$0xff] }
 0x52b   :  { %4503 = vtanh.f32 %v1760_v13  ;;  %v10183_v13 = vld [vmem:[#allocation46_spill] sm:$0xff] }
 0x52c   :  { %4505 = vtanh.f32 %v1757_v31 }
 0x52d   :  { %4507 = vtanh.f32 %v1762_v25  ;;  %v10185_v25 = vld [vmem:[#allocation48_spill] sm:$0xff] }
 0x536   :  { %v4502_v17 = vpop.eup %4501 }
 0x537   :  { %v1767_v3 = vmul.f32 0.5, %v4502_v17  ;;  %v10186_v17 = vld [vmem:[#allocation49_spill] sm:$0xff] }
 0x538   :  { %v4504_v38 = vpop.eup %4503 }
 0x539   :  { %v1771_v20 = vadd.f32 0.5, %v1767_v3  ;;  %v1768_v21 = vmul.f32 0.5, %v4504_v38  ;;  %v4506_v33 = vpop.eup %4505  ;;  %v10151_v3 = vld [vmem:[#allocation21_spill] sm:$0xff]  ;;  %v10180_v38 = vld [vmem:[#allocation43_spill] sm:$0xff] }
 0x53a   :  { %v4508_v41 = vpop.eup %4507 }
 0x53b   :  { %v1772_v28 = vadd.f32 0.5, %v1768_v21  ;;  %v1776_v32 = vmul.f32 %v4506_v33, %v1771_v20  ;;  %v1770_v45 = vmul.f32 0.5, %v4508_v41  ;;  %v10179_v21 = vld [vmem:[#allocation42_spill] sm:$0xff]  ;;  %v10189_v33 = vld [vmem:[#allocation17_spill] sm:$0xff] }
 0x53c   :  { %v10187_v20 = vld [vmem:[#allocation50_spill] sm:$0xff] }
 0x53d   :  { %v1775_v39 = vmul.f32 %v1772_v28, %v6322_v19  ;;  %v1774_v31 = vadd.f32 0.5, %v1770_v45  ;;  %v10152_v19 = vld [vmem:[#allocation22_spill] sm:$0xff]  ;;  %v10188_v28 = vld [vmem:[#allocation51_spill] sm:$0xff] }
 0x53e   :  { %v10190_v41 = vld [vmem:[#allocation18_spill] sm:$0xff] }
 0x53f   :  { %v6959_v14 = vadd.f32 %v1776_v32, %v1775_v39  ;;  %v1534_v39 = vadd.f32 %v6943_v27, %v10189_v33  ;;  %v1536_v45 = vadd.f32 %v6949_v48, %v10190_v41  ;;  %v1607_v27 = vadd.f32 %v6953_v18, %v6140_v47 }
 0x541   :  { %4509 = vtanh.f32 %v6959_v14 }
 0x54e   :  { %v4510_v53 = vpop.eup %4509 }
 0x54f   :  { %v6962_v44 = vmul.f32 %v4510_v53, %v1774_v31 }
 0x551   :  { %1845 = vmatmul.mubr.f32.vlgmr.msra.gmra.mxu0 %v6962_v44  ;;  %1916 = vmatmul.mubr.f32.vlgmr.msra.gmra.mxu1 %v6962_v44 }
 0x552   :  { %1948 = vmatpush1.msra.mxu0 %v6329_v26  ;;  %2019 = vmatpush1.msra.mxu1 %v6332_v52  ;;  %v10153_v26 = vld [vmem:[#allocation23_spill] sm:$0xff]  ;;  %v10154_v52 = vld [vmem:[#allocation24_spill] sm:$0xff] }
 0x553   :  { %1949 = vmatprep.subr.mxu0 %v6335_v29  ;;  %2020 = vmatprep.subr.mxu1 %v6338_v35  ;;  %v10155_v29 = vld [vmem:[#allocation25_spill] sm:$0xff]  ;;  %v10156_v35 = vld [vmem:[#allocation26_spill] sm:$0xff] }
 0x554   :  { %1950 = vmatpush1.msra.mxu0 %v6341_v36  ;;  %2021 = vmatpush1.msra.mxu1 %v6344_v37  ;;  %v10157_v36 = vld [vmem:[#allocation27_spill] sm:$0xff]  ;;  %v10158_v37 = vld [vmem:[#allocation28_spill] sm:$0xff] }
 0x555   :  { %1951 = vmatprep.subr.mxu0 %v6347_v40  ;;  %2022 = vmatprep.subr.mxu1 %v6350_v42  ;;  %v10159_v40 = vld [vmem:[#allocation29_spill] sm:$0xff]  ;;  %v10160_v42 = vld [vmem:[#allocation30_spill] sm:$0xff] }
 0x556   :  { %1952 = vmatpush1.msra.mxu0 %v6353_v46  ;;  %2023 = vmatpush1.msra.mxu1 %v6356_v60  ;;  %v10161_v46 = vld [vmem:[#allocation31_spill] sm:$0xff]  ;;  %v10162_v60 = vld [vmem:[#allocation32_spill] sm:$0xff] }
 0x557   :  { %1953 = vmatprep.subr.mxu0 %v6359_v49  ;;  %2024 = vmatprep.subr.mxu1 %v6362_v55  ;;  %v10163_v49 = vld [vmem:[#allocation33_spill] sm:$0xff]  ;;  %v10164_v55 = vld [vmem:[#allocation34_spill] sm:$0xff] }
 0x558   :  { %1954 = vmatpush1.msra.mxu0 %v6365_v62  ;;  %2025 = vmatpush1.msra.mxu1 %v6368_v56  ;;  %v10165_v62 = vld [vmem:[#allocation35_spill] sm:$0xff]  ;;  %v10166_v56 = vld [vmem:[#allocation36_spill] sm:$0xff] }
 0x559   :  { %1955 = vmatprep.subr.mxu0 %v6371_v58  ;;  %2026 = vmatprep.subr.mxu1 %v6374_v0  ;;  %v10167_v58 = vld [vmem:[#allocation37_spill] sm:$0xff]  ;;  %v10168_v0 = vld [vmem:[#allocation164_spill] sm:$0xff] }
 0x55a   :  { %1956 = vmatpush1.msra.mxu0 %v6377_v4  ;;  %2027 = vmatpush1.msra.mxu1 %v6380_v54  ;;  %v10169_v4 = vld [vmem:[#allocation165_spill] sm:$0xff]  ;;  %v10170_v54 = vld [vmem:[#allocation170_spill] sm:$0xff] }
 0x55b   :  { %1957 = vmatprep.subr.mxu0 %v6383_v2  ;;  %2028 = vmatprep.subr.mxu1 %v6386_v63  ;;  %v10171_v2 = vld [vmem:[#allocation168_spill] sm:$0xff]  ;;  %v10172_v63 = vld [vmem:[#allocation173_spill] sm:$0xff] }
 0x55c   :  { %1958 = vmatpush1.msra.mxu0 %v6389_v1  ;;  %2029 = vmatpush1.msra.mxu1 %v6392_v5  ;;  %v10173_v1 = vld [vmem:[#allocation175_spill] sm:$0xff]  ;;  %v10174_v5 = vld [vmem:[#allocation177_spill] sm:$0xff] }
 0x55d   :  { %1959 = vmatprep.subr.mxu0 %v6395_v7  ;;  %2030 = vmatprep.subr.mxu1 %v6398_v8  ;;  %v10175_v7 = vld [vmem:[#allocation38_spill] sm:$0xff]  ;;  %v10176_v8 = vld [vmem:[#allocation39_spill] sm:$0xff] }
 0x55e   :  { %1960 = vmatpush1.msra.mxu0 %v6401_v9  ;;  %2031 = vmatpush1.msra.mxu1 %v6404_v10  ;;  %v10177_v9 = vld [vmem:[#allocation40_spill] sm:$0xff]  ;;  %v10178_v10 = vld [vmem:[#allocation41_spill] sm:$0xff] }
 0x55f   :  { %1961 = vmatprep.subr.mxu0 %v10151_v3  ;;  %2032 = vmatprep.subr.mxu1 %v10152_v19  ;;  %v1605_v19 = vadd.f32 %v6947_v15, %v6133_v34 }
 0x560   :  { %1962 = vmatpush1.msra.mxu0 %v10153_v26  ;;  %2033 = vmatpush1.msra.mxu1 %v10154_v52 }
 0x561   :  { %1963 = vmatprep.subr.mxu0 %v10155_v29  ;;  %2034 = vmatprep.subr.mxu1 %v10156_v35 }
 0x562   :  { %1964 = vmatpush1.msra.mxu0 %v10157_v36  ;;  %2035 = vmatpush1.msra.mxu1 %v10158_v37 }
 0x563   :  { %1965 = vmatprep.subr.mxu0 %v10159_v40  ;;  %2036 = vmatprep.subr.mxu1 %v10160_v42 }
 0x564   :  { %1966 = vmatpush1.msra.mxu0 %v10161_v46  ;;  %2037 = vmatpush1.msra.mxu1 %v10162_v60 }
 0x565   :  { %1967 = vmatprep.subr.mxu0 %v10163_v49  ;;  %2038 = vmatprep.subr.mxu1 %v10164_v55 }
 0x566   :  { %1968 = vmatpush1.msra.mxu0 %v10165_v62  ;;  %2039 = vmatpush1.msra.mxu1 %v10166_v56 }
 0x567   :  { %1969 = vmatprep.subr.mxu0 %v10167_v58  ;;  %2040 = vmatprep.subr.mxu1 %v10168_v0 }
 0x568   :  { %1970 = vmatpush1.msra.mxu0 %v10169_v4  ;;  %2041 = vmatpush1.msra.mxu1 %v10170_v54 }
 0x569   :  { %1971 = vmatprep.subr.mxu0 %v10171_v2  ;;  %2042 = vmatprep.subr.mxu1 %v10172_v63  ;;  %v7047_v63 = vld [vmem:[%s8992_s7] ss:$0 sm:$0xff] }
 0x56a   :  { %1972 = vmatpush1.msra.mxu0 %v10173_v1  ;;  %2043 = vmatpush1.msra.mxu1 %v10174_v5  ;;  %v10192_v5 = vld [vmem:[#allocation53_spill] sm:$0xff] }
 0x56b   :  { %1973 = vmatprep.subr.mxu0 %v10175_v7  ;;  %2044 = vmatprep.subr.mxu1 %v10176_v8  ;;  %v10193_v7 = vld [vmem:[#allocation54_spill] sm:$0xff]  ;;  %v10194_v8 = vld [vmem:[#allocation55_spill] sm:$0xff] }
 0x56c   :  { %1974 = vmatpush1.msra.mxu0 %v10177_v9  ;;  %2045 = vmatpush1.msra.mxu1 %v10178_v10  ;;  %v10199_v9 = vld [vmem:[#allocation60_spill] sm:$0xff]  ;;  %v10202_v10 = vld [vmem:[#allocation63_spill] sm:$0xff] }
 0x56d   :  { %1975 = vmatprep.subr.mxu0 %v10179_v21  ;;  %2046 = vmatprep.subr.mxu1 %v10180_v38  ;;  %v10203_v21 = vld [vmem:[#allocation64_spill] sm:$0xff]  ;;  %v10204_v38 = vld [vmem:[#allocation65_spill] sm:$0xff] }
 0x56e   :  { %1976 = vmatpush1.msra.mxu0 %v10181_v43  ;;  %2047 = vmatpush1.msra.mxu1 %v10182_v22  ;;  %v10205_v43 = vld [vmem:[#allocation66_spill] sm:$0xff]  ;;  %v10206_v22 = vld [vmem:[#allocation67_spill] sm:$0xff] }
 0x56f   :  { %1977 = vmatprep.subr.mxu0 %v10183_v13  ;;  %2048 = vmatprep.subr.mxu1 %v10184_v61  ;;  %v10207_v13 = vld [vmem:[#allocation68_spill] sm:$0xff]  ;;  %v10208_v61 = vld [vmem:[#allocation69_spill] sm:$0xff] }
 0x570   :  { %1978 = vmatpush1.msra.mxu0 %v10185_v25  ;;  %2049 = vmatpush1.msra.mxu1 %v10186_v17  ;;  %v10209_v25 = vld [vmem:[#allocation70_spill] sm:$0xff]  ;;  %v10210_v17 = vld [vmem:[#allocation71_spill] sm:$0xff] }
 0x571   :  { %2011 = vmatprep.mubr.f32.mxu0 %v9843_v23  ;;  %2082 = vmatprep.mubr.f32.mxu1 %v9843_v23 }
 0x572   :  { %2093 = vmatprep.subr.mxu0 %v10187_v20  ;;  %2164 = vmatprep.subr.mxu1 %v10188_v28  ;;  %v10211_v20 = vld [vmem:[#allocation72_spill] sm:$0xff]  ;;  %v10212_v28 = vld [vmem:[#allocation73_spill] sm:$0xff] }
 0x611   :  { %v1846_v32 = vpop.f32.mrf.mxu0  ;;  %v1917_v53 = vpop.f32.mrf.mxu1 }
 0x612   :  { %v1922_v31 = vadd.f32 %v1846_v32, %v1534_v39  ;;  %v1924_v29 = vadd.f32 %v1917_v53, %v1605_v19  ;;  %v10213_v39 = vld [vmem:[#allocation74_spill] sm:$0xff]  ;;  %v10214_v32 = vld [vmem:[#allocation75_spill] sm:$0xff]  ;;  %v10219_v19 = vld [vmem:[#allocation80_spill] sm:$0xff] }
 0x613   :  { %v1848_v3 = vpop.f32.mrf.mxu0  ;;  %v1919_v36 = vpop.f32.mrf.mxu1  ;;  %v10217_v53 = vld [vmem:[#allocation78_spill] sm:$0xff] }
 0x614   :  { %v1926_v26 = vmul.f32 0.5, %v1922_v31  ;;  %v1923_v52 = vadd.f32 %v1848_v3, %v1536_v45  ;;  %v1925_v37 = vadd.f32 %v1919_v36, %v1607_v27  ;;  %v10215_v45 = vld [vmem:[#allocation76_spill] sm:$0xff]  ;;  %v10216_v31 = vld [vmem:[#allocation77_spill] sm:$0xff]  ;;  %v10218_v3 = vld [vmem:[#allocation79_spill] sm:$0xff] }
 0x615   :  { %v10224_v36 = vld [vmem:[#allocation85_spill] sm:$0xff]  ;;  %v10225_v27 = vld [vmem:[#allocation86_spill] sm:$0xff] }
 0x616   :  { %4511 = vtanh.f32 %v1926_v26  ;;  %v1927_v35 = vmul.f32 0.5, %v1923_v52  ;;  %v1929_v40 = vmul.f32 0.5, %v1925_v37  ;;  %v10220_v26 = vld [vmem:[#allocation81_spill] sm:$0xff]  ;;  %v10221_v52 = vld [vmem:[#allocation82_spill] sm:$0xff]  ;;  %v10226_v37 = vld [vmem:[#allocation87_spill] sm:$0xff] }
 0x618   :  { %4513 = vtanh.f32 %v1927_v35  ;;  %v10223_v35 = vld [vmem:[#allocation84_spill] sm:$0xff] }
 0x619   :  { %4515 = vtanh.f32 %v1924_v29  ;;  %v10222_v29 = vld [vmem:[#allocation83_spill] sm:$0xff] }
 0x61a   :  { %4517 = vtanh.f32 %v1929_v40  ;;  %v10227_v40 = vld [vmem:[#allocation88_spill] sm:$0xff] }
 0x623   :  { %v4512_v48 = vpop.eup %4511 }
 0x624   :  { %v1934_v42 = vmul.f32 0.5, %v4512_v48  ;;  %v10228_v48 = vld [vmem:[#allocation89_spill] sm:$0xff] }
 0x625   :  { %v4514_v46 = vpop.eup %4513 }
 0x626   :  { %v1938_v60 = vadd.f32 0.5, %v1934_v42  ;;  %v1935_v49 = vmul.f32 0.5, %v4514_v46  ;;  %v4516_v15 = vpop.eup %4515  ;;  %v10229_v42 = vld [vmem:[#allocation90_spill] sm:$0xff]  ;;  %v10230_v46 = vld [vmem:[#allocation91_spill] sm:$0xff] }
 0x627   :  { %v4518_v0 = vpop.eup %4517 }
 0x628   :  { %v1939_v55 = vadd.f32 0.5, %v1935_v49  ;;  %v1943_v62 = vmul.f32 %v4516_v15, %v1938_v60  ;;  %v1937_v4 = vmul.f32 0.5, %v4518_v0  ;;  %v10231_v60 = vld [vmem:[#allocation92_spill] sm:$0xff]  ;;  %v10232_v49 = vld [vmem:[#allocation93_spill] sm:$0xff]  ;;  %v10233_v15 = vld [vmem:[#allocation94_spill] sm:$0xff] }
 0x629   :  { %v10237_v0 = vld [vmem:[#allocation98_spill] sm:$0xff] }
 0x62a   :  { %v1942_v56 = vmul.f32 %v1939_v55, %v6541_v16  ;;  %v1941_v18 = vadd.f32 0.5, %v1937_v4  ;;  %v10191_v16 = vld [vmem:[#allocation52_spill] sm:$0xff]  ;;  %v10234_v55 = vld [vmem:[#allocation95_spill] sm:$0xff] }
 0x62b   :  { %v10238_v4 = vld [vmem:[#allocation99_spill] sm:$0xff] }
 0x62c   :  { %v7041_v58 = vadd.f32 %v1943_v62, %v1942_v56  ;;  %v10235_v62 = vld [vmem:[#allocation96_spill] sm:$0xff]  ;;  %v10236_v56 = vld [vmem:[#allocation97_spill] sm:$0xff] }
 0x62e   :  { %4519 = vtanh.f32 %v7041_v58 }
 0x63b   :  { %v4520_v54 = vpop.eup %4519 }
 0x63c   :  { %v1946_v2 = vmul.f32 %v4520_v54, %v1941_v18  ;;  %v10239_v18 = vld [vmem:[#allocation100_spill] sm:$0xff]  ;;  %v10240_v54 = vld [vmem:[#allocation101_spill] sm:$0xff] }
 0x63e   :  { %2012 = vmatmul.mubr.f32.vlgmr.msra.gmra.mxu0 %v1946_v2  ;;  %2083 = vmatmul.mubr.f32.vlgmr.msra.gmra.mxu1 %v1946_v2  ;;  %v4356_v1 = vmul.f32 %v7047_v63, %v1946_v2  ;;  %v10241_v2 = vld [vmem:[#allocation102_spill] sm:$0xff] }
 0x63f   :  { %2094 = vmatpush1.msra.mxu0 %v6545_v24  ;;  %2165 = vmatpush1.msra.mxu1 %v6548_v30  ;;  %v10195_v24 = vld [vmem:[#allocation56_spill] sm:$0xff]  ;;  %v10196_v30 = vld [vmem:[#allocation57_spill] sm:$0xff] }
 0x640   :  { %2095 = vmatprep.subr.mxu0 %v6551_v51  ;;  %2166 = vmatprep.subr.mxu1 %v6554_v11  ;;  %v10197_v51 = vld [vmem:[#allocation58_spill] sm:$0xff]  ;;  %v10198_v11 = vld [vmem:[#allocation59_spill] sm:$0xff] }
 0x641   :  { %4366 = vadd.xlane.f32.xlu0 %v4356_v1  ;;  %2096 = vmatpush1.msra.mxu0 %v6557_v12  ;;  %v10200_v12 = vld [vmem:[#allocation61_spill] sm:$0xff]  ;;  %v10242_v1 = vld [vmem:[#allocation103_spill] sm:$0xff] }
 0x642   :  { %2167 = vmatpush1.msra.mxu1 %v6560_v6  ;;  %2097 = vmatprep.subr.mxu0 %v10191_v16  ;;  %v10201_v6 = vld [vmem:[#allocation62_spill] sm:$0xff]  ;;  %v10243_v16 = vld [vmem:[#allocation104_spill] sm:$0xff] }
 0x643   :  { %2168 = vmatprep.subr.mxu1 %v10192_v5  ;;  %2098 = vmatpush1.msra.mxu0 %v10193_v7  ;;  %v10244_v5 = vld [vmem:[#allocation105_spill] sm:$0xff]  ;;  %v10245_v7 = vld [vmem:[#allocation106_spill] sm:$0xff] }
 0x644   :  { %2169 = vmatpush1.msra.mxu1 %v10194_v8  ;;  %2099 = vmatprep.subr.mxu0 %v10195_v24  ;;  %v10246_v8 = vld [vmem:[#allocation107_spill] sm:$0xff]  ;;  %v10247_v24 = vld [vmem:[#allocation108_spill] sm:$0xff] }
 0x645   :  { %2170 = vmatprep.subr.mxu1 %v10196_v30  ;;  %2100 = vmatpush1.msra.mxu0 %v10197_v51  ;;  %v10248_v30 = vld [vmem:[#allocation109_spill] sm:$0xff]  ;;  %v10249_v51 = vld [vmem:[#allocation110_spill] sm:$0xff] }
 0x646   :  { %2171 = vmatpush1.msra.mxu1 %v10198_v11  ;;  %2101 = vmatprep.subr.mxu0 %v10199_v9  ;;  %v10250_v11 = vld [vmem:[#allocation111_spill] sm:$0xff]  ;;  %v10251_v9 = vld [vmem:[#allocation112_spill] sm:$0xff] }
 0x647   :  { %2172 = vmatprep.subr.mxu1 %v10200_v12  ;;  %2102 = vmatpush1.msra.mxu0 %v10201_v6  ;;  %v10252_v12 = vld [vmem:[#allocation113_spill] sm:$0xff]  ;;  %v10253_v6 = vld [vmem:[#allocation114_spill] sm:$0xff] }
 0x648   :  { %2173 = vmatpush1.msra.mxu1 %v10202_v10  ;;  %2103 = vmatprep.subr.mxu0 %v10203_v21  ;;  %v10254_v10 = vld [vmem:[#allocation115_spill] sm:$0xff]  ;;  %v10255_v21 = vld [vmem:[#allocation116_spill] sm:$0xff] }
 0x649   :  { %2174 = vmatprep.subr.mxu1 %v10204_v38  ;;  %2104 = vmatpush1.msra.mxu0 %v10205_v43  ;;  %v10256_v38 = vld [vmem:[#allocation117_spill] sm:$0xff]  ;;  %v10258_v43 = vld [vmem:[#allocation119_spill] sm:$0xff] }
 0x64a   :  { %2175 = vmatpush1.msra.mxu1 %v10206_v22  ;;  %2105 = vmatprep.subr.mxu0 %v10207_v13  ;;  %v10259_v22 = vld [vmem:[#allocation120_spill] sm:$0xff]  ;;  %v10260_v13 = vld [vmem:[#allocation121_spill] sm:$0xff] }
 0x64b   :  { %2176 = vmatprep.subr.mxu1 %v10208_v61  ;;  %2106 = vmatpush1.msra.mxu0 %v10209_v25  ;;  %v10261_v61 = vld [vmem:[#allocation122_spill] sm:$0xff]  ;;  %v10262_v25 = vld [vmem:[#allocation123_spill] sm:$0xff] }
 0x64c   :  { %2177 = vmatpush1.msra.mxu1 %v10210_v17  ;;  %2107 = vmatprep.subr.mxu0 %v10211_v20  ;;  %v10263_v17 = vld [vmem:[#allocation124_spill] sm:$0xff]  ;;  %v10264_v20 = vld [vmem:[#allocation125_spill] sm:$0xff] }
 0x64d   :  { %2178 = vmatprep.subr.mxu1 %v10212_v28  ;;  %2108 = vmatpush1.msra.mxu0 %v10213_v39  ;;  %v10265_v28 = vld [vmem:[#allocation126_spill] sm:$0xff]  ;;  %v10266_v39 = vld [vmem:[#allocation127_spill] sm:$0xff] }
 0x64e   :  { %2179 = vmatpush1.msra.mxu1 %v10214_v32  ;;  %2109 = vmatprep.subr.mxu0 %v10215_v45  ;;  %v10267_v32 = vld [vmem:[#allocation128_spill] sm:$0xff]  ;;  %v10268_v45 = vld [vmem:[#allocation129_spill] sm:$0xff] }
 0x64f   :  { %2180 = vmatprep.subr.mxu1 %v10216_v31  ;;  %2110 = vmatpush1.msra.mxu0 %v10217_v53  ;;  %v10269_v31 = vld [vmem:[#allocation130_spill] sm:$0xff]  ;;  %v10270_v53 = vld [vmem:[#allocation131_spill] sm:$0xff] }
 0x650   :  { %2181 = vmatpush1.msra.mxu1 %v10218_v3  ;;  %2111 = vmatprep.subr.mxu0 %v10219_v19  ;;  %v10271_v3 = vld [vmem:[#allocation132_spill] sm:$0xff]  ;;  %v10272_v19 = vld [vmem:[#allocation133_spill] sm:$0xff] }
 0x651   :  { %2182 = vmatprep.subr.mxu1 %v10220_v26  ;;  %2112 = vmatpush1.msra.mxu0 %v10221_v52  ;;  %v10273_v26 = vld [vmem:[#allocation134_spill] sm:$0xff]  ;;  %v10274_v52 = vld [vmem:[#allocation135_spill] sm:$0xff] }
 0x652   :  { %2183 = vmatpush1.msra.mxu1 %v10222_v29  ;;  %2113 = vmatprep.subr.mxu0 %v10223_v35  ;;  %v10275_v29 = vld [vmem:[#allocation136_spill] sm:$0xff]  ;;  %v10276_v35 = vld [vmem:[#allocation137_spill] sm:$0xff] }
 0x653   :  { %2184 = vmatprep.subr.mxu1 %v10224_v36  ;;  %2114 = vmatpush1.msra.mxu0 %v10225_v27  ;;  %v10277_v36 = vld [vmem:[#allocation138_spill] sm:$0xff]  ;;  %v10278_v27 = vld [vmem:[#allocation139_spill] sm:$0xff] }
 0x654   :  { %2185 = vmatpush1.msra.mxu1 %v10226_v37  ;;  %2115 = vmatprep.subr.mxu0 %v10227_v40  ;;  %v10279_v37 = vld [vmem:[#allocation140_spill] sm:$0xff]  ;;  %v10280_v40 = vld [vmem:[#allocation141_spill] sm:$0xff] }
 0x655   :  { %2186 = vmatprep.subr.mxu1 %v10228_v48  ;;  %2116 = vmatpush1.msra.mxu0 %v10229_v42  ;;  %v10281_v48 = vld [vmem:[#allocation142_spill] sm:$0xff]  ;;  %v10282_v42 = vld [vmem:[#allocation143_spill] sm:$0xff] }
 0x656   :  { %2187 = vmatpush1.msra.mxu1 %v10230_v46  ;;  %2117 = vmatprep.subr.mxu0 %v10231_v60  ;;  %v10283_v46 = vld [vmem:[#allocation144_spill] sm:$0xff]  ;;  %v10284_v60 = vld [vmem:[#allocation145_spill] sm:$0xff] }
 0x657   :  { %2188 = vmatprep.subr.mxu1 %v10232_v49  ;;  %2118 = vmatpush1.msra.mxu0 %v10233_v15  ;;  %v10285_v49 = vld [vmem:[#allocation146_spill] sm:$0xff]  ;;  %v10286_v15 = vld [vmem:[#allocation147_spill] sm:$0xff] }
 0x658   :  { %2189 = vmatpush1.msra.mxu1 %v10234_v55  ;;  %2119 = vmatprep.subr.mxu0 %v10235_v62  ;;  %v10287_v55 = vld [vmem:[#allocation148_spill] sm:$0xff]  ;;  %v10288_v62 = vld [vmem:[#allocation149_spill] sm:$0xff] }
 0x659   :  { %2190 = vmatprep.subr.mxu1 %v10236_v56  ;;  %2120 = vmatpush1.msra.mxu0 %v10237_v0  ;;  %v10289_v56 = vld [vmem:[#allocation150_spill] sm:$0xff]  ;;  %v10290_v0 = vld [vmem:[#allocation151_spill] sm:$0xff] }
 0x65a   :  { %2191 = vmatpush1.msra.mxu1 %v10238_v4  ;;  %2121 = vmatprep.subr.mxu0 %v10239_v18  ;;  %v10291_v4 = vld [vmem:[#allocation152_spill] sm:$0xff]  ;;  %v10292_v18 = vld [vmem:[#allocation153_spill] sm:$0xff] }
 0x65b   :  { %2192 = vmatprep.subr.mxu1 %v10240_v54  ;;  %2122 = vmatpush1.msra.mxu0 %v10241_v2  ;;  %v10293_v54 = vld [vmem:[#allocation154_spill] sm:$0xff]  ;;  %v10294_v2 = vld [vmem:[#allocation155_spill] sm:$0xff] }
 0x65c   :  { %2193 = vmatpush1.msra.mxu1 %v10242_v1  ;;  %2123 = vmatprep.subr.mxu0 %v10243_v16  ;;  %v10295_v1 = vld [vmem:[#allocation156_spill] sm:$0xff]  ;;  %v10296_v16 = vld [vmem:[#allocation157_spill] sm:$0xff] }
 0x65d   :  { %2194 = vmatprep.subr.mxu1 %v10244_v5  ;;  %2124 = vmatpush1.msra.mxu0 %v10245_v7  ;;  %v10297_v5 = vld [vmem:[#allocation158_spill] sm:$0xff]  ;;  %v10298_v7 = vld [vmem:[#allocation159_spill] sm:$0xff] }
 0x65e   :  { %2157 = vmatprep.mubr.f32.mxu0 %v9843_v23  ;;  %2195 = vmatpush1.msra.mxu1 %v10246_v8  ;;  %v10299_v8 = vld [vmem:[#allocation160_spill] sm:$0xff] }
 0x65f   :  { %2228 = vmatprep.mubr.f32.mxu1 %v9843_v23  ;;  %2158 = vmatmul.mubr.f32.vlgmr.msra.gmra.mxu0 %v6962_v44 }
 0x660   :  { %2229 = vmatmul.mubr.f32.vlgmr.msra.gmra.mxu1 %v6962_v44  ;;  %2260 = vmatprep.subr.mxu0 %v10247_v24  ;;  %v10257_v44 = vld [vmem:[#allocation118_spill] sm:$0xff]  ;;  %v10300_v24 = vld [vmem:[#allocation161_spill] sm:$0xff] }
 0x661   :  { %2331 = vmatprep.subr.mxu1 %v10248_v30  ;;  %2261 = vmatpush1.msra.mxu0 %v10249_v51  ;;  %v10301_v30 = vld [vmem:[#allocation162_spill] sm:$0xff]  ;;  %v10302_v51 = vld [vmem:[#allocation163_spill] sm:$0xff] }
 0x662   :  { %2332 = vmatpush1.msra.mxu1 %v10250_v11  ;;  %2262 = vmatprep.subr.mxu0 %v10251_v9  ;;  %v10303_v11 = vld [vmem:[#allocation174_spill] sm:$0xff]  ;;  %v10304_v9 = vld [vmem:[#allocation176_spill] sm:$0xff] }
 0x663   :  { %2333 = vmatprep.subr.mxu1 %v10252_v12  ;;  %2263 = vmatpush1.msra.mxu0 %v10253_v6  ;;  %v10305_v12 = vld [vmem:[#allocation178_spill] sm:$0xff]  ;;  %v10306_v6 = vld [vmem:[#allocation179_spill] sm:$0xff] }
 0x664   :  { %2334 = vmatpush1.msra.mxu1 %v10254_v10  ;;  %2264 = vmatprep.subr.mxu0 %v10255_v21  ;;  %v10307_v10 = vld [vmem:[#allocation180_spill] sm:$0xff]  ;;  %v10308_v21 = vld [vmem:[#allocation181_spill] sm:$0xff] }
 0x665   :  { %2335 = vmatprep.subr.mxu1 %v10256_v38  ;;  %2265 = vmatpush1.msra.mxu0 %v10257_v44  ;;  %v10309_v38 = vld [vmem:[#allocation182_spill] sm:$0xff]  ;;  %v10310_v44 = vld [vmem:[#allocation183_spill] sm:$0xff] }
 0x666   :  { %2336 = vmatpush1.msra.mxu1 %v10258_v43  ;;  %2266 = vmatprep.subr.mxu0 %v10259_v22  ;;  %v7182_v43 = vld [vmem:[#allocation9 + $0x1e8] sm:$0xff]  ;;  %v7185_v22 = vld [vmem:[#allocation9 + $0x1f8] sm:$0xff] }
 0x667   :  { %2337 = vmatprep.subr.mxu1 %v10260_v13  ;;  %2267 = vmatpush1.msra.mxu0 %v10261_v61  ;;  %v7188_v61 = vld [vmem:[#allocation3] ss:$0 sm:$0xff] }
 0x668   :  { %2338 = vmatpush1.msra.mxu1 %v10262_v25  ;;  %2268 = vmatprep.subr.mxu0 %v10263_v17 }
 0x669   :  { %2339 = vmatprep.subr.mxu1 %v10264_v20  ;;  %2269 = vmatpush1.msra.mxu0 %v10265_v28  ;;  %v10311_v20 = vld [vmem:[#allocation184_spill] sm:$0xff]  ;;  %v10312_v28 = vld [vmem:[#allocation166_spill] sm:$0xff] }
 0x66a   :  { %2340 = vmatpush1.msra.mxu1 %v10266_v39  ;;  %2270 = vmatprep.subr.mxu0 %v10267_v32  ;;  %v209_v39 = vmul.f32 %v10312_v28, %v10311_v20  ;;  %v10313_v32 = vld [vmem:[#allocation167_spill] sm:$0xff] }
 0x66b   :  { %2341 = vmatprep.subr.mxu1 %v10268_v45  ;;  %2271 = vmatpush1.msra.mxu0 %v10269_v31  ;;  %v210_v45 = vmul.f32 %v10313_v32, %v10311_v20 }
 0x66c   :  { %2342 = vmatpush1.msra.mxu1 %v10270_v53  ;;  %2272 = vmatprep.subr.mxu0 %v10271_v3  ;;  %v10314_v3 = vld [vmem:[#allocation169_spill] sm:$0xff] }
 0x66d   :  { %2343 = vmatprep.subr.mxu1 %v10272_v19  ;;  %2273 = vmatpush1.msra.mxu0 %v10273_v26  ;;  %v263_v19 = vadd.f32 %v10314_v3, %v209_v39  ;;  %v7247_v39 = vld [vmem:[#allocation9 + $0x1a0] sm:$0xff] }
 0x66e   :  { %2344 = vmatpush1.msra.mxu1 %v10274_v52  ;;  %2274 = vmatprep.subr.mxu0 %v10275_v29  ;;  %v10315_v29 = vld [vmem:[#allocation171_spill] sm:$0xff] }
 0x66f   :  { %2345 = vmatprep.subr.mxu1 %v10276_v35  ;;  %2275 = vmatpush1.msra.mxu0 %v10277_v36  ;;  %v211_v35 = vmul.f32 %v10315_v29, %v10311_v20  ;;  %v10316_v36 = vld [vmem:[#allocation172_spill] sm:$0xff] }
 0x670   :  { %2346 = vmatpush1.msra.mxu1 %v10278_v27  ;;  %2276 = vmatprep.subr.mxu0 %v10279_v37  ;;  %v264_v27 = vadd.f32 %v10316_v36, %v210_v45  ;;  %v7250_v45 = vld [vmem:[#allocation9 + $0x1b0] sm:$0xff] }
 0x671   :  { %2347 = vmatprep.subr.mxu1 %v10280_v40  ;;  %2277 = vmatpush1.msra.mxu0 %v10281_v48 }
 0x672   :  { %2348 = vmatpush1.msra.mxu1 %v10282_v42  ;;  %2278 = vmatprep.subr.mxu0 %v10283_v46 }
 0x673   :  { %2349 = vmatprep.subr.mxu1 %v10284_v60  ;;  %2279 = vmatpush1.msra.mxu0 %v10285_v49  ;;  %v265_v60 = vadd.f32 %v9988_v59, %v211_v35  ;;  %v7262_v35 = vld [vmem:[#allocation9 + $0x190] sm:$0xff] }
 0x674   :  { %2350 = vmatpush1.msra.mxu1 %v10286_v15  ;;  %2280 = vmatprep.subr.mxu0 %v10287_v55  ;;  %v212_v55 = vmul.f32 %v9989_v50, %v10311_v20  ;;  %v7244_v20 = vld [vmem:[#allocation9 + $0x1b8] sm:$0xff] }
 0x675   :  { %2351 = vmatprep.subr.mxu1 %v10288_v62  ;;  %2281 = vmatpush1.msra.mxu0 %v10289_v56 }
 0x676   :  { %2352 = vmatpush1.msra.mxu1 %v10290_v0  ;;  %2282 = vmatprep.subr.mxu0 %v10291_v4  ;;  %v266_v56 = vadd.f32 %v6045_v57, %v212_v55  ;;  %v7289_v55 = vld [vmem:[#allocation9 + $0x128] sm:$0xff] }
 0x677   :  { %2353 = vmatprep.subr.mxu1 %v10292_v18  ;;  %2283 = vmatpush1.msra.mxu0 %v10293_v54 }
 0x678   :  { %2354 = vmatpush1.msra.mxu1 %v10294_v2  ;;  %2284 = vmatprep.subr.mxu0 %v10295_v1 }
 0x679   :  { %2355 = vmatprep.subr.mxu1 %v10296_v16  ;;  %2285 = vmatpush1.msra.mxu0 %v10297_v5 }
 0x67a   :  { %2356 = vmatpush1.msra.mxu1 %v10298_v7  ;;  %2286 = vmatprep.subr.mxu0 %v10299_v8 }
 0x67b   :  { %2357 = vmatprep.subr.mxu1 %v10300_v24  ;;  %2287 = vmatpush1.msra.mxu0 %v10301_v30 }
 0x67c   :  { %2358 = vmatpush1.msra.mxu1 %v10302_v51  ;;  %2288 = vmatprep.subr.mxu0 %v10303_v11 }
 0x67d   :  { %2359 = vmatprep.subr.mxu1 %v10304_v9  ;;  %2289 = vmatpush1.msra.mxu0 %v10305_v12 }
 0x67e   :  { %2360 = vmatpush1.msra.mxu1 %v10306_v6  ;;  %2290 = vmatprep.subr.mxu0 %v10307_v10  ;;  %v7223_v10 = vld [vmem:[#allocation9 + $0x1e0] sm:$0xff] }
 0x67f   :  { %2361 = vmatprep.subr.mxu1 %v10308_v21  ;;  %2291 = vmatpush1.msra.mxu0 %v10309_v38  ;;  %v7229_v21 = vld [vmem:[#allocation9 + $0x1c8] sm:$0xff]  ;;  %v7232_v38 = vld [vmem:[#allocation9 + $0x1d8] sm:$0xff] }
 0x680   :  { %2324 = vmatprep.mubr.f32.mxu0 %v9843_v23  ;;  %2362 = vmatpush1.msra.mxu1 %v10310_v44  ;;  %v7235_v44 = vld [vmem:[#allocation9 + $0x1c0] sm:$0xff] }
 0x681   :  { %2395 = vmatprep.mubr.f32.mxu1 %v9843_v23  ;;  %2427 = vmatprep.subr.mxu0 %v7182_v43 }
 0x682   :  { %2498 = vmatprep.subr.mxu1 %v7185_v22 }
 0x6ca   :  { %v4367_v13 = vpop.xlane.xlu0 %4366 }
 0x6cb   :  { %v4387_v25 = vadd.f32 %v7188_v61, %v4367_v13  ;;  %v7238_v13 = vld [vmem:[#allocation9 + $0x1d0] sm:$0xff] }
 0x6cd   :  { %4396 = vst.msk [vmem:[%s8994_s9 + $0x10] sm:$0xff] %vm4393_vm0, %v4387_v25  ;;  %v7241_v25 = vld [vmem:[#allocation9 + $0x1a8] sm:$0xff] }
 0x6fe   :  { %v7195_v17 = vpop.f32.mrf.mxu0  ;;  %v7201_v31 = vpop.f32.mrf.mxu1 }
 0x700   :  { %v7203_v53 = vpop.f32.mrf.mxu0  ;;  %v7209_v37 = vpop.f32.mrf.mxu1 }
 0x71f   :  { %v2159_v26 = vpop.f32.mrf.mxu0 }
 0x720   :  { %v2235_v52 = vadd.f32 %v2159_v26, %v263_v19  ;;  %v2230_v46 = vpop.f32.mrf.mxu1  ;;  %v7253_v19 = vld [vmem:[#allocation9 + $0x188] sm:$0xff]  ;;  %v7256_v26 = vld [vmem:[#allocation9 + $0x198] sm:$0xff] }
 0x721   :  { %v2161_v40 = vpop.f32.mrf.mxu0  ;;  %v2237_v15 = vadd.f32 %v2230_v46, %v265_v60  ;;  %v7277_v46 = vld [vmem:[#allocation9 + $0x148] sm:$0xff]  ;;  %v7280_v60 = vld [vmem:[#allocation9 + $0x158] sm:$0xff] }
 0x722   :  { %v2239_v48 = vmul.f32 0.5, %v2235_v52  ;;  %v2236_v42 = vadd.f32 %v2161_v40, %v264_v27  ;;  %v2232_v62 = vpop.f32.mrf.mxu1  ;;  %v7259_v52 = vld [vmem:[#allocation9 + $0x180] sm:$0xff]  ;;  %v7265_v27 = vld [vmem:[#allocation9 + $0x168] sm:$0xff]  ;;  %v7268_v40 = vld [vmem:[#allocation9 + $0x178] sm:$0xff] }
 0x723   :  { %v2238_v0 = vadd.f32 %v2232_v62, %v266_v56  ;;  %v7292_v62 = vld [vmem:[#allocation9 + $0x138] sm:$0xff]  ;;  %v7295_v56 = vld [vmem:[#allocation9 + $0x120] sm:$0xff] }
 0x724   :  { %4521 = vtanh.f32 %v2239_v48  ;;  %v2240_v49 = vmul.f32 0.5, %v2236_v42  ;;  %v7271_v48 = vld [vmem:[#allocation9 + $0x160] sm:$0xff]  ;;  %v7274_v42 = vld [vmem:[#allocation9 + $0x170] sm:$0xff] }
 0x725   :  { %v2242_v4 = vmul.f32 0.5, %v2238_v0  ;;  %v7298_v0 = vld [vmem:[#allocation9 + $0x130] sm:$0xff] }
 0x726   :  { %4523 = vtanh.f32 %v2240_v49  ;;  %v7283_v49 = vld [vmem:[#allocation9 + $0x140] sm:$0xff] }
 0x727   :  { %4525 = vtanh.f32 %v2237_v15  ;;  %v7286_v15 = vld [vmem:[#allocation9 + $0x150] sm:$0xff] }
 0x728   :  { %4527 = vtanh.f32 %v2242_v4  ;;  %v7301_v4 = vld [vmem:[#allocation9 + $0x108] sm:$0xff] }
 0x729   :  { %10317 = vst [vmem:[#allocation21_spill] sm:$0xff] %v7301_v4 }
 0x731   :  { %v4522_v18 = vpop.eup %4521 }
 0x732   :  { %v2247_v54 = vmul.f32 0.5, %v4522_v18  ;;  %v7304_v18 = vld [vmem:[#allocation9 + $0x118] sm:$0xff] }
 0x733   :  { %v4524_v2 = vpop.eup %4523  ;;  %10318 = vst [vmem:[#allocation22_spill] sm:$0xff] %v7304_v18 }
 0x734   :  { %v2251_v1 = vadd.f32 0.5, %v2247_v54  ;;  %v2248_v16 = vmul.f32 0.5, %v4524_v2  ;;  %v4526_v7 = vpop.eup %4525  ;;  %v7307_v54 = vld [vmem:[#allocation9 + $0x100] sm:$0xff]  ;;  %v7310_v2 = vld [vmem:[#allocation9 + $0x110] sm:$0xff] }
 0x735   :  { %v4528_v51 = vpop.eup %4527  ;;  %10319 = vst [vmem:[#allocation23_spill] sm:$0xff] %v7307_v54  ;;  %10320 = vst [vmem:[#allocation24_spill] sm:$0xff] %v7310_v2 }
 0x736   :  { %v2252_v5 = vadd.f32 0.5, %v2248_v16  ;;  %v2256_v24 = vmul.f32 %v4526_v7, %v2251_v1  ;;  %v2250_v11 = vmul.f32 0.5, %v4528_v51  ;;  %v7313_v1 = vld [vmem:[#allocation9 + $0xe8] sm:$0xff]  ;;  %v7316_v16 = vld [vmem:[#allocation9 + $0xf8] sm:$0xff]  ;;  %v7322_v7 = vld [vmem:[#allocation9 + $0xf0] sm:$0xff] }
 0x737   :  { %10321 = vst [vmem:[#allocation25_spill] sm:$0xff] %v7313_v1  ;;  %10322 = vst [vmem:[#allocation26_spill] sm:$0xff] %v7316_v16  ;;  %v7331_v51 = vld [vmem:[#allocation9 + $0xc0] sm:$0xff] }
 0x738   :  { %v2255_v8 = vmul.f32 %v2252_v5, %v6959_v14  ;;  %v2254_v9 = vadd.f32 0.5, %v2250_v11  ;;  %v7226_v14 = vld [vmem:[#allocation9 + $0x1f0] sm:$0xff]  ;;  %v7319_v5 = vld [vmem:[#allocation9 + $0xe0] sm:$0xff]  ;;  %10324 = vst [vmem:[#allocation28_spill] sm:$0xff] %v7322_v7  ;;  %10327 = vst [vmem:[#allocation31_spill] sm:$0xff] %v7331_v51 }
 0x739   :  { %10323 = vst [vmem:[#allocation27_spill] sm:$0xff] %v7319_v5  ;;  %v7334_v11 = vld [vmem:[#allocation9 + $0xd0] sm:$0xff] }
 0x73a   :  { %v7216_v30 = vadd.f32 %v2256_v24, %v2255_v8  ;;  %v7325_v8 = vld [vmem:[#allocation9 + $0xc8] sm:$0xff]  ;;  %v7328_v24 = vld [vmem:[#allocation9 + $0xd8] sm:$0xff]  ;;  %10328 = vst [vmem:[#allocation32_spill] sm:$0xff] %v7334_v11 }
 0x73b   :  { %10325 = vst [vmem:[#allocation29_spill] sm:$0xff] %v7325_v8  ;;  %10326 = vst [vmem:[#allocation30_spill] sm:$0xff] %v7328_v24 }
 0x73c   :  { %4529 = vtanh.f32 %v7216_v30 }
 0x749   :  { %v4530_v12 = vpop.eup %4529 }
 0x74a   :  { %v7219_v6 = vmul.f32 %v4530_v12, %v2254_v9  ;;  %v7337_v9 = vld [vmem:[#allocation9 + $0xa8] sm:$0xff]  ;;  %v7340_v12 = vld [vmem:[#allocation9 + $0xb8] sm:$0xff] }
 0x74b   :  { %10329 = vst [vmem:[#allocation33_spill] sm:$0xff] %v7337_v9  ;;  %10330 = vst [vmem:[#allocation34_spill] sm:$0xff] %v7340_v12 }
 0x74c   :  { %2325 = vmatmul.mubr.f32.vlgmr.msra.gmra.mxu0 %v7219_v6  ;;  %2396 = vmatmul.mubr.f32.vlgmr.msra.gmra.mxu1 %v7219_v6 }
 0x74d   :  { %2428 = vmatpush1.msra.mxu0 %v7223_v10  ;;  %2499 = vmatpush1.msra.mxu1 %v7226_v14 }
 0x74e   :  { %2429 = vmatprep.subr.mxu0 %v7229_v21  ;;  %2500 = vmatprep.subr.mxu1 %v7232_v38 }
 0x74f   :  { %2430 = vmatpush1.msra.mxu0 %v7235_v44  ;;  %2501 = vmatpush1.msra.mxu1 %v7238_v13 }
 0x750   :  { %2431 = vmatprep.subr.mxu0 %v7241_v25  ;;  %2502 = vmatprep.subr.mxu1 %v7244_v20 }
 0x751   :  { %2432 = vmatpush1.msra.mxu0 %v7247_v39  ;;  %2503 = vmatpush1.msra.mxu1 %v7250_v45 }
 0x752   :  { %2433 = vmatprep.subr.mxu0 %v7253_v19  ;;  %2504 = vmatprep.subr.mxu1 %v7256_v26 }
 0x753   :  { %2434 = vmatpush1.msra.mxu0 %v7259_v52  ;;  %2505 = vmatpush1.msra.mxu1 %v7262_v35 }
 0x754   :  { %2435 = vmatprep.subr.mxu0 %v7265_v27  ;;  %2506 = vmatprep.subr.mxu1 %v7268_v40 }
 0x755   :  { %2436 = vmatpush1.msra.mxu0 %v7271_v48  ;;  %2507 = vmatpush1.msra.mxu1 %v7274_v42 }
 0x756   :  { %2437 = vmatprep.subr.mxu0 %v7277_v46  ;;  %2508 = vmatprep.subr.mxu1 %v7280_v60 }
 0x757   :  { %2438 = vmatpush1.msra.mxu0 %v7283_v49  ;;  %2509 = vmatpush1.msra.mxu1 %v7286_v15 }
 0x758   :  { %2439 = vmatprep.subr.mxu0 %v7289_v55  ;;  %2510 = vmatprep.subr.mxu1 %v7292_v62 }
 0x759   :  { %2440 = vmatpush1.msra.mxu0 %v7295_v56  ;;  %2511 = vmatpush1.msra.mxu1 %v7298_v0 }
 0x75a   :  { %2441 = vmatprep.subr.mxu0 %v7301_v4  ;;  %2512 = vmatprep.subr.mxu1 %v7304_v18 }
 0x75b   :  { %2442 = vmatpush1.msra.mxu0 %v7307_v54  ;;  %2513 = vmatpush1.msra.mxu1 %v7310_v2 }
 0x75c   :  { %2443 = vmatprep.subr.mxu0 %v7313_v1  ;;  %2514 = vmatprep.subr.mxu1 %v7316_v16  ;;  %v2085_v16 = vadd.f32 %v7201_v31, %v6133_v34 }
 0x75d   :  { %2444 = vmatpush1.msra.mxu0 %v7319_v5  ;;  %2515 = vmatpush1.msra.mxu1 %v7322_v7 }
 0x75e   :  { %2445 = vmatprep.subr.mxu0 %v7325_v8  ;;  %2516 = vmatprep.subr.mxu1 %v7328_v24  ;;  %v7343_v8 = vld [vmem:[#allocation9 + $0xa0] sm:$0xff]  ;;  %v7346_v24 = vld [vmem:[#allocation9 + $0xb0] sm:$0xff] }
 0x75f   :  { %2446 = vmatpush1.msra.mxu0 %v7331_v51  ;;  %2517 = vmatpush1.msra.mxu1 %v7334_v11  ;;  %10331 = vst [vmem:[#allocation35_spill] sm:$0xff] %v7343_v8  ;;  %10332 = vst [vmem:[#allocation36_spill] sm:$0xff] %v7346_v24  ;;  %v7349_v51 = vld [vmem:[#allocation9 + $0x88] sm:$0xff]  ;;  %v7352_v11 = vld [vmem:[#allocation9 + $0x98] sm:$0xff] }
 0x760   :  { %2447 = vmatprep.subr.mxu0 %v7337_v9  ;;  %2518 = vmatprep.subr.mxu1 %v7340_v12  ;;  %10333 = vst [vmem:[#allocation37_spill] sm:$0xff] %v7349_v51  ;;  %10334 = vst [vmem:[#allocation164_spill] sm:$0xff] %v7352_v11  ;;  %v7355_v9 = vld [vmem:[#allocation9 + $0x80] sm:$0xff]  ;;  %v7358_v12 = vld [vmem:[#allocation9 + $0x90] sm:$0xff] }
 0x761   :  { %2448 = vmatpush1.msra.mxu0 %v7343_v8  ;;  %2519 = vmatpush1.msra.mxu1 %v7346_v24  ;;  %10335 = vst [vmem:[#allocation165_spill] sm:$0xff] %v7355_v9  ;;  %10336 = vst [vmem:[#allocation170_spill] sm:$0xff] %v7358_v12  ;;  %v7361_v8 = vld [vmem:[#allocation9 + $0x68] sm:$0xff]  ;;  %v7364_v24 = vld [vmem:[#allocation9 + $0x78] sm:$0xff] }
 0x762   :  { %2449 = vmatprep.subr.mxu0 %v7349_v51  ;;  %2520 = vmatprep.subr.mxu1 %v7352_v11  ;;  %10337 = vst [vmem:[#allocation168_spill] sm:$0xff] %v7361_v8  ;;  %10338 = vst [vmem:[#allocation173_spill] sm:$0xff] %v7364_v24  ;;  %v7367_v51 = vld [vmem:[#allocation9 + $0x60] sm:$0xff]  ;;  %v7370_v11 = vld [vmem:[#allocation9 + $0x70] sm:$0xff] }
 0x763   :  { %2450 = vmatpush1.msra.mxu0 %v7355_v9  ;;  %2521 = vmatpush1.msra.mxu1 %v7358_v12  ;;  %10339 = vst [vmem:[#allocation175_spill] sm:$0xff] %v7367_v51  ;;  %10340 = vst [vmem:[#allocation177_spill] sm:$0xff] %v7370_v11  ;;  %v7373_v9 = vld [vmem:[#allocation9 + $0x48] sm:$0xff]  ;;  %v7376_v12 = vld [vmem:[#allocation9 + $0x58] sm:$0xff] }
 0x764   :  { %2451 = vmatprep.subr.mxu0 %v7361_v8  ;;  %2522 = vmatprep.subr.mxu1 %v7364_v24  ;;  %10341 = vst [vmem:[#allocation38_spill] sm:$0xff] %v7373_v9  ;;  %10342 = vst [vmem:[#allocation39_spill] sm:$0xff] %v7376_v12  ;;  %v7379_v8 = vld [vmem:[#allocation9 + $0x40] sm:$0xff]  ;;  %v7382_v24 = vld [vmem:[#allocation9 + $0x50] sm:$0xff] }
 0x765   :  { %2452 = vmatpush1.msra.mxu0 %v7367_v51  ;;  %2523 = vmatpush1.msra.mxu1 %v7370_v11  ;;  %10343 = vst [vmem:[#allocation40_spill] sm:$0xff] %v7379_v8  ;;  %10344 = vst [vmem:[#allocation41_spill] sm:$0xff] %v7382_v24  ;;  %v7385_v51 = vld [vmem:[#allocation9 + $0x28] sm:$0xff]  ;;  %v7388_v11 = vld [vmem:[#allocation9 + $0x38] sm:$0xff] }
 0x766   :  { %2453 = vmatprep.subr.mxu0 %v7373_v9  ;;  %2524 = vmatprep.subr.mxu1 %v7376_v12  ;;  %10345 = vst [vmem:[#allocation42_spill] sm:$0xff] %v7385_v51  ;;  %10346 = vst [vmem:[#allocation43_spill] sm:$0xff] %v7388_v11  ;;  %v7391_v9 = vld [vmem:[#allocation9 + $0x20] sm:$0xff]  ;;  %v7394_v12 = vld [vmem:[#allocation9 + $0x30] sm:$0xff] }
 0x767   :  { %2454 = vmatpush1.msra.mxu0 %v7379_v8  ;;  %2525 = vmatpush1.msra.mxu1 %v7382_v24  ;;  %10347 = vst [vmem:[#allocation44_spill] sm:$0xff] %v7391_v9  ;;  %10348 = vst [vmem:[#allocation45_spill] sm:$0xff] %v7394_v12  ;;  %v7397_v8 = vld [vmem:[#allocation9 + $0x8] sm:$0xff]  ;;  %v7400_v24 = vld [vmem:[#allocation9 + $0x18] sm:$0xff] }
 0x768   :  { %2455 = vmatprep.subr.mxu0 %v7385_v51  ;;  %2526 = vmatprep.subr.mxu1 %v7388_v11  ;;  %10349 = vst [vmem:[#allocation46_spill] sm:$0xff] %v7397_v8  ;;  %10350 = vst [vmem:[#allocation47_spill] sm:$0xff] %v7400_v24  ;;  %v7403_v51 = vld [vmem:[#allocation9] sm:$0xff]  ;;  %v7406_v11 = vld [vmem:[#allocation9 + $0x10] sm:$0xff] }
 0x769   :  { %2456 = vmatpush1.msra.mxu0 %v7391_v9  ;;  %2527 = vmatpush1.msra.mxu1 %v7394_v12  ;;  %10351 = vst [vmem:[#allocation48_spill] sm:$0xff] %v7403_v51  ;;  %10352 = vst [vmem:[#allocation49_spill] sm:$0xff] %v7406_v11  ;;  %v7411_v12 = vld [vmem:[#allocation4 + $0x1e8] sm:$0xff]  ;;  %v2016_v9 = vadd.f32 %v7203_v53, %v10190_v41 }
 0x76a   :  { %2457 = vmatprep.subr.mxu0 %v7397_v8  ;;  %2528 = vmatprep.subr.mxu1 %v7400_v24  ;;  %10353 = vst [vmem:[#allocation50_spill] sm:$0xff] %v7411_v12  ;;  %v7414_v8 = vld [vmem:[#allocation4 + $0x1f8] sm:$0xff]  ;;  %v2014_v24 = vadd.f32 %v7195_v17, %v10189_v33  ;;  %v2087_v17 = vadd.f32 %v7209_v37, %v6140_v47 }
 0x76b   :  { %2458 = vmatpush1.msra.mxu0 %v7403_v51  ;;  %2529 = vmatpush1.msra.mxu1 %v7406_v11  ;;  %10354 = vst [vmem:[#allocation51_spill] sm:$0xff] %v7414_v8 }
 0x76c   :  { %2491 = vmatprep.mubr.f32.mxu0 %v9843_v23  ;;  %2562 = vmatprep.mubr.f32.mxu1 %v9843_v23 }
 0x76d   :  { %2573 = vmatprep.subr.mxu0 %v7411_v12  ;;  %2644 = vmatprep.subr.mxu1 %v7414_v8 }
 0x80c   :  { %v2326_v51 = vpop.f32.mrf.mxu0  ;;  %v2397_v7 = vpop.f32.mrf.mxu1 }
 0x80d   :  { %v2402_v11 = vadd.f32 %v2326_v51, %v2014_v24  ;;  %v2404_v12 = vadd.f32 %v2397_v7, %v2085_v16 }
 0x80e   :  { %v2328_v5 = vpop.f32.mrf.mxu0  ;;  %v2399_v8 = vpop.f32.mrf.mxu1 }
 0x80f   :  { %v2406_v1 = vmul.f32 0.5, %v2402_v11  ;;  %v2403_v2 = vadd.f32 %v2328_v5, %v2016_v9  ;;  %v2405_v33 = vadd.f32 %v2399_v8, %v2087_v17  ;;  %v7430_v9 = vld [vmem:[#allocation4 + $0x1e0] sm:$0xff]  ;;  %v7451_v17 = vld [vmem:[#allocation4 + $0x1b8] sm:$0xff] }
 0x811   :  { %4531 = vtanh.f32 %v2406_v1  ;;  %v2407_v54 = vmul.f32 0.5, %v2403_v2  ;;  %v2409_v18 = vmul.f32 0.5, %v2405_v33 }
 0x813   :  { %4533 = vtanh.f32 %v2407_v54 }
 0x814   :  { %4535 = vtanh.f32 %v2404_v12  ;;  %v7448_v12 = vld [vmem:[#allocation4 + $0x1a8] sm:$0xff] }
 0x815   :  { %4537 = vtanh.f32 %v2409_v18  ;;  %v7442_v18 = vld [vmem:[#allocation4 + $0x1c0] sm:$0xff] }
 0x81e   :  { %v4532_v53 = vpop.eup %4531 }
 0x81f   :  { %v2414_v24 = vmul.f32 0.5, %v4532_v53  ;;  %v7454_v53 = vld [vmem:[#allocation4 + $0x1a0] sm:$0xff] }
 0x820   :  { %v4534_v51 = vpop.eup %4533  ;;  %10355 = vst [vmem:[#allocation52_spill] sm:$0xff] %v7454_v53 }
 0x821   :  { %v2418_v41 = vadd.f32 0.5, %v2414_v24  ;;  %v2415_v4 = vmul.f32 0.5, %v4534_v51  ;;  %v4536_v31 = vpop.eup %4535  ;;  %v7457_v24 = vld [vmem:[#allocation4 + $0x1b0] sm:$0xff]  ;;  %v7460_v51 = vld [vmem:[#allocation4 + $0x188] sm:$0xff] }
 0x822   :  { %v4538_v54 = vpop.eup %4537  ;;  %10356 = vst [vmem:[#allocation53_spill] sm:$0xff] %v7457_v24  ;;  %10357 = vst [vmem:[#allocation54_spill] sm:$0xff] %v7460_v51 }
 0x823   :  { %v2419_v11 = vadd.f32 0.5, %v2415_v4  ;;  %v2423_v5 = vmul.f32 %v4536_v31, %v2418_v41  ;;  %v2417_v16 = vmul.f32 0.5, %v4538_v54  ;;  %v7433_v41 = vld [vmem:[#allocation4 + $0x1f0] sm:$0xff]  ;;  %v7439_v4 = vld [vmem:[#allocation4 + $0x1d8] sm:$0xff] }
 0x824   :  { %v7463_v31 = vld [vmem:[#allocation4 + $0x198] sm:$0xff] }
 0x825   :  { %v2422_v1 = vmul.f32 %v2419_v11, %v7041_v58  ;;  %v2421_v37 = vadd.f32 0.5, %v2417_v16  ;;  %v7436_v58 = vld [vmem:[#allocation4 + $0x1c8] sm:$0xff]  ;;  %10358 = vst [vmem:[#allocation55_spill] sm:$0xff] %v7463_v31  ;;  %v7466_v11 = vld [vmem:[#allocation4 + $0x180] sm:$0xff]  ;;  %v7475_v54 = vld [vmem:[#allocation4 + $0x178] sm:$0xff] }
 0x826   :  { %10359 = vst [vmem:[#allocation56_spill] sm:$0xff] %v7466_v11  ;;  %10362 = vst [vmem:[#allocation59_spill] sm:$0xff] %v7475_v54  ;;  %v7478_v16 = vld [vmem:[#allocation4 + $0x160] sm:$0xff] }
 0x827   :  { %v7426_v2 = vadd.f32 %v2423_v5, %v2422_v1  ;;  %v7469_v5 = vld [vmem:[#allocation4 + $0x190] sm:$0xff]  ;;  %v7472_v1 = vld [vmem:[#allocation4 + $0x168] sm:$0xff]  ;;  %10363 = vst [vmem:[#allocation60_spill] sm:$0xff] %v7478_v16 }
 0x828   :  { %10360 = vst [vmem:[#allocation57_spill] sm:$0xff] %v7469_v5  ;;  %10361 = vst [vmem:[#allocation58_spill] sm:$0xff] %v7472_v1 }
 0x829   :  { %4539 = vtanh.f32 %v7426_v2 }
 0x836   :  { %v4540_v7 = vpop.eup %4539 }
 0x837   :  { %v2426_v33 = vmul.f32 %v4540_v7, %v2421_v37  ;;  %v7481_v37 = vld [vmem:[#allocation4 + $0x170] sm:$0xff]  ;;  %v7484_v7 = vld [vmem:[#allocation4 + $0x148] sm:$0xff] }
 0x838   :  { %10364 = vst [vmem:[#allocation61_spill] sm:$0xff] %v7481_v37  ;;  %10365 = vst [vmem:[#allocation62_spill] sm:$0xff] %v7484_v7 }
 0x839   :  { %2492 = vmatmul.mubr.f32.vlgmr.msra.gmra.mxu0 %v2426_v33  ;;  %2563 = vmatmul.mubr.f32.vlgmr.msra.gmra.mxu1 %v2426_v33  ;;  %v4357_v8 = vmul.f32 %v7047_v63, %v2426_v33  ;;  %v7445_v63 = vld [vmem:[#allocation4 + $0x1d0] sm:$0xff]  ;;  %v7487_v33 = vld [vmem:[#allocation4 + $0x158] sm:$0xff] }
 0x83a   :  { %2574 = vmatpush1.msra.mxu0 %v7430_v9  ;;  %2645 = vmatpush1.msra.mxu1 %v7433_v41  ;;  %10366 = vst [vmem:[#allocation63_spill] sm:$0xff] %v7487_v33 }
 0x83b   :  { %2575 = vmatprep.subr.mxu0 %v7436_v58  ;;  %2646 = vmatprep.subr.mxu1 %v7439_v4 }
 0x83c   :  { %4368 = vadd.xlane.f32.xlu0 %v4357_v8  ;;  %2576 = vmatpush1.msra.mxu0 %v7442_v18  ;;  %v7490_v8 = vld [vmem:[#allocation4 + $0x140] sm:$0xff] }
 0x83d   :  { %2647 = vmatpush1.msra.mxu1 %v7445_v63  ;;  %2577 = vmatprep.subr.mxu0 %v7448_v12  ;;  %10367 = vst [vmem:[#allocation64_spill] sm:$0xff] %v7490_v8 }
 0x83e   :  { %2648 = vmatprep.subr.mxu1 %v7451_v17  ;;  %2578 = vmatpush1.msra.mxu0 %v7454_v53 }
 0x83f   :  { %2649 = vmatpush1.msra.mxu1 %v7457_v24  ;;  %2579 = vmatprep.subr.mxu0 %v7460_v51 }
 0x840   :  { %2650 = vmatprep.subr.mxu1 %v7463_v31  ;;  %2580 = vmatpush1.msra.mxu0 %v7466_v11 }
 0x841   :  { %2651 = vmatpush1.msra.mxu1 %v7469_v5  ;;  %2581 = vmatprep.subr.mxu0 %v7472_v1 }
 0x842   :  { %2652 = vmatprep.subr.mxu1 %v7475_v54  ;;  %2582 = vmatpush1.msra.mxu0 %v7478_v16  ;;  %v7493_v54 = vld [vmem:[#allocation4 + $0x150] sm:$0xff]  ;;  %v7496_v16 = vld [vmem:[#allocation4 + $0x128] sm:$0xff] }
 0x843   :  { %2653 = vmatpush1.msra.mxu1 %v7481_v37  ;;  %2583 = vmatprep.subr.mxu0 %v7484_v7  ;;  %10368 = vst [vmem:[#allocation65_spill] sm:$0xff] %v7493_v54  ;;  %10369 = vst [vmem:[#allocation66_spill] sm:$0xff] %v7496_v16  ;;  %v7499_v37 = vld [vmem:[#allocation4 + $0x138] sm:$0xff]  ;;  %v7502_v7 = vld [vmem:[#allocation4 + $0x120] sm:$0xff] }
 0x844   :  { %2654 = vmatprep.subr.mxu1 %v7487_v33  ;;  %2584 = vmatpush1.msra.mxu0 %v7490_v8  ;;  %10370 = vst [vmem:[#allocation67_spill] sm:$0xff] %v7499_v37  ;;  %10371 = vst [vmem:[#allocation68_spill] sm:$0xff] %v7502_v7  ;;  %v7505_v33 = vld [vmem:[#allocation4 + $0x130] sm:$0xff]  ;;  %v7508_v8 = vld [vmem:[#allocation4 + $0x108] sm:$0xff] }
 0x845   :  { %2655 = vmatpush1.msra.mxu1 %v7493_v54  ;;  %2585 = vmatprep.subr.mxu0 %v7496_v16  ;;  %10372 = vst [vmem:[#allocation69_spill] sm:$0xff] %v7505_v33  ;;  %10373 = vst [vmem:[#allocation70_spill] sm:$0xff] %v7508_v8  ;;  %v7511_v54 = vld [vmem:[#allocation4 + $0x118] sm:$0xff]  ;;  %v7514_v16 = vld [vmem:[#allocation4 + $0x100] sm:$0xff] }
 0x846   :  { %2656 = vmatprep.subr.mxu1 %v7499_v37  ;;  %2586 = vmatpush1.msra.mxu0 %v7502_v7  ;;  %10374 = vst [vmem:[#allocation71_spill] sm:$0xff] %v7511_v54  ;;  %10375 = vst [vmem:[#allocation72_spill] sm:$0xff] %v7514_v16  ;;  %v7517_v37 = vld [vmem:[#allocation4 + $0x110] sm:$0xff]  ;;  %v7520_v7 = vld [vmem:[#allocation4 + $0xe8] sm:$0xff] }
 0x847   :  { %2657 = vmatpush1.msra.mxu1 %v7505_v33  ;;  %2587 = vmatprep.subr.mxu0 %v7508_v8  ;;  %10376 = vst [vmem:[#allocation73_spill] sm:$0xff] %v7517_v37  ;;  %10377 = vst [vmem:[#allocation74_spill] sm:$0xff] %v7520_v7  ;;  %v7523_v33 = vld [vmem:[#allocation4 + $0xf8] sm:$0xff]  ;;  %v7526_v8 = vld [vmem:[#allocation4 + $0xe0] sm:$0xff] }
 0x848   :  { %2658 = vmatprep.subr.mxu1 %v7511_v54  ;;  %2588 = vmatpush1.msra.mxu0 %v7514_v16  ;;  %10378 = vst [vmem:[#allocation75_spill] sm:$0xff] %v7523_v33  ;;  %10379 = vst [vmem:[#allocation76_spill] sm:$0xff] %v7526_v8  ;;  %v7529_v54 = vld [vmem:[#allocation4 + $0xf0] sm:$0xff]  ;;  %v7532_v16 = vld [vmem:[#allocation4 + $0xc8] sm:$0xff] }
 0x849   :  { %2659 = vmatpush1.msra.mxu1 %v7517_v37  ;;  %2589 = vmatprep.subr.mxu0 %v7520_v7  ;;  %10380 = vst [vmem:[#allocation77_spill] sm:$0xff] %v7529_v54  ;;  %10381 = vst [vmem:[#allocation78_spill] sm:$0xff] %v7532_v16  ;;  %v7535_v37 = vld [vmem:[#allocation4 + $0xd8] sm:$0xff]  ;;  %v7538_v7 = vld [vmem:[#allocation4 + $0xc0] sm:$0xff] }
 0x84a   :  { %2660 = vmatprep.subr.mxu1 %v7523_v33  ;;  %2590 = vmatpush1.msra.mxu0 %v7526_v8  ;;  %10382 = vst [vmem:[#allocation79_spill] sm:$0xff] %v7535_v37  ;;  %10383 = vst [vmem:[#allocation80_spill] sm:$0xff] %v7538_v7  ;;  %v7541_v33 = vld [vmem:[#allocation4 + $0xd0] sm:$0xff]  ;;  %v7544_v8 = vld [vmem:[#allocation4 + $0xa8] sm:$0xff] }
 0x84b   :  { %2661 = vmatpush1.msra.mxu1 %v7529_v54  ;;  %2591 = vmatprep.subr.mxu0 %v7532_v16  ;;  %10384 = vst [vmem:[#allocation81_spill] sm:$0xff] %v7541_v33  ;;  %10385 = vst [vmem:[#allocation82_spill] sm:$0xff] %v7544_v8  ;;  %v7547_v54 = vld [vmem:[#allocation4 + $0xb8] sm:$0xff]  ;;  %v7550_v16 = vld [vmem:[#allocation4 + $0xa0] sm:$0xff] }
 0x84c   :  { %2662 = vmatprep.subr.mxu1 %v7535_v37  ;;  %2592 = vmatpush1.msra.mxu0 %v7538_v7  ;;  %10386 = vst [vmem:[#allocation83_spill] sm:$0xff] %v7547_v54  ;;  %10387 = vst [vmem:[#allocation84_spill] sm:$0xff] %v7550_v16  ;;  %v7553_v37 = vld [vmem:[#allocation4 + $0xb0] sm:$0xff]  ;;  %v7556_v7 = vld [vmem:[#allocation4 + $0x88] sm:$0xff] }
 0x84d   :  { %2663 = vmatpush1.msra.mxu1 %v7541_v33  ;;  %2593 = vmatprep.subr.mxu0 %v7544_v8  ;;  %10388 = vst [vmem:[#allocation85_spill] sm:$0xff] %v7553_v37  ;;  %10389 = vst [vmem:[#allocation86_spill] sm:$0xff] %v7556_v7  ;;  %v7559_v33 = vld [vmem:[#allocation4 + $0x98] sm:$0xff]  ;;  %v7562_v8 = vld [vmem:[#allocation4 + $0x80] sm:$0xff] }
 0x84e   :  { %2664 = vmatprep.subr.mxu1 %v7547_v54  ;;  %2594 = vmatpush1.msra.mxu0 %v7550_v16  ;;  %10390 = vst [vmem:[#allocation87_spill] sm:$0xff] %v7559_v33  ;;  %10391 = vst [vmem:[#allocation88_spill] sm:$0xff] %v7562_v8  ;;  %v7565_v54 = vld [vmem:[#allocation4 + $0x90] sm:$0xff]  ;;  %v7568_v16 = vld [vmem:[#allocation4 + $0x68] sm:$0xff] }
 0x84f   :  { %2665 = vmatpush1.msra.mxu1 %v7553_v37  ;;  %2595 = vmatprep.subr.mxu0 %v7556_v7  ;;  %10392 = vst [vmem:[#allocation89_spill] sm:$0xff] %v7565_v54  ;;  %10393 = vst [vmem:[#allocation90_spill] sm:$0xff] %v7568_v16  ;;  %v7571_v37 = vld [vmem:[#allocation4 + $0x78] sm:$0xff]  ;;  %v7574_v7 = vld [vmem:[#allocation4 + $0x60] sm:$0xff] }
 0x850   :  { %2666 = vmatprep.subr.mxu1 %v7559_v33  ;;  %2596 = vmatpush1.msra.mxu0 %v7562_v8  ;;  %10394 = vst [vmem:[#allocation91_spill] sm:$0xff] %v7571_v37  ;;  %10395 = vst [vmem:[#allocation92_spill] sm:$0xff] %v7574_v7  ;;  %v7577_v33 = vld [vmem:[#allocation4 + $0x70] sm:$0xff]  ;;  %v7580_v8 = vld [vmem:[#allocation4 + $0x48] sm:$0xff] }
 0x851   :  { %2667 = vmatpush1.msra.mxu1 %v7565_v54  ;;  %2597 = vmatprep.subr.mxu0 %v7568_v16  ;;  %10396 = vst [vmem:[#allocation93_spill] sm:$0xff] %v7577_v33  ;;  %10397 = vst [vmem:[#allocation94_spill] sm:$0xff] %v7580_v8  ;;  %v7583_v54 = vld [vmem:[#allocation4 + $0x58] sm:$0xff]  ;;  %v7586_v16 = vld [vmem:[#allocation4 + $0x40] sm:$0xff] }
 0x852   :  { %2668 = vmatprep.subr.mxu1 %v7571_v37  ;;  %2598 = vmatpush1.msra.mxu0 %v7574_v7  ;;  %10398 = vst [vmem:[#allocation95_spill] sm:$0xff] %v7583_v54  ;;  %10399 = vst [vmem:[#allocation96_spill] sm:$0xff] %v7586_v16  ;;  %v7589_v37 = vld [vmem:[#allocation4 + $0x50] sm:$0xff]  ;;  %v7592_v7 = vld [vmem:[#allocation4 + $0x28] sm:$0xff] }
 0x853   :  { %2669 = vmatpush1.msra.mxu1 %v7577_v33  ;;  %2599 = vmatprep.subr.mxu0 %v7580_v8  ;;  %10400 = vst [vmem:[#allocation97_spill] sm:$0xff] %v7589_v37  ;;  %10401 = vst [vmem:[#allocation98_spill] sm:$0xff] %v7592_v7  ;;  %v7595_v33 = vld [vmem:[#allocation4 + $0x38] sm:$0xff]  ;;  %v7598_v8 = vld [vmem:[#allocation4 + $0x20] sm:$0xff] }
 0x854   :  { %2670 = vmatprep.subr.mxu1 %v7583_v54  ;;  %2600 = vmatpush1.msra.mxu0 %v7586_v16  ;;  %10402 = vst [vmem:[#allocation99_spill] sm:$0xff] %v7595_v33  ;;  %10403 = vst [vmem:[#allocation100_spill] sm:$0xff] %v7598_v8  ;;  %v7601_v54 = vld [vmem:[#allocation4 + $0x30] sm:$0xff]  ;;  %v7604_v16 = vld [vmem:[#allocation4 + $0x8] sm:$0xff] }
 0x855   :  { %2671 = vmatpush1.msra.mxu1 %v7589_v37  ;;  %2601 = vmatprep.subr.mxu0 %v7592_v7  ;;  %10404 = vst [vmem:[#allocation101_spill] sm:$0xff] %v7601_v54  ;;  %10405 = vst [vmem:[#allocation102_spill] sm:$0xff] %v7604_v16  ;;  %v7607_v37 = vld [vmem:[#allocation4 + $0x18] sm:$0xff]  ;;  %v7610_v7 = vld [vmem:[#allocation4] sm:$0xff] }
 0x856   :  { %2672 = vmatprep.subr.mxu1 %v7595_v33  ;;  %2602 = vmatpush1.msra.mxu0 %v7598_v8  ;;  %10406 = vst [vmem:[#allocation103_spill] sm:$0xff] %v7607_v37  ;;  %10407 = vst [vmem:[#allocation104_spill] sm:$0xff] %v7610_v7  ;;  %v7614_v33 = vld [vmem:[#allocation4 + $0x10] sm:$0xff] }
 0x857   :  { %2673 = vmatpush1.msra.mxu1 %v7601_v54  ;;  %2603 = vmatprep.subr.mxu0 %v7604_v16  ;;  %10408 = vst [vmem:[#allocation105_spill] sm:$0xff] %v7614_v33  ;;  %v7620_v16 = vld [vmem:[#allocation7 + $0x1e8] sm:$0xff]  ;;  %v7629_v54 = vld [vmem:[#allocation7 + $0x1f0] sm:$0xff] }
 0x858   :  { %2674 = vmatprep.subr.mxu1 %v7607_v37  ;;  %2604 = vmatpush1.msra.mxu0 %v7610_v7  ;;  %10409 = vst [vmem:[#allocation106_spill] sm:$0xff] %v7620_v16  ;;  %v7623_v37 = vld [vmem:[#allocation7 + $0x1f8] sm:$0xff]  ;;  %v7626_v7 = vld [vmem:[#allocation7 + $0x1e0] sm:$0xff]  ;;  %10412 = vst [vmem:[#allocation109_spill] sm:$0xff] %v7629_v54 }
 0x859   :  { %2637 = vmatprep.mubr.f32.mxu0 %v9843_v23  ;;  %2675 = vmatpush1.msra.mxu1 %v7614_v33  ;;  %10410 = vst [vmem:[#allocation107_spill] sm:$0xff] %v7623_v37  ;;  %10411 = vst [vmem:[#allocation108_spill] sm:$0xff] %v7626_v7  ;;  %v7632_v33 = vld [vmem:[#allocation7 + $0x1c8] sm:$0xff] }
 0x85a   :  { %2708 = vmatprep.mubr.f32.mxu1 %v9843_v23  ;;  %2638 = vmatmul.mubr.f32.vlgmr.msra.gmra.mxu0 %v7219_v6  ;;  %10413 = vst [vmem:[#allocation110_spill] sm:$0xff] %v7632_v33 }
 0x85b   :  { %2709 = vmatmul.mubr.f32.vlgmr.msra.gmra.mxu1 %v7219_v6  ;;  %2740 = vmatprep.subr.mxu0 %v7620_v16  ;;  %v7635_v6 = vld [vmem:[#allocation7 + $0x1d8] sm:$0xff]  ;;  %v7638_v16 = vld [vmem:[#allocation7 + $0x1c0] sm:$0xff] }
 0x85c   :  { %2811 = vmatprep.subr.mxu1 %v7623_v37  ;;  %2741 = vmatpush1.msra.mxu0 %v7626_v7  ;;  %10414 = vst [vmem:[#allocation111_spill] sm:$0xff] %v7635_v6  ;;  %10415 = vst [vmem:[#allocation112_spill] sm:$0xff] %v7638_v16  ;;  %v7641_v37 = vld [vmem:[#allocation7 + $0x1d0] sm:$0xff]  ;;  %v7644_v7 = vld [vmem:[#allocation7 + $0x1a8] sm:$0xff] }
 0x85d   :  { %2812 = vmatpush1.msra.mxu1 %v7629_v54  ;;  %2742 = vmatprep.subr.mxu0 %v7632_v33  ;;  %10416 = vst [vmem:[#allocation113_spill] sm:$0xff] %v7641_v37  ;;  %10417 = vst [vmem:[#allocation114_spill] sm:$0xff] %v7644_v7  ;;  %v7647_v54 = vld [vmem:[#allocation7 + $0x1b8] sm:$0xff]  ;;  %v7650_v33 = vld [vmem:[#allocation7 + $0x1a0] sm:$0xff] }
 0x85e   :  { %2813 = vmatprep.subr.mxu1 %v7635_v6  ;;  %2743 = vmatpush1.msra.mxu0 %v7638_v16  ;;  %10418 = vst [vmem:[#allocation115_spill] sm:$0xff] %v7647_v54  ;;  %10419 = vst [vmem:[#allocation116_spill] sm:$0xff] %v7650_v33  ;;  %v7653_v6 = vld [vmem:[#allocation7 + $0x1b0] sm:$0xff]  ;;  %v7656_v16 = vld [vmem:[#allocation7 + $0x188] sm:$0xff] }
 0x85f   :  { %2814 = vmatpush1.msra.mxu1 %v7641_v37  ;;  %2744 = vmatprep.subr.mxu0 %v7644_v7  ;;  %10420 = vst [vmem:[#allocation117_spill] sm:$0xff] %v7653_v6  ;;  %10421 = vst [vmem:[#allocation118_spill] sm:$0xff] %v7656_v16  ;;  %v7659_v37 = vld [vmem:[#allocation7 + $0x198] sm:$0xff]  ;;  %v7662_v7 = vld [vmem:[#allocation7 + $0x180] sm:$0xff] }
 0x860   :  { %2815 = vmatprep.subr.mxu1 %v7647_v54  ;;  %2745 = vmatpush1.msra.mxu0 %v7650_v33  ;;  %10422 = vst [vmem:[#allocation119_spill] sm:$0xff] %v7659_v37  ;;  %10423 = vst [vmem:[#allocation120_spill] sm:$0xff] %v7662_v7  ;;  %v7665_v54 = vld [vmem:[#allocation7 + $0x190] sm:$0xff]  ;;  %v7668_v33 = vld [vmem:[#allocation7 + $0x168] sm:$0xff] }
 0x861   :  { %2816 = vmatpush1.msra.mxu1 %v7653_v6  ;;  %2746 = vmatprep.subr.mxu0 %v7656_v16  ;;  %10424 = vst [vmem:[#allocation121_spill] sm:$0xff] %v7665_v54  ;;  %10425 = vst [vmem:[#allocation122_spill] sm:$0xff] %v7668_v33  ;;  %v7671_v6 = vld [vmem:[#allocation7 + $0x178] sm:$0xff]  ;;  %v7674_v16 = vld [vmem:[#allocation7 + $0x160] sm:$0xff] }
 0x862   :  { %2817 = vmatprep.subr.mxu1 %v7659_v37  ;;  %2747 = vmatpush1.msra.mxu0 %v7662_v7  ;;  %10426 = vst [vmem:[#allocation123_spill] sm:$0xff] %v7671_v6  ;;  %10427 = vst [vmem:[#allocation124_spill] sm:$0xff] %v7674_v16  ;;  %v7677_v37 = vld [vmem:[#allocation7 + $0x170] sm:$0xff]  ;;  %v7680_v7 = vld [vmem:[#allocation7 + $0x148] sm:$0xff] }
 0x863   :  { %2818 = vmatpush1.msra.mxu1 %v7665_v54  ;;  %2748 = vmatprep.subr.mxu0 %v7668_v33  ;;  %10428 = vst [vmem:[#allocation125_spill] sm:$0xff] %v7677_v37  ;;  %10429 = vst [vmem:[#allocation126_spill] sm:$0xff] %v7680_v7  ;;  %v7683_v54 = vld [vmem:[#allocation7 + $0x158] sm:$0xff]  ;;  %v7686_v33 = vld [vmem:[#allocation7 + $0x140] sm:$0xff] }
 0x864   :  { %2819 = vmatprep.subr.mxu1 %v7671_v6  ;;  %2749 = vmatpush1.msra.mxu0 %v7674_v16  ;;  %10430 = vst [vmem:[#allocation127_spill] sm:$0xff] %v7683_v54  ;;  %10431 = vst [vmem:[#allocation128_spill] sm:$0xff] %v7686_v33  ;;  %v7689_v6 = vld [vmem:[#allocation7 + $0x150] sm:$0xff]  ;;  %v7692_v16 = vld [vmem:[#allocation7 + $0x128] sm:$0xff] }
 0x865   :  { %2820 = vmatpush1.msra.mxu1 %v7677_v37  ;;  %2750 = vmatprep.subr.mxu0 %v7680_v7  ;;  %10432 = vst [vmem:[#allocation129_spill] sm:$0xff] %v7689_v6  ;;  %10433 = vst [vmem:[#allocation130_spill] sm:$0xff] %v7692_v16  ;;  %v7695_v37 = vld [vmem:[#allocation7 + $0x138] sm:$0xff]  ;;  %v7698_v7 = vld [vmem:[#allocation7 + $0x120] sm:$0xff] }
 0x866   :  { %2821 = vmatprep.subr.mxu1 %v7683_v54  ;;  %2751 = vmatpush1.msra.mxu0 %v7686_v33  ;;  %10434 = vst [vmem:[#allocation131_spill] sm:$0xff] %v7695_v37  ;;  %10435 = vst [vmem:[#allocation132_spill] sm:$0xff] %v7698_v7  ;;  %v7701_v54 = vld [vmem:[#allocation7 + $0x130] sm:$0xff]  ;;  %v7704_v33 = vld [vmem:[#allocation7 + $0x108] sm:$0xff] }
 0x867   :  { %2822 = vmatpush1.msra.mxu1 %v7689_v6  ;;  %2752 = vmatprep.subr.mxu0 %v7692_v16  ;;  %10436 = vst [vmem:[#allocation133_spill] sm:$0xff] %v7701_v54  ;;  %10437 = vst [vmem:[#allocation134_spill] sm:$0xff] %v7704_v33  ;;  %v7707_v6 = vld [vmem:[#allocation7 + $0x118] sm:$0xff]  ;;  %v7710_v16 = vld [vmem:[#allocation7 + $0x100] sm:$0xff] }
 0x868   :  { %2823 = vmatprep.subr.mxu1 %v7695_v37  ;;  %2753 = vmatpush1.msra.mxu0 %v7698_v7  ;;  %10438 = vst [vmem:[#allocation135_spill] sm:$0xff] %v7707_v6  ;;  %10439 = vst [vmem:[#allocation136_spill] sm:$0xff] %v7710_v16  ;;  %v7713_v37 = vld [vmem:[#allocation7 + $0x110] sm:$0xff]  ;;  %v7716_v7 = vld [vmem:[#allocation7 + $0xe8] sm:$0xff] }
 0x869   :  { %2824 = vmatpush1.msra.mxu1 %v7701_v54  ;;  %2754 = vmatprep.subr.mxu0 %v7704_v33  ;;  %10440 = vst [vmem:[#allocation137_spill] sm:$0xff] %v7713_v37  ;;  %10441 = vst [vmem:[#allocation138_spill] sm:$0xff] %v7716_v7  ;;  %v7719_v54 = vld [vmem:[#allocation7 + $0xf8] sm:$0xff]  ;;  %v7722_v33 = vld [vmem:[#allocation7 + $0xe0] sm:$0xff] }
 0x86a   :  { %2825 = vmatprep.subr.mxu1 %v7707_v6  ;;  %2755 = vmatpush1.msra.mxu0 %v7710_v16  ;;  %10442 = vst [vmem:[#allocation139_spill] sm:$0xff] %v7719_v54  ;;  %10443 = vst [vmem:[#allocation140_spill] sm:$0xff] %v7722_v33  ;;  %v7725_v6 = vld [vmem:[#allocation7 + $0xf0] sm:$0xff]  ;;  %v7728_v16 = vld [vmem:[#allocation7 + $0xc8] sm:$0xff] }
 0x86b   :  { %2826 = vmatpush1.msra.mxu1 %v7713_v37  ;;  %2756 = vmatprep.subr.mxu0 %v7716_v7  ;;  %10444 = vst [vmem:[#allocation141_spill] sm:$0xff] %v7725_v6  ;;  %10445 = vst [vmem:[#allocation142_spill] sm:$0xff] %v7728_v16  ;;  %v7731_v37 = vld [vmem:[#allocation7 + $0xd8] sm:$0xff]  ;;  %v7734_v7 = vld [vmem:[#allocation7 + $0xc0] sm:$0xff] }
 0x86c   :  { %2827 = vmatprep.subr.mxu1 %v7719_v54  ;;  %2757 = vmatpush1.msra.mxu0 %v7722_v33  ;;  %10446 = vst [vmem:[#allocation143_spill] sm:$0xff] %v7731_v37  ;;  %10447 = vst [vmem:[#allocation144_spill] sm:$0xff] %v7734_v7  ;;  %v7737_v54 = vld [vmem:[#allocation7 + $0xd0] sm:$0xff]  ;;  %v7740_v33 = vld [vmem:[#allocation7 + $0xa8] sm:$0xff] }
 0x86d   :  { %2828 = vmatpush1.msra.mxu1 %v7725_v6  ;;  %2758 = vmatprep.subr.mxu0 %v7728_v16  ;;  %10448 = vst [vmem:[#allocation145_spill] sm:$0xff] %v7737_v54  ;;  %10449 = vst [vmem:[#allocation146_spill] sm:$0xff] %v7740_v33  ;;  %v7743_v6 = vld [vmem:[#allocation7 + $0xb8] sm:$0xff]  ;;  %v7746_v16 = vld [vmem:[#allocation7 + $0xa0] sm:$0xff] }
 0x86e   :  { %2829 = vmatprep.subr.mxu1 %v7731_v37  ;;  %2759 = vmatpush1.msra.mxu0 %v7734_v7  ;;  %10450 = vst [vmem:[#allocation147_spill] sm:$0xff] %v7743_v6  ;;  %10451 = vst [vmem:[#allocation148_spill] sm:$0xff] %v7746_v16  ;;  %v7749_v37 = vld [vmem:[#allocation7 + $0xb0] sm:$0xff]  ;;  %v7752_v7 = vld [vmem:[#allocation7 + $0x88] sm:$0xff] }
 0x86f   :  { %2830 = vmatpush1.msra.mxu1 %v7737_v54  ;;  %2760 = vmatprep.subr.mxu0 %v7740_v33  ;;  %10452 = vst [vmem:[#allocation149_spill] sm:$0xff] %v7749_v37  ;;  %10453 = vst [vmem:[#allocation150_spill] sm:$0xff] %v7752_v7  ;;  %v7755_v54 = vld [vmem:[#allocation7 + $0x98] sm:$0xff]  ;;  %v7758_v33 = vld [vmem:[#allocation7 + $0x80] sm:$0xff] }
 0x870   :  { %2831 = vmatprep.subr.mxu1 %v7743_v6  ;;  %2761 = vmatpush1.msra.mxu0 %v7746_v16  ;;  %10454 = vst [vmem:[#allocation151_spill] sm:$0xff] %v7755_v54  ;;  %10455 = vst [vmem:[#allocation152_spill] sm:$0xff] %v7758_v33  ;;  %v7761_v6 = vld [vmem:[#allocation7 + $0x90] sm:$0xff]  ;;  %v7764_v16 = vld [vmem:[#allocation7 + $0x68] sm:$0xff] }
 0x871   :  { %2832 = vmatpush1.msra.mxu1 %v7749_v37  ;;  %2762 = vmatprep.subr.mxu0 %v7752_v7  ;;  %10456 = vst [vmem:[#allocation153_spill] sm:$0xff] %v7761_v6  ;;  %10457 = vst [vmem:[#allocation154_spill] sm:$0xff] %v7764_v16  ;;  %v7767_v37 = vld [vmem:[#allocation7 + $0x78] sm:$0xff]  ;;  %v7770_v7 = vld [vmem:[#allocation7 + $0x60] sm:$0xff] }
 0x872   :  { %2833 = vmatprep.subr.mxu1 %v7755_v54  ;;  %2763 = vmatpush1.msra.mxu0 %v7758_v33  ;;  %10458 = vst [vmem:[#allocation155_spill] sm:$0xff] %v7767_v37  ;;  %10459 = vst [vmem:[#allocation156_spill] sm:$0xff] %v7770_v7  ;;  %v7773_v54 = vld [vmem:[#allocation7 + $0x70] sm:$0xff]  ;;  %v7776_v33 = vld [vmem:[#allocation7 + $0x48] sm:$0xff] }
 0x873   :  { %2834 = vmatpush1.msra.mxu1 %v7761_v6  ;;  %2764 = vmatprep.subr.mxu0 %v7764_v16  ;;  %10460 = vst [vmem:[#allocation157_spill] sm:$0xff] %v7773_v54  ;;  %10461 = vst [vmem:[#allocation158_spill] sm:$0xff] %v7776_v33  ;;  %v7779_v6 = vld [vmem:[#allocation7 + $0x58] sm:$0xff]  ;;  %v7782_v16 = vld [vmem:[#allocation7 + $0x40] sm:$0xff] }
 0x874   :  { %2835 = vmatprep.subr.mxu1 %v7767_v37  ;;  %2765 = vmatpush1.msra.mxu0 %v7770_v7  ;;  %10462 = vst [vmem:[#allocation159_spill] sm:$0xff] %v7779_v6  ;;  %10463 = vst [vmem:[#allocation160_spill] sm:$0xff] %v7782_v16  ;;  %v7785_v37 = vld [vmem:[#allocation7 + $0x50] sm:$0xff]  ;;  %v7788_v7 = vld [vmem:[#allocation7 + $0x28] sm:$0xff] }
 0x875   :  { %2836 = vmatpush1.msra.mxu1 %v7773_v54  ;;  %2766 = vmatprep.subr.mxu0 %v7776_v33  ;;  %10464 = vst [vmem:[#allocation161_spill] sm:$0xff] %v7785_v37  ;;  %10465 = vst [vmem:[#allocation162_spill] sm:$0xff] %v7788_v7  ;;  %v7791_v54 = vld [vmem:[#allocation7 + $0x38] sm:$0xff]  ;;  %v7794_v33 = vld [vmem:[#allocation7 + $0x20] sm:$0xff] }
 0x876   :  { %2837 = vmatprep.subr.mxu1 %v7779_v6  ;;  %2767 = vmatpush1.msra.mxu0 %v7782_v16  ;;  %10466 = vst [vmem:[#allocation163_spill] sm:$0xff] %v7791_v54  ;;  %10467 = vst [vmem:[#allocation174_spill] sm:$0xff] %v7794_v33  ;;  %v7797_v6 = vld [vmem:[#allocation7 + $0x30] sm:$0xff]  ;;  %v7800_v16 = vld [vmem:[#allocation7 + $0x8] sm:$0xff] }
 0x877   :  { %2838 = vmatpush1.msra.mxu1 %v7785_v37  ;;  %2768 = vmatprep.subr.mxu0 %v7788_v7  ;;  %10468 = vst [vmem:[#allocation176_spill] sm:$0xff] %v7797_v6  ;;  %10469 = vst [vmem:[#allocation178_spill] sm:$0xff] %v7800_v16  ;;  %v7803_v37 = vld [vmem:[#allocation7 + $0x18] sm:$0xff]  ;;  %v7806_v7 = vld [vmem:[#allocation7] sm:$0xff] }
 0x878   :  { %2839 = vmatprep.subr.mxu1 %v7791_v54  ;;  %2769 = vmatpush1.msra.mxu0 %v7794_v33  ;;  %10470 = vst [vmem:[#allocation179_spill] sm:$0xff] %v7803_v37  ;;  %10471 = vst [vmem:[#allocation180_spill] sm:$0xff] %v7806_v7  ;;  %v7810_v54 = vld [vmem:[#allocation7 + $0x10] sm:$0xff] }
 0x879   :  { %2840 = vmatpush1.msra.mxu1 %v7797_v6  ;;  %2770 = vmatprep.subr.mxu0 %v7800_v16  ;;  %10472 = vst [vmem:[#allocation181_spill] sm:$0xff] %v7810_v54 }
 0x87a   :  { %2841 = vmatprep.subr.mxu1 %v7803_v37  ;;  %2771 = vmatpush1.msra.mxu0 %v7806_v7  ;;  %v10473_v37 = vld [vmem:[#allocation19_spill] sm:$0xff] }
 0x87b   :  { %2804 = vmatprep.mubr.f32.mxu0 %v9843_v23  ;;  %2842 = vmatpush1.msra.mxu1 %v7810_v54  ;;  %v213_v33 = vmul.f32 %v10312_v28, %v10473_v37  ;;  %v214_v54 = vmul.f32 %v10313_v32, %v10473_v37  ;;  %v215_v1 = vmul.f32 %v10315_v29, %v10473_v37 }
 0x87c   :  { %2875 = vmatprep.mubr.f32.mxu1 %v9843_v23  ;;  %2907 = vmatprep.subr.mxu0 %v7182_v43 }
 0x87d   :  { %2978 = vmatprep.subr.mxu1 %v7185_v22  ;;  %v267_v22 = vadd.f32 %v10314_v3, %v213_v33  ;;  %v269_v32 = vadd.f32 %v9988_v59, %v215_v1  ;;  %v216_v33 = vmul.f32 %v9989_v50, %v10473_v37 }
 0x8c5   :  { %v4369_v16 = vpop.xlane.xlu0 %4368 }
 0x8c6   :  { %v4388_v6 = vadd.f32 %v7188_v61, %v4369_v16 }
 0x8c8   :  { %4397 = vst.msk [vmem:[%s8994_s9 + $0x18] sm:$0xff] %vm4393_vm0, %v4388_v6  ;;  %v268_v6 = vadd.f32 %v10316_v36, %v214_v54 }
 0x8f9   :  { %v7821_v7 = vpop.f32.mrf.mxu0  ;;  %v7827_v8 = vpop.f32.mrf.mxu1 }
 0x8fb   :  { %v7829_v43 = vpop.f32.mrf.mxu0  ;;  %v7835_v5 = vpop.f32.mrf.mxu1 }
 0x91a   :  { %v2639_v61 = vpop.f32.mrf.mxu0 }
 0x91b   :  { %v2715_v16 = vadd.f32 %v2639_v61, %v267_v22  ;;  %v2710_v51 = vpop.f32.mrf.mxu1  ;;  %v270_v61 = vadd.f32 %v6045_v57, %v216_v33 }
 0x91c   :  { %v2641_v11 = vpop.f32.mrf.mxu0  ;;  %v2717_v53 = vadd.f32 %v2710_v51, %v269_v32 }
 0x91d   :  { %v2719_v28 = vmul.f32 0.5, %v2715_v16  ;;  %v2716_v31 = vadd.f32 %v2641_v11, %v268_v6  ;;  %v2712_v22 = vpop.f32.mrf.mxu1 }
 0x91e   :  { %v2718_v54 = vadd.f32 %v2712_v22, %v270_v61  ;;  %v10504_v61 = vld [vmem:[#allocation44_spill] sm:$0xff] }
 0x91f   :  { %4541 = vtanh.f32 %v2719_v28  ;;  %v2720_v24 = vmul.f32 0.5, %v2716_v31 }
 0x920   :  { %v2722_v36 = vmul.f32 0.5, %v2718_v54  ;;  %v10505_v54 = vld [vmem:[#allocation45_spill] sm:$0xff] }
 0x921   :  { %4543 = vtanh.f32 %v2720_v24 }
 0x922   :  { %4545 = vtanh.f32 %v2717_v53 }
 0x923   :  { %4547 = vtanh.f32 %v2722_v36  ;;  %v10476_v36 = vld [vmem:[#allocation23_spill] sm:$0xff] }
 0x92c   :  { %v4542_v29 = vpop.eup %4541 }
 0x92d   :  { %v2727_v3 = vmul.f32 0.5, %v4542_v29  ;;  %v10475_v29 = vld [vmem:[#allocation22_spill] sm:$0xff] }
 0x92e   :  { %v4544_v16 = vpop.eup %4543 }
 0x92f   :  { %v2731_v11 = vadd.f32 0.5, %v2727_v3  ;;  %v2728_v6 = vmul.f32 0.5, %v4544_v16  ;;  %v4546_v1 = vpop.eup %4545  ;;  %v10474_v3 = vld [vmem:[#allocation21_spill] sm:$0xff]  ;;  %v10506_v16 = vld [vmem:[#allocation46_spill] sm:$0xff] }
 0x930   :  { %v4548_v53 = vpop.eup %4547 }
 0x931   :  { %v2732_v28 = vadd.f32 0.5, %v2728_v6  ;;  %v2736_v24 = vmul.f32 %v4546_v1, %v2731_v11  ;;  %v2730_v31 = vmul.f32 0.5, %v4548_v53  ;;  %v10507_v11 = vld [vmem:[#allocation47_spill] sm:$0xff]  ;;  %v10508_v6 = vld [vmem:[#allocation48_spill] sm:$0xff]  ;;  %v10510_v1 = vld [vmem:[#allocation50_spill] sm:$0xff] }
 0x933   :  { %v2735_v32 = vmul.f32 %v2732_v28, %v7216_v30  ;;  %v2734_v37 = vadd.f32 0.5, %v2730_v31  ;;  %v10477_v30 = vld [vmem:[#allocation24_spill] sm:$0xff]  ;;  %v10509_v28 = vld [vmem:[#allocation49_spill] sm:$0xff] }
 0x935   :  { %v7842_v51 = vadd.f32 %v2736_v24, %v2735_v32  ;;  %v10511_v32 = vld [vmem:[#allocation51_spill] sm:$0xff]  ;;  %v10512_v24 = vld [vmem:[#allocation17_spill] sm:$0xff] }
 0x936   :  { %v2494_v53 = vadd.f32 %v7821_v7, %v10512_v24  ;;  %v2567_v7 = vadd.f32 %v7835_v5, %v6140_v47 }
 0x937   :  { %4549 = vtanh.f32 %v7842_v51 }
 0x944   :  { %v4550_v33 = vpop.eup %4549 }
 0x945   :  { %v7845_v22 = vmul.f32 %v4550_v33, %v2734_v37  ;;  %v10513_v37 = vld [vmem:[#allocation18_spill] sm:$0xff] }
 0x946   :  { %v2496_v33 = vadd.f32 %v7829_v43, %v10513_v37 }
 0x947   :  { %2805 = vmatmul.mubr.f32.vlgmr.msra.gmra.mxu0 %v7845_v22  ;;  %2876 = vmatmul.mubr.f32.vlgmr.msra.gmra.mxu1 %v7845_v22 }
 0x948   :  { %2908 = vmatpush1.msra.mxu0 %v7223_v10  ;;  %2979 = vmatpush1.msra.mxu1 %v7226_v14  ;;  %v10478_v10 = vld [vmem:[#allocation25_spill] sm:$0xff]  ;;  %v10479_v14 = vld [vmem:[#allocation26_spill] sm:$0xff] }
 0x949   :  { %2909 = vmatprep.subr.mxu0 %v7229_v21  ;;  %2980 = vmatprep.subr.mxu1 %v7232_v38  ;;  %v10480_v21 = vld [vmem:[#allocation27_spill] sm:$0xff]  ;;  %v10481_v38 = vld [vmem:[#allocation28_spill] sm:$0xff] }
 0x94a   :  { %2910 = vmatpush1.msra.mxu0 %v7235_v44  ;;  %2981 = vmatpush1.msra.mxu1 %v7238_v13  ;;  %v10482_v44 = vld [vmem:[#allocation29_spill] sm:$0xff]  ;;  %v10483_v13 = vld [vmem:[#allocation30_spill] sm:$0xff] }
 0x94b   :  { %2911 = vmatprep.subr.mxu0 %v7241_v25  ;;  %2982 = vmatprep.subr.mxu1 %v7244_v20  ;;  %v10484_v25 = vld [vmem:[#allocation31_spill] sm:$0xff]  ;;  %v10485_v20 = vld [vmem:[#allocation32_spill] sm:$0xff] }
 0x94c   :  { %2912 = vmatpush1.msra.mxu0 %v7247_v39  ;;  %2983 = vmatpush1.msra.mxu1 %v7250_v45  ;;  %v10486_v39 = vld [vmem:[#allocation33_spill] sm:$0xff]  ;;  %v10487_v45 = vld [vmem:[#allocation34_spill] sm:$0xff] }
 0x94d   :  { %2913 = vmatprep.subr.mxu0 %v7253_v19  ;;  %2984 = vmatprep.subr.mxu1 %v7256_v26  ;;  %v10488_v19 = vld [vmem:[#allocation35_spill] sm:$0xff]  ;;  %v10489_v26 = vld [vmem:[#allocation36_spill] sm:$0xff] }
 0x94e   :  { %2914 = vmatpush1.msra.mxu0 %v7259_v52  ;;  %2985 = vmatpush1.msra.mxu1 %v7262_v35  ;;  %v10490_v52 = vld [vmem:[#allocation37_spill] sm:$0xff]  ;;  %v10491_v35 = vld [vmem:[#allocation164_spill] sm:$0xff] }
 0x94f   :  { %2915 = vmatprep.subr.mxu0 %v7265_v27  ;;  %2986 = vmatprep.subr.mxu1 %v7268_v40  ;;  %v10492_v27 = vld [vmem:[#allocation165_spill] sm:$0xff]  ;;  %v10493_v40 = vld [vmem:[#allocation170_spill] sm:$0xff] }
 0x950   :  { %2916 = vmatpush1.msra.mxu0 %v7271_v48  ;;  %2987 = vmatpush1.msra.mxu1 %v7274_v42  ;;  %v10494_v48 = vld [vmem:[#allocation168_spill] sm:$0xff]  ;;  %v10495_v42 = vld [vmem:[#allocation173_spill] sm:$0xff] }
 0x951   :  { %2917 = vmatprep.subr.mxu0 %v7277_v46  ;;  %2988 = vmatprep.subr.mxu1 %v7280_v60  ;;  %v10496_v46 = vld [vmem:[#allocation175_spill] sm:$0xff]  ;;  %v10497_v60 = vld [vmem:[#allocation177_spill] sm:$0xff] }
 0x952   :  { %2918 = vmatpush1.msra.mxu0 %v7283_v49  ;;  %2989 = vmatpush1.msra.mxu1 %v7286_v15  ;;  %v10498_v49 = vld [vmem:[#allocation38_spill] sm:$0xff]  ;;  %v10499_v15 = vld [vmem:[#allocation39_spill] sm:$0xff] }
 0x953   :  { %2919 = vmatprep.subr.mxu0 %v7289_v55  ;;  %2990 = vmatprep.subr.mxu1 %v7292_v62  ;;  %v10500_v55 = vld [vmem:[#allocation40_spill] sm:$0xff]  ;;  %v10501_v62 = vld [vmem:[#allocation41_spill] sm:$0xff] }
 0x954   :  { %2920 = vmatpush1.msra.mxu0 %v7295_v56  ;;  %2991 = vmatpush1.msra.mxu1 %v7298_v0  ;;  %v10502_v56 = vld [vmem:[#allocation42_spill] sm:$0xff]  ;;  %v10503_v0 = vld [vmem:[#allocation43_spill] sm:$0xff] }
 0x955   :  { %2921 = vmatprep.subr.mxu0 %v10474_v3  ;;  %2992 = vmatprep.subr.mxu1 %v10475_v29 }
 0x956   :  { %2922 = vmatpush1.msra.mxu0 %v10476_v36  ;;  %2993 = vmatpush1.msra.mxu1 %v10477_v30  ;;  %v2565_v30 = vadd.f32 %v7827_v8, %v6133_v34 }
 0x957   :  { %2923 = vmatprep.subr.mxu0 %v10478_v10  ;;  %2994 = vmatprep.subr.mxu1 %v10479_v14 }
 0x958   :  { %2924 = vmatpush1.msra.mxu0 %v10480_v21  ;;  %2995 = vmatpush1.msra.mxu1 %v10481_v38 }
 0x959   :  { %2925 = vmatprep.subr.mxu0 %v10482_v44  ;;  %2996 = vmatprep.subr.mxu1 %v10483_v13 }
 0x95a   :  { %2926 = vmatpush1.msra.mxu0 %v10484_v25  ;;  %2997 = vmatpush1.msra.mxu1 %v10485_v20 }
 0x95b   :  { %2927 = vmatprep.subr.mxu0 %v10486_v39  ;;  %2998 = vmatprep.subr.mxu1 %v10487_v45 }
 0x95c   :  { %2928 = vmatpush1.msra.mxu0 %v10488_v19  ;;  %2999 = vmatpush1.msra.mxu1 %v10489_v26 }
 0x95d   :  { %2929 = vmatprep.subr.mxu0 %v10490_v52  ;;  %3000 = vmatprep.subr.mxu1 %v10491_v35 }
 0x95e   :  { %2930 = vmatpush1.msra.mxu0 %v10492_v27  ;;  %3001 = vmatpush1.msra.mxu1 %v10493_v40 }
 0x95f   :  { %2931 = vmatprep.subr.mxu0 %v10494_v48  ;;  %3002 = vmatprep.subr.mxu1 %v10495_v42 }
 0x960   :  { %2932 = vmatpush1.msra.mxu0 %v10496_v46  ;;  %3003 = vmatpush1.msra.mxu1 %v10497_v60  ;;  %v7930_v60 = vld [vmem:[%s8992_s7] ss:$0 sm:$0xff] }
 0x961   :  { %2933 = vmatprep.subr.mxu0 %v10498_v49  ;;  %3004 = vmatprep.subr.mxu1 %v10499_v15  ;;  %v10515_v15 = vld [vmem:[#allocation53_spill] sm:$0xff] }
 0x962   :  { %2934 = vmatpush1.msra.mxu0 %v10500_v55  ;;  %3005 = vmatpush1.msra.mxu1 %v10501_v62  ;;  %v10520_v55 = vld [vmem:[#allocation58_spill] sm:$0xff]  ;;  %v10525_v62 = vld [vmem:[#allocation63_spill] sm:$0xff] }
 0x963   :  { %2935 = vmatprep.subr.mxu0 %v10502_v56  ;;  %3006 = vmatprep.subr.mxu1 %v10503_v0  ;;  %v10526_v56 = vld [vmem:[#allocation64_spill] sm:$0xff]  ;;  %v10527_v0 = vld [vmem:[#allocation65_spill] sm:$0xff] }
 0x964   :  { %2936 = vmatpush1.msra.mxu0 %v10504_v61  ;;  %3007 = vmatpush1.msra.mxu1 %v10505_v54  ;;  %v10528_v61 = vld [vmem:[#allocation66_spill] sm:$0xff]  ;;  %v10529_v54 = vld [vmem:[#allocation67_spill] sm:$0xff] }
 0x965   :  { %2937 = vmatprep.subr.mxu0 %v10506_v16  ;;  %3008 = vmatprep.subr.mxu1 %v10507_v11  ;;  %v10530_v16 = vld [vmem:[#allocation68_spill] sm:$0xff]  ;;  %v10531_v11 = vld [vmem:[#allocation69_spill] sm:$0xff] }
 0x966   :  { %2938 = vmatpush1.msra.mxu0 %v10508_v6  ;;  %3009 = vmatpush1.msra.mxu1 %v10509_v28  ;;  %v10532_v6 = vld [vmem:[#allocation70_spill] sm:$0xff]  ;;  %v10533_v28 = vld [vmem:[#allocation71_spill] sm:$0xff] }
 0x967   :  { %2971 = vmatprep.mubr.f32.mxu0 %v9843_v23  ;;  %3042 = vmatprep.mubr.f32.mxu1 %v9843_v23 }
 0x968   :  { %3053 = vmatprep.subr.mxu0 %v10510_v1  ;;  %3124 = vmatprep.subr.mxu1 %v10511_v32  ;;  %v10534_v1 = vld [vmem:[#allocation72_spill] sm:$0xff]  ;;  %v10535_v32 = vld [vmem:[#allocation73_spill] sm:$0xff] }
 0xa07   :  { %v2806_v31 = vpop.f32.mrf.mxu0  ;;  %v2877_v29 = vpop.f32.mrf.mxu1 }
 0xa08   :  { %v2882_v3 = vadd.f32 %v2806_v31, %v2494_v53  ;;  %v2884_v21 = vadd.f32 %v2877_v29, %v2565_v30  ;;  %v10536_v53 = vld [vmem:[#allocation74_spill] sm:$0xff]  ;;  %v10537_v31 = vld [vmem:[#allocation75_spill] sm:$0xff]  ;;  %v10542_v30 = vld [vmem:[#allocation80_spill] sm:$0xff] }
 0xa09   :  { %v2808_v36 = vpop.f32.mrf.mxu0  ;;  %v2879_v44 = vpop.f32.mrf.mxu1  ;;  %v10540_v29 = vld [vmem:[#allocation78_spill] sm:$0xff] }
 0xa0a   :  { %v2886_v10 = vmul.f32 0.5, %v2882_v3  ;;  %v2883_v14 = vadd.f32 %v2808_v36, %v2496_v33  ;;  %v2885_v13 = vadd.f32 %v2879_v44, %v2567_v7  ;;  %v10538_v33 = vld [vmem:[#allocation76_spill] sm:$0xff]  ;;  %v10539_v3 = vld [vmem:[#allocation77_spill] sm:$0xff]  ;;  %v10541_v36 = vld [vmem:[#allocation79_spill] sm:$0xff] }
 0xa0b   :  { %v10547_v44 = vld [vmem:[#allocation85_spill] sm:$0xff]  ;;  %v10548_v7 = vld [vmem:[#allocation86_spill] sm:$0xff] }
 0xa0c   :  { %4551 = vtanh.f32 %v2886_v10  ;;  %v2887_v38 = vmul.f32 0.5, %v2883_v14  ;;  %v2889_v25 = vmul.f32 0.5, %v2885_v13  ;;  %v10543_v10 = vld [vmem:[#allocation81_spill] sm:$0xff]  ;;  %v10544_v14 = vld [vmem:[#allocation82_spill] sm:$0xff]  ;;  %v10549_v13 = vld [vmem:[#allocation87_spill] sm:$0xff] }
 0xa0e   :  { %4553 = vtanh.f32 %v2887_v38  ;;  %v10546_v38 = vld [vmem:[#allocation84_spill] sm:$0xff] }
 0xa0f   :  { %4555 = vtanh.f32 %v2884_v21  ;;  %v10545_v21 = vld [vmem:[#allocation83_spill] sm:$0xff] }
 0xa10   :  { %4557 = vtanh.f32 %v2889_v25  ;;  %v10550_v25 = vld [vmem:[#allocation88_spill] sm:$0xff] }
 0xa19   :  { %v4552_v43 = vpop.eup %4551 }
 0xa1a   :  { %v2894_v20 = vmul.f32 0.5, %v4552_v43  ;;  %v10551_v43 = vld [vmem:[#allocation89_spill] sm:$0xff] }
 0xa1b   :  { %v4554_v39 = vpop.eup %4553 }
 0xa1c   :  { %v2898_v45 = vadd.f32 0.5, %v2894_v20  ;;  %v2895_v19 = vmul.f32 0.5, %v4554_v39  ;;  %v4556_v8 = vpop.eup %4555  ;;  %v10552_v20 = vld [vmem:[#allocation90_spill] sm:$0xff]  ;;  %v10553_v39 = vld [vmem:[#allocation91_spill] sm:$0xff] }
 0xa1d   :  { %v4558_v40 = vpop.eup %4557 }
 0xa1e   :  { %v2899_v26 = vadd.f32 0.5, %v2895_v19  ;;  %v2903_v52 = vmul.f32 %v4556_v8, %v2898_v45  ;;  %v2897_v48 = vmul.f32 0.5, %v4558_v40  ;;  %v10554_v45 = vld [vmem:[#allocation92_spill] sm:$0xff]  ;;  %v10555_v19 = vld [vmem:[#allocation93_spill] sm:$0xff]  ;;  %v10556_v8 = vld [vmem:[#allocation94_spill] sm:$0xff] }
 0xa1f   :  { %v10560_v40 = vld [vmem:[#allocation98_spill] sm:$0xff] }
 0xa20   :  { %v2902_v35 = vmul.f32 %v2899_v26, %v7426_v2  ;;  %v2901_v5 = vadd.f32 0.5, %v2897_v48  ;;  %v10514_v2 = vld [vmem:[#allocation52_spill] sm:$0xff]  ;;  %v10557_v26 = vld [vmem:[#allocation95_spill] sm:$0xff] }
 0xa21   :  { %v10561_v48 = vld [vmem:[#allocation99_spill] sm:$0xff] }
 0xa22   :  { %v7924_v27 = vadd.f32 %v2903_v52, %v2902_v35  ;;  %v10558_v52 = vld [vmem:[#allocation96_spill] sm:$0xff]  ;;  %v10559_v35 = vld [vmem:[#allocation97_spill] sm:$0xff] }
 0xa24   :  { %4559 = vtanh.f32 %v7924_v27 }
 0xa31   :  { %v4560_v42 = vpop.eup %4559 }
 0xa32   :  { %v2906_v46 = vmul.f32 %v4560_v42, %v2901_v5  ;;  %v10562_v5 = vld [vmem:[#allocation100_spill] sm:$0xff]  ;;  %v10563_v42 = vld [vmem:[#allocation101_spill] sm:$0xff] }
 0xa34   :  { %2972 = vmatmul.mubr.f32.vlgmr.msra.gmra.mxu0 %v2906_v46  ;;  %3043 = vmatmul.mubr.f32.vlgmr.msra.gmra.mxu1 %v2906_v46  ;;  %v4358_v49 = vmul.f32 %v7930_v60, %v2906_v46  ;;  %v10564_v46 = vld [vmem:[#allocation102_spill] sm:$0xff] }
 0xa35   :  { %3054 = vmatpush1.msra.mxu0 %v7430_v9  ;;  %3125 = vmatpush1.msra.mxu1 %v7433_v41  ;;  %v10516_v9 = vld [vmem:[#allocation54_spill] sm:$0xff]  ;;  %v10517_v41 = vld [vmem:[#allocation55_spill] sm:$0xff] }
 0xa36   :  { %3055 = vmatprep.subr.mxu0 %v7436_v58  ;;  %3126 = vmatprep.subr.mxu1 %v7439_v4  ;;  %v10518_v58 = vld [vmem:[#allocation56_spill] sm:$0xff]  ;;  %v10519_v4 = vld [vmem:[#allocation57_spill] sm:$0xff] }
 0xa37   :  { %4370 = vadd.xlane.f32.xlu1 %v4358_v49  ;;  %3056 = vmatpush1.msra.mxu0 %v7442_v18  ;;  %v10521_v18 = vld [vmem:[#allocation59_spill] sm:$0xff] }
 0xa38   :  { %3127 = vmatpush1.msra.mxu1 %v7445_v63  ;;  %3057 = vmatprep.subr.mxu0 %v7448_v12  ;;  %v10522_v63 = vld [vmem:[#allocation60_spill] sm:$0xff]  ;;  %v10523_v12 = vld [vmem:[#allocation61_spill] sm:$0xff]  ;;  %v10565_v49 = vld [vmem:[#allocation103_spill] sm:$0xff] }
 0xa39   :  { %3128 = vmatprep.subr.mxu1 %v7451_v17  ;;  %3058 = vmatpush1.msra.mxu0 %v10514_v2  ;;  %v10524_v17 = vld [vmem:[#allocation62_spill] sm:$0xff]  ;;  %v10566_v2 = vld [vmem:[#allocation104_spill] sm:$0xff] }
 0xa3a   :  { %3129 = vmatpush1.msra.mxu1 %v10515_v15  ;;  %3059 = vmatprep.subr.mxu0 %v10516_v9  ;;  %v10567_v15 = vld [vmem:[#allocation105_spill] sm:$0xff]  ;;  %v10568_v9 = vld [vmem:[#allocation106_spill] sm:$0xff] }
 0xa3b   :  { %3130 = vmatprep.subr.mxu1 %v10517_v41  ;;  %3060 = vmatpush1.msra.mxu0 %v10518_v58  ;;  %v10569_v41 = vld [vmem:[#allocation107_spill] sm:$0xff]  ;;  %v10570_v58 = vld [vmem:[#allocation108_spill] sm:$0xff] }
 0xa3c   :  { %3131 = vmatpush1.msra.mxu1 %v10519_v4  ;;  %3061 = vmatprep.subr.mxu0 %v10520_v55  ;;  %v10571_v4 = vld [vmem:[#allocation109_spill] sm:$0xff]  ;;  %v10572_v55 = vld [vmem:[#allocation110_spill] sm:$0xff] }
 0xa3d   :  { %3132 = vmatprep.subr.mxu1 %v10521_v18  ;;  %3062 = vmatpush1.msra.mxu0 %v10522_v63  ;;  %v10573_v18 = vld [vmem:[#allocation111_spill] sm:$0xff]  ;;  %v10574_v63 = vld [vmem:[#allocation112_spill] sm:$0xff] }
 0xa3e   :  { %3133 = vmatpush1.msra.mxu1 %v10523_v12  ;;  %3063 = vmatprep.subr.mxu0 %v10524_v17  ;;  %v10575_v12 = vld [vmem:[#allocation113_spill] sm:$0xff]  ;;  %v10576_v17 = vld [vmem:[#allocation114_spill] sm:$0xff] }
 0xa3f   :  { %3134 = vmatprep.subr.mxu1 %v10525_v62  ;;  %3064 = vmatpush1.msra.mxu0 %v10526_v56  ;;  %v10577_v62 = vld [vmem:[#allocation115_spill] sm:$0xff]  ;;  %v10579_v56 = vld [vmem:[#allocation117_spill] sm:$0xff] }
 0xa40   :  { %3135 = vmatpush1.msra.mxu1 %v10527_v0  ;;  %3065 = vmatprep.subr.mxu0 %v10528_v61  ;;  %v10580_v0 = vld [vmem:[#allocation118_spill] sm:$0xff]  ;;  %v10581_v61 = vld [vmem:[#allocation119_spill] sm:$0xff] }
 0xa41   :  { %3136 = vmatprep.subr.mxu1 %v10529_v54  ;;  %3066 = vmatpush1.msra.mxu0 %v10530_v16  ;;  %v10582_v54 = vld [vmem:[#allocation120_spill] sm:$0xff]  ;;  %v10583_v16 = vld [vmem:[#allocation121_spill] sm:$0xff] }
 0xa42   :  { %3137 = vmatpush1.msra.mxu1 %v10531_v11  ;;  %3067 = vmatprep.subr.mxu0 %v10532_v6  ;;  %v10584_v11 = vld [vmem:[#allocation122_spill] sm:$0xff]  ;;  %v10585_v6 = vld [vmem:[#allocation123_spill] sm:$0xff] }
 0xa43   :  { %3138 = vmatprep.subr.mxu1 %v10533_v28  ;;  %3068 = vmatpush1.msra.mxu0 %v10534_v1  ;;  %v10586_v28 = vld [vmem:[#allocation124_spill] sm:$0xff]  ;;  %v10587_v1 = vld [vmem:[#allocation125_spill] sm:$0xff] }
 0xa44   :  { %3139 = vmatpush1.msra.mxu1 %v10535_v32  ;;  %3069 = vmatprep.subr.mxu0 %v10536_v53  ;;  %v10588_v32 = vld [vmem:[#allocation126_spill] sm:$0xff]  ;;  %v10589_v53 = vld [vmem:[#allocation127_spill] sm:$0xff] }
 0xa45   :  { %3140 = vmatprep.subr.mxu1 %v10537_v31  ;;  %3070 = vmatpush1.msra.mxu0 %v10538_v33  ;;  %v10590_v31 = vld [vmem:[#allocation128_spill] sm:$0xff]  ;;  %v10591_v33 = vld [vmem:[#allocation129_spill] sm:$0xff] }
 0xa46   :  { %3141 = vmatpush1.msra.mxu1 %v10539_v3  ;;  %3071 = vmatprep.subr.mxu0 %v10540_v29  ;;  %v10592_v3 = vld [vmem:[#allocation130_spill] sm:$0xff]  ;;  %v10593_v29 = vld [vmem:[#allocation131_spill] sm:$0xff] }
 0xa47   :  { %3142 = vmatprep.subr.mxu1 %v10541_v36  ;;  %3072 = vmatpush1.msra.mxu0 %v10542_v30  ;;  %v10594_v36 = vld [vmem:[#allocation132_spill] sm:$0xff]  ;;  %v10595_v30 = vld [vmem:[#allocation133_spill] sm:$0xff] }
 0xa48   :  { %3143 = vmatpush1.msra.mxu1 %v10543_v10  ;;  %3073 = vmatprep.subr.mxu0 %v10544_v14  ;;  %v10596_v10 = vld [vmem:[#allocation134_spill] sm:$0xff]  ;;  %v10597_v14 = vld [vmem:[#allocation135_spill] sm:$0xff] }
 0xa49   :  { %3144 = vmatprep.subr.mxu1 %v10545_v21  ;;  %3074 = vmatpush1.msra.mxu0 %v10546_v38  ;;  %v10598_v21 = vld [vmem:[#allocation136_spill] sm:$0xff]  ;;  %v10599_v38 = vld [vmem:[#allocation137_spill] sm:$0xff] }
 0xa4a   :  { %3145 = vmatpush1.msra.mxu1 %v10547_v44  ;;  %3075 = vmatprep.subr.mxu0 %v10548_v7  ;;  %v10600_v44 = vld [vmem:[#allocation138_spill] sm:$0xff]  ;;  %v10601_v7 = vld [vmem:[#allocation139_spill] sm:$0xff] }
 0xa4b   :  { %3146 = vmatprep.subr.mxu1 %v10549_v13  ;;  %3076 = vmatpush1.msra.mxu0 %v10550_v25  ;;  %v10602_v13 = vld [vmem:[#allocation140_spill] sm:$0xff]  ;;  %v10603_v25 = vld [vmem:[#allocation141_spill] sm:$0xff] }
 0xa4c   :  { %3147 = vmatpush1.msra.mxu1 %v10551_v43  ;;  %3077 = vmatprep.subr.mxu0 %v10552_v20  ;;  %v10604_v43 = vld [vmem:[#allocation142_spill] sm:$0xff]  ;;  %v10605_v20 = vld [vmem:[#allocation143_spill] sm:$0xff] }
 0xa4d   :  { %3148 = vmatprep.subr.mxu1 %v10553_v39  ;;  %3078 = vmatpush1.msra.mxu0 %v10554_v45  ;;  %v10606_v39 = vld [vmem:[#allocation144_spill] sm:$0xff]  ;;  %v10607_v45 = vld [vmem:[#allocation145_spill] sm:$0xff] }
 0xa4e   :  { %3149 = vmatpush1.msra.mxu1 %v10555_v19  ;;  %3079 = vmatprep.subr.mxu0 %v10556_v8  ;;  %v10608_v19 = vld [vmem:[#allocation146_spill] sm:$0xff]  ;;  %v10609_v8 = vld [vmem:[#allocation147_spill] sm:$0xff] }
 0xa4f   :  { %3150 = vmatprep.subr.mxu1 %v10557_v26  ;;  %3080 = vmatpush1.msra.mxu0 %v10558_v52  ;;  %v10610_v26 = vld [vmem:[#allocation148_spill] sm:$0xff]  ;;  %v10611_v52 = vld [vmem:[#allocation149_spill] sm:$0xff] }
 0xa50   :  { %3151 = vmatpush1.msra.mxu1 %v10559_v35  ;;  %3081 = vmatprep.subr.mxu0 %v10560_v40  ;;  %v10612_v35 = vld [vmem:[#allocation150_spill] sm:$0xff]  ;;  %v10613_v40 = vld [vmem:[#allocation151_spill] sm:$0xff] }
 0xa51   :  { %3152 = vmatprep.subr.mxu1 %v10561_v48  ;;  %3082 = vmatpush1.msra.mxu0 %v10562_v5  ;;  %v10614_v48 = vld [vmem:[#allocation152_spill] sm:$0xff]  ;;  %v10615_v5 = vld [vmem:[#allocation153_spill] sm:$0xff] }
 0xa52   :  { %3153 = vmatpush1.msra.mxu1 %v10563_v42  ;;  %3083 = vmatprep.subr.mxu0 %v10564_v46  ;;  %v10616_v42 = vld [vmem:[#allocation154_spill] sm:$0xff]  ;;  %v10617_v46 = vld [vmem:[#allocation155_spill] sm:$0xff] }
 0xa53   :  { %3154 = vmatprep.subr.mxu1 %v10565_v49  ;;  %3084 = vmatpush1.msra.mxu0 %v10566_v2  ;;  %v10618_v49 = vld [vmem:[#allocation156_spill] sm:$0xff]  ;;  %v10619_v2 = vld [vmem:[#allocation157_spill] sm:$0xff] }
 0xa54   :  { %3117 = vmatprep.mubr.f32.mxu0 %v9843_v23  ;;  %3155 = vmatpush1.msra.mxu1 %v10567_v15  ;;  %v10620_v15 = vld [vmem:[#allocation158_spill] sm:$0xff] }
 0xa55   :  { %3188 = vmatprep.mubr.f32.mxu1 %v9843_v23  ;;  %3118 = vmatmul.mubr.f32.vlgmr.msra.gmra.mxu0 %v7845_v22 }
 0xa56   :  { %3189 = vmatmul.mubr.f32.vlgmr.msra.gmra.mxu1 %v7845_v22  ;;  %3220 = vmatprep.subr.mxu0 %v10568_v9  ;;  %v10578_v22 = vld [vmem:[#allocation116_spill] sm:$0xff]  ;;  %v10621_v9 = vld [vmem:[#allocation159_spill] sm:$0xff] }
 0xa57   :  { %3291 = vmatprep.subr.mxu1 %v10569_v41  ;;  %3221 = vmatpush1.msra.mxu0 %v10570_v58  ;;  %v10622_v41 = vld [vmem:[#allocation160_spill] sm:$0xff]  ;;  %v10623_v58 = vld [vmem:[#allocation161_spill] sm:$0xff] }
 0xa58   :  { %3292 = vmatpush1.msra.mxu1 %v10571_v4  ;;  %3222 = vmatprep.subr.mxu0 %v10572_v55  ;;  %v10624_v4 = vld [vmem:[#allocation162_spill] sm:$0xff]  ;;  %v10625_v55 = vld [vmem:[#allocation163_spill] sm:$0xff] }
 0xa59   :  { %3293 = vmatprep.subr.mxu1 %v10573_v18  ;;  %3223 = vmatpush1.msra.mxu0 %v10574_v63  ;;  %v10626_v18 = vld [vmem:[#allocation174_spill] sm:$0xff]  ;;  %v10627_v63 = vld [vmem:[#allocation176_spill] sm:$0xff] }
 0xa5a   :  { %3294 = vmatpush1.msra.mxu1 %v10575_v12  ;;  %3224 = vmatprep.subr.mxu0 %v10576_v17  ;;  %v10628_v12 = vld [vmem:[#allocation178_spill] sm:$0xff]  ;;  %v10629_v17 = vld [vmem:[#allocation179_spill] sm:$0xff] }
 0xa5b   :  { %3295 = vmatprep.subr.mxu1 %v10577_v62  ;;  %3225 = vmatpush1.msra.mxu0 %v10578_v22  ;;  %v10630_v62 = vld [vmem:[#allocation180_spill] sm:$0xff]  ;;  %v10631_v22 = vld [vmem:[#allocation181_spill] sm:$0xff] }
 0xa5c   :  { %3296 = vmatpush1.msra.mxu1 %v10579_v56  ;;  %3226 = vmatprep.subr.mxu0 %v10580_v0  ;;  %v8065_v56 = vld [vmem:[#allocation9 + $0x1e8] sm:$0xff]  ;;  %v8068_v0 = vld [vmem:[#allocation9 + $0x1f8] sm:$0xff] }
 0xa5d   :  { %3297 = vmatprep.subr.mxu1 %v10581_v61  ;;  %3227 = vmatpush1.msra.mxu0 %v10582_v54  ;;  %v8071_v54 = vld [vmem:[#allocation3] ss:$0 sm:$0xff] }
 0xa5e   :  { %3298 = vmatpush1.msra.mxu1 %v10583_v16  ;;  %3228 = vmatprep.subr.mxu0 %v10584_v11 }
 0xa5f   :  { %3299 = vmatprep.subr.mxu1 %v10585_v6  ;;  %3229 = vmatpush1.msra.mxu0 %v10586_v28  ;;  %v10632_v6 = vld [vmem:[#allocation185_spill] sm:$0xff]  ;;  %v10633_v28 = vld [vmem:[#allocation166_spill] sm:$0xff] }
 0xa60   :  { %3300 = vmatpush1.msra.mxu1 %v10587_v1  ;;  %3230 = vmatprep.subr.mxu0 %v10588_v32  ;;  %v217_v1 = vmul.f32 %v10633_v28, %v10632_v6  ;;  %v10634_v32 = vld [vmem:[#allocation167_spill] sm:$0xff] }
 0xa61   :  { %3301 = vmatprep.subr.mxu1 %v10589_v53  ;;  %3231 = vmatpush1.msra.mxu0 %v10590_v31  ;;  %v218_v53 = vmul.f32 %v10634_v32, %v10632_v6 }
 0xa62   :  { %3302 = vmatpush1.msra.mxu1 %v10591_v33  ;;  %3232 = vmatprep.subr.mxu0 %v10592_v3  ;;  %v10635_v3 = vld [vmem:[#allocation169_spill] sm:$0xff] }
 0xa63   :  { %3303 = vmatprep.subr.mxu1 %v10593_v29  ;;  %3233 = vmatpush1.msra.mxu0 %v10594_v36  ;;  %v271_v29 = vadd.f32 %v10635_v3, %v217_v1  ;;  %v8130_v1 = vld [vmem:[#allocation9 + $0x1a0] sm:$0xff] }
 0xa64   :  { %3304 = vmatpush1.msra.mxu1 %v10595_v30  ;;  %3234 = vmatprep.subr.mxu0 %v10596_v10  ;;  %v10636_v10 = vld [vmem:[#allocation171_spill] sm:$0xff] }
 0xa65   :  { %3305 = vmatprep.subr.mxu1 %v10597_v14  ;;  %3235 = vmatpush1.msra.mxu0 %v10598_v21  ;;  %v219_v14 = vmul.f32 %v10636_v10, %v10632_v6  ;;  %v10637_v21 = vld [vmem:[#allocation172_spill] sm:$0xff] }
 0xa66   :  { %3306 = vmatpush1.msra.mxu1 %v10599_v38  ;;  %3236 = vmatprep.subr.mxu0 %v10600_v44  ;;  %v272_v38 = vadd.f32 %v10637_v21, %v218_v53  ;;  %v8133_v53 = vld [vmem:[#allocation9 + $0x1b0] sm:$0xff] }
 0xa67   :  { %3307 = vmatprep.subr.mxu1 %v10601_v7  ;;  %3237 = vmatpush1.msra.mxu0 %v10602_v13 }
 0xa68   :  { %3308 = vmatpush1.msra.mxu1 %v10603_v25  ;;  %3238 = vmatprep.subr.mxu0 %v10604_v43 }
 0xa69   :  { %3309 = vmatprep.subr.mxu1 %v10605_v20  ;;  %3239 = vmatpush1.msra.mxu0 %v10606_v39  ;;  %v273_v20 = vadd.f32 %v9988_v59, %v219_v14  ;;  %v8145_v14 = vld [vmem:[#allocation9 + $0x190] sm:$0xff] }
 0xa6a   :  { %3310 = vmatpush1.msra.mxu1 %v10607_v45  ;;  %3240 = vmatprep.subr.mxu0 %v10608_v19  ;;  %v220_v19 = vmul.f32 %v9989_v50, %v10632_v6  ;;  %v8127_v6 = vld [vmem:[#allocation9 + $0x1b8] sm:$0xff] }
 0xa6b   :  { %3311 = vmatprep.subr.mxu1 %v10609_v8  ;;  %3241 = vmatpush1.msra.mxu0 %v10610_v26 }
 0xa6c   :  { %3312 = vmatpush1.msra.mxu1 %v10611_v52  ;;  %3242 = vmatprep.subr.mxu0 %v10612_v35  ;;  %v274_v26 = vadd.f32 %v6045_v57, %v220_v19  ;;  %v8172_v19 = vld [vmem:[#allocation9 + $0x128] sm:$0xff] }
 0xa6d   :  { %3313 = vmatprep.subr.mxu1 %v10613_v40  ;;  %3243 = vmatpush1.msra.mxu0 %v10614_v48 }
 0xa6e   :  { %3314 = vmatpush1.msra.mxu1 %v10615_v5  ;;  %3244 = vmatprep.subr.mxu0 %v10616_v42 }
 0xa6f   :  { %3315 = vmatprep.subr.mxu1 %v10617_v46  ;;  %3245 = vmatpush1.msra.mxu0 %v10618_v49 }
 0xa70   :  { %3316 = vmatpush1.msra.mxu1 %v10619_v2  ;;  %3246 = vmatprep.subr.mxu0 %v10620_v15 }
 0xa71   :  { %3317 = vmatprep.subr.mxu1 %v10621_v9  ;;  %3247 = vmatpush1.msra.mxu0 %v10622_v41 }
 0xa72   :  { %3318 = vmatpush1.msra.mxu1 %v10623_v58  ;;  %3248 = vmatprep.subr.mxu0 %v10624_v4 }
 0xa73   :  { %3319 = vmatprep.subr.mxu1 %v10625_v55  ;;  %3249 = vmatpush1.msra.mxu0 %v10626_v18 }
 0xa74   :  { %3320 = vmatpush1.msra.mxu1 %v10627_v63  ;;  %3250 = vmatprep.subr.mxu0 %v10628_v12  ;;  %v8106_v12 = vld [vmem:[#allocation9 + $0x1e0] sm:$0xff] }
 0xa75   :  { %3321 = vmatprep.subr.mxu1 %v10629_v17  ;;  %3251 = vmatpush1.msra.mxu0 %v10630_v62  ;;  %v8112_v17 = vld [vmem:[#allocation9 + $0x1c8] sm:$0xff]  ;;  %v8115_v62 = vld [vmem:[#allocation9 + $0x1d8] sm:$0xff] }
 0xa76   :  { %3284 = vmatprep.mubr.f32.mxu0 %v9843_v23  ;;  %3322 = vmatpush1.msra.mxu1 %v10631_v22  ;;  %v8118_v22 = vld [vmem:[#allocation9 + $0x1c0] sm:$0xff] }
 0xa77   :  { %3355 = vmatprep.mubr.f32.mxu1 %v9843_v23  ;;  %3387 = vmatprep.subr.mxu0 %v8065_v56 }
 0xa78   :  { %3458 = vmatprep.subr.mxu1 %v8068_v0 }
 0xac0   :  { %v4371_v61 = vpop.xlane.xlu1 %4370 }
 0xac1   :  { %v4389_v16 = vadd.f32 %v8071_v54, %v4371_v61  ;;  %v8121_v61 = vld [vmem:[#allocation9 + $0x1d0] sm:$0xff] }
 0xac3   :  { %4398 = vst.msk [vmem:[%s8994_s9 + $0x20] sm:$0xff] %vm4393_vm0, %v4389_v16  ;;  %v8124_v16 = vld [vmem:[#allocation9 + $0x1a8] sm:$0xff] }
 0xaf4   :  { %v8078_v11 = vpop.f32.mrf.mxu0  ;;  %v8084_v31 = vpop.f32.mrf.mxu1 }
 0xaf6   :  { %v8086_v33 = vpop.f32.mrf.mxu0  ;;  %v8092_v44 = vpop.f32.mrf.mxu1 }
 0xb15   :  { %v3119_v36 = vpop.f32.mrf.mxu0 }
 0xb16   :  { %v3195_v30 = vadd.f32 %v3119_v36, %v271_v29  ;;  %v3190_v43 = vpop.f32.mrf.mxu1  ;;  %v8136_v29 = vld [vmem:[#allocation9 + $0x188] sm:$0xff]  ;;  %v8139_v36 = vld [vmem:[#allocation9 + $0x198] sm:$0xff] }
 0xb17   :  { %v3121_v7 = vpop.f32.mrf.mxu0  ;;  %v3197_v45 = vadd.f32 %v3190_v43, %v273_v20  ;;  %v8160_v43 = vld [vmem:[#allocation9 + $0x148] sm:$0xff]  ;;  %v8163_v20 = vld [vmem:[#allocation9 + $0x158] sm:$0xff] }
 0xb18   :  { %v3199_v13 = vmul.f32 0.5, %v3195_v30  ;;  %v3196_v25 = vadd.f32 %v3121_v7, %v272_v38  ;;  %v3192_v8 = vpop.f32.mrf.mxu1  ;;  %v8142_v30 = vld [vmem:[#allocation9 + $0x180] sm:$0xff]  ;;  %v8148_v38 = vld [vmem:[#allocation9 + $0x168] sm:$0xff]  ;;  %v8151_v7 = vld [vmem:[#allocation9 + $0x178] sm:$0xff] }
 0xb19   :  { %v3198_v52 = vadd.f32 %v3192_v8, %v274_v26  ;;  %v8175_v8 = vld [vmem:[#allocation9 + $0x138] sm:$0xff]  ;;  %v8178_v26 = vld [vmem:[#allocation9 + $0x120] sm:$0xff] }
 0xb1a   :  { %4561 = vtanh.f32 %v3199_v13  ;;  %v3200_v39 = vmul.f32 0.5, %v3196_v25  ;;  %v8154_v13 = vld [vmem:[#allocation9 + $0x160] sm:$0xff]  ;;  %v8157_v25 = vld [vmem:[#allocation9 + $0x170] sm:$0xff] }
 0xb1b   :  { %v3202_v35 = vmul.f32 0.5, %v3198_v52  ;;  %v8181_v52 = vld [vmem:[#allocation9 + $0x130] sm:$0xff] }
 0xb1c   :  { %4563 = vtanh.f32 %v3200_v39  ;;  %v8166_v39 = vld [vmem:[#allocation9 + $0x140] sm:$0xff] }
 0xb1d   :  { %4565 = vtanh.f32 %v3197_v45  ;;  %v8169_v45 = vld [vmem:[#allocation9 + $0x150] sm:$0xff] }
 0xb1e   :  { %4567 = vtanh.f32 %v3202_v35  ;;  %v8184_v35 = vld [vmem:[#allocation9 + $0x108] sm:$0xff] }
 0xb1f   :  { %10638 = vst [vmem:[#allocation182_spill] sm:$0xff] %v8184_v35 }
 0xb27   :  { %v4562_v40 = vpop.eup %4561 }
 0xb28   :  { %v3207_v48 = vmul.f32 0.5, %v4562_v40  ;;  %v8187_v40 = vld [vmem:[#allocation9 + $0x118] sm:$0xff] }
 0xb29   :  { %v4564_v5 = vpop.eup %4563  ;;  %10639 = vst [vmem:[#allocation183_spill] sm:$0xff] %v8187_v40 }
 0xb2a   :  { %v3211_v42 = vadd.f32 0.5, %v3207_v48  ;;  %v3208_v46 = vmul.f32 0.5, %v4564_v5  ;;  %v4566_v2 = vpop.eup %4565  ;;  %v8190_v48 = vld [vmem:[#allocation9 + $0x100] sm:$0xff]  ;;  %v8193_v5 = vld [vmem:[#allocation9 + $0x110] sm:$0xff] }
 0xb2b   :  { %v4568_v58 = vpop.eup %4567  ;;  %10640 = vst [vmem:[#allocation184_spill] sm:$0xff] %v8190_v48  ;;  %10641 = vst [vmem:[#allocation19_spill] sm:$0xff] %v8193_v5 }
 0xb2c   :  { %v3212_v49 = vadd.f32 0.5, %v3208_v46  ;;  %v3216_v9 = vmul.f32 %v4566_v2, %v3211_v42  ;;  %v3210_v4 = vmul.f32 0.5, %v4568_v58  ;;  %v8196_v42 = vld [vmem:[#allocation9 + $0xe8] sm:$0xff]  ;;  %v8199_v46 = vld [vmem:[#allocation9 + $0xf8] sm:$0xff]  ;;  %v8205_v2 = vld [vmem:[#allocation9 + $0xf0] sm:$0xff] }
 0xb2d   :  { %10642 = vst [vmem:[#allocation21_spill] sm:$0xff] %v8196_v42  ;;  %10643 = vst [vmem:[#allocation22_spill] sm:$0xff] %v8199_v46  ;;  %v8214_v58 = vld [vmem:[#allocation9 + $0xc0] sm:$0xff] }
 0xb2e   :  { %v3215_v15 = vmul.f32 %v3212_v49, %v7842_v51  ;;  %v3214_v55 = vadd.f32 0.5, %v3210_v4  ;;  %v8109_v51 = vld [vmem:[#allocation9 + $0x1f0] sm:$0xff]  ;;  %v8202_v49 = vld [vmem:[#allocation9 + $0xe0] sm:$0xff]  ;;  %10645 = vst [vmem:[#allocation24_spill] sm:$0xff] %v8205_v2  ;;  %10648 = vst [vmem:[#allocation27_spill] sm:$0xff] %v8214_v58 }
 0xb2f   :  { %10644 = vst [vmem:[#allocation23_spill] sm:$0xff] %v8202_v49  ;;  %v8217_v4 = vld [vmem:[#allocation9 + $0xd0] sm:$0xff] }
 0xb30   :  { %v8099_v41 = vadd.f32 %v3216_v9, %v3215_v15  ;;  %v8208_v15 = vld [vmem:[#allocation9 + $0xc8] sm:$0xff]  ;;  %v8211_v9 = vld [vmem:[#allocation9 + $0xd8] sm:$0xff]  ;;  %10649 = vst [vmem:[#allocation28_spill] sm:$0xff] %v8217_v4 }
 0xb31   :  { %10646 = vst [vmem:[#allocation25_spill] sm:$0xff] %v8208_v15  ;;  %10647 = vst [vmem:[#allocation26_spill] sm:$0xff] %v8211_v9 }
 0xb32   :  { %4569 = vtanh.f32 %v8099_v41 }
 0xb3f   :  { %v4570_v18 = vpop.eup %4569 }
 0xb40   :  { %v8102_v63 = vmul.f32 %v4570_v18, %v3214_v55  ;;  %v8220_v55 = vld [vmem:[#allocation9 + $0xa8] sm:$0xff]  ;;  %v8223_v18 = vld [vmem:[#allocation9 + $0xb8] sm:$0xff] }
 0xb41   :  { %10650 = vst [vmem:[#allocation29_spill] sm:$0xff] %v8220_v55  ;;  %10651 = vst [vmem:[#allocation30_spill] sm:$0xff] %v8223_v18 }
 0xb42   :  { %3285 = vmatmul.mubr.f32.vlgmr.msra.gmra.mxu0 %v8102_v63  ;;  %3356 = vmatmul.mubr.f32.vlgmr.msra.gmra.mxu1 %v8102_v63 }
 0xb43   :  { %3388 = vmatpush1.msra.mxu0 %v8106_v12  ;;  %3459 = vmatpush1.msra.mxu1 %v8109_v51 }
 0xb44   :  { %3389 = vmatprep.subr.mxu0 %v8112_v17  ;;  %3460 = vmatprep.subr.mxu1 %v8115_v62 }
 0xb45   :  { %3390 = vmatpush1.msra.mxu0 %v8118_v22  ;;  %3461 = vmatpush1.msra.mxu1 %v8121_v61 }
 0xb46   :  { %3391 = vmatprep.subr.mxu0 %v8124_v16  ;;  %3462 = vmatprep.subr.mxu1 %v8127_v6 }
 0xb47   :  { %3392 = vmatpush1.msra.mxu0 %v8130_v1  ;;  %3463 = vmatpush1.msra.mxu1 %v8133_v53 }
 0xb48   :  { %3393 = vmatprep.subr.mxu0 %v8136_v29  ;;  %3464 = vmatprep.subr.mxu1 %v8139_v36 }
 0xb49   :  { %3394 = vmatpush1.msra.mxu0 %v8142_v30  ;;  %3465 = vmatpush1.msra.mxu1 %v8145_v14 }
 0xb4a   :  { %3395 = vmatprep.subr.mxu0 %v8148_v38  ;;  %3466 = vmatprep.subr.mxu1 %v8151_v7 }
 0xb4b   :  { %3396 = vmatpush1.msra.mxu0 %v8154_v13  ;;  %3467 = vmatpush1.msra.mxu1 %v8157_v25 }
 0xb4c   :  { %3397 = vmatprep.subr.mxu0 %v8160_v43  ;;  %3468 = vmatprep.subr.mxu1 %v8163_v20 }
 0xb4d   :  { %3398 = vmatpush1.msra.mxu0 %v8166_v39  ;;  %3469 = vmatpush1.msra.mxu1 %v8169_v45 }
 0xb4e   :  { %3399 = vmatprep.subr.mxu0 %v8172_v19  ;;  %3470 = vmatprep.subr.mxu1 %v8175_v8 }
 0xb4f   :  { %3400 = vmatpush1.msra.mxu0 %v8178_v26  ;;  %3471 = vmatpush1.msra.mxu1 %v8181_v52 }
 0xb50   :  { %3401 = vmatprep.subr.mxu0 %v8184_v35  ;;  %3472 = vmatprep.subr.mxu1 %v8187_v40 }
 0xb51   :  { %3402 = vmatpush1.msra.mxu0 %v8190_v48  ;;  %3473 = vmatpush1.msra.mxu1 %v8193_v5 }
 0xb52   :  { %3403 = vmatprep.subr.mxu0 %v8196_v42  ;;  %3474 = vmatprep.subr.mxu1 %v8199_v46  ;;  %v3045_v46 = vadd.f32 %v8084_v31, %v6133_v34 }
 0xb53   :  { %3404 = vmatpush1.msra.mxu0 %v8202_v49  ;;  %3475 = vmatpush1.msra.mxu1 %v8205_v2 }
 0xb54   :  { %3405 = vmatprep.subr.mxu0 %v8208_v15  ;;  %3476 = vmatprep.subr.mxu1 %v8211_v9  ;;  %v8226_v15 = vld [vmem:[#allocation9 + $0xa0] sm:$0xff]  ;;  %v8229_v9 = vld [vmem:[#allocation9 + $0xb0] sm:$0xff] }
 0xb55   :  { %3406 = vmatpush1.msra.mxu0 %v8214_v58  ;;  %3477 = vmatpush1.msra.mxu1 %v8217_v4  ;;  %10652 = vst [vmem:[#allocation31_spill] sm:$0xff] %v8226_v15  ;;  %10653 = vst [vmem:[#allocation32_spill] sm:$0xff] %v8229_v9  ;;  %v8232_v58 = vld [vmem:[#allocation9 + $0x88] sm:$0xff]  ;;  %v8235_v4 = vld [vmem:[#allocation9 + $0x98] sm:$0xff] }
 0xb56   :  { %3407 = vmatprep.subr.mxu0 %v8220_v55  ;;  %3478 = vmatprep.subr.mxu1 %v8223_v18  ;;  %10654 = vst [vmem:[#allocation33_spill] sm:$0xff] %v8232_v58  ;;  %10655 = vst [vmem:[#allocation34_spill] sm:$0xff] %v8235_v4  ;;  %v8238_v55 = vld [vmem:[#allocation9 + $0x80] sm:$0xff]  ;;  %v8241_v18 = vld [vmem:[#allocation9 + $0x90] sm:$0xff] }
 0xb57   :  { %3408 = vmatpush1.msra.mxu0 %v8226_v15  ;;  %3479 = vmatpush1.msra.mxu1 %v8229_v9  ;;  %10656 = vst [vmem:[#allocation35_spill] sm:$0xff] %v8238_v55  ;;  %10657 = vst [vmem:[#allocation36_spill] sm:$0xff] %v8241_v18  ;;  %v8244_v15 = vld [vmem:[#allocation9 + $0x68] sm:$0xff]  ;;  %v8247_v9 = vld [vmem:[#allocation9 + $0x78] sm:$0xff] }
 0xb58   :  { %3409 = vmatprep.subr.mxu0 %v8232_v58  ;;  %3480 = vmatprep.subr.mxu1 %v8235_v4  ;;  %10658 = vst [vmem:[#allocation37_spill] sm:$0xff] %v8244_v15  ;;  %10659 = vst [vmem:[#allocation164_spill] sm:$0xff] %v8247_v9  ;;  %v8250_v58 = vld [vmem:[#allocation9 + $0x60] sm:$0xff]  ;;  %v8253_v4 = vld [vmem:[#allocation9 + $0x70] sm:$0xff] }
 0xb59   :  { %3410 = vmatpush1.msra.mxu0 %v8238_v55  ;;  %3481 = vmatpush1.msra.mxu1 %v8241_v18  ;;  %10660 = vst [vmem:[#allocation165_spill] sm:$0xff] %v8250_v58  ;;  %10661 = vst [vmem:[#allocation170_spill] sm:$0xff] %v8253_v4  ;;  %v8256_v55 = vld [vmem:[#allocation9 + $0x48] sm:$0xff]  ;;  %v8259_v18 = vld [vmem:[#allocation9 + $0x58] sm:$0xff] }
 0xb5a   :  { %3411 = vmatprep.subr.mxu0 %v8244_v15  ;;  %3482 = vmatprep.subr.mxu1 %v8247_v9  ;;  %10662 = vst [vmem:[#allocation168_spill] sm:$0xff] %v8256_v55  ;;  %10663 = vst [vmem:[#allocation173_spill] sm:$0xff] %v8259_v18  ;;  %v8262_v15 = vld [vmem:[#allocation9 + $0x40] sm:$0xff]  ;;  %v8265_v9 = vld [vmem:[#allocation9 + $0x50] sm:$0xff] }
 0xb5b   :  { %3412 = vmatpush1.msra.mxu0 %v8250_v58  ;;  %3483 = vmatpush1.msra.mxu1 %v8253_v4  ;;  %10664 = vst [vmem:[#allocation175_spill] sm:$0xff] %v8262_v15  ;;  %10665 = vst [vmem:[#allocation177_spill] sm:$0xff] %v8265_v9  ;;  %v8268_v58 = vld [vmem:[#allocation9 + $0x28] sm:$0xff]  ;;  %v8271_v4 = vld [vmem:[#allocation9 + $0x38] sm:$0xff] }
 0xb5c   :  { %3413 = vmatprep.subr.mxu0 %v8256_v55  ;;  %3484 = vmatprep.subr.mxu1 %v8259_v18  ;;  %10666 = vst [vmem:[#allocation38_spill] sm:$0xff] %v8268_v58  ;;  %10667 = vst [vmem:[#allocation39_spill] sm:$0xff] %v8271_v4  ;;  %v8274_v55 = vld [vmem:[#allocation9 + $0x20] sm:$0xff]  ;;  %v8277_v18 = vld [vmem:[#allocation9 + $0x30] sm:$0xff] }
 0xb5d   :  { %3414 = vmatpush1.msra.mxu0 %v8262_v15  ;;  %3485 = vmatpush1.msra.mxu1 %v8265_v9  ;;  %10668 = vst [vmem:[#allocation40_spill] sm:$0xff] %v8274_v55  ;;  %10669 = vst [vmem:[#allocation41_spill] sm:$0xff] %v8277_v18  ;;  %v8280_v15 = vld [vmem:[#allocation9 + $0x8] sm:$0xff]  ;;  %v8283_v9 = vld [vmem:[#allocation9 + $0x18] sm:$0xff] }
 0xb5e   :  { %3415 = vmatprep.subr.mxu0 %v8268_v58  ;;  %3486 = vmatprep.subr.mxu1 %v8271_v4  ;;  %10670 = vst [vmem:[#allocation42_spill] sm:$0xff] %v8280_v15  ;;  %10671 = vst [vmem:[#allocation43_spill] sm:$0xff] %v8283_v9  ;;  %v8286_v58 = vld [vmem:[#allocation9] sm:$0xff]  ;;  %v8289_v4 = vld [vmem:[#allocation9 + $0x10] sm:$0xff] }
 0xb5f   :  { %3416 = vmatpush1.msra.mxu0 %v8274_v55  ;;  %3487 = vmatpush1.msra.mxu1 %v8277_v18  ;;  %10672 = vst [vmem:[#allocation44_spill] sm:$0xff] %v8286_v58  ;;  %10673 = vst [vmem:[#allocation45_spill] sm:$0xff] %v8289_v4  ;;  %v8294_v18 = vld [vmem:[#allocation4 + $0x1e8] sm:$0xff]  ;;  %v2976_v55 = vadd.f32 %v8086_v33, %v10513_v37 }
 0xb60   :  { %3417 = vmatprep.subr.mxu0 %v8280_v15  ;;  %3488 = vmatprep.subr.mxu1 %v8283_v9  ;;  %10674 = vst [vmem:[#allocation46_spill] sm:$0xff] %v8294_v18  ;;  %v8297_v15 = vld [vmem:[#allocation4 + $0x1f8] sm:$0xff]  ;;  %v2974_v9 = vadd.f32 %v8078_v11, %v10512_v24  ;;  %v3047_v11 = vadd.f32 %v8092_v44, %v6140_v47 }
 0xb61   :  { %3418 = vmatpush1.msra.mxu0 %v8286_v58  ;;  %3489 = vmatpush1.msra.mxu1 %v8289_v4  ;;  %10675 = vst [vmem:[#allocation47_spill] sm:$0xff] %v8297_v15 }
 0xb62   :  { %3451 = vmatprep.mubr.f32.mxu0 %v9843_v23  ;;  %3522 = vmatprep.mubr.f32.mxu1 %v9843_v23 }
 0xb63   :  { %3533 = vmatprep.subr.mxu0 %v8294_v18  ;;  %3604 = vmatprep.subr.mxu1 %v8297_v15 }
 0xc02   :  { %v3286_v58 = vpop.f32.mrf.mxu0  ;;  %v3357_v2 = vpop.f32.mrf.mxu1 }
 0xc03   :  { %v3362_v4 = vadd.f32 %v3286_v58, %v2974_v9  ;;  %v3364_v18 = vadd.f32 %v3357_v2, %v3045_v46 }
 0xc04   :  { %v3288_v49 = vpop.f32.mrf.mxu0  ;;  %v3359_v15 = vpop.f32.mrf.mxu1 }
 0xc05   :  { %v3366_v42 = vmul.f32 0.5, %v3362_v4  ;;  %v3363_v5 = vadd.f32 %v3288_v49, %v2976_v55  ;;  %v3365_v24 = vadd.f32 %v3359_v15, %v3047_v11  ;;  %v8313_v55 = vld [vmem:[#allocation4 + $0x1e0] sm:$0xff]  ;;  %v8334_v11 = vld [vmem:[#allocation4 + $0x1b8] sm:$0xff] }
 0xc07   :  { %4571 = vtanh.f32 %v3366_v42  ;;  %v3367_v48 = vmul.f32 0.5, %v3363_v5  ;;  %v3369_v40 = vmul.f32 0.5, %v3365_v24 }
 0xc09   :  { %4573 = vtanh.f32 %v3367_v48 }
 0xc0a   :  { %4575 = vtanh.f32 %v3364_v18  ;;  %v8331_v18 = vld [vmem:[#allocation4 + $0x1a8] sm:$0xff] }
 0xc0b   :  { %4577 = vtanh.f32 %v3369_v40  ;;  %v8325_v40 = vld [vmem:[#allocation4 + $0x1c0] sm:$0xff] }
 0xc14   :  { %v4572_v33 = vpop.eup %4571 }
 0xc15   :  { %v3374_v9 = vmul.f32 0.5, %v4572_v33  ;;  %v8337_v33 = vld [vmem:[#allocation4 + $0x1a0] sm:$0xff] }
 0xc16   :  { %v4574_v58 = vpop.eup %4573  ;;  %10676 = vst [vmem:[#allocation48_spill] sm:$0xff] %v8337_v33 }
 0xc17   :  { %v3378_v37 = vadd.f32 0.5, %v3374_v9  ;;  %v3375_v35 = vmul.f32 0.5, %v4574_v58  ;;  %v4576_v31 = vpop.eup %4575  ;;  %v8340_v9 = vld [vmem:[#allocation4 + $0x1b0] sm:$0xff]  ;;  %v8343_v58 = vld [vmem:[#allocation4 + $0x188] sm:$0xff] }
 0xc18   :  { %v4578_v48 = vpop.eup %4577  ;;  %10677 = vst [vmem:[#allocation49_spill] sm:$0xff] %v8340_v9  ;;  %10678 = vst [vmem:[#allocation50_spill] sm:$0xff] %v8343_v58 }
 0xc19   :  { %v3379_v4 = vadd.f32 0.5, %v3375_v35  ;;  %v3383_v49 = vmul.f32 %v4576_v31, %v3378_v37  ;;  %v3377_v46 = vmul.f32 0.5, %v4578_v48  ;;  %v8316_v37 = vld [vmem:[#allocation4 + $0x1f0] sm:$0xff]  ;;  %v8322_v35 = vld [vmem:[#allocation4 + $0x1d8] sm:$0xff] }
 0xc1a   :  { %v8346_v31 = vld [vmem:[#allocation4 + $0x198] sm:$0xff] }
 0xc1b   :  { %v3382_v42 = vmul.f32 %v3379_v4, %v7924_v27  ;;  %v3381_v44 = vadd.f32 0.5, %v3377_v46  ;;  %v8319_v27 = vld [vmem:[#allocation4 + $0x1c8] sm:$0xff]  ;;  %10679 = vst [vmem:[#allocation51_spill] sm:$0xff] %v8346_v31  ;;  %v8349_v4 = vld [vmem:[#allocation4 + $0x180] sm:$0xff]  ;;  %v8358_v48 = vld [vmem:[#allocation4 + $0x178] sm:$0xff] }
 0xc1c   :  { %10680 = vst [vmem:[#allocation52_spill] sm:$0xff] %v8349_v4  ;;  %10683 = vst [vmem:[#allocation55_spill] sm:$0xff] %v8358_v48  ;;  %v8361_v46 = vld [vmem:[#allocation4 + $0x160] sm:$0xff] }
 0xc1d   :  { %v8309_v5 = vadd.f32 %v3383_v49, %v3382_v42  ;;  %v8352_v49 = vld [vmem:[#allocation4 + $0x190] sm:$0xff]  ;;  %v8355_v42 = vld [vmem:[#allocation4 + $0x168] sm:$0xff]  ;;  %10684 = vst [vmem:[#allocation56_spill] sm:$0xff] %v8361_v46 }
 0xc1e   :  { %10681 = vst [vmem:[#allocation53_spill] sm:$0xff] %v8352_v49  ;;  %10682 = vst [vmem:[#allocation54_spill] sm:$0xff] %v8355_v42 }
 0xc1f   :  { %4579 = vtanh.f32 %v8309_v5 }
 0xc2c   :  { %v4580_v2 = vpop.eup %4579 }
 0xc2d   :  { %v3386_v24 = vmul.f32 %v4580_v2, %v3381_v44  ;;  %v8364_v44 = vld [vmem:[#allocation4 + $0x170] sm:$0xff]  ;;  %v8367_v2 = vld [vmem:[#allocation4 + $0x148] sm:$0xff] }
 0xc2e   :  { %10685 = vst [vmem:[#allocation57_spill] sm:$0xff] %v8364_v44  ;;  %10686 = vst [vmem:[#allocation58_spill] sm:$0xff] %v8367_v2 }
 0xc2f   :  { %3452 = vmatmul.mubr.f32.vlgmr.msra.gmra.mxu0 %v3386_v24  ;;  %3523 = vmatmul.mubr.f32.vlgmr.msra.gmra.mxu1 %v3386_v24  ;;  %v4359_v15 = vmul.f32 %v7930_v60, %v3386_v24  ;;  %v8328_v60 = vld [vmem:[#allocation4 + $0x1d0] sm:$0xff]  ;;  %v8370_v24 = vld [vmem:[#allocation4 + $0x158] sm:$0xff] }
 0xc30   :  { %3534 = vmatpush1.msra.mxu0 %v8313_v55  ;;  %3605 = vmatpush1.msra.mxu1 %v8316_v37  ;;  %10687 = vst [vmem:[#allocation59_spill] sm:$0xff] %v8370_v24 }
 0xc31   :  { %3535 = vmatprep.subr.mxu0 %v8319_v27  ;;  %3606 = vmatprep.subr.mxu1 %v8322_v35 }
 0xc32   :  { %4372 = vadd.xlane.f32.xlu0 %v4359_v15  ;;  %3536 = vmatpush1.msra.mxu0 %v8325_v40  ;;  %v8373_v15 = vld [vmem:[#allocation4 + $0x140] sm:$0xff] }
 0xc33   :  { %3607 = vmatpush1.msra.mxu1 %v8328_v60  ;;  %3537 = vmatprep.subr.mxu0 %v8331_v18  ;;  %10688 = vst [vmem:[#allocation60_spill] sm:$0xff] %v8373_v15 }
 0xc34   :  { %3608 = vmatprep.subr.mxu1 %v8334_v11  ;;  %3538 = vmatpush1.msra.mxu0 %v8337_v33 }
 0xc35   :  { %3609 = vmatpush1.msra.mxu1 %v8340_v9  ;;  %3539 = vmatprep.subr.mxu0 %v8343_v58 }
 0xc36   :  { %3610 = vmatprep.subr.mxu1 %v8346_v31  ;;  %3540 = vmatpush1.msra.mxu0 %v8349_v4 }
 0xc37   :  { %3611 = vmatpush1.msra.mxu1 %v8352_v49  ;;  %3541 = vmatprep.subr.mxu0 %v8355_v42 }
 0xc38   :  { %3612 = vmatprep.subr.mxu1 %v8358_v48  ;;  %3542 = vmatpush1.msra.mxu0 %v8361_v46  ;;  %v8376_v48 = vld [vmem:[#allocation4 + $0x150] sm:$0xff]  ;;  %v8379_v46 = vld [vmem:[#allocation4 + $0x128] sm:$0xff] }
 0xc39   :  { %3613 = vmatpush1.msra.mxu1 %v8364_v44  ;;  %3543 = vmatprep.subr.mxu0 %v8367_v2  ;;  %10689 = vst [vmem:[#allocation61_spill] sm:$0xff] %v8376_v48  ;;  %10690 = vst [vmem:[#allocation62_spill] sm:$0xff] %v8379_v46  ;;  %v8382_v44 = vld [vmem:[#allocation4 + $0x138] sm:$0xff]  ;;  %v8385_v2 = vld [vmem:[#allocation4 + $0x120] sm:$0xff] }
 0xc3a   :  { %3614 = vmatprep.subr.mxu1 %v8370_v24  ;;  %3544 = vmatpush1.msra.mxu0 %v8373_v15  ;;  %10691 = vst [vmem:[#allocation63_spill] sm:$0xff] %v8382_v44  ;;  %10692 = vst [vmem:[#allocation64_spill] sm:$0xff] %v8385_v2  ;;  %v8388_v24 = vld [vmem:[#allocation4 + $0x130] sm:$0xff]  ;;  %v8391_v15 = vld [vmem:[#allocation4 + $0x108] sm:$0xff] }
 0xc3b   :  { %3615 = vmatpush1.msra.mxu1 %v8376_v48  ;;  %3545 = vmatprep.subr.mxu0 %v8379_v46  ;;  %10693 = vst [vmem:[#allocation65_spill] sm:$0xff] %v8388_v24  ;;  %10694 = vst [vmem:[#allocation66_spill] sm:$0xff] %v8391_v15  ;;  %v8394_v48 = vld [vmem:[#allocation4 + $0x118] sm:$0xff]  ;;  %v8397_v46 = vld [vmem:[#allocation4 + $0x100] sm:$0xff] }
 0xc3c   :  { %3616 = vmatprep.subr.mxu1 %v8382_v44  ;;  %3546 = vmatpush1.msra.mxu0 %v8385_v2  ;;  %10695 = vst [vmem:[#allocation67_spill] sm:$0xff] %v8394_v48  ;;  %10696 = vst [vmem:[#allocation68_spill] sm:$0xff] %v8397_v46  ;;  %v8400_v44 = vld [vmem:[#allocation4 + $0x110] sm:$0xff]  ;;  %v8403_v2 = vld [vmem:[#allocation4 + $0xe8] sm:$0xff] }
 0xc3d   :  { %3617 = vmatpush1.msra.mxu1 %v8388_v24  ;;  %3547 = vmatprep.subr.mxu0 %v8391_v15  ;;  %10697 = vst [vmem:[#allocation69_spill] sm:$0xff] %v8400_v44  ;;  %10698 = vst [vmem:[#allocation70_spill] sm:$0xff] %v8403_v2  ;;  %v8406_v24 = vld [vmem:[#allocation4 + $0xf8] sm:$0xff]  ;;  %v8409_v15 = vld [vmem:[#allocation4 + $0xe0] sm:$0xff] }
 0xc3e   :  { %3618 = vmatprep.subr.mxu1 %v8394_v48  ;;  %3548 = vmatpush1.msra.mxu0 %v8397_v46  ;;  %10699 = vst [vmem:[#allocation71_spill] sm:$0xff] %v8406_v24  ;;  %10700 = vst [vmem:[#allocation72_spill] sm:$0xff] %v8409_v15  ;;  %v8412_v48 = vld [vmem:[#allocation4 + $0xf0] sm:$0xff]  ;;  %v8415_v46 = vld [vmem:[#allocation4 + $0xc8] sm:$0xff] }
 0xc3f   :  { %3619 = vmatpush1.msra.mxu1 %v8400_v44  ;;  %3549 = vmatprep.subr.mxu0 %v8403_v2  ;;  %10701 = vst [vmem:[#allocation73_spill] sm:$0xff] %v8412_v48  ;;  %10702 = vst [vmem:[#allocation74_spill] sm:$0xff] %v8415_v46  ;;  %v8418_v44 = vld [vmem:[#allocation4 + $0xd8] sm:$0xff]  ;;  %v8421_v2 = vld [vmem:[#allocation4 + $0xc0] sm:$0xff] }
 0xc40   :  { %3620 = vmatprep.subr.mxu1 %v8406_v24  ;;  %3550 = vmatpush1.msra.mxu0 %v8409_v15  ;;  %10703 = vst [vmem:[#allocation75_spill] sm:$0xff] %v8418_v44  ;;  %10704 = vst [vmem:[#allocation76_spill] sm:$0xff] %v8421_v2  ;;  %v8424_v24 = vld [vmem:[#allocation4 + $0xd0] sm:$0xff]  ;;  %v8427_v15 = vld [vmem:[#allocation4 + $0xa8] sm:$0xff] }
 0xc41   :  { %3621 = vmatpush1.msra.mxu1 %v8412_v48  ;;  %3551 = vmatprep.subr.mxu0 %v8415_v46  ;;  %10705 = vst [vmem:[#allocation77_spill] sm:$0xff] %v8424_v24  ;;  %10706 = vst [vmem:[#allocation78_spill] sm:$0xff] %v8427_v15  ;;  %v8430_v48 = vld [vmem:[#allocation4 + $0xb8] sm:$0xff]  ;;  %v8433_v46 = vld [vmem:[#allocation4 + $0xa0] sm:$0xff] }
 0xc42   :  { %3622 = vmatprep.subr.mxu1 %v8418_v44  ;;  %3552 = vmatpush1.msra.mxu0 %v8421_v2  ;;  %10707 = vst [vmem:[#allocation79_spill] sm:$0xff] %v8430_v48  ;;  %10708 = vst [vmem:[#allocation80_spill] sm:$0xff] %v8433_v46  ;;  %v8436_v44 = vld [vmem:[#allocation4 + $0xb0] sm:$0xff]  ;;  %v8439_v2 = vld [vmem:[#allocation4 + $0x88] sm:$0xff] }
 0xc43   :  { %3623 = vmatpush1.msra.mxu1 %v8424_v24  ;;  %3553 = vmatprep.subr.mxu0 %v8427_v15  ;;  %10709 = vst [vmem:[#allocation81_spill] sm:$0xff] %v8436_v44  ;;  %10710 = vst [vmem:[#allocation82_spill] sm:$0xff] %v8439_v2  ;;  %v8442_v24 = vld [vmem:[#allocation4 + $0x98] sm:$0xff]  ;;  %v8445_v15 = vld [vmem:[#allocation4 + $0x80] sm:$0xff] }
 0xc44   :  { %3624 = vmatprep.subr.mxu1 %v8430_v48  ;;  %3554 = vmatpush1.msra.mxu0 %v8433_v46  ;;  %10711 = vst [vmem:[#allocation83_spill] sm:$0xff] %v8442_v24  ;;  %10712 = vst [vmem:[#allocation84_spill] sm:$0xff] %v8445_v15  ;;  %v8448_v48 = vld [vmem:[#allocation4 + $0x90] sm:$0xff]  ;;  %v8451_v46 = vld [vmem:[#allocation4 + $0x68] sm:$0xff] }
 0xc45   :  { %3625 = vmatpush1.msra.mxu1 %v8436_v44  ;;  %3555 = vmatprep.subr.mxu0 %v8439_v2  ;;  %10713 = vst [vmem:[#allocation85_spill] sm:$0xff] %v8448_v48  ;;  %10714 = vst [vmem:[#allocation86_spill] sm:$0xff] %v8451_v46  ;;  %v8454_v44 = vld [vmem:[#allocation4 + $0x78] sm:$0xff]  ;;  %v8457_v2 = vld [vmem:[#allocation4 + $0x60] sm:$0xff] }
 0xc46   :  { %3626 = vmatprep.subr.mxu1 %v8442_v24  ;;  %3556 = vmatpush1.msra.mxu0 %v8445_v15  ;;  %10715 = vst [vmem:[#allocation87_spill] sm:$0xff] %v8454_v44  ;;  %10716 = vst [vmem:[#allocation88_spill] sm:$0xff] %v8457_v2  ;;  %v8460_v24 = vld [vmem:[#allocation4 + $0x70] sm:$0xff]  ;;  %v8463_v15 = vld [vmem:[#allocation4 + $0x48] sm:$0xff] }
 0xc47   :  { %3627 = vmatpush1.msra.mxu1 %v8448_v48  ;;  %3557 = vmatprep.subr.mxu0 %v8451_v46  ;;  %10717 = vst [vmem:[#allocation89_spill] sm:$0xff] %v8460_v24  ;;  %10718 = vst [vmem:[#allocation90_spill] sm:$0xff] %v8463_v15  ;;  %v8466_v48 = vld [vmem:[#allocation4 + $0x58] sm:$0xff]  ;;  %v8469_v46 = vld [vmem:[#allocation4 + $0x40] sm:$0xff] }
 0xc48   :  { %3628 = vmatprep.subr.mxu1 %v8454_v44  ;;  %3558 = vmatpush1.msra.mxu0 %v8457_v2  ;;  %10719 = vst [vmem:[#allocation91_spill] sm:$0xff] %v8466_v48  ;;  %10720 = vst [vmem:[#allocation92_spill] sm:$0xff] %v8469_v46  ;;  %v8472_v44 = vld [vmem:[#allocation4 + $0x50] sm:$0xff]  ;;  %v8475_v2 = vld [vmem:[#allocation4 + $0x28] sm:$0xff] }
 0xc49   :  { %3629 = vmatpush1.msra.mxu1 %v8460_v24  ;;  %3559 = vmatprep.subr.mxu0 %v8463_v15  ;;  %10721 = vst [vmem:[#allocation93_spill] sm:$0xff] %v8472_v44  ;;  %10722 = vst [vmem:[#allocation94_spill] sm:$0xff] %v8475_v2  ;;  %v8478_v24 = vld [vmem:[#allocation4 + $0x38] sm:$0xff]  ;;  %v8481_v15 = vld [vmem:[#allocation4 + $0x20] sm:$0xff] }
 0xc4a   :  { %3630 = vmatprep.subr.mxu1 %v8466_v48  ;;  %3560 = vmatpush1.msra.mxu0 %v8469_v46  ;;  %10723 = vst [vmem:[#allocation95_spill] sm:$0xff] %v8478_v24  ;;  %10724 = vst [vmem:[#allocation96_spill] sm:$0xff] %v8481_v15  ;;  %v8484_v48 = vld [vmem:[#allocation4 + $0x30] sm:$0xff]  ;;  %v8487_v46 = vld [vmem:[#allocation4 + $0x8] sm:$0xff] }
 0xc4b   :  { %3631 = vmatpush1.msra.mxu1 %v8472_v44  ;;  %3561 = vmatprep.subr.mxu0 %v8475_v2  ;;  %10725 = vst [vmem:[#allocation97_spill] sm:$0xff] %v8484_v48  ;;  %10726 = vst [vmem:[#allocation98_spill] sm:$0xff] %v8487_v46  ;;  %v8490_v44 = vld [vmem:[#allocation4 + $0x18] sm:$0xff]  ;;  %v8493_v2 = vld [vmem:[#allocation4] sm:$0xff] }
 0xc4c   :  { %3632 = vmatprep.subr.mxu1 %v8478_v24  ;;  %3562 = vmatpush1.msra.mxu0 %v8481_v15  ;;  %10727 = vst [vmem:[#allocation99_spill] sm:$0xff] %v8490_v44  ;;  %10728 = vst [vmem:[#allocation100_spill] sm:$0xff] %v8493_v2  ;;  %v8497_v24 = vld [vmem:[#allocation4 + $0x10] sm:$0xff] }
 0xc4d   :  { %3633 = vmatpush1.msra.mxu1 %v8484_v48  ;;  %3563 = vmatprep.subr.mxu0 %v8487_v46  ;;  %10729 = vst [vmem:[#allocation101_spill] sm:$0xff] %v8497_v24  ;;  %v8503_v46 = vld [vmem:[#allocation7 + $0x1e8] sm:$0xff]  ;;  %v8512_v48 = vld [vmem:[#allocation7 + $0x1f0] sm:$0xff] }
 0xc4e   :  { %3634 = vmatprep.subr.mxu1 %v8490_v44  ;;  %3564 = vmatpush1.msra.mxu0 %v8493_v2  ;;  %10730 = vst [vmem:[#allocation102_spill] sm:$0xff] %v8503_v46  ;;  %v8506_v44 = vld [vmem:[#allocation7 + $0x1f8] sm:$0xff]  ;;  %v8509_v2 = vld [vmem:[#allocation7 + $0x1e0] sm:$0xff]  ;;  %10733 = vst [vmem:[#allocation105_spill] sm:$0xff] %v8512_v48 }
 0xc4f   :  { %3597 = vmatprep.mubr.f32.mxu0 %v9843_v23  ;;  %3635 = vmatpush1.msra.mxu1 %v8497_v24  ;;  %10731 = vst [vmem:[#allocation103_spill] sm:$0xff] %v8506_v44  ;;  %10732 = vst [vmem:[#allocation104_spill] sm:$0xff] %v8509_v2  ;;  %v8515_v24 = vld [vmem:[#allocation7 + $0x1c8] sm:$0xff] }
 0xc50   :  { %3668 = vmatprep.mubr.f32.mxu1 %v9843_v23  ;;  %3598 = vmatmul.mubr.f32.vlgmr.msra.gmra.mxu0 %v8102_v63  ;;  %10734 = vst [vmem:[#allocation106_spill] sm:$0xff] %v8515_v24 }
 0xc51   :  { %3669 = vmatmul.mubr.f32.vlgmr.msra.gmra.mxu1 %v8102_v63  ;;  %3700 = vmatprep.subr.mxu0 %v8503_v46  ;;  %v8518_v63 = vld [vmem:[#allocation7 + $0x1d8] sm:$0xff]  ;;  %v8521_v46 = vld [vmem:[#allocation7 + $0x1c0] sm:$0xff] }
 0xc52   :  { %3771 = vmatprep.subr.mxu1 %v8506_v44  ;;  %3701 = vmatpush1.msra.mxu0 %v8509_v2  ;;  %10735 = vst [vmem:[#allocation107_spill] sm:$0xff] %v8518_v63  ;;  %10736 = vst [vmem:[#allocation108_spill] sm:$0xff] %v8521_v46  ;;  %v8524_v44 = vld [vmem:[#allocation7 + $0x1d0] sm:$0xff]  ;;  %v8527_v2 = vld [vmem:[#allocation7 + $0x1a8] sm:$0xff] }
 0xc53   :  { %3772 = vmatpush1.msra.mxu1 %v8512_v48  ;;  %3702 = vmatprep.subr.mxu0 %v8515_v24  ;;  %10737 = vst [vmem:[#allocation109_spill] sm:$0xff] %v8524_v44  ;;  %10738 = vst [vmem:[#allocation110_spill] sm:$0xff] %v8527_v2  ;;  %v8530_v48 = vld [vmem:[#allocation7 + $0x1b8] sm:$0xff]  ;;  %v8533_v24 = vld [vmem:[#allocation7 + $0x1a0] sm:$0xff] }
 0xc54   :  { %3773 = vmatprep.subr.mxu1 %v8518_v63  ;;  %3703 = vmatpush1.msra.mxu0 %v8521_v46  ;;  %10739 = vst [vmem:[#allocation111_spill] sm:$0xff] %v8530_v48  ;;  %10740 = vst [vmem:[#allocation112_spill] sm:$0xff] %v8533_v24  ;;  %v8536_v63 = vld [vmem:[#allocation7 + $0x1b0] sm:$0xff]  ;;  %v8539_v46 = vld [vmem:[#allocation7 + $0x188] sm:$0xff] }
 0xc55   :  { %3774 = vmatpush1.msra.mxu1 %v8524_v44  ;;  %3704 = vmatprep.subr.mxu0 %v8527_v2  ;;  %10741 = vst [vmem:[#allocation113_spill] sm:$0xff] %v8536_v63  ;;  %10742 = vst [vmem:[#allocation114_spill] sm:$0xff] %v8539_v46  ;;  %v8542_v44 = vld [vmem:[#allocation7 + $0x198] sm:$0xff]  ;;  %v8545_v2 = vld [vmem:[#allocation7 + $0x180] sm:$0xff] }
 0xc56   :  { %3775 = vmatprep.subr.mxu1 %v8530_v48  ;;  %3705 = vmatpush1.msra.mxu0 %v8533_v24  ;;  %10743 = vst [vmem:[#allocation115_spill] sm:$0xff] %v8542_v44  ;;  %10744 = vst [vmem:[#allocation116_spill] sm:$0xff] %v8545_v2  ;;  %v8548_v48 = vld [vmem:[#allocation7 + $0x190] sm:$0xff]  ;;  %v8551_v24 = vld [vmem:[#allocation7 + $0x168] sm:$0xff] }
 0xc57   :  { %3776 = vmatpush1.msra.mxu1 %v8536_v63  ;;  %3706 = vmatprep.subr.mxu0 %v8539_v46  ;;  %10745 = vst [vmem:[#allocation117_spill] sm:$0xff] %v8548_v48  ;;  %10746 = vst [vmem:[#allocation118_spill] sm:$0xff] %v8551_v24  ;;  %v8554_v63 = vld [vmem:[#allocation7 + $0x178] sm:$0xff]  ;;  %v8557_v46 = vld [vmem:[#allocation7 + $0x160] sm:$0xff] }
 0xc58   :  { %3777 = vmatprep.subr.mxu1 %v8542_v44  ;;  %3707 = vmatpush1.msra.mxu0 %v8545_v2  ;;  %10747 = vst [vmem:[#allocation119_spill] sm:$0xff] %v8554_v63  ;;  %10748 = vst [vmem:[#allocation120_spill] sm:$0xff] %v8557_v46  ;;  %v8560_v44 = vld [vmem:[#allocation7 + $0x170] sm:$0xff]  ;;  %v8563_v2 = vld [vmem:[#allocation7 + $0x148] sm:$0xff] }
 0xc59   :  { %3778 = vmatpush1.msra.mxu1 %v8548_v48  ;;  %3708 = vmatprep.subr.mxu0 %v8551_v24  ;;  %10749 = vst [vmem:[#allocation121_spill] sm:$0xff] %v8560_v44  ;;  %10750 = vst [vmem:[#allocation122_spill] sm:$0xff] %v8563_v2  ;;  %v8566_v48 = vld [vmem:[#allocation7 + $0x158] sm:$0xff]  ;;  %v8569_v24 = vld [vmem:[#allocation7 + $0x140] sm:$0xff] }
 0xc5a   :  { %3779 = vmatprep.subr.mxu1 %v8554_v63  ;;  %3709 = vmatpush1.msra.mxu0 %v8557_v46  ;;  %10751 = vst [vmem:[#allocation123_spill] sm:$0xff] %v8566_v48  ;;  %10752 = vst [vmem:[#allocation124_spill] sm:$0xff] %v8569_v24  ;;  %v8572_v63 = vld [vmem:[#allocation7 + $0x150] sm:$0xff]  ;;  %v8575_v46 = vld [vmem:[#allocation7 + $0x128] sm:$0xff] }
 0xc5b   :  { %3780 = vmatpush1.msra.mxu1 %v8560_v44  ;;  %3710 = vmatprep.subr.mxu0 %v8563_v2  ;;  %10753 = vst [vmem:[#allocation125_spill] sm:$0xff] %v8572_v63  ;;  %10754 = vst [vmem:[#allocation126_spill] sm:$0xff] %v8575_v46  ;;  %v8578_v44 = vld [vmem:[#allocation7 + $0x138] sm:$0xff]  ;;  %v8581_v2 = vld [vmem:[#allocation7 + $0x120] sm:$0xff] }
 0xc5c   :  { %3781 = vmatprep.subr.mxu1 %v8566_v48  ;;  %3711 = vmatpush1.msra.mxu0 %v8569_v24  ;;  %10755 = vst [vmem:[#allocation127_spill] sm:$0xff] %v8578_v44  ;;  %10756 = vst [vmem:[#allocation128_spill] sm:$0xff] %v8581_v2  ;;  %v8584_v48 = vld [vmem:[#allocation7 + $0x130] sm:$0xff]  ;;  %v8587_v24 = vld [vmem:[#allocation7 + $0x108] sm:$0xff] }
 0xc5d   :  { %3782 = vmatpush1.msra.mxu1 %v8572_v63  ;;  %3712 = vmatprep.subr.mxu0 %v8575_v46  ;;  %10757 = vst [vmem:[#allocation129_spill] sm:$0xff] %v8584_v48  ;;  %10758 = vst [vmem:[#allocation130_spill] sm:$0xff] %v8587_v24  ;;  %v8590_v63 = vld [vmem:[#allocation7 + $0x118] sm:$0xff]  ;;  %v8593_v46 = vld [vmem:[#allocation7 + $0x100] sm:$0xff] }
 0xc5e   :  { %3783 = vmatprep.subr.mxu1 %v8578_v44  ;;  %3713 = vmatpush1.msra.mxu0 %v8581_v2  ;;  %10759 = vst [vmem:[#allocation131_spill] sm:$0xff] %v8590_v63  ;;  %10760 = vst [vmem:[#allocation132_spill] sm:$0xff] %v8593_v46  ;;  %v8596_v44 = vld [vmem:[#allocation7 + $0x110] sm:$0xff]  ;;  %v8599_v2 = vld [vmem:[#allocation7 + $0xe8] sm:$0xff] }
 0xc5f   :  { %3784 = vmatpush1.msra.mxu1 %v8584_v48  ;;  %3714 = vmatprep.subr.mxu0 %v8587_v24  ;;  %10761 = vst [vmem:[#allocation133_spill] sm:$0xff] %v8596_v44  ;;  %10762 = vst [vmem:[#allocation134_spill] sm:$0xff] %v8599_v2  ;;  %v8602_v48 = vld [vmem:[#allocation7 + $0xf8] sm:$0xff]  ;;  %v8605_v24 = vld [vmem:[#allocation7 + $0xe0] sm:$0xff] }
 0xc60   :  { %3785 = vmatprep.subr.mxu1 %v8590_v63  ;;  %3715 = vmatpush1.msra.mxu0 %v8593_v46  ;;  %10763 = vst [vmem:[#allocation135_spill] sm:$0xff] %v8602_v48  ;;  %10764 = vst [vmem:[#allocation136_spill] sm:$0xff] %v8605_v24  ;;  %v8608_v63 = vld [vmem:[#allocation7 + $0xf0] sm:$0xff]  ;;  %v8611_v46 = vld [vmem:[#allocation7 + $0xc8] sm:$0xff] }
 0xc61   :  { %3786 = vmatpush1.msra.mxu1 %v8596_v44  ;;  %3716 = vmatprep.subr.mxu0 %v8599_v2  ;;  %10765 = vst [vmem:[#allocation137_spill] sm:$0xff] %v8608_v63  ;;  %10766 = vst [vmem:[#allocation138_spill] sm:$0xff] %v8611_v46  ;;  %v8614_v44 = vld [vmem:[#allocation7 + $0xd8] sm:$0xff]  ;;  %v8617_v2 = vld [vmem:[#allocation7 + $0xc0] sm:$0xff] }
 0xc62   :  { %3787 = vmatprep.subr.mxu1 %v8602_v48  ;;  %3717 = vmatpush1.msra.mxu0 %v8605_v24  ;;  %10767 = vst [vmem:[#allocation139_spill] sm:$0xff] %v8614_v44  ;;  %10768 = vst [vmem:[#allocation140_spill] sm:$0xff] %v8617_v2  ;;  %v8620_v48 = vld [vmem:[#allocation7 + $0xd0] sm:$0xff]  ;;  %v8623_v24 = vld [vmem:[#allocation7 + $0xa8] sm:$0xff] }
 0xc63   :  { %3788 = vmatpush1.msra.mxu1 %v8608_v63  ;;  %3718 = vmatprep.subr.mxu0 %v8611_v46  ;;  %10769 = vst [vmem:[#allocation141_spill] sm:$0xff] %v8620_v48  ;;  %10770 = vst [vmem:[#allocation142_spill] sm:$0xff] %v8623_v24  ;;  %v8626_v63 = vld [vmem:[#allocation7 + $0xb8] sm:$0xff]  ;;  %v8629_v46 = vld [vmem:[#allocation7 + $0xa0] sm:$0xff] }
 0xc64   :  { %3789 = vmatprep.subr.mxu1 %v8614_v44  ;;  %3719 = vmatpush1.msra.mxu0 %v8617_v2  ;;  %10771 = vst [vmem:[#allocation143_spill] sm:$0xff] %v8626_v63  ;;  %10772 = vst [vmem:[#allocation144_spill] sm:$0xff] %v8629_v46  ;;  %v8632_v44 = vld [vmem:[#allocation7 + $0xb0] sm:$0xff]  ;;  %v8635_v2 = vld [vmem:[#allocation7 + $0x88] sm:$0xff] }
 0xc65   :  { %3790 = vmatpush1.msra.mxu1 %v8620_v48  ;;  %3720 = vmatprep.subr.mxu0 %v8623_v24  ;;  %10773 = vst [vmem:[#allocation145_spill] sm:$0xff] %v8632_v44  ;;  %10774 = vst [vmem:[#allocation146_spill] sm:$0xff] %v8635_v2  ;;  %v8638_v48 = vld [vmem:[#allocation7 + $0x98] sm:$0xff]  ;;  %v8641_v24 = vld [vmem:[#allocation7 + $0x80] sm:$0xff] }
 0xc66   :  { %3791 = vmatprep.subr.mxu1 %v8626_v63  ;;  %3721 = vmatpush1.msra.mxu0 %v8629_v46  ;;  %10775 = vst [vmem:[#allocation147_spill] sm:$0xff] %v8638_v48  ;;  %10776 = vst [vmem:[#allocation148_spill] sm:$0xff] %v8641_v24  ;;  %v8644_v63 = vld [vmem:[#allocation7 + $0x90] sm:$0xff]  ;;  %v8647_v46 = vld [vmem:[#allocation7 + $0x68] sm:$0xff] }
 0xc67   :  { %3792 = vmatpush1.msra.mxu1 %v8632_v44  ;;  %3722 = vmatprep.subr.mxu0 %v8635_v2  ;;  %10777 = vst [vmem:[#allocation149_spill] sm:$0xff] %v8644_v63  ;;  %10778 = vst [vmem:[#allocation150_spill] sm:$0xff] %v8647_v46  ;;  %v8650_v44 = vld [vmem:[#allocation7 + $0x78] sm:$0xff]  ;;  %v8653_v2 = vld [vmem:[#allocation7 + $0x60] sm:$0xff] }
 0xc68   :  { %3793 = vmatprep.subr.mxu1 %v8638_v48  ;;  %3723 = vmatpush1.msra.mxu0 %v8641_v24  ;;  %10779 = vst [vmem:[#allocation151_spill] sm:$0xff] %v8650_v44  ;;  %10780 = vst [vmem:[#allocation152_spill] sm:$0xff] %v8653_v2  ;;  %v8656_v48 = vld [vmem:[#allocation7 + $0x70] sm:$0xff]  ;;  %v8659_v24 = vld [vmem:[#allocation7 + $0x48] sm:$0xff] }
 0xc69   :  { %3794 = vmatpush1.msra.mxu1 %v8644_v63  ;;  %3724 = vmatprep.subr.mxu0 %v8647_v46  ;;  %10781 = vst [vmem:[#allocation153_spill] sm:$0xff] %v8656_v48  ;;  %10782 = vst [vmem:[#allocation154_spill] sm:$0xff] %v8659_v24  ;;  %v8662_v63 = vld [vmem:[#allocation7 + $0x58] sm:$0xff]  ;;  %v8665_v46 = vld [vmem:[#allocation7 + $0x40] sm:$0xff] }
 0xc6a   :  { %3795 = vmatprep.subr.mxu1 %v8650_v44  ;;  %3725 = vmatpush1.msra.mxu0 %v8653_v2  ;;  %10783 = vst [vmem:[#allocation155_spill] sm:$0xff] %v8662_v63  ;;  %10784 = vst [vmem:[#allocation156_spill] sm:$0xff] %v8665_v46  ;;  %v8668_v44 = vld [vmem:[#allocation7 + $0x50] sm:$0xff]  ;;  %v8671_v2 = vld [vmem:[#allocation7 + $0x28] sm:$0xff] }
 0xc6b   :  { %3796 = vmatpush1.msra.mxu1 %v8656_v48  ;;  %3726 = vmatprep.subr.mxu0 %v8659_v24  ;;  %10785 = vst [vmem:[#allocation157_spill] sm:$0xff] %v8668_v44  ;;  %10786 = vst [vmem:[#allocation158_spill] sm:$0xff] %v8671_v2  ;;  %v8674_v48 = vld [vmem:[#allocation7 + $0x38] sm:$0xff]  ;;  %v8677_v24 = vld [vmem:[#allocation7 + $0x20] sm:$0xff] }
 0xc6c   :  { %3797 = vmatprep.subr.mxu1 %v8662_v63  ;;  %3727 = vmatpush1.msra.mxu0 %v8665_v46  ;;  %10787 = vst [vmem:[#allocation159_spill] sm:$0xff] %v8674_v48  ;;  %10788 = vst [vmem:[#allocation160_spill] sm:$0xff] %v8677_v24  ;;  %v8680_v63 = vld [vmem:[#allocation7 + $0x30] sm:$0xff]  ;;  %v8683_v46 = vld [vmem:[#allocation7 + $0x8] sm:$0xff] }
 0xc6d   :  { %3798 = vmatpush1.msra.mxu1 %v8668_v44  ;;  %3728 = vmatprep.subr.mxu0 %v8671_v2  ;;  %10789 = vst [vmem:[#allocation161_spill] sm:$0xff] %v8680_v63  ;;  %10790 = vst [vmem:[#allocation162_spill] sm:$0xff] %v8683_v46  ;;  %v8686_v44 = vld [vmem:[#allocation7 + $0x18] sm:$0xff]  ;;  %v8689_v2 = vld [vmem:[#allocation7] sm:$0xff] }
 0xc6e   :  { %3799 = vmatprep.subr.mxu1 %v8674_v48  ;;  %3729 = vmatpush1.msra.mxu0 %v8677_v24  ;;  %10791 = vst [vmem:[#allocation163_spill] sm:$0xff] %v8686_v44  ;;  %10792 = vst [vmem:[#allocation174_spill] sm:$0xff] %v8689_v2  ;;  %v8693_v48 = vld [vmem:[#allocation7 + $0x10] sm:$0xff] }
 0xc6f   :  { %3800 = vmatpush1.msra.mxu1 %v8680_v63  ;;  %3730 = vmatprep.subr.mxu0 %v8683_v46  ;;  %10793 = vst [vmem:[#allocation176_spill] sm:$0xff] %v8693_v48 }
 0xc70   :  { %3801 = vmatprep.subr.mxu1 %v8686_v44  ;;  %3731 = vmatpush1.msra.mxu0 %v8689_v2  ;;  %v10794_v44 = vld [vmem:[#allocation20_spill] sm:$0xff] }
 0xc71   :  { %3764 = vmatprep.mubr.f32.mxu0 %v9843_v23  ;;  %3802 = vmatpush1.msra.mxu1 %v8693_v48  ;;  %v221_v24 = vmul.f32 %v10633_v28, %v10794_v44  ;;  %v222_v48 = vmul.f32 %v10634_v32, %v10794_v44  ;;  %v223_v42 = vmul.f32 %v10636_v10, %v10794_v44 }
 0xc72   :  { %3835 = vmatprep.mubr.f32.mxu1 %v9843_v23  ;;  %3867 = vmatprep.subr.mxu0 %v8065_v56 }
 0xc73   :  { %3938 = vmatprep.subr.mxu1 %v8068_v0  ;;  %v275_v0 = vadd.f32 %v10635_v3, %v221_v24  ;;  %v277_v32 = vadd.f32 %v9988_v59, %v223_v42  ;;  %v224_v24 = vmul.f32 %v9989_v50, %v10794_v44 }
 0xcbb   :  { %v4373_v46 = vpop.xlane.xlu0 %4372 }
 0xcbc   :  { %v4390_v63 = vadd.f32 %v8071_v54, %v4373_v46 }
 0xcbe   :  { %4399 = vst.msk [vmem:[%s8994_s9 + $0x28] sm:$0xff] %vm4393_vm0, %v4390_v63  ;;  %v276_v63 = vadd.f32 %v10637_v21, %v222_v48 }
 0xcef   :  { %v8704_v2 = vpop.f32.mrf.mxu0  ;;  %v8710_v15 = vpop.f32.mrf.mxu1 }
 0xcf1   :  { %v8712_v56 = vpop.f32.mrf.mxu0  ;;  %v8718_v49 = vpop.f32.mrf.mxu1 }
 0xd10   :  { %v3599_v54 = vpop.f32.mrf.mxu0 }
 0xd11   :  { %v3675_v46 = vadd.f32 %v3599_v54, %v275_v0  ;;  %v3670_v58 = vpop.f32.mrf.mxu1  ;;  %v278_v54 = vadd.f32 %v6045_v57, %v224_v24 }
 0xd12   :  { %v3601_v4 = vpop.f32.mrf.mxu0  ;;  %v3677_v33 = vadd.f32 %v3670_v58, %v277_v32 }
 0xd13   :  { %v3679_v28 = vmul.f32 0.5, %v3675_v46  ;;  %v3676_v31 = vadd.f32 %v3601_v4, %v276_v63  ;;  %v3672_v0 = vpop.f32.mrf.mxu1 }
 0xd14   :  { %v3678_v48 = vadd.f32 %v3672_v0, %v278_v54  ;;  %v10825_v54 = vld [vmem:[#allocation40_spill] sm:$0xff] }
 0xd15   :  { %4581 = vtanh.f32 %v3679_v28  ;;  %v3680_v9 = vmul.f32 0.5, %v3676_v31 }
 0xd16   :  { %v3682_v21 = vmul.f32 0.5, %v3678_v48  ;;  %v10826_v48 = vld [vmem:[#allocation41_spill] sm:$0xff] }
 0xd17   :  { %4583 = vtanh.f32 %v3680_v9 }
 0xd18   :  { %4585 = vtanh.f32 %v3677_v33 }
 0xd19   :  { %4587 = vtanh.f32 %v3682_v21  ;;  %v10797_v21 = vld [vmem:[#allocation184_spill] sm:$0xff] }
 0xd22   :  { %v4582_v10 = vpop.eup %4581 }
 0xd23   :  { %v3687_v3 = vmul.f32 0.5, %v4582_v10  ;;  %v10796_v10 = vld [vmem:[#allocation183_spill] sm:$0xff] }
 0xd24   :  { %v4584_v46 = vpop.eup %4583 }
 0xd25   :  { %v3691_v4 = vadd.f32 0.5, %v3687_v3  ;;  %v3688_v63 = vmul.f32 0.5, %v4584_v46  ;;  %v4586_v42 = vpop.eup %4585  ;;  %v10795_v3 = vld [vmem:[#allocation182_spill] sm:$0xff] }
 0xd26   :  { %v4588_v33 = vpop.eup %4587  ;;  %v10827_v46 = vld [vmem:[#allocation42_spill] sm:$0xff] }
 0xd27   :  { %v3692_v28 = vadd.f32 0.5, %v3688_v63  ;;  %v3696_v9 = vmul.f32 %v4586_v42, %v3691_v4  ;;  %v3690_v31 = vmul.f32 0.5, %v4588_v33  ;;  %v10828_v4 = vld [vmem:[#allocation43_spill] sm:$0xff]  ;;  %v10829_v63 = vld [vmem:[#allocation44_spill] sm:$0xff]  ;;  %v10831_v42 = vld [vmem:[#allocation46_spill] sm:$0xff] }
 0xd29   :  { %v3695_v32 = vmul.f32 %v3692_v28, %v8099_v41  ;;  %v3694_v44 = vadd.f32 0.5, %v3690_v31  ;;  %v10798_v41 = vld [vmem:[#allocation19_spill] sm:$0xff]  ;;  %v10830_v28 = vld [vmem:[#allocation45_spill] sm:$0xff] }
 0xd2b   :  { %v8725_v58 = vadd.f32 %v3696_v9, %v3695_v32  ;;  %v10832_v32 = vld [vmem:[#allocation47_spill] sm:$0xff]  ;;  %v10833_v9 = vld [vmem:[#allocation17_spill] sm:$0xff] }
 0xd2c   :  { %v3454_v33 = vadd.f32 %v8704_v2, %v10833_v9  ;;  %v3527_v2 = vadd.f32 %v8718_v49, %v6140_v47 }
 0xd2d   :  { %4589 = vtanh.f32 %v8725_v58 }
 0xd3a   :  { %v4590_v24 = vpop.eup %4589 }
 0xd3b   :  { %v8728_v0 = vmul.f32 %v4590_v24, %v3694_v44  ;;  %v10834_v44 = vld [vmem:[#allocation18_spill] sm:$0xff] }
 0xd3c   :  { %v3456_v24 = vadd.f32 %v8712_v56, %v10834_v44 }
 0xd3d   :  { %3765 = vmatmul.mubr.f32.vlgmr.msra.gmra.mxu0 %v8728_v0  ;;  %3836 = vmatmul.mubr.f32.vlgmr.msra.gmra.mxu1 %v8728_v0 }
 0xd3e   :  { %3868 = vmatpush1.msra.mxu0 %v8106_v12  ;;  %3939 = vmatpush1.msra.mxu1 %v8109_v51  ;;  %v10799_v12 = vld [vmem:[#allocation21_spill] sm:$0xff]  ;;  %v10800_v51 = vld [vmem:[#allocation22_spill] sm:$0xff] }
 0xd3f   :  { %3869 = vmatprep.subr.mxu0 %v8112_v17  ;;  %3940 = vmatprep.subr.mxu1 %v8115_v62  ;;  %v10801_v17 = vld [vmem:[#allocation23_spill] sm:$0xff]  ;;  %v10802_v62 = vld [vmem:[#allocation24_spill] sm:$0xff] }
 0xd40   :  { %3870 = vmatpush1.msra.mxu0 %v8118_v22  ;;  %3941 = vmatpush1.msra.mxu1 %v8121_v61  ;;  %v10803_v22 = vld [vmem:[#allocation25_spill] sm:$0xff]  ;;  %v10804_v61 = vld [vmem:[#allocation26_spill] sm:$0xff] }
 0xd41   :  { %3871 = vmatprep.subr.mxu0 %v8124_v16  ;;  %3942 = vmatprep.subr.mxu1 %v8127_v6  ;;  %v10805_v16 = vld [vmem:[#allocation27_spill] sm:$0xff]  ;;  %v10806_v6 = vld [vmem:[#allocation28_spill] sm:$0xff] }
 0xd42   :  { %3872 = vmatpush1.msra.mxu0 %v8130_v1  ;;  %3943 = vmatpush1.msra.mxu1 %v8133_v53  ;;  %v10807_v1 = vld [vmem:[#allocation29_spill] sm:$0xff]  ;;  %v10808_v53 = vld [vmem:[#allocation30_spill] sm:$0xff] }
 0xd43   :  { %3873 = vmatprep.subr.mxu0 %v8136_v29  ;;  %3944 = vmatprep.subr.mxu1 %v8139_v36  ;;  %v10809_v29 = vld [vmem:[#allocation31_spill] sm:$0xff]  ;;  %v10810_v36 = vld [vmem:[#allocation32_spill] sm:$0xff] }
 0xd44   :  { %3874 = vmatpush1.msra.mxu0 %v8142_v30  ;;  %3945 = vmatpush1.msra.mxu1 %v8145_v14  ;;  %v10811_v30 = vld [vmem:[#allocation33_spill] sm:$0xff]  ;;  %v10812_v14 = vld [vmem:[#allocation34_spill] sm:$0xff] }
 0xd45   :  { %3875 = vmatprep.subr.mxu0 %v8148_v38  ;;  %3946 = vmatprep.subr.mxu1 %v8151_v7  ;;  %v10813_v38 = vld [vmem:[#allocation35_spill] sm:$0xff]  ;;  %v10814_v7 = vld [vmem:[#allocation36_spill] sm:$0xff] }
 0xd46   :  { %3876 = vmatpush1.msra.mxu0 %v8154_v13  ;;  %3947 = vmatpush1.msra.mxu1 %v8157_v25  ;;  %v10815_v13 = vld [vmem:[#allocation37_spill] sm:$0xff]  ;;  %v10816_v25 = vld [vmem:[#allocation164_spill] sm:$0xff] }
 0xd47   :  { %3877 = vmatprep.subr.mxu0 %v8160_v43  ;;  %3948 = vmatprep.subr.mxu1 %v8163_v20  ;;  %v10817_v43 = vld [vmem:[#allocation165_spill] sm:$0xff]  ;;  %v10818_v20 = vld [vmem:[#allocation170_spill] sm:$0xff] }
 0xd48   :  { %3878 = vmatpush1.msra.mxu0 %v8166_v39  ;;  %3949 = vmatpush1.msra.mxu1 %v8169_v45  ;;  %v10819_v39 = vld [vmem:[#allocation168_spill] sm:$0xff]  ;;  %v10820_v45 = vld [vmem:[#allocation173_spill] sm:$0xff] }
 0xd49   :  { %3879 = vmatprep.subr.mxu0 %v8172_v19  ;;  %3950 = vmatprep.subr.mxu1 %v8175_v8  ;;  %v10821_v19 = vld [vmem:[#allocation175_spill] sm:$0xff]  ;;  %v10822_v8 = vld [vmem:[#allocation177_spill] sm:$0xff] }
 0xd4a   :  { %3880 = vmatpush1.msra.mxu0 %v8178_v26  ;;  %3951 = vmatpush1.msra.mxu1 %v8181_v52  ;;  %v10823_v26 = vld [vmem:[#allocation38_spill] sm:$0xff]  ;;  %v10824_v52 = vld [vmem:[#allocation39_spill] sm:$0xff] }
 0xd4b   :  { %3881 = vmatprep.subr.mxu0 %v10795_v3  ;;  %3952 = vmatprep.subr.mxu1 %v10796_v10 }
 0xd4c   :  { %3882 = vmatpush1.msra.mxu0 %v10797_v21  ;;  %3953 = vmatpush1.msra.mxu1 %v10798_v41  ;;  %v3525_v41 = vadd.f32 %v8710_v15, %v6133_v34 }
 0xd4d   :  { %3883 = vmatprep.subr.mxu0 %v10799_v12  ;;  %3954 = vmatprep.subr.mxu1 %v10800_v51 }
 0xd4e   :  { %3884 = vmatpush1.msra.mxu0 %v10801_v17  ;;  %3955 = vmatpush1.msra.mxu1 %v10802_v62 }
 0xd4f   :  { %3885 = vmatprep.subr.mxu0 %v10803_v22  ;;  %3956 = vmatprep.subr.mxu1 %v10804_v61 }
 0xd50   :  { %3886 = vmatpush1.msra.mxu0 %v10805_v16  ;;  %3957 = vmatpush1.msra.mxu1 %v10806_v6 }
 0xd51   :  { %3887 = vmatprep.subr.mxu0 %v10807_v1  ;;  %3958 = vmatprep.subr.mxu1 %v10808_v53 }
 0xd52   :  { %3888 = vmatpush1.msra.mxu0 %v10809_v29  ;;  %3959 = vmatpush1.msra.mxu1 %v10810_v36 }
 0xd53   :  { %3889 = vmatprep.subr.mxu0 %v10811_v30  ;;  %3960 = vmatprep.subr.mxu1 %v10812_v14 }
 0xd54   :  { %3890 = vmatpush1.msra.mxu0 %v10813_v38  ;;  %3961 = vmatpush1.msra.mxu1 %v10814_v7 }
 0xd55   :  { %3891 = vmatprep.subr.mxu0 %v10815_v13  ;;  %3962 = vmatprep.subr.mxu1 %v10816_v25 }
 0xd56   :  { %3892 = vmatpush1.msra.mxu0 %v10817_v43  ;;  %3963 = vmatpush1.msra.mxu1 %v10818_v20  ;;  %v8813_v20 = vld [vmem:[%s8992_s7] ss:$0 sm:$0xff] }
 0xd57   :  { %3893 = vmatprep.subr.mxu0 %v10819_v39  ;;  %3964 = vmatprep.subr.mxu1 %v10820_v45  ;;  %v10836_v45 = vld [vmem:[#allocation49_spill] sm:$0xff] }
 0xd58   :  { %3894 = vmatpush1.msra.mxu0 %v10821_v19  ;;  %3965 = vmatpush1.msra.mxu1 %v10822_v8  ;;  %v10841_v19 = vld [vmem:[#allocation54_spill] sm:$0xff]  ;;  %v10846_v8 = vld [vmem:[#allocation59_spill] sm:$0xff] }
 0xd59   :  { %3895 = vmatprep.subr.mxu0 %v10823_v26  ;;  %3966 = vmatprep.subr.mxu1 %v10824_v52  ;;  %v10847_v26 = vld [vmem:[#allocation60_spill] sm:$0xff]  ;;  %v10848_v52 = vld [vmem:[#allocation61_spill] sm:$0xff] }
 0xd5a   :  { %3896 = vmatpush1.msra.mxu0 %v10825_v54  ;;  %3967 = vmatpush1.msra.mxu1 %v10826_v48  ;;  %v10849_v54 = vld [vmem:[#allocation62_spill] sm:$0xff]  ;;  %v10850_v48 = vld [vmem:[#allocation63_spill] sm:$0xff] }
 0xd5b   :  { %3897 = vmatprep.subr.mxu0 %v10827_v46  ;;  %3968 = vmatprep.subr.mxu1 %v10828_v4  ;;  %v10851_v46 = vld [vmem:[#allocation64_spill] sm:$0xff]  ;;  %v10852_v4 = vld [vmem:[#allocation65_spill] sm:$0xff] }
 0xd5c   :  { %3898 = vmatpush1.msra.mxu0 %v10829_v63  ;;  %3969 = vmatpush1.msra.mxu1 %v10830_v28  ;;  %v10853_v63 = vld [vmem:[#allocation66_spill] sm:$0xff]  ;;  %v10854_v28 = vld [vmem:[#allocation67_spill] sm:$0xff] }
 0xd5d   :  { %3931 = vmatprep.mubr.f32.mxu0 %v9843_v23  ;;  %4002 = vmatprep.mubr.f32.mxu1 %v9843_v23 }
 0xd5e   :  { %4013 = vmatprep.subr.mxu0 %v10831_v42  ;;  %4084 = vmatprep.subr.mxu1 %v10832_v32  ;;  %v10855_v42 = vld [vmem:[#allocation68_spill] sm:$0xff]  ;;  %v10856_v32 = vld [vmem:[#allocation69_spill] sm:$0xff] }
 0xdfd   :  { %v3766_v31 = vpop.f32.mrf.mxu0  ;;  %v3837_v10 = vpop.f32.mrf.mxu1 }
 0xdfe   :  { %v3842_v3 = vadd.f32 %v3766_v31, %v3454_v33  ;;  %v3844_v17 = vadd.f32 %v3837_v10, %v3525_v41  ;;  %v10857_v33 = vld [vmem:[#allocation70_spill] sm:$0xff]  ;;  %v10858_v31 = vld [vmem:[#allocation71_spill] sm:$0xff]  ;;  %v10863_v41 = vld [vmem:[#allocation76_spill] sm:$0xff] }
 0xdff   :  { %v3768_v21 = vpop.f32.mrf.mxu0  ;;  %v3839_v22 = vpop.f32.mrf.mxu1  ;;  %v10861_v10 = vld [vmem:[#allocation74_spill] sm:$0xff] }
 0xe00   :  { %v3846_v12 = vmul.f32 0.5, %v3842_v3  ;;  %v3843_v51 = vadd.f32 %v3768_v21, %v3456_v24  ;;  %v3845_v61 = vadd.f32 %v3839_v22, %v3527_v2  ;;  %v10859_v24 = vld [vmem:[#allocation72_spill] sm:$0xff]  ;;  %v10860_v3 = vld [vmem:[#allocation73_spill] sm:$0xff]  ;;  %v10862_v21 = vld [vmem:[#allocation75_spill] sm:$0xff] }
 0xe01   :  { %v10868_v22 = vld [vmem:[#allocation81_spill] sm:$0xff]  ;;  %v10869_v2 = vld [vmem:[#allocation82_spill] sm:$0xff] }
 0xe02   :  { %4591 = vtanh.f32 %v3846_v12  ;;  %v3847_v62 = vmul.f32 0.5, %v3843_v51  ;;  %v3849_v16 = vmul.f32 0.5, %v3845_v61  ;;  %v10864_v12 = vld [vmem:[#allocation77_spill] sm:$0xff]  ;;  %v10865_v51 = vld [vmem:[#allocation78_spill] sm:$0xff]  ;;  %v10870_v61 = vld [vmem:[#allocation83_spill] sm:$0xff] }
 0xe04   :  { %4593 = vtanh.f32 %v3847_v62  ;;  %v10867_v62 = vld [vmem:[#allocation80_spill] sm:$0xff] }
 0xe05   :  { %4595 = vtanh.f32 %v3844_v17  ;;  %v10866_v17 = vld [vmem:[#allocation79_spill] sm:$0xff] }
 0xe06   :  { %4597 = vtanh.f32 %v3849_v16  ;;  %v10871_v16 = vld [vmem:[#allocation84_spill] sm:$0xff] }
 0xe0f   :  { %v4592_v56 = vpop.eup %4591 }
 0xe10   :  { %v3854_v6 = vmul.f32 0.5, %v4592_v56  ;;  %v10872_v56 = vld [vmem:[#allocation85_spill] sm:$0xff] }
 0xe11   :  { %v4594_v1 = vpop.eup %4593 }
 0xe12   :  { %v3858_v53 = vadd.f32 0.5, %v3854_v6  ;;  %v3855_v29 = vmul.f32 0.5, %v4594_v1  ;;  %v4596_v15 = vpop.eup %4595  ;;  %v10873_v6 = vld [vmem:[#allocation86_spill] sm:$0xff]  ;;  %v10874_v1 = vld [vmem:[#allocation87_spill] sm:$0xff] }
 0xe13   :  { %v4598_v7 = vpop.eup %4597 }
 0xe14   :  { %v3859_v36 = vadd.f32 0.5, %v3855_v29  ;;  %v3863_v30 = vmul.f32 %v4596_v15, %v3858_v53  ;;  %v3857_v13 = vmul.f32 0.5, %v4598_v7  ;;  %v10875_v53 = vld [vmem:[#allocation88_spill] sm:$0xff]  ;;  %v10876_v29 = vld [vmem:[#allocation89_spill] sm:$0xff]  ;;  %v10877_v15 = vld [vmem:[#allocation90_spill] sm:$0xff] }
 0xe15   :  { %v10881_v7 = vld [vmem:[#allocation94_spill] sm:$0xff] }
 0xe16   :  { %v3862_v14 = vmul.f32 %v3859_v36, %v8309_v5  ;;  %v3861_v49 = vadd.f32 0.5, %v3857_v13  ;;  %v10835_v5 = vld [vmem:[#allocation48_spill] sm:$0xff]  ;;  %v10878_v36 = vld [vmem:[#allocation91_spill] sm:$0xff] }
 0xe17   :  { %v10882_v13 = vld [vmem:[#allocation95_spill] sm:$0xff] }
 0xe18   :  { %v8807_v38 = vadd.f32 %v3863_v30, %v3862_v14  ;;  %v10879_v30 = vld [vmem:[#allocation92_spill] sm:$0xff]  ;;  %v10880_v14 = vld [vmem:[#allocation93_spill] sm:$0xff] }
 0xe1a   :  { %4599 = vtanh.f32 %v8807_v38 }
 0xe27   :  { %v4600_v25 = vpop.eup %4599 }
 0xe28   :  { %v3866_v43 = vmul.f32 %v4600_v25, %v3861_v49  ;;  %v10883_v49 = vld [vmem:[#allocation96_spill] sm:$0xff]  ;;  %v10884_v25 = vld [vmem:[#allocation97_spill] sm:$0xff] }
 0xe2a   :  { %3932 = vmatmul.mubr.f32.vlgmr.msra.gmra.mxu0 %v3866_v43  ;;  %4003 = vmatmul.mubr.f32.vlgmr.msra.gmra.mxu1 %v3866_v43  ;;  %v4360_v39 = vmul.f32 %v8813_v20, %v3866_v43  ;;  %v10885_v43 = vld [vmem:[#allocation98_spill] sm:$0xff] }
 0xe2b   :  { %4014 = vmatpush1.msra.mxu0 %v8313_v55  ;;  %4085 = vmatpush1.msra.mxu1 %v8316_v37  ;;  %v10837_v55 = vld [vmem:[#allocation50_spill] sm:$0xff]  ;;  %v10838_v37 = vld [vmem:[#allocation51_spill] sm:$0xff] }
 0xe2c   :  { %4015 = vmatprep.subr.mxu0 %v8319_v27  ;;  %4086 = vmatprep.subr.mxu1 %v8322_v35  ;;  %v10839_v27 = vld [vmem:[#allocation52_spill] sm:$0xff]  ;;  %v10840_v35 = vld [vmem:[#allocation53_spill] sm:$0xff] }
 0xe2d   :  { %4374 = vadd.xlane.f32.xlu1 %v4360_v39  ;;  %4016 = vmatpush1.msra.mxu0 %v8325_v40  ;;  %v10842_v40 = vld [vmem:[#allocation55_spill] sm:$0xff] }
 0xe2e   :  { %4087 = vmatpush1.msra.mxu1 %v8328_v60  ;;  %4017 = vmatprep.subr.mxu0 %v8331_v18  ;;  %v10843_v60 = vld [vmem:[#allocation56_spill] sm:$0xff]  ;;  %v10844_v18 = vld [vmem:[#allocation57_spill] sm:$0xff]  ;;  %v10886_v39 = vld [vmem:[#allocation99_spill] sm:$0xff] }
 0xe2f   :  { %4088 = vmatprep.subr.mxu1 %v8334_v11  ;;  %4018 = vmatpush1.msra.mxu0 %v10835_v5  ;;  %v10845_v11 = vld [vmem:[#allocation58_spill] sm:$0xff]  ;;  %v10887_v5 = vld [vmem:[#allocation100_spill] sm:$0xff] }
 0xe30   :  { %4089 = vmatpush1.msra.mxu1 %v10836_v45  ;;  %4019 = vmatprep.subr.mxu0 %v10837_v55  ;;  %v10888_v45 = vld [vmem:[#allocation101_spill] sm:$0xff]  ;;  %v10889_v55 = vld [vmem:[#allocation102_spill] sm:$0xff] }
 0xe31   :  { %4090 = vmatprep.subr.mxu1 %v10838_v37  ;;  %4020 = vmatpush1.msra.mxu0 %v10839_v27  ;;  %v10890_v37 = vld [vmem:[#allocation103_spill] sm:$0xff]  ;;  %v10891_v27 = vld [vmem:[#allocation104_spill] sm:$0xff] }
 0xe32   :  { %4091 = vmatpush1.msra.mxu1 %v10840_v35  ;;  %4021 = vmatprep.subr.mxu0 %v10841_v19  ;;  %v10892_v35 = vld [vmem:[#allocation105_spill] sm:$0xff]  ;;  %v10893_v19 = vld [vmem:[#allocation106_spill] sm:$0xff] }
 0xe33   :  { %4092 = vmatprep.subr.mxu1 %v10842_v40  ;;  %4022 = vmatpush1.msra.mxu0 %v10843_v60  ;;  %v10894_v40 = vld [vmem:[#allocation107_spill] sm:$0xff]  ;;  %v10895_v60 = vld [vmem:[#allocation108_spill] sm:$0xff] }
 0xe34   :  { %4093 = vmatpush1.msra.mxu1 %v10844_v18  ;;  %4023 = vmatprep.subr.mxu0 %v10845_v11  ;;  %v10896_v18 = vld [vmem:[#allocation109_spill] sm:$0xff]  ;;  %v10897_v11 = vld [vmem:[#allocation110_spill] sm:$0xff] }
 0xe35   :  { %4094 = vmatprep.subr.mxu1 %v10846_v8  ;;  %4024 = vmatpush1.msra.mxu0 %v10847_v26  ;;  %v10898_v8 = vld [vmem:[#allocation111_spill] sm:$0xff]  ;;  %v10900_v26 = vld [vmem:[#allocation113_spill] sm:$0xff] }
 0xe36   :  { %4095 = vmatpush1.msra.mxu1 %v10848_v52  ;;  %4025 = vmatprep.subr.mxu0 %v10849_v54  ;;  %v10901_v52 = vld [vmem:[#allocation114_spill] sm:$0xff]  ;;  %v10902_v54 = vld [vmem:[#allocation115_spill] sm:$0xff] }
 0xe37   :  { %4096 = vmatprep.subr.mxu1 %v10850_v48  ;;  %4026 = vmatpush1.msra.mxu0 %v10851_v46  ;;  %v10903_v48 = vld [vmem:[#allocation116_spill] sm:$0xff]  ;;  %v10904_v46 = vld [vmem:[#allocation117_spill] sm:$0xff] }
 0xe38   :  { %4097 = vmatpush1.msra.mxu1 %v10852_v4  ;;  %4027 = vmatprep.subr.mxu0 %v10853_v63  ;;  %v10905_v4 = vld [vmem:[#allocation118_spill] sm:$0xff]  ;;  %v10906_v63 = vld [vmem:[#allocation119_spill] sm:$0xff] }
 0xe39   :  { %4098 = vmatprep.subr.mxu1 %v10854_v28  ;;  %4028 = vmatpush1.msra.mxu0 %v10855_v42  ;;  %v10907_v28 = vld [vmem:[#allocation120_spill] sm:$0xff]  ;;  %v10908_v42 = vld [vmem:[#allocation121_spill] sm:$0xff] }
 0xe3a   :  { %4099 = vmatpush1.msra.mxu1 %v10856_v32  ;;  %4029 = vmatprep.subr.mxu0 %v10857_v33  ;;  %v10909_v32 = vld [vmem:[#allocation122_spill] sm:$0xff]  ;;  %v10910_v33 = vld [vmem:[#allocation123_spill] sm:$0xff] }
 0xe3b   :  { %4100 = vmatprep.subr.mxu1 %v10858_v31  ;;  %4030 = vmatpush1.msra.mxu0 %v10859_v24  ;;  %v10911_v31 = vld [vmem:[#allocation124_spill] sm:$0xff]  ;;  %v10912_v24 = vld [vmem:[#allocation125_spill] sm:$0xff] }
 0xe3c   :  { %4101 = vmatpush1.msra.mxu1 %v10860_v3  ;;  %4031 = vmatprep.subr.mxu0 %v10861_v10  ;;  %v10913_v3 = vld [vmem:[#allocation126_spill] sm:$0xff]  ;;  %v10914_v10 = vld [vmem:[#allocation127_spill] sm:$0xff] }
 0xe3d   :  { %4102 = vmatprep.subr.mxu1 %v10862_v21  ;;  %4032 = vmatpush1.msra.mxu0 %v10863_v41  ;;  %v10915_v21 = vld [vmem:[#allocation128_spill] sm:$0xff]  ;;  %v10916_v41 = vld [vmem:[#allocation129_spill] sm:$0xff] }
 0xe3e   :  { %4103 = vmatpush1.msra.mxu1 %v10864_v12  ;;  %4033 = vmatprep.subr.mxu0 %v10865_v51  ;;  %v10917_v12 = vld [vmem:[#allocation130_spill] sm:$0xff]  ;;  %v10918_v51 = vld [vmem:[#allocation131_spill] sm:$0xff] }
 0xe3f   :  { %4104 = vmatprep.subr.mxu1 %v10866_v17  ;;  %4034 = vmatpush1.msra.mxu0 %v10867_v62  ;;  %v10919_v17 = vld [vmem:[#allocation132_spill] sm:$0xff]  ;;  %v10920_v62 = vld [vmem:[#allocation133_spill] sm:$0xff] }
 0xe40   :  { %4105 = vmatpush1.msra.mxu1 %v10868_v22  ;;  %4035 = vmatprep.subr.mxu0 %v10869_v2  ;;  %v10921_v22 = vld [vmem:[#allocation134_spill] sm:$0xff]  ;;  %v10922_v2 = vld [vmem:[#allocation135_spill] sm:$0xff] }
 0xe41   :  { %4106 = vmatprep.subr.mxu1 %v10870_v61  ;;  %4036 = vmatpush1.msra.mxu0 %v10871_v16  ;;  %v10923_v61 = vld [vmem:[#allocation136_spill] sm:$0xff]  ;;  %v10924_v16 = vld [vmem:[#allocation137_spill] sm:$0xff] }
 0xe42   :  { %4107 = vmatpush1.msra.mxu1 %v10872_v56  ;;  %4037 = vmatprep.subr.mxu0 %v10873_v6  ;;  %v10925_v56 = vld [vmem:[#allocation138_spill] sm:$0xff]  ;;  %v10926_v6 = vld [vmem:[#allocation139_spill] sm:$0xff] }
 0xe43   :  { %4108 = vmatprep.subr.mxu1 %v10874_v1  ;;  %4038 = vmatpush1.msra.mxu0 %v10875_v53  ;;  %v10927_v1 = vld [vmem:[#allocation140_spill] sm:$0xff]  ;;  %v10928_v53 = vld [vmem:[#allocation141_spill] sm:$0xff] }
 0xe44   :  { %4109 = vmatpush1.msra.mxu1 %v10876_v29  ;;  %4039 = vmatprep.subr.mxu0 %v10877_v15  ;;  %v10929_v29 = vld [vmem:[#allocation142_spill] sm:$0xff]  ;;  %v10930_v15 = vld [vmem:[#allocation143_spill] sm:$0xff] }
 0xe45   :  { %4110 = vmatprep.subr.mxu1 %v10878_v36  ;;  %4040 = vmatpush1.msra.mxu0 %v10879_v30  ;;  %v10931_v36 = vld [vmem:[#allocation144_spill] sm:$0xff]  ;;  %v10932_v30 = vld [vmem:[#allocation145_spill] sm:$0xff] }
 0xe46   :  { %4111 = vmatpush1.msra.mxu1 %v10880_v14  ;;  %4041 = vmatprep.subr.mxu0 %v10881_v7  ;;  %v10933_v14 = vld [vmem:[#allocation146_spill] sm:$0xff]  ;;  %v10934_v7 = vld [vmem:[#allocation147_spill] sm:$0xff] }
 0xe47   :  { %4112 = vmatprep.subr.mxu1 %v10882_v13  ;;  %4042 = vmatpush1.msra.mxu0 %v10883_v49  ;;  %v10935_v13 = vld [vmem:[#allocation148_spill] sm:$0xff]  ;;  %v10936_v49 = vld [vmem:[#allocation149_spill] sm:$0xff] }
 0xe48   :  { %4113 = vmatpush1.msra.mxu1 %v10884_v25  ;;  %4043 = vmatprep.subr.mxu0 %v10885_v43  ;;  %v10937_v25 = vld [vmem:[#allocation150_spill] sm:$0xff]  ;;  %v10938_v43 = vld [vmem:[#allocation151_spill] sm:$0xff] }
 0xe49   :  { %4114 = vmatprep.subr.mxu1 %v10886_v39  ;;  %4044 = vmatpush1.msra.mxu0 %v10887_v5  ;;  %v10939_v39 = vld [vmem:[#allocation152_spill] sm:$0xff]  ;;  %v10940_v5 = vld [vmem:[#allocation153_spill] sm:$0xff] }
 0xe4a   :  { %4077 = vmatprep.mubr.f32.mxu0 %v9843_v23  ;;  %4115 = vmatpush1.msra.mxu1 %v10888_v45  ;;  %v10941_v45 = vld [vmem:[#allocation154_spill] sm:$0xff] }
 0xe4b   :  { %4148 = vmatprep.mubr.f32.mxu1 %v9843_v23  ;;  %4078 = vmatmul.mubr.f32.vlgmr.msra.gmra.mxu0 %v8728_v0 }
 0xe4c   :  { %4149 = vmatmul.mubr.f32.vlgmr.msra.gmra.mxu1 %v8728_v0  ;;  %4180 = vmatprep.subr.mxu0 %v10889_v55  ;;  %v10899_v0 = vld [vmem:[#allocation112_spill] sm:$0xff]  ;;  %v10942_v55 = vld [vmem:[#allocation155_spill] sm:$0xff] }
 0xe4d   :  { %4251 = vmatprep.subr.mxu1 %v10890_v37  ;;  %4181 = vmatpush1.msra.mxu0 %v10891_v27  ;;  %v10943_v37 = vld [vmem:[#allocation156_spill] sm:$0xff]  ;;  %v10944_v27 = vld [vmem:[#allocation157_spill] sm:$0xff] }
 0xe4e   :  { %4252 = vmatpush1.msra.mxu1 %v10892_v35  ;;  %4182 = vmatprep.subr.mxu0 %v10893_v19  ;;  %v10945_v35 = vld [vmem:[#allocation158_spill] sm:$0xff]  ;;  %v10946_v19 = vld [vmem:[#allocation159_spill] sm:$0xff] }
 0xe4f   :  { %4253 = vmatprep.subr.mxu1 %v10894_v40  ;;  %4183 = vmatpush1.msra.mxu0 %v10895_v60  ;;  %v10947_v40 = vld [vmem:[#allocation160_spill] sm:$0xff]  ;;  %v10948_v60 = vld [vmem:[#allocation161_spill] sm:$0xff] }
 0xe50   :  { %4254 = vmatpush1.msra.mxu1 %v10896_v18  ;;  %4184 = vmatprep.subr.mxu0 %v10897_v11  ;;  %v10949_v18 = vld [vmem:[#allocation162_spill] sm:$0xff]  ;;  %v10950_v11 = vld [vmem:[#allocation163_spill] sm:$0xff] }
 0xe51   :  { %4255 = vmatprep.subr.mxu1 %v10898_v8  ;;  %4185 = vmatpush1.msra.mxu0 %v10899_v0  ;;  %v10951_v8 = vld [vmem:[#allocation174_spill] sm:$0xff]  ;;  %v10952_v0 = vld [vmem:[#allocation176_spill] sm:$0xff] }
 0xe52   :  { %4256 = vmatpush1.msra.mxu1 %v10900_v26  ;;  %4186 = vmatprep.subr.mxu0 %v10901_v52  ;;  %v8948_v52 = vld [vmem:[#allocation3] ss:$0 sm:$0xff] }
 0xe53   :  { %4257 = vmatprep.subr.mxu1 %v10902_v54  ;;  %4187 = vmatpush1.msra.mxu0 %v10903_v48 }
 0xe54   :  { %4258 = vmatpush1.msra.mxu1 %v10904_v46  ;;  %4188 = vmatprep.subr.mxu0 %v10905_v4  ;;  %v10953_v46 = vld [vmem:[#allocation186_spill] sm:$0xff] }
 0xe55   :  { %4259 = vmatprep.subr.mxu1 %v10906_v63  ;;  %4189 = vmatpush1.msra.mxu0 %v10907_v28  ;;  %v10954_v4 = vld [vmem:[#allocation166_spill] sm:$0xff]  ;;  %v10955_v28 = vld [vmem:[#allocation167_spill] sm:$0xff] }
 0xe56   :  { %4260 = vmatpush1.msra.mxu1 %v10908_v42  ;;  %4190 = vmatprep.subr.mxu0 %v10909_v32  ;;  %v225_v63 = vmul.f32 %v10954_v4, %v10953_v46  ;;  %v226_v42 = vmul.f32 %v10955_v28, %v10953_v46 }
 0xe57   :  { %4261 = vmatprep.subr.mxu1 %v10910_v33  ;;  %4191 = vmatpush1.msra.mxu0 %v10911_v31 }
 0xe58   :  { %4262 = vmatpush1.msra.mxu1 %v10912_v24  ;;  %4192 = vmatprep.subr.mxu0 %v10913_v3 }
 0xe59   :  { %4263 = vmatprep.subr.mxu1 %v10914_v10  ;;  %4193 = vmatpush1.msra.mxu0 %v10915_v21  ;;  %v10957_v10 = vld [vmem:[#allocation171_spill] sm:$0xff] }
 0xe5a   :  { %4264 = vmatpush1.msra.mxu1 %v10916_v41  ;;  %4194 = vmatprep.subr.mxu0 %v10917_v12  ;;  %v227_v21 = vmul.f32 %v10957_v10, %v10953_v46  ;;  %v10958_v41 = vld [vmem:[#allocation172_spill] sm:$0xff] }
 0xe5b   :  { %4265 = vmatprep.subr.mxu1 %v10918_v51  ;;  %4195 = vmatpush1.msra.mxu0 %v10919_v17  ;;  %v280_v12 = vadd.f32 %v10958_v41, %v226_v42 }
 0xe5c   :  { %4266 = vmatpush1.msra.mxu1 %v10920_v62  ;;  %4196 = vmatprep.subr.mxu0 %v10921_v22 }
 0xe5d   :  { %4267 = vmatprep.subr.mxu1 %v10922_v2  ;;  %4197 = vmatpush1.msra.mxu0 %v10923_v61  ;;  %v281_v61 = vadd.f32 %v9988_v59, %v227_v21 }
 0xe5e   :  { %4268 = vmatpush1.msra.mxu1 %v10924_v16  ;;  %4198 = vmatprep.subr.mxu0 %v10925_v56 }
 0xe5f   :  { %4269 = vmatprep.subr.mxu1 %v10926_v6  ;;  %4199 = vmatpush1.msra.mxu0 %v10927_v1  ;;  %v228_v6 = vmul.f32 %v9989_v50, %v10953_v46 }
 0xe60   :  { %4270 = vmatpush1.msra.mxu1 %v10928_v53  ;;  %4200 = vmatprep.subr.mxu0 %v10929_v29 }
 0xe61   :  { %4271 = vmatprep.subr.mxu1 %v10930_v15  ;;  %4201 = vmatpush1.msra.mxu0 %v10931_v36  ;;  %v282_v53 = vadd.f32 %v6045_v57, %v228_v6 }
 0xe62   :  { %4272 = vmatpush1.msra.mxu1 %v10932_v30  ;;  %4202 = vmatprep.subr.mxu0 %v10933_v14 }
 0xe63   :  { %4273 = vmatprep.subr.mxu1 %v10934_v7  ;;  %4203 = vmatpush1.msra.mxu0 %v10935_v13 }
 0xe64   :  { %4274 = vmatpush1.msra.mxu1 %v10936_v49  ;;  %4204 = vmatprep.subr.mxu0 %v10937_v25 }
 0xe65   :  { %4275 = vmatprep.subr.mxu1 %v10938_v43  ;;  %4205 = vmatpush1.msra.mxu0 %v10939_v39 }
 0xe66   :  { %4276 = vmatpush1.msra.mxu1 %v10940_v5  ;;  %4206 = vmatprep.subr.mxu0 %v10941_v45 }
 0xe67   :  { %4277 = vmatprep.subr.mxu1 %v10942_v55  ;;  %4207 = vmatpush1.msra.mxu0 %v10943_v37 }
 0xe68   :  { %4278 = vmatpush1.msra.mxu1 %v10944_v27  ;;  %4208 = vmatprep.subr.mxu0 %v10945_v35 }
 0xe69   :  { %4279 = vmatprep.subr.mxu1 %v10946_v19  ;;  %4209 = vmatpush1.msra.mxu0 %v10947_v40 }
 0xe6a   :  { %4280 = vmatpush1.msra.mxu1 %v10948_v60  ;;  %4210 = vmatprep.subr.mxu0 %v10949_v18 }
 0xe6b   :  { %4281 = vmatprep.subr.mxu1 %v10950_v11  ;;  %4211 = vmatpush1.msra.mxu0 %v10951_v8 }
 0xe6c   :  { %4244 = vmatprep.mubr.f32.mxu0 %v9843_v23  ;;  %4282 = vmatpush1.msra.mxu1 %v10952_v0 }
 0xe6d   :  { %4315 = vmatprep.mubr.f32.mxu1 %v9843_v23  ;;  %v10956_v23 = vld [vmem:[#allocation169_spill] sm:$0xff] }
 0xe6e   :  { %v279_v31 = vadd.f32 %v10956_v23, %v225_v63 }
 0xeb6   :  { %v4375_v26 = vpop.xlane.xlu1 %4374 }
 0xeb7   :  { %v4391_v54 = vadd.f32 %v8948_v52, %v4375_v26 }
 0xeb9   :  { %4400 = vst.msk [vmem:[%s8994_s9 + $0x30] sm:$0xff] %vm4393_vm0, %v4391_v54 }
 0xeea   :  { %v3933_v48 = vpop.f32.mrf.mxu0  ;;  %v4004_v32 = vpop.f32.mrf.mxu1 }
 0xeeb   :  { %v3934_v37 = vadd.f32 %v3933_v48, %v10833_v9  ;;  %v4005_v60 = vadd.f32 %v4004_v32, %v6133_v34 }
 0xeec   :  { %v3935_v33 = vpop.f32.mrf.mxu0  ;;  %v4006_v51 = vpop.f32.mrf.mxu1 }
 0xeed   :  { %v3936_v35 = vadd.f32 %v3935_v33, %v10834_v44  ;;  %v4007_v54 = vadd.f32 %v4006_v51, %v6140_v47 }
 0xf0b   :  { %v4079_v24 = vpop.f32.mrf.mxu0 }
 0xf0c   :  { %v4155_v3 = vadd.f32 %v4079_v24, %v279_v31  ;;  %v4150_v2 = vpop.f32.mrf.mxu1 }
 0xf0d   :  { %v4081_v17 = vpop.f32.mrf.mxu0  ;;  %v4157_v56 = vadd.f32 %v4150_v2, %v281_v61 }
 0xf0e   :  { %v4159_v62 = vmul.f32 0.5, %v4155_v3  ;;  %v4156_v22 = vadd.f32 %v4081_v17, %v280_v12  ;;  %v4152_v1 = vpop.f32.mrf.mxu1 }
 0xf0f   :  { %v4158_v29 = vadd.f32 %v4152_v1, %v282_v53 }
 0xf10   :  { %4601 = vtanh.f32 %v4159_v62  ;;  %v4160_v16 = vmul.f32 0.5, %v4156_v22 }
 0xf11   :  { %v4162_v15 = vmul.f32 0.5, %v4158_v29 }
 0xf12   :  { %4603 = vtanh.f32 %v4160_v16 }
 0xf13   :  { %4605 = vtanh.f32 %v4157_v56 }
 0xf14   :  { %4607 = vtanh.f32 %v4162_v15 }
 0xf1d   :  { %v4602_v36 = vpop.eup %4601 }
 0xf1e   :  { %v4167_v30 = vmul.f32 0.5, %v4602_v36 }
 0xf1f   :  { %v4604_v14 = vpop.eup %4603 }
 0xf20   :  { %v4171_v7 = vadd.f32 0.5, %v4167_v30  ;;  %v4168_v13 = vmul.f32 0.5, %v4604_v14  ;;  %v4606_v59 = vpop.eup %4605 }
 0xf21   :  { %v4608_v50 = vpop.eup %4607 }
 0xf22   :  { %v4172_v49 = vadd.f32 0.5, %v4168_v13  ;;  %v4176_v43 = vmul.f32 %v4606_v59, %v4171_v7  ;;  %v4170_v5 = vmul.f32 0.5, %v4608_v50 }
 0xf24   :  { %v4175_v25 = vmul.f32 %v4172_v49, %v8725_v58  ;;  %v4174_v45 = vadd.f32 0.5, %v4170_v5 }
 0xf26   :  { %v4177_v39 = vadd.f32 %v4176_v43, %v4175_v25 }
 0xf28   :  { %4609 = vtanh.f32 %v4177_v39  ;;  %4405 = vst [vmem:[#allocation11] sm:$0xff] %v4177_v39 }
 0xf35   :  { %v4610_v57 = vpop.eup %4609 }
 0xf36   :  { %v4179_v55 = vmul.f32 %v4610_v57, %v4174_v45 }
 0xf38   :  { %4245 = vmatmul.mubr.f32.vlgmr.msra.gmra.mxu0 %v4179_v55  ;;  %4402 = vst [vmem:[#allocation10] sm:$0xff] %v4179_v55  ;;  %4316 = vmatmul.mubr.f32.vlgmr.msra.gmra.mxu1 %v4179_v55 }
 0xff8   :  { %v4246_v27 = vpop.f32.mrf.mxu0  ;;  %v4317_v40 = vpop.f32.mrf.mxu1 }
 0xff9   :  { %v4322_v19 = vadd.f32 %v4246_v27, %v3934_v37  ;;  %v4324_v8 = vadd.f32 %v4317_v40, %v4005_v60 }
 0xffa   :  { %v4248_v58 = vpop.f32.mrf.mxu0  ;;  %v4319_v26 = vpop.f32.mrf.mxu1 }
 0xffb   :  { %v4326_v18 = vmul.f32 0.5, %v4322_v19  ;;  %v4323_v11 = vadd.f32 %v4248_v58, %v3936_v35  ;;  %v4325_v46 = vadd.f32 %v4319_v26, %v4007_v54 }
 0xffd   :  { %4611 = vtanh.f32 %v4326_v18  ;;  %v4327_v0 = vmul.f32 0.5, %v4323_v11  ;;  %v4329_v9 = vmul.f32 0.5, %v4325_v46 }
 0xfff   :  { %4613 = vtanh.f32 %v4327_v0 }
0x1000   :  { %4615 = vtanh.f32 %v4324_v8 }
0x1001   :  { %4617 = vtanh.f32 %v4329_v9 }
0x100a   :  { %v4612_v48 = vpop.eup %4611 }
0x100b   :  { %v4334_v4 = vmul.f32 0.5, %v4612_v48 }
0x100c   :  { %v4614_v44 = vpop.eup %4613 }
0x100d   :  { %v4338_v63 = vadd.f32 0.5, %v4334_v4  ;;  %v4335_v28 = vmul.f32 0.5, %v4614_v44  ;;  %v4616_v42 = vpop.eup %4615 }
0x100e   :  { %v4618_v31 = vpop.eup %4617 }
0x100f   :  { %v4339_v34 = vadd.f32 0.5, %v4335_v28  ;;  %v4343_v32 = vmul.f32 %v4616_v42, %v4338_v63  ;;  %v4337_v24 = vmul.f32 0.5, %v4618_v31 }
0x1011   :  { %v4342_v33 = vmul.f32 %v4339_v34, %v8807_v38  ;;  %v4341_v3 = vadd.f32 0.5, %v4337_v24 }
0x1013   :  { %v4344_v23 = vadd.f32 %v4343_v32, %v4342_v33 }
0x1015   :  { %4619 = vtanh.f32 %v4344_v23  ;;  %4407 = vst [vmem:[#allocation11 + $0x8] sm:$0xff] %v4344_v23 }
0x1022   :  { %v4620_v47 = vpop.eup %4619 }
0x1023   :  { %v4346_v10 = vmul.f32 %v4620_v47, %v4341_v3 }
0x1025   :  { %v4361_v21 = vmul.f32 %v8813_v20, %v4346_v10  ;;  %4404 = vst [vmem:[#allocation10 + $0x8] sm:$0xff] %v4346_v10 }
0x1027   :  { %4376 = vadd.xlane.f32.xlu0 %v4361_v21 }
0x1028   :  { %5274 = shalt.err (!%p5271_p5)
}
0x1029   :  { %s5320_s30 = smov 128   ;;  %s5321_s12 = smov 8  }
0x102a   :  { %4421 = dma.vmem_to_hbm [thread:$0]  %s4416_s26, 256, %s8995_s10, [#allocation6], %s5320_s30, %s5320_s30, %s5321_s12  }
0x102b   :  { %s5283_s14 = scalar_lea.vmem %s4428_s28, 256  ;;  %p5288_p7 = scmp.lt.s32.totalorder %s4428_s28, %s4428_s28 }
0x102c   :  { %p5284_p6 = scmp.ne.s32.totalorder %s4428_s28, %s5283_s14  ;;  %p5289_p8 = scmp.lt.s32.totalorder %s5283_s14, %s5283_s14 }
0x102e   :  { %p5290_p9 = por %p5289_p8, %p5288_p7 }
0x1030   :  { %p5291_p10 = pnand %p5290_p9, %p5284_p6 }
0x1032   :  { %5294 = shalt.err (!%p5291_p10)
}
0x1033   :  { %4433 = dma.vmem_to_hbm [thread:$0]  %s4428_s28, 256, %s8996_s11, [#allocation12], %s5320_s30, %s5320_s30, %s5321_s12  }
0x10b0   :  { %v4377_v38 = vpop.xlane.xlu0 %4376 }
0x10b1   :  { %v4392_v20 = vadd.f32 %v8948_v52, %v4377_v38 }
0x10b3   :  { %4401 = vst.msk [vmem:[%s8994_s9 + $0x38] sm:$0xff] %vm4393_vm0, %v4392_v20 }
0x10b4   :  { %5307 = dma.done.wait [#allocation6], 256  }
0x10b5   :  { %5308 = vsyncadd [#allocation6], 4294967040 }
0x10b6   :  { %5309 = dma.done.wait [#allocation12], 256  }
0x10b7   :  { %5310 = vsyncadd [#allocation12], 4294967040 }
0x10b8   :  { %4442 = vsyncpa [#allocation5], 1 }
0x10b9   :  { %4443 = vsyncpa [#allocation8], 1 }
0x10ba   :  { %4444 = vsyncpa [#allocation6], 1 }
0x10bb   :  { %4445 = vsyncpa [#allocation12], 1 }

</bundles_post_ra>
